<compile_context>
chip_gen: v7x
topology: tpu7x:2x2x1
jax: 0.10.0
libtpu: 0.0.40
codegen_flags: <defaults>
</compile_context>

<pallas_src>
import functools

import jax
import jax.numpy as jnp
from jax import lax
from jax.experimental import pallas as pl
from jax.experimental.pallas import tpu as pltpu


def _round_up(x, m):
    return (x + m - 1) // m * m


def _gatv2_kernel(att_ref, src3_ref, xt_ref, adj_ref, wr_ref, br_ref, bias_ref,
                  o_ref, *, heads, ch):
    """One GATv2Conv layer (concat over heads) + ELU for one target-row tile.

    att_ref : SMEM (1, H*C)     attention vector (head-major flatten)
    src3_ref: (H, C, N)         lin_l(x)^T + b_l  (hoisted, grid-invariant)
    xt_ref  : (T, F_in)         target-node feature row tile
    adj_ref : (T, N) bf16       adj[t, j] = 1 iff edge j -> t
    wr_ref  : (F_in, H*C)       lin_r weight       br_ref: (1, H*C)
    bias_ref: (H, C, 1)         output bias
    o_ref   : (H, C, T)         transposed output tile (lane-dense on T)
    """
    ti = xt_ref.shape[0]
    n = src3_ref.shape[2]

    src3 = src3_ref[...]                                        # (H, C, N) f32
    # Target-side projection for this row tile (per-tile MXU matmul).
    xr = jnp.dot(xt_ref[...], wr_ref[...],
                 preferred_element_type=jnp.float32) + br_ref[...]   # (T, H*C)

    adj = adj_ref[...]                                          # bf16 mask
    edge = adj > 0
    has_edge = jnp.max(adj.astype(jnp.float32), axis=1, keepdims=True) > 0.0

    alphas = []
    for h in range(heads):                  # heads / ch are small & static
        # e[t, j] = sum_c att[h,c] * leaky_relu(x_r[t, hc] + x_l[j, hc])
        e = jnp.zeros((ti, n), jnp.float32)
        for c in range(ch):
            k = h * ch + c
            z = xr[:, k:k + 1] + src3[h, c:c + 1, :]            # (T, N)
            e = e + att_ref[0, k] * jnp.maximum(z, 0.2 * z)     # att * leaky_relu
        # Masked softmax over incoming edges j of each target t.
        e = jnp.where(edge, e, jnp.float32(-1e30))
        m = jnp.max(e, axis=1, keepdims=True)
        p = jnp.exp(e - m)
        denom = jnp.sum(p, axis=1, keepdims=True)
        scale = jnp.where(has_edge, pl.reciprocal(denom, approx=True), 0.0)
        alphas.append((p * scale).astype(jnp.bfloat16))
        # TODO(synk): attention-coefficient dropout skipped (eval-mode semantics).

    alpha = jnp.stack(alphas, axis=0)                           # (H, T, N) bf16

    # Batched bf16 aggregation (f32 accumulate): out[h, c, t] = sum_j a*x_l
    out = lax.dot_general(
        src3.astype(jnp.bfloat16), alpha,
        dimension_numbers=(((2,), (2,)), ((0,), (0,))),
        preferred_element_type=jnp.float32)                     # (H, C, T)
    out = out + bias_ref[...]
    # ELU, single lane-dense store of the full transposed tile.
    o_ref[...] = jnp.where(out > 0, out, jnp.exp(jnp.minimum(out, 0.0)) - 1.0)


def _pick_tile_n(n_pad, f_in, heads, ch, budget_bytes=32 * 1024 * 1024):
    """Largest row tile in {512, 256, 128} that divides n_pad and fits VMEM."""
    hc = heads * ch
    for t in (512, 256, 128):
        if n_pad % t:
            continue
        db_tiles = 2 * (t * n_pad * 2 + t * f_in * 4) + 2 * hc * t * 4
        resident = 2 * (hc * n_pad * 4 + f_in * hc * 4)
        temps = (heads + 4) * t * n_pad * 4
        if db_tiles + resident + temps <= budget_bytes:
            return t
    return 128


def gatv2_layer(x, adj, p, *, heads, ch):
    """x: (N_pad, F_in) f32, adj: (N_pad, N_pad) bf16. Returns (H*C, N_pad)."""
    n_pad, f_in = x.shape
    hc = heads * ch
    # Hoisted, grid-invariant source projection: src3[h, c, j] = lin_l(x)[j, h*ch+c]
    src3 = (jnp.dot(x, p["wl"]) + p["bl"]).T.reshape(heads, ch, n_pad)

    tile_n = _pick_tile_n(n_pad, f_in, heads, ch)
    kernel = functools.partial(_gatv2_kernel, heads=heads, ch=ch)

    out3 = pl.pallas_call(
        kernel,
        out_shape=jax.ShapeDtypeStruct((heads, ch, n_pad), jnp.float32),
        grid=(n_pad // tile_n,),
        in_specs=[
            pl.BlockSpec(memory_space=pltpu.MemorySpace.SMEM),         # att
            pl.BlockSpec((heads, ch, n_pad), lambda i: (0, 0, 0)),     # src3
            pl.BlockSpec((tile_n, f_in), lambda i: (i, 0)),            # x tile
            pl.BlockSpec((tile_n, n_pad), lambda i: (i, 0)),           # adj tile
            pl.BlockSpec((f_in, hc), lambda i: (0, 0)),                # wr
            pl.BlockSpec((1, hc), lambda i: (0, 0)),                   # br
            pl.BlockSpec((heads, ch, 1), lambda i: (0, 0, 0)),         # bias
        ],
        out_specs=pl.BlockSpec((heads, ch, tile_n), lambda i: (0, 0, i)),
        compiler_params=pltpu.CompilerParams(
            dimension_semantics=("parallel",),
            vmem_limit_bytes=48 * 1024 * 1024),
        # TODO(synk): mark invariant inputs pipeline_mode=pl.Buffered(1) once
        # single-buffered pipeline_mode is reliably supported.
    )(p["att"], src3, x, adj, p["wr"], p["br"], p["bias3"])

    return out3.reshape(hc, n_pad)          # transposed (feature-major) output


def init_gatv2_params(key, in_ch, out_ch_per_head, heads):
    hc = heads * out_ch_per_head
    ks = jax.random.split(key, 6)

    def glorot(k, shape):
        fan_in, fan_out = shape[0], shape[-1]
        return jax.random.normal(k, shape, jnp.float32) * jnp.sqrt(2.0 / (fan_in + fan_out))

    return {
        "wl": glorot(ks[0], (in_ch, hc)),                       # lin_l (source)
        "bl": 0.01 * jax.random.normal(ks[1], (1, hc), jnp.float32),
        "wr": glorot(ks[2], (in_ch, hc)),                       # lin_r (target)
        "br": 0.01 * jax.random.normal(ks[3], (1, hc), jnp.float32),
        "att": glorot(ks[4], (heads, out_ch_per_head)).reshape(1, hc),
        "bias3": (0.01 * jax.random.normal(ks[5], (1, hc), jnp.float32)
                  ).reshape(heads, out_ch_per_head, 1),
    }


def init_gatnet_params(key, in_channels, out_channels, heads):
    k1, k2 = jax.random.split(key)
    return {
        "conv1": init_gatv2_params(k1, in_channels, out_channels, heads),
        "conv2": init_gatv2_params(k2, out_channels * heads,
                                   out_channels // heads, heads),
    }


def gatnet_forward(params, x, edge_index, *, out_channels, heads):
    """x: (batch, nodes_per_graph, in_ch); edge_index: (2, E) int32 [src; dst]."""
    b, n_per, f = x.shape
    n = b * n_per
    x_flat = x.reshape(n, f).astype(jnp.float32)

    # Pad nodes to a multiple of 128 (lane-dense output tiles, (8,128) layout).
    n_pad = _round_up(max(n, 128), 128)
    x_p = jnp.zeros((n_pad, f), jnp.float32).at[:n].set(x_flat)

    src, dst = edge_index[0], edge_index[1]
    # adj[t, j] = 1 iff edge j -> t (softmax over incoming edges); bf16 mask.
    # add_self_loops=False in the reference, so no self-loops are added.
    adj = jnp.zeros((n_pad, n_pad), jnp.bfloat16).at[dst, src].set(1.0)
    # TODO(synk): for large sparse graphs replace the dense mask with
    # scalar-prefetched per-target neighbor lists (PrefetchScalarGridSpec).

    h1_t = gatv2_layer(x_p, adj, params["conv1"], heads=heads, ch=out_channels)
    h2_t = gatv2_layer(h1_t.T, adj, params["conv2"],
                       heads=heads, ch=out_channels // heads)
    out = h2_t.T[:n]
    return out.reshape(b, n_per, out.shape[-1])


if __name__ == "__main__":
    batch = 2
    nodes_per_graph = 8
    in_channels = 8
    out_channels = 8
    heads = 2
    dropout = 0.1  # unused in eval-mode forward

    key = jax.random.PRNGKey(0)
    k_param, k_x = jax.random.split(key)

    params = init_gatnet_params(k_param, in_channels, out_channels, heads)
    x = jax.random.normal(k_x, (batch, nodes_per_graph, in_channels), jnp.float32)

    # Deterministic edge list: ring + skip-3 edges inside each graph.
    edges = []
    for g in range(batch):
        off = g * nodes_per_graph
        for j in range(nodes_per_graph):
            edges.append((off + j, off + (j + 1) % nodes_per_graph))
            edges.append((off + j, off + (j + 3) % nodes_per_graph))
    edge_index = jnp.asarray(edges, dtype=jnp.int32).T   # (2, E): row0=src, row1=dst

    fwd = jax.jit(functools.partial(gatnet_forward,
                                    out_channels=out_channels, heads=heads))
    out = fwd(params, x, edge_index)
    out = jax.block_until_ready(out)

    assert out.shape == (batch, nodes_per_graph, out_channels)
    assert bool(jnp.all(jnp.isfinite(out)))
    print("KERNEL_OK")
</pallas_src>

<mosaic_0001>
module attributes {stable_mosaic.version = 11 : i64} {
  func.func @_gatv2_kernel(%arg0: i32, %arg1: memref<1x16xf32, #tpu.memory_space<smem>>, %arg2: memref<2x8x128xf32, #tpu.memory_space<vmem>>, %arg3: memref<128x8xf32, #tpu.memory_space<vmem>>, %arg4: memref<128x128xbf16, #tpu.memory_space<vmem>>, %arg5: memref<8x16xf32, #tpu.memory_space<vmem>>, %arg6: memref<1x16xf32, #tpu.memory_space<vmem>>, %arg7: memref<2x8x1xf32, #tpu.memory_space<vmem>>, %arg8: memref<2x8x128xf32, #tpu.memory_space<vmem>>) attributes {dimension_semantics = [#tpu.dimension_semantics<parallel>], iteration_bounds = array<i64: 1>, scalar_prefetch = 0 : i64, scratch_operands = 0 : i64, tpu.core_type = #tpu.core_type<tc>, window_params = [{transform_indices = @transform_0, window_bounds = array<i64: 1, 16>}, {pipeline_mode = #tpu.pipeline_mode<synchronous>, transform_indices = @transform_1, window_bounds = array<i64: 2, 8, 128>}, {transform_indices = @transform_2, window_bounds = array<i64: 128, 8>}, {transform_indices = @transform_3, window_bounds = array<i64: 128, 128>}, {pipeline_mode = #tpu.pipeline_mode<synchronous>, transform_indices = @transform_4, window_bounds = array<i64: 8, 16>}, {pipeline_mode = #tpu.pipeline_mode<synchronous>, transform_indices = @transform_5, window_bounds = array<i64: 1, 16>}, {pipeline_mode = #tpu.pipeline_mode<synchronous>, transform_indices = @transform_6, window_bounds = array<i64: 2, 8, 1>}, {transform_indices = @transform_7, window_bounds = array<i64: 2, 8, 128>}]} {
    %c0 = arith.constant 0 : index
    %c0_0 = arith.constant 0 : index
    %c0_1 = arith.constant 0 : index
    %0 = vector.load %arg2[%c0, %c0_0, %c0_1] : memref<2x8x128xf32, #tpu.memory_space<vmem>>, vector<2x8x128xf32>
    %c0_2 = arith.constant 0 : index
    %c0_3 = arith.constant 0 : index
    %1 = vector.load %arg3[%c0_2, %c0_3] : memref<128x8xf32, #tpu.memory_space<vmem>>, vector<128x8xf32>
    %c0_4 = arith.constant 0 : index
    %c0_5 = arith.constant 0 : index
    %2 = vector.load %arg5[%c0_4, %c0_5] : memref<8x16xf32, #tpu.memory_space<vmem>>, vector<8x16xf32>
    %cst = arith.constant dense<0.000000e+00> : vector<128x16xf32>
    %3 = tpu.matmul %1, %2, %cst {dimension_numbers = #tpu.dot_dimension_numbers<[1], [0], [0], [1], [0, 0, 1, 1], [], []>} : vector<128x8xf32>, vector<8x16xf32>, vector<128x16xf32> -> vector<128x16xf32>
    %c0_6 = arith.constant 0 : index
    %c0_7 = arith.constant 0 : index
    %4 = vector.load %arg6[%c0_6, %c0_7] : memref<1x16xf32, #tpu.memory_space<vmem>>, vector<1x16xf32>
    %5 = vector.broadcast %4 : vector<1x16xf32> to vector<128x16xf32>
    %6 = arith.addf %3, %5 : vector<128x16xf32>
    %c0_8 = arith.constant 0 : index
    %c0_9 = arith.constant 0 : index
    %7 = vector.load %arg4[%c0_8, %c0_9] : memref<128x128xbf16, #tpu.memory_space<vmem>>, vector<128x128xbf16>
    %cst_10 = arith.constant 0.000000e+00 : bf16
    %8 = vector.broadcast %cst_10 : bf16 to vector<128x128xbf16>
    %9 = arith.cmpf ogt, %7, %8 : vector<128x128xbf16>
    %10 = arith.extf %7 : vector<128x128xbf16> to vector<128x128xf32>
    %cst_11 = arith.constant dense<0xFF800000> : vector<128xf32>
    %11 = vector.multi_reduction <maximumf>, %10, %cst_11 [1] : vector<128x128xf32> to vector<128xf32>
    %12 = vector.shape_cast %11 : vector<128xf32> to vector<128x1xf32>
    %cst_12 = arith.constant 0.000000e+00 : f32
    %13 = vector.broadcast %cst_12 : f32 to vector<128x1xf32>
    %14 = arith.cmpf ogt, %12, %13 : vector<128x1xf32>
    %cst_13 = arith.constant 0.000000e+00 : f32
    %15 = vector.broadcast %cst_13 : f32 to vector<128x128xf32>
    %16 = vector.extract_strided_slice %6 {offsets = [0, 0], sizes = [128, 1], strides = [1, 1]} : vector<128x16xf32> to vector<128x1xf32>
    %17 = vector.extract_strided_slice %0 {offsets = [0, 0, 0], sizes = [1, 1, 128], strides = [1, 1, 1]} : vector<2x8x128xf32> to vector<1x1x128xf32>
    %18 = vector.shape_cast %17 : vector<1x1x128xf32> to vector<1x128xf32>
    %19 = vector.broadcast %16 : vector<128x1xf32> to vector<128x128xf32>
    %20 = vector.broadcast %18 : vector<1x128xf32> to vector<128x128xf32>
    %21 = arith.addf %19, %20 : vector<128x128xf32>
    %c0_14 = arith.constant 0 : index
    %c0_15 = arith.constant 0 : index
    %22 = memref.load %arg1[%c0_14, %c0_15] : memref<1x16xf32, #tpu.memory_space<smem>>
    %cst_16 = arith.constant 2.000000e-01 : f32
    %23 = vector.broadcast %cst_16 : f32 to vector<128x128xf32>
    %24 = arith.mulf %23, %21 : vector<128x128xf32>
    %25 = arith.maximumf %21, %24 : vector<128x128xf32>
    %26 = vector.broadcast %22 : f32 to vector<128x128xf32>
    %27 = arith.mulf %26, %25 : vector<128x128xf32>
    %28 = arith.addf %15, %27 : vector<128x128xf32>
    %29 = vector.extract_strided_slice %6 {offsets = [0, 1], sizes = [128, 1], strides = [1, 1]} : vector<128x16xf32> to vector<128x1xf32>
    %30 = vector.extract_strided_slice %0 {offsets = [0, 1, 0], sizes = [1, 1, 128], strides = [1, 1, 1]} : vector<2x8x128xf32> to vector<1x1x128xf32>
    %31 = vector.shape_cast %30 : vector<1x1x128xf32> to vector<1x128xf32>
    %32 = vector.broadcast %29 : vector<128x1xf32> to vector<128x128xf32>
    %33 = vector.broadcast %31 : vector<1x128xf32> to vector<128x128xf32>
    %34 = arith.addf %32, %33 : vector<128x128xf32>
    %c0_17 = arith.constant 0 : index
    %c1 = arith.constant 1 : index
    %35 = memref.load %arg1[%c0_17, %c1] : memref<1x16xf32, #tpu.memory_space<smem>>
    %cst_18 = arith.constant 2.000000e-01 : f32
    %36 = vector.broadcast %cst_18 : f32 to vector<128x128xf32>
    %37 = arith.mulf %36, %34 : vector<128x128xf32>
    %38 = arith.maximumf %34, %37 : vector<128x128xf32>
    %39 = vector.broadcast %35 : f32 to vector<128x128xf32>
    %40 = arith.mulf %39, %38 : vector<128x128xf32>
    %41 = arith.addf %28, %40 : vector<128x128xf32>
    %42 = vector.extract_strided_slice %6 {offsets = [0, 2], sizes = [128, 1], strides = [1, 1]} : vector<128x16xf32> to vector<128x1xf32>
    %43 = vector.extract_strided_slice %0 {offsets = [0, 2, 0], sizes = [1, 1, 128], strides = [1, 1, 1]} : vector<2x8x128xf32> to vector<1x1x128xf32>
    %44 = vector.shape_cast %43 : vector<1x1x128xf32> to vector<1x128xf32>
    %45 = vector.broadcast %42 : vector<128x1xf32> to vector<128x128xf32>
    %46 = vector.broadcast %44 : vector<1x128xf32> to vector<128x128xf32>
    %47 = arith.addf %45, %46 : vector<128x128xf32>
    %c0_19 = arith.constant 0 : index
    %c2 = arith.constant 2 : index
    %48 = memref.load %arg1[%c0_19, %c2] : memref<1x16xf32, #tpu.memory_space<smem>>
    %cst_20 = arith.constant 2.000000e-01 : f32
    %49 = vector.broadcast %cst_20 : f32 to vector<128x128xf32>
    %50 = arith.mulf %49, %47 : vector<128x128xf32>
    %51 = arith.maximumf %47, %50 : vector<128x128xf32>
    %52 = vector.broadcast %48 : f32 to vector<128x128xf32>
    %53 = arith.mulf %52, %51 : vector<128x128xf32>
    %54 = arith.addf %41, %53 : vector<128x128xf32>
    %55 = vector.extract_strided_slice %6 {offsets = [0, 3], sizes = [128, 1], strides = [1, 1]} : vector<128x16xf32> to vector<128x1xf32>
    %56 = vector.extract_strided_slice %0 {offsets = [0, 3, 0], sizes = [1, 1, 128], strides = [1, 1, 1]} : vector<2x8x128xf32> to vector<1x1x128xf32>
    %57 = vector.shape_cast %56 : vector<1x1x128xf32> to vector<1x128xf32>
    %58 = vector.broadcast %55 : vector<128x1xf32> to vector<128x128xf32>
    %59 = vector.broadcast %57 : vector<1x128xf32> to vector<128x128xf32>
    %60 = arith.addf %58, %59 : vector<128x128xf32>
    %c0_21 = arith.constant 0 : index
    %c3 = arith.constant 3 : index
    %61 = memref.load %arg1[%c0_21, %c3] : memref<1x16xf32, #tpu.memory_space<smem>>
    %cst_22 = arith.constant 2.000000e-01 : f32
    %62 = vector.broadcast %cst_22 : f32 to vector<128x128xf32>
    %63 = arith.mulf %62, %60 : vector<128x128xf32>
    %64 = arith.maximumf %60, %63 : vector<128x128xf32>
    %65 = vector.broadcast %61 : f32 to vector<128x128xf32>
    %66 = arith.mulf %65, %64 : vector<128x128xf32>
    %67 = arith.addf %54, %66 : vector<128x128xf32>
    %68 = vector.extract_strided_slice %6 {offsets = [0, 4], sizes = [128, 1], strides = [1, 1]} : vector<128x16xf32> to vector<128x1xf32>
    %69 = vector.extract_strided_slice %0 {offsets = [0, 4, 0], sizes = [1, 1, 128], strides = [1, 1, 1]} : vector<2x8x128xf32> to vector<1x1x128xf32>
    %70 = vector.shape_cast %69 : vector<1x1x128xf32> to vector<1x128xf32>
    %71 = vector.broadcast %68 : vector<128x1xf32> to vector<128x128xf32>
    %72 = vector.broadcast %70 : vector<1x128xf32> to vector<128x128xf32>
    %73 = arith.addf %71, %72 : vector<128x128xf32>
    %c0_23 = arith.constant 0 : index
    %c4 = arith.constant 4 : index
    %74 = memref.load %arg1[%c0_23, %c4] : memref<1x16xf32, #tpu.memory_space<smem>>
    %cst_24 = arith.constant 2.000000e-01 : f32
    %75 = vector.broadcast %cst_24 : f32 to vector<128x128xf32>
    %76 = arith.mulf %75, %73 : vector<128x128xf32>
    %77 = arith.maximumf %73, %76 : vector<128x128xf32>
    %78 = vector.broadcast %74 : f32 to vector<128x128xf32>
    %79 = arith.mulf %78, %77 : vector<128x128xf32>
    %80 = arith.addf %67, %79 : vector<128x128xf32>
    %81 = vector.extract_strided_slice %6 {offsets = [0, 5], sizes = [128, 1], strides = [1, 1]} : vector<128x16xf32> to vector<128x1xf32>
    %82 = vector.extract_strided_slice %0 {offsets = [0, 5, 0], sizes = [1, 1, 128], strides = [1, 1, 1]} : vector<2x8x128xf32> to vector<1x1x128xf32>
    %83 = vector.shape_cast %82 : vector<1x1x128xf32> to vector<1x128xf32>
    %84 = vector.broadcast %81 : vector<128x1xf32> to vector<128x128xf32>
    %85 = vector.broadcast %83 : vector<1x128xf32> to vector<128x128xf32>
    %86 = arith.addf %84, %85 : vector<128x128xf32>
    %c0_25 = arith.constant 0 : index
    %c5 = arith.constant 5 : index
    %87 = memref.load %arg1[%c0_25, %c5] : memref<1x16xf32, #tpu.memory_space<smem>>
    %cst_26 = arith.constant 2.000000e-01 : f32
    %88 = vector.broadcast %cst_26 : f32 to vector<128x128xf32>
    %89 = arith.mulf %88, %86 : vector<128x128xf32>
    %90 = arith.maximumf %86, %89 : vector<128x128xf32>
    %91 = vector.broadcast %87 : f32 to vector<128x128xf32>
    %92 = arith.mulf %91, %90 : vector<128x128xf32>
    %93 = arith.addf %80, %92 : vector<128x128xf32>
    %94 = vector.extract_strided_slice %6 {offsets = [0, 6], sizes = [128, 1], strides = [1, 1]} : vector<128x16xf32> to vector<128x1xf32>
    %95 = vector.extract_strided_slice %0 {offsets = [0, 6, 0], sizes = [1, 1, 128], strides = [1, 1, 1]} : vector<2x8x128xf32> to vector<1x1x128xf32>
    %96 = vector.shape_cast %95 : vector<1x1x128xf32> to vector<1x128xf32>
    %97 = vector.broadcast %94 : vector<128x1xf32> to vector<128x128xf32>
    %98 = vector.broadcast %96 : vector<1x128xf32> to vector<128x128xf32>
    %99 = arith.addf %97, %98 : vector<128x128xf32>
    %c0_27 = arith.constant 0 : index
    %c6 = arith.constant 6 : index
    %100 = memref.load %arg1[%c0_27, %c6] : memref<1x16xf32, #tpu.memory_space<smem>>
    %cst_28 = arith.constant 2.000000e-01 : f32
    %101 = vector.broadcast %cst_28 : f32 to vector<128x128xf32>
    %102 = arith.mulf %101, %99 : vector<128x128xf32>
    %103 = arith.maximumf %99, %102 : vector<128x128xf32>
    %104 = vector.broadcast %100 : f32 to vector<128x128xf32>
    %105 = arith.mulf %104, %103 : vector<128x128xf32>
    %106 = arith.addf %93, %105 : vector<128x128xf32>
    %107 = vector.extract_strided_slice %6 {offsets = [0, 7], sizes = [128, 1], strides = [1, 1]} : vector<128x16xf32> to vector<128x1xf32>
    %108 = vector.extract_strided_slice %0 {offsets = [0, 7, 0], sizes = [1, 1, 128], strides = [1, 1, 1]} : vector<2x8x128xf32> to vector<1x1x128xf32>
    %109 = vector.shape_cast %108 : vector<1x1x128xf32> to vector<1x128xf32>
    %110 = vector.broadcast %107 : vector<128x1xf32> to vector<128x128xf32>
    %111 = vector.broadcast %109 : vector<1x128xf32> to vector<128x128xf32>
    %112 = arith.addf %110, %111 : vector<128x128xf32>
    %c0_29 = arith.constant 0 : index
    %c7 = arith.constant 7 : index
    %113 = memref.load %arg1[%c0_29, %c7] : memref<1x16xf32, #tpu.memory_space<smem>>
    %cst_30 = arith.constant 2.000000e-01 : f32
    %114 = vector.broadcast %cst_30 : f32 to vector<128x128xf32>
    %115 = arith.mulf %114, %112 : vector<128x128xf32>
    %116 = arith.maximumf %112, %115 : vector<128x128xf32>
    %117 = vector.broadcast %113 : f32 to vector<128x128xf32>
    %118 = arith.mulf %117, %116 : vector<128x128xf32>
    %119 = arith.addf %106, %118 : vector<128x128xf32>
    %cst_31 = arith.constant -1.000000e+30 : f32
    %120 = vector.broadcast %cst_31 : f32 to vector<128x128xf32>
    %121 = arith.select %9, %119, %120 : vector<128x128xi1>, vector<128x128xf32>
    %cst_32 = arith.constant dense<0xFF800000> : vector<128xf32>
    %122 = vector.multi_reduction <maximumf>, %121, %cst_32 [1] : vector<128x128xf32> to vector<128xf32>
    %123 = vector.shape_cast %122 : vector<128xf32> to vector<128x1xf32>
    %124 = vector.broadcast %123 : vector<128x1xf32> to vector<128x128xf32>
    %125 = arith.subf %121, %124 : vector<128x128xf32>
    %126 = math.exp %125 : vector<128x128xf32>
    %cst_33 = arith.constant dense<0.000000e+00> : vector<128xf32>
    %127 = vector.multi_reduction <add>, %126, %cst_33 [1] : vector<128x128xf32> to vector<128xf32>
    %128 = vector.shape_cast %127 : vector<128xf32> to vector<128x1xf32>
    %129 = tpu.reciprocal %128 {approx = true} : vector<128x1xf32> -> vector<128x1xf32>
    %cst_34 = arith.constant 0.000000e+00 : f32
    %130 = vector.broadcast %cst_34 : f32 to vector<128x1xf32>
    %131 = arith.select %14, %129, %130 : vector<128x1xi1>, vector<128x1xf32>
    %132 = vector.broadcast %131 : vector<128x1xf32> to vector<128x128xf32>
    %133 = arith.mulf %126, %132 : vector<128x128xf32>
    %134 = arith.truncf %133 : vector<128x128xf32> to vector<128x128xbf16>
    %cst_35 = arith.constant 0.000000e+00 : f32
    %135 = vector.broadcast %cst_35 : f32 to vector<128x128xf32>
    %136 = vector.extract_strided_slice %6 {offsets = [0, 8], sizes = [128, 1], strides = [1, 1]} : vector<128x16xf32> to vector<128x1xf32>
    %137 = vector.extract_strided_slice %0 {offsets = [1, 0, 0], sizes = [1, 1, 128], strides = [1, 1, 1]} : vector<2x8x128xf32> to vector<1x1x128xf32>
    %138 = vector.shape_cast %137 : vector<1x1x128xf32> to vector<1x128xf32>
    %139 = vector.broadcast %136 : vector<128x1xf32> to vector<128x128xf32>
    %140 = vector.broadcast %138 : vector<1x128xf32> to vector<128x128xf32>
    %141 = arith.addf %139, %140 : vector<128x128xf32>
    %c0_36 = arith.constant 0 : index
    %c8 = arith.constant 8 : index
    %142 = memref.load %arg1[%c0_36, %c8] : memref<1x16xf32, #tpu.memory_space<smem>>
    %cst_37 = arith.constant 2.000000e-01 : f32
    %143 = vector.broadcast %cst_37 : f32 to vector<128x128xf32>
    %144 = arith.mulf %143, %141 : vector<128x128xf32>
    %145 = arith.maximumf %141, %144 : vector<128x128xf32>
    %146 = vector.broadcast %142 : f32 to vector<128x128xf32>
    %147 = arith.mulf %146, %145 : vector<128x128xf32>
    %148 = arith.addf %135, %147 : vector<128x128xf32>
    %149 = vector.extract_strided_slice %6 {offsets = [0, 9], sizes = [128, 1], strides = [1, 1]} : vector<128x16xf32> to vector<128x1xf32>
    %150 = vector.extract_strided_slice %0 {offsets = [1, 1, 0], sizes = [1, 1, 128], strides = [1, 1, 1]} : vector<2x8x128xf32> to vector<1x1x128xf32>
    %151 = vector.shape_cast %150 : vector<1x1x128xf32> to vector<1x128xf32>
    %152 = vector.broadcast %149 : vector<128x1xf32> to vector<128x128xf32>
    %153 = vector.broadcast %151 : vector<1x128xf32> to vector<128x128xf32>
    %154 = arith.addf %152, %153 : vector<128x128xf32>
    %c0_38 = arith.constant 0 : index
    %c9 = arith.constant 9 : index
    %155 = memref.load %arg1[%c0_38, %c9] : memref<1x16xf32, #tpu.memory_space<smem>>
    %cst_39 = arith.constant 2.000000e-01 : f32
    %156 = vector.broadcast %cst_39 : f32 to vector<128x128xf32>
    %157 = arith.mulf %156, %154 : vector<128x128xf32>
    %158 = arith.maximumf %154, %157 : vector<128x128xf32>
    %159 = vector.broadcast %155 : f32 to vector<128x128xf32>
    %160 = arith.mulf %159, %158 : vector<128x128xf32>
    %161 = arith.addf %148, %160 : vector<128x128xf32>
    %162 = vector.extract_strided_slice %6 {offsets = [0, 10], sizes = [128, 1], strides = [1, 1]} : vector<128x16xf32> to vector<128x1xf32>
    %163 = vector.extract_strided_slice %0 {offsets = [1, 2, 0], sizes = [1, 1, 128], strides = [1, 1, 1]} : vector<2x8x128xf32> to vector<1x1x128xf32>
    %164 = vector.shape_cast %163 : vector<1x1x128xf32> to vector<1x128xf32>
    %165 = vector.broadcast %162 : vector<128x1xf32> to vector<128x128xf32>
    %166 = vector.broadcast %164 : vector<1x128xf32> to vector<128x128xf32>
    %167 = arith.addf %165, %166 : vector<128x128xf32>
    %c0_40 = arith.constant 0 : index
    %c10 = arith.constant 10 : index
    %168 = memref.load %arg1[%c0_40, %c10] : memref<1x16xf32, #tpu.memory_space<smem>>
    %cst_41 = arith.constant 2.000000e-01 : f32
    %169 = vector.broadcast %cst_41 : f32 to vector<128x128xf32>
    %170 = arith.mulf %169, %167 : vector<128x128xf32>
    %171 = arith.maximumf %167, %170 : vector<128x128xf32>
    %172 = vector.broadcast %168 : f32 to vector<128x128xf32>
    %173 = arith.mulf %172, %171 : vector<128x128xf32>
    %174 = arith.addf %161, %173 : vector<128x128xf32>
    %175 = vector.extract_strided_slice %6 {offsets = [0, 11], sizes = [128, 1], strides = [1, 1]} : vector<128x16xf32> to vector<128x1xf32>
    %176 = vector.extract_strided_slice %0 {offsets = [1, 3, 0], sizes = [1, 1, 128], strides = [1, 1, 1]} : vector<2x8x128xf32> to vector<1x1x128xf32>
    %177 = vector.shape_cast %176 : vector<1x1x128xf32> to vector<1x128xf32>
    %178 = vector.broadcast %175 : vector<128x1xf32> to vector<128x128xf32>
    %179 = vector.broadcast %177 : vector<1x128xf32> to vector<128x128xf32>
    %180 = arith.addf %178, %179 : vector<128x128xf32>
    %c0_42 = arith.constant 0 : index
    %c11 = arith.constant 11 : index
    %181 = memref.load %arg1[%c0_42, %c11] : memref<1x16xf32, #tpu.memory_space<smem>>
    %cst_43 = arith.constant 2.000000e-01 : f32
    %182 = vector.broadcast %cst_43 : f32 to vector<128x128xf32>
    %183 = arith.mulf %182, %180 : vector<128x128xf32>
    %184 = arith.maximumf %180, %183 : vector<128x128xf32>
    %185 = vector.broadcast %181 : f32 to vector<128x128xf32>
    %186 = arith.mulf %185, %184 : vector<128x128xf32>
    %187 = arith.addf %174, %186 : vector<128x128xf32>
    %188 = vector.extract_strided_slice %6 {offsets = [0, 12], sizes = [128, 1], strides = [1, 1]} : vector<128x16xf32> to vector<128x1xf32>
    %189 = vector.extract_strided_slice %0 {offsets = [1, 4, 0], sizes = [1, 1, 128], strides = [1, 1, 1]} : vector<2x8x128xf32> to vector<1x1x128xf32>
    %190 = vector.shape_cast %189 : vector<1x1x128xf32> to vector<1x128xf32>
    %191 = vector.broadcast %188 : vector<128x1xf32> to vector<128x128xf32>
    %192 = vector.broadcast %190 : vector<1x128xf32> to vector<128x128xf32>
    %193 = arith.addf %191, %192 : vector<128x128xf32>
    %c0_44 = arith.constant 0 : index
    %c12 = arith.constant 12 : index
    %194 = memref.load %arg1[%c0_44, %c12] : memref<1x16xf32, #tpu.memory_space<smem>>
    %cst_45 = arith.constant 2.000000e-01 : f32
    %195 = vector.broadcast %cst_45 : f32 to vector<128x128xf32>
    %196 = arith.mulf %195, %193 : vector<128x128xf32>
    %197 = arith.maximumf %193, %196 : vector<128x128xf32>
    %198 = vector.broadcast %194 : f32 to vector<128x128xf32>
    %199 = arith.mulf %198, %197 : vector<128x128xf32>
    %200 = arith.addf %187, %199 : vector<128x128xf32>
    %201 = vector.extract_strided_slice %6 {offsets = [0, 13], sizes = [128, 1], strides = [1, 1]} : vector<128x16xf32> to vector<128x1xf32>
    %202 = vector.extract_strided_slice %0 {offsets = [1, 5, 0], sizes = [1, 1, 128], strides = [1, 1, 1]} : vector<2x8x128xf32> to vector<1x1x128xf32>
    %203 = vector.shape_cast %202 : vector<1x1x128xf32> to vector<1x128xf32>
    %204 = vector.broadcast %201 : vector<128x1xf32> to vector<128x128xf32>
    %205 = vector.broadcast %203 : vector<1x128xf32> to vector<128x128xf32>
    %206 = arith.addf %204, %205 : vector<128x128xf32>
    %c0_46 = arith.constant 0 : index
    %c13 = arith.constant 13 : index
    %207 = memref.load %arg1[%c0_46, %c13] : memref<1x16xf32, #tpu.memory_space<smem>>
    %cst_47 = arith.constant 2.000000e-01 : f32
    %208 = vector.broadcast %cst_47 : f32 to vector<128x128xf32>
    %209 = arith.mulf %208, %206 : vector<128x128xf32>
    %210 = arith.maximumf %206, %209 : vector<128x128xf32>
    %211 = vector.broadcast %207 : f32 to vector<128x128xf32>
    %212 = arith.mulf %211, %210 : vector<128x128xf32>
    %213 = arith.addf %200, %212 : vector<128x128xf32>
    %214 = vector.extract_strided_slice %6 {offsets = [0, 14], sizes = [128, 1], strides = [1, 1]} : vector<128x16xf32> to vector<128x1xf32>
    %215 = vector.extract_strided_slice %0 {offsets = [1, 6, 0], sizes = [1, 1, 128], strides = [1, 1, 1]} : vector<2x8x128xf32> to vector<1x1x128xf32>
    %216 = vector.shape_cast %215 : vector<1x1x128xf32> to vector<1x128xf32>
    %217 = vector.broadcast %214 : vector<128x1xf32> to vector<128x128xf32>
    %218 = vector.broadcast %216 : vector<1x128xf32> to vector<128x128xf32>
    %219 = arith.addf %217, %218 : vector<128x128xf32>
    %c0_48 = arith.constant 0 : index
    %c14 = arith.constant 14 : index
    %220 = memref.load %arg1[%c0_48, %c14] : memref<1x16xf32, #tpu.memory_space<smem>>
    %cst_49 = arith.constant 2.000000e-01 : f32
    %221 = vector.broadcast %cst_49 : f32 to vector<128x128xf32>
    %222 = arith.mulf %221, %219 : vector<128x128xf32>
    %223 = arith.maximumf %219, %222 : vector<128x128xf32>
    %224 = vector.broadcast %220 : f32 to vector<128x128xf32>
    %225 = arith.mulf %224, %223 : vector<128x128xf32>
    %226 = arith.addf %213, %225 : vector<128x128xf32>
    %227 = vector.extract_strided_slice %6 {offsets = [0, 15], sizes = [128, 1], strides = [1, 1]} : vector<128x16xf32> to vector<128x1xf32>
    %228 = vector.extract_strided_slice %0 {offsets = [1, 7, 0], sizes = [1, 1, 128], strides = [1, 1, 1]} : vector<2x8x128xf32> to vector<1x1x128xf32>
    %229 = vector.shape_cast %228 : vector<1x1x128xf32> to vector<1x128xf32>
    %230 = vector.broadcast %227 : vector<128x1xf32> to vector<128x128xf32>
    %231 = vector.broadcast %229 : vector<1x128xf32> to vector<128x128xf32>
    %232 = arith.addf %230, %231 : vector<128x128xf32>
    %c0_50 = arith.constant 0 : index
    %c15 = arith.constant 15 : index
    %233 = memref.load %arg1[%c0_50, %c15] : memref<1x16xf32, #tpu.memory_space<smem>>
    %cst_51 = arith.constant 2.000000e-01 : f32
    %234 = vector.broadcast %cst_51 : f32 to vector<128x128xf32>
    %235 = arith.mulf %234, %232 : vector<128x128xf32>
    %236 = arith.maximumf %232, %235 : vector<128x128xf32>
    %237 = vector.broadcast %233 : f32 to vector<128x128xf32>
    %238 = arith.mulf %237, %236 : vector<128x128xf32>
    %239 = arith.addf %226, %238 : vector<128x128xf32>
    %cst_52 = arith.constant -1.000000e+30 : f32
    %240 = vector.broadcast %cst_52 : f32 to vector<128x128xf32>
    %241 = arith.select %9, %239, %240 : vector<128x128xi1>, vector<128x128xf32>
    %cst_53 = arith.constant dense<0xFF800000> : vector<128xf32>
    %242 = vector.multi_reduction <maximumf>, %241, %cst_53 [1] : vector<128x128xf32> to vector<128xf32>
    %243 = vector.shape_cast %242 : vector<128xf32> to vector<128x1xf32>
    %244 = vector.broadcast %243 : vector<128x1xf32> to vector<128x128xf32>
    %245 = arith.subf %241, %244 : vector<128x128xf32>
    %246 = math.exp %245 : vector<128x128xf32>
    %cst_54 = arith.constant dense<0.000000e+00> : vector<128xf32>
    %247 = vector.multi_reduction <add>, %246, %cst_54 [1] : vector<128x128xf32> to vector<128xf32>
    %248 = vector.shape_cast %247 : vector<128xf32> to vector<128x1xf32>
    %249 = tpu.reciprocal %248 {approx = true} : vector<128x1xf32> -> vector<128x1xf32>
    %cst_55 = arith.constant 0.000000e+00 : f32
    %250 = vector.broadcast %cst_55 : f32 to vector<128x1xf32>
    %251 = arith.select %14, %249, %250 : vector<128x1xi1>, vector<128x1xf32>
    %252 = vector.broadcast %251 : vector<128x1xf32> to vector<128x128xf32>
    %253 = arith.mulf %246, %252 : vector<128x128xf32>
    %254 = arith.truncf %253 : vector<128x128xf32> to vector<128x128xbf16>
    %255 = vector.shape_cast %134 : vector<128x128xbf16> to vector<1x128x128xbf16>
    %256 = vector.shape_cast %254 : vector<128x128xbf16> to vector<1x128x128xbf16>
    %257 = tpu.concatenate %255, %256 in 0 : vector<1x128x128xbf16>, vector<1x128x128xbf16> -> vector<2x128x128xbf16>
    %258 = arith.truncf %0 : vector<2x8x128xf32> to vector<2x8x128xbf16>
    %cst_56 = arith.constant dense<0.000000e+00> : vector<2x8x128xf32>
    %259 = tpu.matmul %258, %257, %cst_56 {dimension_numbers = #tpu.dot_dimension_numbers<[2], [2], [1], [1], [0, 0, 0, 1, 1, 1], [0], [0]>} : vector<2x8x128xbf16>, vector<2x128x128xbf16>, vector<2x8x128xf32> -> vector<2x8x128xf32>
    %c0_57 = arith.constant 0 : index
    %c0_58 = arith.constant 0 : index
    %c0_59 = arith.constant 0 : index
    %260 = vector.load %arg7[%c0_57, %c0_58, %c0_59] : memref<2x8x1xf32, #tpu.memory_space<vmem>>, vector<2x8x1xf32>
    %261 = vector.broadcast %260 : vector<2x8x1xf32> to vector<2x8x128xf32>
    %262 = arith.addf %259, %261 : vector<2x8x128xf32>
    %cst_60 = arith.constant 0.000000e+00 : f32
    %263 = vector.broadcast %cst_60 : f32 to vector<2x8x128xf32>
    %264 = arith.cmpf ogt, %262, %263 : vector<2x8x128xf32>
    %cst_61 = arith.constant 0.000000e+00 : f32
    %265 = vector.broadcast %cst_61 : f32 to vector<2x8x128xf32>
    %266 = arith.minimumf %262, %265 : vector<2x8x128xf32>
    %267 = math.exp %266 : vector<2x8x128xf32>
    %cst_62 = arith.constant 1.000000e+00 : f32
    %268 = vector.broadcast %cst_62 : f32 to vector<2x8x128xf32>
    %269 = arith.subf %267, %268 : vector<2x8x128xf32>
    %270 = arith.select %264, %262, %269 : vector<2x8x128xi1>, vector<2x8x128xf32>
    %c0_63 = arith.constant 0 : index
    %c0_64 = arith.constant 0 : index
    %c0_65 = arith.constant 0 : index
    %271 = vector.load %arg8[%c0_63, %c0_64, %c0_65] : memref<2x8x128xf32, #tpu.memory_space<vmem>>, vector<2x8x128xf32>
    tpu.vector_store %arg8[%c0_63, %c0_64, %c0_65], %270 {strides = array<i32>} : memref<2x8x128xf32, #tpu.memory_space<vmem>>, vector<2x8x128xf32>,
    return
  }
  func.func @transform_0(%arg0: i32) -> (i32, i32) {
    %c0_i32 = arith.constant 0 : i32
    %c0_i32_0 = arith.constant 0 : i32
    %c0_i32_1 = arith.constant 0 : i32
    return %c0_i32, %c0_i32_0 : i32, i32
  }
  func.func @transform_1(%arg0: i32) -> (i32, i32, i32) {
    %c0_i32 = arith.constant 0 : i32
    %c0_i32_0 = arith.constant 0 : i32
    %c0_i32_1 = arith.constant 0 : i32
    %c0_i32_2 = arith.constant 0 : i32
    return %c0_i32, %c0_i32_0, %c0_i32_1 : i32, i32, i32
  }
  func.func @transform_2(%arg0: i32) -> (i32, i32) {
    %c0_i32 = arith.constant 0 : i32
    %c0_i32_0 = arith.constant 0 : i32
    return %arg0, %c0_i32 : i32, i32
  }
  func.func @transform_3(%arg0: i32) -> (i32, i32) {
    %c0_i32 = arith.constant 0 : i32
    %c0_i32_0 = arith.constant 0 : i32
    return %arg0, %c0_i32 : i32, i32
  }
  func.func @transform_4(%arg0: i32) -> (i32, i32) {
    %c0_i32 = arith.constant 0 : i32
    %c0_i32_0 = arith.constant 0 : i32
    %c0_i32_1 = arith.constant 0 : i32
    return %c0_i32, %c0_i32_0 : i32, i32
  }
  func.func @transform_5(%arg0: i32) -> (i32, i32) {
    %c0_i32 = arith.constant 0 : i32
    %c0_i32_0 = arith.constant 0 : i32
    %c0_i32_1 = arith.constant 0 : i32
    return %c0_i32, %c0_i32_0 : i32, i32
  }
  func.func @transform_6(%arg0: i32) -> (i32, i32, i32) {
    %c0_i32 = arith.constant 0 : i32
    %c0_i32_0 = arith.constant 0 : i32
    %c0_i32_1 = arith.constant 0 : i32
    %c0_i32_2 = arith.constant 0 : i32
    return %c0_i32, %c0_i32_0, %c0_i32_1 : i32, i32, i32
  }
  func.func @transform_7(%arg0: i32) -> (i32, i32, i32) {
    %c0_i32 = arith.constant 0 : i32
    %c0_i32_0 = arith.constant 0 : i32
    %c0_i32_1 = arith.constant 0 : i32
    return %c0_i32, %c0_i32_0, %arg0 : i32, i32, i32
  }
}

module attributes {stable_mosaic.version = 11 : i64} {
  func.func @_gatv2_kernel(%arg0: i32, %arg1: memref<1x8xf32, #tpu.memory_space<smem>>, %arg2: memref<2x4x128xf32, #tpu.memory_space<vmem>>, %arg3: memref<128x16xf32, #tpu.memory_space<vmem>>, %arg4: memref<128x128xbf16, #tpu.memory_space<vmem>>, %arg5: memref<16x8xf32, #tpu.memory_space<vmem>>, %arg6: memref<1x8xf32, #tpu.memory_space<vmem>>, %arg7: memref<2x4x1xf32, #tpu.memory_space<vmem>>, %arg8: memref<2x4x128xf32, #tpu.memory_space<vmem>>) attributes {dimension_semantics = [#tpu.dimension_semantics<parallel>], iteration_bounds = array<i64: 1>, scalar_prefetch = 0 : i64, scratch_operands = 0 : i64, tpu.core_type = #tpu.core_type<tc>, window_params = [{transform_indices = @transform_0, window_bounds = array<i64: 1, 8>}, {pipeline_mode = #tpu.pipeline_mode<synchronous>, transform_indices = @transform_1, window_bounds = array<i64: 2, 4, 128>}, {transform_indices = @transform_2, window_bounds = array<i64: 128, 16>}, {transform_indices = @transform_3, window_bounds = array<i64: 128, 128>}, {pipeline_mode = #tpu.pipeline_mode<synchronous>, transform_indices = @transform_4, window_bounds = array<i64: 16, 8>}, {pipeline_mode = #tpu.pipeline_mode<synchronous>, transform_indices = @transform_5, window_bounds = array<i64: 1, 8>}, {pipeline_mode = #tpu.pipeline_mode<synchronous>, transform_indices = @transform_6, window_bounds = array<i64: 2, 4, 1>}, {transform_indices = @transform_7, window_bounds = array<i64: 2, 4, 128>}]} {
    %c0 = arith.constant 0 : index
    %c0_0 = arith.constant 0 : index
    %c0_1 = arith.constant 0 : index
    %0 = vector.load %arg2[%c0, %c0_0, %c0_1] : memref<2x4x128xf32, #tpu.memory_space<vmem>>, vector<2x4x128xf32>
    %c0_2 = arith.constant 0 : index
    %c0_3 = arith.constant 0 : index
    %1 = vector.load %arg3[%c0_2, %c0_3] : memref<128x16xf32, #tpu.memory_space<vmem>>, vector<128x16xf32>
    %c0_4 = arith.constant 0 : index
    %c0_5 = arith.constant 0 : index
    %2 = vector.load %arg5[%c0_4, %c0_5] : memref<16x8xf32, #tpu.memory_space<vmem>>, vector<16x8xf32>
    %cst = arith.constant dense<0.000000e+00> : vector<128x8xf32>
    %3 = tpu.matmul %1, %2, %cst {dimension_numbers = #tpu.dot_dimension_numbers<[1], [0], [0], [1], [0, 0, 1, 1], [], []>} : vector<128x16xf32>, vector<16x8xf32>, vector<128x8xf32> -> vector<128x8xf32>
    %c0_6 = arith.constant 0 : index
    %c0_7 = arith.constant 0 : index
    %4 = vector.load %arg6[%c0_6, %c0_7] : memref<1x8xf32, #tpu.memory_space<vmem>>, vector<1x8xf32>
    %5 = vector.broadcast %4 : vector<1x8xf32> to vector<128x8xf32>
    %6 = arith.addf %3, %5 : vector<128x8xf32>
    %c0_8 = arith.constant 0 : index
    %c0_9 = arith.constant 0 : index
    %7 = vector.load %arg4[%c0_8, %c0_9] : memref<128x128xbf16, #tpu.memory_space<vmem>>, vector<128x128xbf16>
    %cst_10 = arith.constant 0.000000e+00 : bf16
    %8 = vector.broadcast %cst_10 : bf16 to vector<128x128xbf16>
    %9 = arith.cmpf ogt, %7, %8 : vector<128x128xbf16>
    %10 = arith.extf %7 : vector<128x128xbf16> to vector<128x128xf32>
    %cst_11 = arith.constant dense<0xFF800000> : vector<128xf32>
    %11 = vector.multi_reduction <maximumf>, %10, %cst_11 [1] : vector<128x128xf32> to vector<128xf32>
    %12 = vector.shape_cast %11 : vector<128xf32> to vector<128x1xf32>
    %cst_12 = arith.constant 0.000000e+00 : f32
    %13 = vector.broadcast %cst_12 : f32 to vector<128x1xf32>
    %14 = arith.cmpf ogt, %12, %13 : vector<128x1xf32>
    %cst_13 = arith.constant 0.000000e+00 : f32
    %15 = vector.broadcast %cst_13 : f32 to vector<128x128xf32>
    %16 = vector.extract_strided_slice %6 {offsets = [0, 0], sizes = [128, 1], strides = [1, 1]} : vector<128x8xf32> to vector<128x1xf32>
    %17 = vector.extract_strided_slice %0 {offsets = [0, 0, 0], sizes = [1, 1, 128], strides = [1, 1, 1]} : vector<2x4x128xf32> to vector<1x1x128xf32>
    %18 = vector.shape_cast %17 : vector<1x1x128xf32> to vector<1x128xf32>
    %19 = vector.broadcast %16 : vector<128x1xf32> to vector<128x128xf32>
    %20 = vector.broadcast %18 : vector<1x128xf32> to vector<128x128xf32>
    %21 = arith.addf %19, %20 : vector<128x128xf32>
    %c0_14 = arith.constant 0 : index
    %c0_15 = arith.constant 0 : index
    %22 = memref.load %arg1[%c0_14, %c0_15] : memref<1x8xf32, #tpu.memory_space<smem>>
    %cst_16 = arith.constant 2.000000e-01 : f32
    %23 = vector.broadcast %cst_16 : f32 to vector<128x128xf32>
    %24 = arith.mulf %23, %21 : vector<128x128xf32>
    %25 = arith.maximumf %21, %24 : vector<128x128xf32>
    %26 = vector.broadcast %22 : f32 to vector<128x128xf32>
    %27 = arith.mulf %26, %25 : vector<128x128xf32>
    %28 = arith.addf %15, %27 : vector<128x128xf32>
    %29 = vector.extract_strided_slice %6 {offsets = [0, 1], sizes = [128, 1], strides = [1, 1]} : vector<128x8xf32> to vector<128x1xf32>
    %30 = vector.extract_strided_slice %0 {offsets = [0, 1, 0], sizes = [1, 1, 128], strides = [1, 1, 1]} : vector<2x4x128xf32> to vector<1x1x128xf32>
    %31 = vector.shape_cast %30 : vector<1x1x128xf32> to vector<1x128xf32>
    %32 = vector.broadcast %29 : vector<128x1xf32> to vector<128x128xf32>
    %33 = vector.broadcast %31 : vector<1x128xf32> to vector<128x128xf32>
    %34 = arith.addf %32, %33 : vector<128x128xf32>
    %c0_17 = arith.constant 0 : index
    %c1 = arith.constant 1 : index
    %35 = memref.load %arg1[%c0_17, %c1] : memref<1x8xf32, #tpu.memory_space<smem>>
    %cst_18 = arith.constant 2.000000e-01 : f32
    %36 = vector.broadcast %cst_18 : f32 to vector<128x128xf32>
    %37 = arith.mulf %36, %34 : vector<128x128xf32>
    %38 = arith.maximumf %34, %37 : vector<128x128xf32>
    %39 = vector.broadcast %35 : f32 to vector<128x128xf32>
    %40 = arith.mulf %39, %38 : vector<128x128xf32>
    %41 = arith.addf %28, %40 : vector<128x128xf32>
    %42 = vector.extract_strided_slice %6 {offsets = [0, 2], sizes = [128, 1], strides = [1, 1]} : vector<128x8xf32> to vector<128x1xf32>
    %43 = vector.extract_strided_slice %0 {offsets = [0, 2, 0], sizes = [1, 1, 128], strides = [1, 1, 1]} : vector<2x4x128xf32> to vector<1x1x128xf32>
    %44 = vector.shape_cast %43 : vector<1x1x128xf32> to vector<1x128xf32>
    %45 = vector.broadcast %42 : vector<128x1xf32> to vector<128x128xf32>
    %46 = vector.broadcast %44 : vector<1x128xf32> to vector<128x128xf32>
    %47 = arith.addf %45, %46 : vector<128x128xf32>
    %c0_19 = arith.constant 0 : index
    %c2 = arith.constant 2 : index
    %48 = memref.load %arg1[%c0_19, %c2] : memref<1x8xf32, #tpu.memory_space<smem>>
    %cst_20 = arith.constant 2.000000e-01 : f32
    %49 = vector.broadcast %cst_20 : f32 to vector<128x128xf32>
    %50 = arith.mulf %49, %47 : vector<128x128xf32>
    %51 = arith.maximumf %47, %50 : vector<128x128xf32>
    %52 = vector.broadcast %48 : f32 to vector<128x128xf32>
    %53 = arith.mulf %52, %51 : vector<128x128xf32>
    %54 = arith.addf %41, %53 : vector<128x128xf32>
    %55 = vector.extract_strided_slice %6 {offsets = [0, 3], sizes = [128, 1], strides = [1, 1]} : vector<128x8xf32> to vector<128x1xf32>
    %56 = vector.extract_strided_slice %0 {offsets = [0, 3, 0], sizes = [1, 1, 128], strides = [1, 1, 1]} : vector<2x4x128xf32> to vector<1x1x128xf32>
    %57 = vector.shape_cast %56 : vector<1x1x128xf32> to vector<1x128xf32>
    %58 = vector.broadcast %55 : vector<128x1xf32> to vector<128x128xf32>
    %59 = vector.broadcast %57 : vector<1x128xf32> to vector<128x128xf32>
    %60 = arith.addf %58, %59 : vector<128x128xf32>
    %c0_21 = arith.constant 0 : index
    %c3 = arith.constant 3 : index
    %61 = memref.load %arg1[%c0_21, %c3] : memref<1x8xf32, #tpu.memory_space<smem>>
    %cst_22 = arith.constant 2.000000e-01 : f32
    %62 = vector.broadcast %cst_22 : f32 to vector<128x128xf32>
    %63 = arith.mulf %62, %60 : vector<128x128xf32>
    %64 = arith.maximumf %60, %63 : vector<128x128xf32>
    %65 = vector.broadcast %61 : f32 to vector<128x128xf32>
    %66 = arith.mulf %65, %64 : vector<128x128xf32>
    %67 = arith.addf %54, %66 : vector<128x128xf32>
    %cst_23 = arith.constant -1.000000e+30 : f32
    %68 = vector.broadcast %cst_23 : f32 to vector<128x128xf32>
    %69 = arith.select %9, %67, %68 : vector<128x128xi1>, vector<128x128xf32>
    %cst_24 = arith.constant dense<0xFF800000> : vector<128xf32>
    %70 = vector.multi_reduction <maximumf>, %69, %cst_24 [1] : vector<128x128xf32> to vector<128xf32>
    %71 = vector.shape_cast %70 : vector<128xf32> to vector<128x1xf32>
    %72 = vector.broadcast %71 : vector<128x1xf32> to vector<128x128xf32>
    %73 = arith.subf %69, %72 : vector<128x128xf32>
    %74 = math.exp %73 : vector<128x128xf32>
    %cst_25 = arith.constant dense<0.000000e+00> : vector<128xf32>
    %75 = vector.multi_reduction <add>, %74, %cst_25 [1] : vector<128x128xf32> to vector<128xf32>
    %76 = vector.shape_cast %75 : vector<128xf32> to vector<128x1xf32>
    %77 = tpu.reciprocal %76 {approx = true} : vector<128x1xf32> -> vector<128x1xf32>
    %cst_26 = arith.constant 0.000000e+00 : f32
    %78 = vector.broadcast %cst_26 : f32 to vector<128x1xf32>
    %79 = arith.select %14, %77, %78 : vector<128x1xi1>, vector<128x1xf32>
    %80 = vector.broadcast %79 : vector<128x1xf32> to vector<128x128xf32>
    %81 = arith.mulf %74, %80 : vector<128x128xf32>
    %82 = arith.truncf %81 : vector<128x128xf32> to vector<128x128xbf16>
    %cst_27 = arith.constant 0.000000e+00 : f32
    %83 = vector.broadcast %cst_27 : f32 to vector<128x128xf32>
    %84 = vector.extract_strided_slice %6 {offsets = [0, 4], sizes = [128, 1], strides = [1, 1]} : vector<128x8xf32> to vector<128x1xf32>
    %85 = vector.extract_strided_slice %0 {offsets = [1, 0, 0], sizes = [1, 1, 128], strides = [1, 1, 1]} : vector<2x4x128xf32> to vector<1x1x128xf32>
    %86 = vector.shape_cast %85 : vector<1x1x128xf32> to vector<1x128xf32>
    %87 = vector.broadcast %84 : vector<128x1xf32> to vector<128x128xf32>
    %88 = vector.broadcast %86 : vector<1x128xf32> to vector<128x128xf32>
    %89 = arith.addf %87, %88 : vector<128x128xf32>
    %c0_28 = arith.constant 0 : index
    %c4 = arith.constant 4 : index
    %90 = memref.load %arg1[%c0_28, %c4] : memref<1x8xf32, #tpu.memory_space<smem>>
    %cst_29 = arith.constant 2.000000e-01 : f32
    %91 = vector.broadcast %cst_29 : f32 to vector<128x128xf32>
    %92 = arith.mulf %91, %89 : vector<128x128xf32>
    %93 = arith.maximumf %89, %92 : vector<128x128xf32>
    %94 = vector.broadcast %90 : f32 to vector<128x128xf32>
    %95 = arith.mulf %94, %93 : vector<128x128xf32>
    %96 = arith.addf %83, %95 : vector<128x128xf32>
    %97 = vector.extract_strided_slice %6 {offsets = [0, 5], sizes = [128, 1], strides = [1, 1]} : vector<128x8xf32> to vector<128x1xf32>
    %98 = vector.extract_strided_slice %0 {offsets = [1, 1, 0], sizes = [1, 1, 128], strides = [1, 1, 1]} : vector<2x4x128xf32> to vector<1x1x128xf32>
    %99 = vector.shape_cast %98 : vector<1x1x128xf32> to vector<1x128xf32>
    %100 = vector.broadcast %97 : vector<128x1xf32> to vector<128x128xf32>
    %101 = vector.broadcast %99 : vector<1x128xf32> to vector<128x128xf32>
    %102 = arith.addf %100, %101 : vector<128x128xf32>
    %c0_30 = arith.constant 0 : index
    %c5 = arith.constant 5 : index
    %103 = memref.load %arg1[%c0_30, %c5] : memref<1x8xf32, #tpu.memory_space<smem>>
    %cst_31 = arith.constant 2.000000e-01 : f32
    %104 = vector.broadcast %cst_31 : f32 to vector<128x128xf32>
    %105 = arith.mulf %104, %102 : vector<128x128xf32>
    %106 = arith.maximumf %102, %105 : vector<128x128xf32>
    %107 = vector.broadcast %103 : f32 to vector<128x128xf32>
    %108 = arith.mulf %107, %106 : vector<128x128xf32>
    %109 = arith.addf %96, %108 : vector<128x128xf32>
    %110 = vector.extract_strided_slice %6 {offsets = [0, 6], sizes = [128, 1], strides = [1, 1]} : vector<128x8xf32> to vector<128x1xf32>
    %111 = vector.extract_strided_slice %0 {offsets = [1, 2, 0], sizes = [1, 1, 128], strides = [1, 1, 1]} : vector<2x4x128xf32> to vector<1x1x128xf32>
    %112 = vector.shape_cast %111 : vector<1x1x128xf32> to vector<1x128xf32>
    %113 = vector.broadcast %110 : vector<128x1xf32> to vector<128x128xf32>
    %114 = vector.broadcast %112 : vector<1x128xf32> to vector<128x128xf32>
    %115 = arith.addf %113, %114 : vector<128x128xf32>
    %c0_32 = arith.constant 0 : index
    %c6 = arith.constant 6 : index
    %116 = memref.load %arg1[%c0_32, %c6] : memref<1x8xf32, #tpu.memory_space<smem>>
    %cst_33 = arith.constant 2.000000e-01 : f32
    %117 = vector.broadcast %cst_33 : f32 to vector<128x128xf32>
    %118 = arith.mulf %117, %115 : vector<128x128xf32>
    %119 = arith.maximumf %115, %118 : vector<128x128xf32>
    %120 = vector.broadcast %116 : f32 to vector<128x128xf32>
    %121 = arith.mulf %120, %119 : vector<128x128xf32>
    %122 = arith.addf %109, %121 : vector<128x128xf32>
    %123 = vector.extract_strided_slice %6 {offsets = [0, 7], sizes = [128, 1], strides = [1, 1]} : vector<128x8xf32> to vector<128x1xf32>
    %124 = vector.extract_strided_slice %0 {offsets = [1, 3, 0], sizes = [1, 1, 128], strides = [1, 1, 1]} : vector<2x4x128xf32> to vector<1x1x128xf32>
    %125 = vector.shape_cast %124 : vector<1x1x128xf32> to vector<1x128xf32>
    %126 = vector.broadcast %123 : vector<128x1xf32> to vector<128x128xf32>
    %127 = vector.broadcast %125 : vector<1x128xf32> to vector<128x128xf32>
    %128 = arith.addf %126, %127 : vector<128x128xf32>
    %c0_34 = arith.constant 0 : index
    %c7 = arith.constant 7 : index
    %129 = memref.load %arg1[%c0_34, %c7] : memref<1x8xf32, #tpu.memory_space<smem>>
    %cst_35 = arith.constant 2.000000e-01 : f32
    %130 = vector.broadcast %cst_35 : f32 to vector<128x128xf32>
    %131 = arith.mulf %130, %128 : vector<128x128xf32>
    %132 = arith.maximumf %128, %131 : vector<128x128xf32>
    %133 = vector.broadcast %129 : f32 to vector<128x128xf32>
    %134 = arith.mulf %133, %132 : vector<128x128xf32>
    %135 = arith.addf %122, %134 : vector<128x128xf32>
    %cst_36 = arith.constant -1.000000e+30 : f32
    %136 = vector.broadcast %cst_36 : f32 to vector<128x128xf32>
    %137 = arith.select %9, %135, %136 : vector<128x128xi1>, vector<128x128xf32>
    %cst_37 = arith.constant dense<0xFF800000> : vector<128xf32>
    %138 = vector.multi_reduction <maximumf>, %137, %cst_37 [1] : vector<128x128xf32> to vector<128xf32>
    %139 = vector.shape_cast %138 : vector<128xf32> to vector<128x1xf32>
    %140 = vector.broadcast %139 : vector<128x1xf32> to vector<128x128xf32>
    %141 = arith.subf %137, %140 : vector<128x128xf32>
    %142 = math.exp %141 : vector<128x128xf32>
    %cst_38 = arith.constant dense<0.000000e+00> : vector<128xf32>
    %143 = vector.multi_reduction <add>, %142, %cst_38 [1] : vector<128x128xf32> to vector<128xf32>
    %144 = vector.shape_cast %143 : vector<128xf32> to vector<128x1xf32>
    %145 = tpu.reciprocal %144 {approx = true} : vector<128x1xf32> -> vector<128x1xf32>
    %cst_39 = arith.constant 0.000000e+00 : f32
    %146 = vector.broadcast %cst_39 : f32 to vector<128x1xf32>
    %147 = arith.select %14, %145, %146 : vector<128x1xi1>, vector<128x1xf32>
    %148 = vector.broadcast %147 : vector<128x1xf32> to vector<128x128xf32>
    %149 = arith.mulf %142, %148 : vector<128x128xf32>
    %150 = arith.truncf %149 : vector<128x128xf32> to vector<128x128xbf16>
    %151 = vector.shape_cast %82 : vector<128x128xbf16> to vector<1x128x128xbf16>
    %152 = vector.shape_cast %150 : vector<128x128xbf16> to vector<1x128x128xbf16>
    %153 = tpu.concatenate %151, %152 in 0 : vector<1x128x128xbf16>, vector<1x128x128xbf16> -> vector<2x128x128xbf16>
    %154 = arith.truncf %0 : vector<2x4x128xf32> to vector<2x4x128xbf16>
    %cst_40 = arith.constant dense<0.000000e+00> : vector<2x4x128xf32>
    %155 = tpu.matmul %154, %153, %cst_40 {dimension_numbers = #tpu.dot_dimension_numbers<[2], [2], [1], [1], [0, 0, 0, 1, 1, 1], [0], [0]>} : vector<2x4x128xbf16>, vector<2x128x128xbf16>, vector<2x4x128xf32> -> vector<2x4x128xf32>
    %c0_41 = arith.constant 0 : index
    %c0_42 = arith.constant 0 : index
    %c0_43 = arith.constant 0 : index
    %156 = vector.load %arg7[%c0_41, %c0_42, %c0_43] : memref<2x4x1xf32, #tpu.memory_space<vmem>>, vector<2x4x1xf32>
    %157 = vector.broadcast %156 : vector<2x4x1xf32> to vector<2x4x128xf32>
    %158 = arith.addf %155, %157 : vector<2x4x128xf32>
    %cst_44 = arith.constant 0.000000e+00 : f32
    %159 = vector.broadcast %cst_44 : f32 to vector<2x4x128xf32>
    %160 = arith.cmpf ogt, %158, %159 : vector<2x4x128xf32>
    %cst_45 = arith.constant 0.000000e+00 : f32
    %161 = vector.broadcast %cst_45 : f32 to vector<2x4x128xf32>
    %162 = arith.minimumf %158, %161 : vector<2x4x128xf32>
    %163 = math.exp %162 : vector<2x4x128xf32>
    %cst_46 = arith.constant 1.000000e+00 : f32
    %164 = vector.broadcast %cst_46 : f32 to vector<2x4x128xf32>
    %165 = arith.subf %163, %164 : vector<2x4x128xf32>
    %166 = arith.select %160, %158, %165 : vector<2x4x128xi1>, vector<2x4x128xf32>
    %c0_47 = arith.constant 0 : index
    %c0_48 = arith.constant 0 : index
    %c0_49 = arith.constant 0 : index
    %167 = vector.load %arg8[%c0_47, %c0_48, %c0_49] : memref<2x4x128xf32, #tpu.memory_space<vmem>>, vector<2x4x128xf32>
    tpu.vector_store %arg8[%c0_47, %c0_48, %c0_49], %166 {strides = array<i32>} : memref<2x4x128xf32, #tpu.memory_space<vmem>>, vector<2x4x128xf32>,
    return
  }
  func.func @transform_0(%arg0: i32) -> (i32, i32) {
    %c0_i32 = arith.constant 0 : i32
    %c0_i32_0 = arith.constant 0 : i32
    %c0_i32_1 = arith.constant 0 : i32
    return %c0_i32, %c0_i32_0 : i32, i32
  }
  func.func @transform_1(%arg0: i32) -> (i32, i32, i32) {
    %c0_i32 = arith.constant 0 : i32
    %c0_i32_0 = arith.constant 0 : i32
    %c0_i32_1 = arith.constant 0 : i32
    %c0_i32_2 = arith.constant 0 : i32
    return %c0_i32, %c0_i32_0, %c0_i32_1 : i32, i32, i32
  }
  func.func @transform_2(%arg0: i32) -> (i32, i32) {
    %c0_i32 = arith.constant 0 : i32
    %c0_i32_0 = arith.constant 0 : i32
    return %arg0, %c0_i32 : i32, i32
  }
  func.func @transform_3(%arg0: i32) -> (i32, i32) {
    %c0_i32 = arith.constant 0 : i32
    %c0_i32_0 = arith.constant 0 : i32
    return %arg0, %c0_i32 : i32, i32
  }
  func.func @transform_4(%arg0: i32) -> (i32, i32) {
    %c0_i32 = arith.constant 0 : i32
    %c0_i32_0 = arith.constant 0 : i32
    %c0_i32_1 = arith.constant 0 : i32
    return %c0_i32, %c0_i32_0 : i32, i32
  }
  func.func @transform_5(%arg0: i32) -> (i32, i32) {
    %c0_i32 = arith.constant 0 : i32
    %c0_i32_0 = arith.constant 0 : i32
    %c0_i32_1 = arith.constant 0 : i32
    return %c0_i32, %c0_i32_0 : i32, i32
  }
  func.func @transform_6(%arg0: i32) -> (i32, i32, i32) {
    %c0_i32 = arith.constant 0 : i32
    %c0_i32_0 = arith.constant 0 : i32
    %c0_i32_1 = arith.constant 0 : i32
    %c0_i32_2 = arith.constant 0 : i32
    return %c0_i32, %c0_i32_0, %c0_i32_1 : i32, i32, i32
  }
  func.func @transform_7(%arg0: i32) -> (i32, i32, i32) {
    %c0_i32 = arith.constant 0 : i32
    %c0_i32_0 = arith.constant 0 : i32
    %c0_i32_1 = arith.constant 0 : i32
    return %c0_i32, %c0_i32_0, %arg0 : i32, i32, i32
  }
}

</mosaic_0001>

<bundles_post_ra>
// kernel: gatnet_forward.3
= control target key start
LH: loop header
LB: loop body
LE: loop exit
PB: predicated region body
PF: predicated region fallthrough
CT: control target
= control target key end

     0   :  { %12 = vsyncpa [#allocation3], 0  ;;  %s4195_s0 = inlined_call_operand.vmem [shape: f32[1,8], index: 0, kind: input, shape index: {}]   ;;  %s4196_s1 = inlined_call_operand.vmem [shape: f32[2,4,128], index: 1, kind: input, shape index: {}]   ;;  %s4197_s2 = inlined_call_operand.vmem [shape: f32[128,16], index: 2, kind: input, shape index: {}]   ;;  %s4198_s3 = inlined_call_operand.vmem [shape: bf16[128,128], index: 3, kind: input, shape index: {}]   ;;  %s4199_s4 = inlined_call_operand.vmem [shape: f32[16,8], index: 4, kind: input, shape index: {}]   ;;  %s4200_s5 = inlined_call_operand.vmem [shape: f32[1,8], index: 5, kind: input, shape index: {}]   ;;  %s4201_s6 = inlined_call_operand.vmem [shape: f32[2,4,1], index: 6, kind: input, shape index: {}]   ;;  %s4202_s7 = inlined_call_operand.vmem [shape: f32[2,4,128], index: 7, kind: output, shape index: {}]  }
   0x1   :  { %s19_s26 = sshll.u32 %s4195_s0, 4  ;;  %s20_s26 = int_to_ptr.vmem [resolvable:$true] %s19_s26 }
   0x2   :  { %s2493_s27 = scalar_lea.vmem %s20_s26, 16  ;;  %p2498_p1 = scmp.lt.s32.totalorder %s20_s26, %s20_s26 }
   0x3   :  { %p2494_p0 = scmp.ne.s32.totalorder %s20_s26, %s2493_s27  ;;  %p2499_p2 = scmp.lt.s32.totalorder %s2493_s27, %s2493_s27 }
   0x5   :  { %p2500_p3 = por %p2499_p2, %p2498_p1 }
   0x7   :  { %p2501_p4 = pnand %p2500_p3, %p2494_p0 }
   0x9   :  { %2504 = shalt.err (!%p2501_p4)
}
   0xa   :  { %s2507_s28 = smov [#allocation2]  }
   0xb   :  { %22 = dma.vmem_to_smem %s20_s26, 16, %s2507_s28, [#allocation3]  }
   0xc   :  { %2505 = dma.done.wait [#allocation3], 16  }
   0xd   :  { %2506 = vsyncadd [#allocation3], 4294967280 }
   0xe   :  { %38 = sfence }
   0xf   :  { %v60_v0 = vld [vmem:[%s4199_s4] sm:$0xff]  ;;  %v61_v1 = vld [vmem:[%s4199_s4 + $0x8] sm:$0xff]  ;;  %vm69_vm0 = vcmask 130048   ;;  %v4215_v4 = vmov 0   ;;  %v46_v6 = vld [vmem:[%s4197_s2 + $0x10] sm:$0xff]  ;;  %v4218_v52 = vmov 5  }
  0x10   :  { %v44_v2 = vld [vmem:[%s4197_s2] sm:$0xff]  ;;  %v2234_v3 = vpack.c.bf16 %v61_v1, %v60_v0  ;;  %2249 = vset.pattern.permute.xlu1 %v4215_v4  ;;  %v45_v5 = vld [vmem:[%s4197_s2 + $0x8] sm:$0xff]  ;;  %v47_v13 = vld [vmem:[%s4197_s2 + $0x18] sm:$0xff]  ;;  %2252 = vset.pattern.permute.xlu0 %v4218_v52  ;;  %v4209_v59 = vmov 7   ;;  %v4213_v60 = vmov 2   ;;  %v4205_v1 = vmov 4  }
  0x11   :  { %2170 = vmatprep.mubr.msk.f32.mxu0 %vm69_vm0, %v44_v2  ;;  %v2581_v7 = vld [vmem:[%s4198_s3] sm:$0xf]  ;;  %v265_v8 = vld [vmem:[%s4198_s3 + $0x8] sm:$0xf]  ;;  %v2589_v9 = vld [vmem:[%s4198_s3 + $0x4] sm:$0xf] }
  0x12   :  { %2235 = vmatprep.subr.bf16.mxu0 %v2234_v3  ;;  %v295_v10 = vunpack.c.l.bf16 %v2581_v7  ;;  %v297_v11 = vunpack.c.l.bf16 %v265_v8  ;;  %v2596_v12 = vld [vmem:[%s4198_s3 + $0xc] sm:$0xf]  ;;  %v48_v14 = vld [vmem:[%s4197_s2 + $0x20] sm:$0xff]  ;;  %v296_v15 = vunpack.c.l.bf16 %v2589_v9  ;;  %v267_v17 = vld [vmem:[%s4198_s3 + $0x10] sm:$0xf]  ;;  %v4211_v8 = vmov 6  }
  0x13   :  { %2237 = vmatpush3.bf16.msra.mxu0 %v2234_v3  ;;  %v298_v16 = vunpack.c.l.bf16 %v2596_v12  ;;  %v268_v18 = vld [vmem:[%s4198_s3 + $0x14] sm:$0xf]  ;;  %v49_v19 = vld [vmem:[%s4197_s2 + $0x28] sm:$0xff]  ;;  %v299_v21 = vunpack.c.l.bf16 %v267_v17  ;;  %v269_v23 = vld [vmem:[%s4198_s3 + $0x18] sm:$0xf]  ;;  %s2121_s24 = sld [smem:[#allocation2 + $0x1]] }
  0x14   :  { %311 = vmax.xlane.f32.xlu0 %v295_v10  ;;  %315 = vmax.xlane.f32.xlu1 %v297_v11  ;;  %v50_v20 = vld [vmem:[%s4197_s2 + $0x30] sm:$0xff]  ;;  %v300_v22 = vunpack.c.l.bf16 %v268_v18  ;;  %v270_v24 = vld [vmem:[%s4198_s3 + $0x1c] sm:$0xf]  ;;  %v52_v26 = vld [vmem:[%s4197_s2 + $0x40] sm:$0xff]  ;;  %v301_v27 = vunpack.c.l.bf16 %v269_v23  ;;  %s2997_s27 = sld [smem:[#allocation2 + $0x5]]  ;;  %s3005_s28 = sld [smem:[#allocation2]] }
  0x15   :  { %v51_v25 = vld [vmem:[%s4197_s2 + $0x38] sm:$0xff]  ;;  %v302_v28 = vunpack.c.l.bf16 %v270_v24  ;;  %v271_v29 = vld [vmem:[%s4198_s3 + $0x20] sm:$0xf]  ;;  %v272_v30 = vld [vmem:[%s4198_s3 + $0x24] sm:$0xf]  ;;  %s3016_s29 = sld [smem:[#allocation2 + $0x2]] }
  0x16   :  { %2171 = vmatmul.mubr.msk.f32.vlgmr.msra.gmra.mrb[0].mxu0 %vm69_vm0, %v45_v5  ;;  %v53_v31 = vld [vmem:[%s4197_s2 + $0x48] sm:$0xff]  ;;  %v54_v32 = vld [vmem:[%s4197_s2 + $0x50] sm:$0xff]  ;;  %v303_v33 = vunpack.c.l.bf16 %v271_v29  ;;  %v304_v34 = vunpack.c.l.bf16 %v272_v30  ;;  %v55_v37 = vld [vmem:[%s4197_s2 + $0x58] sm:$0xff]  ;;  %s3018_s30 = sld [smem:[#allocation2 + $0x4]]  ;;  %vm279_vm1 = vcmp.gt.bf16.partialorder %v2581_v7, 0  ;;  %s3026_s8 = sld [smem:[#allocation2 + $0x6]] }
  0x17   :  { %2173 = vmatprep.mubr.msk.f32.mxu0 %vm69_vm0, %v46_v6  ;;  %v273_v35 = vld [vmem:[%s4198_s3 + $0x28] sm:$0xf]  ;;  %v274_v36 = vld [vmem:[%s4198_s3 + $0x2c] sm:$0xf]  ;;  %v56_v38 = vld [vmem:[%s4197_s2 + $0x60] sm:$0xff]  ;;  %s3053_s9 = sld [smem:[#allocation2 + $0x3]] }
  0x18   :  { %313 = vmax.xlane.f32.xlu0 %v296_v15  ;;  %317 = vmax.xlane.f32.xlu1 %v298_v16  ;;  %v305_v39 = vunpack.c.l.bf16 %v273_v35  ;;  %v306_v40 = vunpack.c.l.bf16 %v274_v36  ;;  %v275_v41 = vld [vmem:[%s4198_s3 + $0x30] sm:$0xf]  ;;  %v276_v42 = vld [vmem:[%s4198_s3 + $0x34] sm:$0xf]  ;;  %v57_v43 = vld [vmem:[%s4197_s2 + $0x68] sm:$0xff]  ;;  %v4203_v15 = vmov 3  }
  0x19   :  { %v58_v44 = vld [vmem:[%s4197_s2 + $0x70] sm:$0xff]  ;;  %v307_v45 = vunpack.c.l.bf16 %v275_v41  ;;  %v308_v46 = vunpack.c.l.bf16 %v276_v42  ;;  %v277_v47 = vld [vmem:[%s4198_s3 + $0x38] sm:$0xf]  ;;  %v278_v48 = vld [vmem:[%s4198_s3 + $0x3c] sm:$0xf]  ;;  %s3090_s0 = sld [smem:[#allocation2 + $0x7]] }
  0x1a   :  { %2174 = vmatmul.mubr.msk.f32.gmra.mrb[2].mxu0 %vm69_vm0, %v47_v13  ;;  %v59_v49 = vld [vmem:[%s4197_s2 + $0x78] sm:$0xff]  ;;  %v309_v50 = vunpack.c.l.bf16 %v277_v47  ;;  %v310_v51 = vunpack.c.l.bf16 %v278_v48  ;;  %v2693_v53 = vld [vmem:[%s4200_s5] ss:$0 sm:$0xff]  ;;  %vm280_vm2 = vcmp.gt.bf16.partialorder %v2589_v9, 0  ;;  %vm282_vm4 = vcmp.gt.bf16.partialorder %v2596_v12, 0 }
  0x1b   :  { %2176 = vmatprep.mubr.msk.f32.mxu0 %vm69_vm0, %v48_v14 }
  0x1c   :  { %319 = vmax.xlane.f32.xlu0 %v299_v21  ;;  %321 = vmax.xlane.f32.xlu1 %v300_v22  ;;  %v4207_v22 = vmov 1  }
  0x1e   :  { %2177 = vmatmul.mubr.msk.f32.gmra.mrb[4].mxu0 %vm69_vm0, %v49_v19 }
  0x1f   :  { %2179 = vmatprep.mubr.msk.f32.mxu0 %vm69_vm0, %v50_v20 }
  0x20   :  { %323 = vmax.xlane.f32.xlu0 %v301_v27  ;;  %325 = vmax.xlane.f32.xlu1 %v302_v28 }
  0x22   :  { %2180 = vmatmul.mubr.msk.f32.gmra.mrb[6].mxu0 %vm69_vm0, %v51_v25 }
  0x23   :  { %2182 = vmatprep.mubr.msk.f32.mxu0 %vm69_vm0, %v52_v26 }
  0x24   :  { %327 = vmax.xlane.f32.xlu0 %v303_v33  ;;  %329 = vmax.xlane.f32.xlu1 %v304_v34 }
  0x26   :  { %2183 = vmatmul.mubr.msk.f32.gmra.mrb[8].mxu0 %vm69_vm0, %v53_v31 }
  0x27   :  { %2185 = vmatprep.mubr.msk.f32.mxu0 %vm69_vm0, %v54_v32 }
  0x28   :  { %331 = vmax.xlane.f32.xlu0 %v305_v39  ;;  %333 = vmax.xlane.f32.xlu1 %v306_v40 }
  0x2a   :  { %2186 = vmatmul.mubr.msk.f32.gmra.mrb[10].mxu0 %vm69_vm0, %v55_v37 }
  0x2b   :  { %2188 = vmatprep.mubr.msk.f32.mxu0 %vm69_vm0, %v56_v38 }
  0x2c   :  { %335 = vmax.xlane.f32.xlu0 %v307_v45  ;;  %337 = vmax.xlane.f32.xlu1 %v308_v46 }
  0x2e   :  { %2189 = vmatmul.mubr.msk.f32.gmra.mrb[12].mxu0 %vm69_vm0, %v57_v43 }
  0x2f   :  { %2191 = vmatprep.mubr.msk.f32.mxu0 %vm69_vm0, %v58_v44 }
  0x30   :  { %339 = vmax.xlane.f32.xlu0 %v309_v50  ;;  %341 = vmax.xlane.f32.xlu1 %v310_v51 }
  0x32   :  { %2192 = vmatmul.mubr.msk.f32.gmra.mrb[14].mxu0 %vm69_vm0, %v59_v49 }
  0xa1   :  { %v2805_v32 = vpop.xlane.xlu1 %315  ;;  %v2807_v33 = vpop.xlane.xlu0 %311 }
  0xa2   :  { %4249 = vst [vmem:[#allocation5_spill] sm:$0xff] %v2805_v32  ;;  %4250 = vst [vmem:[#allocation6_spill] sm:$0xff] %v2807_v33  ;;  %v4280_v32 = vmov 7  }
  0xa5   :  { %v2814_v34 = vpop.xlane.xlu1 %317  ;;  %v2816_v35 = vpop.xlane.xlu0 %313 }
  0xa6   :  { %4251 = vst [vmem:[#allocation7_spill] sm:$0xff] %v2814_v34  ;;  %4252 = vst [vmem:[#allocation8_spill] sm:$0xff] %v2816_v35 }
  0xa9   :  { %v2821_v36 = vpop.xlane.xlu1 %321  ;;  %v2823_v37 = vpop.xlane.xlu0 %319 }
  0xaa   :  { %4253 = vst [vmem:[#allocation9_spill] sm:$0xff] %v2821_v36  ;;  %4254 = vst [vmem:[#allocation10_spill] sm:$0xff] %v2823_v37 }
  0xad   :  { %v2829_v38 = vpop.xlane.xlu1 %325  ;;  %v2831_v39 = vpop.xlane.xlu0 %323 }
  0xae   :  { %4255 = vst [vmem:[#allocation11_spill] sm:$0xff] %v2829_v38  ;;  %4256 = vst [vmem:[#allocation12_spill] sm:$0xff] %v2831_v39 }
  0xb1   :  { %v2837_v40 = vpop.xlane.xlu1 %329  ;;  %v2839_v41 = vpop.xlane.xlu0 %327 }
  0xb2   :  { %4257 = vst [vmem:[#allocation13_spill] sm:$0xff] %v2837_v40  ;;  %4258 = vst [vmem:[#allocation14_spill] sm:$0xff] %v2839_v41 }
  0xb5   :  { %v2845_v42 = vpop.xlane.xlu1 %333  ;;  %v2847_v43 = vpop.xlane.xlu0 %331 }
  0xb6   :  { %4259 = vst [vmem:[#allocation15_spill] sm:$0xff] %v2845_v42  ;;  %4260 = vst [vmem:[#allocation16_spill] sm:$0xff] %v2847_v43  ;;  %v4277_v43 = vmov 6  }
  0xb9   :  { %v2854_v44 = vpop.xlane.xlu1 %337  ;;  %v2856_v45 = vpop.xlane.xlu0 %335 }
  0xba   :  { %4261 = vst [vmem:[#allocation17_spill] sm:$0xff] %v2854_v44  ;;  %4262 = vst [vmem:[#allocation18_spill] sm:$0xff] %v2856_v45  ;;  %v43_v44 = vld [vmem:[%s4196_s1 + $0x4] sm:$0xf] }
  0xbd   :  { %v2861_v46 = vpop.xlane.xlu1 %341  ;;  %v2863_v47 = vpop.xlane.xlu0 %339 }
  0xbe   :  { %4263 = vst [vmem:[#allocation19_spill] sm:$0xff] %v2861_v46  ;;  %4264 = vst [vmem:[#allocation20_spill] sm:$0xff] %v2863_v47 }
  0xe9   :  { %v2172_v54 = vpop.f32.mrb[0].mxu0 }
  0xea   :  { %v2696_v55 = vadd.f32 %v2172_v54, %v2693_v53  ;;  %v184_v56 = vpop.f32.mrb[1].mxu0 }
  0xeb   :  { %v2708_v0 = vadd.f32 %v2693_v53, %v184_v56 }
  0xec   :  { %1362 = vperm.xlu0 %2252, %v2696_v55   ;;  %366 = vperm.xlu1 %2249, %v2696_v55  }
  0xed   :  { %v2175_v57 = vpop.f32.mrb[2].mxu0 }
  0xee   :  { %v194_v58 = vpop.f32.mrb[3].mxu0  ;;  %v2732_v17 = vadd.f32 %v2175_v57, %v2693_v53 }
  0xef   :  { %v2745_v24 = vadd.f32 %v2693_v53, %v194_v58 }
  0xf0   :  { %2255 = vset.pattern.permute.xlu0 %v4209_v59  ;;  %2250 = vset.pattern.permute.xlu1 %v4213_v60 }
  0xf1   :  { %1662 = vperm.xlu0 %2255, %v2696_v55   ;;  %680 = vperm.xlu1 %2250, %v2696_v55   ;;  %v2178_v61 = vpop.f32.mrb[4].mxu0 }
  0xf2   :  { %v204_v62 = vpop.f32.mrb[5].mxu0  ;;  %v2762_v28 = vadd.f32 %v2178_v61, %v2693_v53 }
  0xf3   :  { %v2705_v63 = vadd.f32 %v2693_v53, %v204_v62 }
  0xf5   :  { %2256 = vset.pattern.permute.xlu0 %v4215_v4  ;;  %2251 = vset.pattern.permute.xlu1 %v4205_v1  ;;  %v2181_v2 = vpop.f32.mrb[6].mxu0 }
  0xf6   :  { %1212 = vperm.xlu1 %2251, %v2696_v55   ;;  %361 = vperm.xlu0 %2256, %v2708_v0   ;;  %v214_v3 = vpop.f32.mrb[7].mxu0  ;;  %v2769_v29 = vadd.f32 %v2181_v2, %v2693_v53 }
  0xf7   :  { %v2715_v5 = vadd.f32 %v2693_v53, %v214_v3 }
  0xf9   :  { %v2184_v6 = vpop.f32.mrb[8].mxu0 }
  0xfa   :  { %2253 = vset.pattern.permute.xlu1 %v4211_v8  ;;  %2258 = vset.pattern.permute.xlu0 %v4213_v60  ;;  %v224_v10 = vpop.f32.mrb[9].mxu0  ;;  %v2783_v30 = vadd.f32 %v2184_v6, %v2693_v53 }
  0xfb   :  { %1512 = vperm.xlu1 %2253, %v2696_v55   ;;  %676 = vperm.xlu0 %2258, %v2708_v0   ;;  %v2722_v11 = vadd.f32 %v2693_v53, %v224_v10 }
  0xfd   :  { %v2187_v13 = vpop.f32.mrb[10].mxu0 }
  0xfe   :  { %v234_v14 = vpop.f32.mrb[11].mxu0  ;;  %v2789_v31 = vadd.f32 %v2187_v13, %v2693_v53 }
  0xff   :  { %2254 = vset.pattern.permute.xlu1 %v4203_v15  ;;  %2261 = vset.pattern.permute.xlu0 %v4203_v15  ;;  %v2727_v16 = vadd.f32 %v2693_v53, %v234_v14 }
 0x100   :  { %830 = vperm.xlu1 %2254, %v2696_v55   ;;  %826 = vperm.xlu0 %2261, %v2708_v0  }
 0x101   :  { %v2190_v18 = vpop.f32.mrb[12].mxu0 }
 0x102   :  { %v2735_v19 = vadd.f32 %v2190_v18, %v2693_v53  ;;  %v244_v20 = vpop.f32.mrb[13].mxu0 }
 0x103   :  { %v2738_v21 = vadd.f32 %v2693_v53, %v244_v20 }
 0x104   :  { %2257 = vset.pattern.permute.xlu1 %v4207_v22  ;;  %2265 = vset.pattern.permute.xlu0 %v4213_v60 }
 0x105   :  { %526 = vperm.xlu1 %2257, %v2708_v0   ;;  %688 = vperm.xlu0 %2265, %v2732_v17   ;;  %v2193_v23 = vpop.f32.mrb[14].mxu0 }
 0x106   :  { %v2748_v25 = vadd.f32 %v2193_v23, %v2693_v53  ;;  %v254_v26 = vpop.f32.mrb[15].mxu0 }
 0x107   :  { %v2751_v27 = vadd.f32 %v2693_v53, %v254_v26 }
 0x109   :  { %2259 = vset.pattern.permute.xlu1 %v4218_v52  ;;  %2274 = vset.pattern.permute.xlu0 %v4218_v52 }
 0x10a   :  { %1358 = vperm.xlu1 %2259, %v2708_v0   ;;  %1366 = vperm.xlu0 %2274, %v2745_v24  }
 0x10e   :  { %2260 = vset.pattern.permute.xlu1 %v4211_v8  ;;  %2277 = vset.pattern.permute.xlu0 %v4209_v59 }
 0x10f   :  { %1508 = vperm.xlu1 %2260, %v2708_v0   ;;  %1666 = vperm.xlu0 %2277, %v2745_v24  }
 0x113   :  { %2262 = vset.pattern.permute.xlu1 %v4209_v59  ;;  %2280 = vset.pattern.permute.xlu0 %v4213_v60 }
 0x114   :  { %1658 = vperm.xlu1 %2262, %v2708_v0   ;;  %696 = vperm.xlu0 %2280, %v2762_v28  }
 0x118   :  { %2263 = vset.pattern.permute.xlu1 %v4215_v4  ;;  %704 = vperm.xlu0 %2280, %v2769_v29  }
 0x119   :  { %376 = vperm.xlu1 %2263, %v2732_v17  }
 0x11c   :  { %2293 = vset.pattern.permute.xlu0 %v4218_v52 }
 0x11d   :  { %2264 = vset.pattern.permute.xlu1 %v4207_v22  ;;  %1386 = vperm.xlu0 %2293, %v2769_v29  }
 0x11e   :  { %538 = vperm.xlu1 %2264, %v2732_v17  }
 0x121   :  { %2296 = vset.pattern.permute.xlu0 %v4209_v59 }
 0x122   :  { %2266 = vset.pattern.permute.xlu1 %v4205_v1  ;;  %1686 = vperm.xlu0 %2296, %v2769_v29  }
 0x123   :  { %1220 = vperm.xlu1 %2266, %v2732_v17  }
 0x126   :  { %2302 = vset.pattern.permute.xlu0 %v4215_v4 }
 0x127   :  { %2267 = vset.pattern.permute.xlu1 %v4218_v52  ;;  %406 = vperm.xlu0 %2302, %v2783_v30  }
 0x128   :  { %1370 = vperm.xlu1 %2267, %v2732_v17  }
 0x12b   :  { %416 = vperm.xlu0 %2302, %v2789_v31  }
 0x12c   :  { %2268 = vset.pattern.permute.xlu1 %v4203_v15 }
 0x12d   :  { %838 = vperm.xlu1 %2268, %v2732_v17  }
 0x12f   :  { %2314 = vset.pattern.permute.xlu0 %v4218_v52 }
 0x130   :  { %1390 = vperm.xlu0 %2314, %v2722_v11  }
 0x131   :  { %2269 = vset.pattern.permute.xlu1 %v4209_v59 }
 0x132   :  { %1670 = vperm.xlu1 %2269, %v2732_v17  }
 0x134   :  { %2315 = vset.pattern.permute.xlu0 %v4205_v1 }
 0x135   :  { %1208 = vperm.xlu0 %2315, %v2708_v0  }
 0x136   :  { %2270 = vset.pattern.permute.xlu1 %v4215_v4 }
 0x137   :  { %371 = vperm.xlu1 %2270, %v2745_v24  }
 0x139   :  { %1228 = vperm.xlu0 %2315, %v2762_v28  }
 0x13b   :  { %2271 = vset.pattern.permute.xlu1 %v4207_v22 }
 0x13c   :  { %534 = vperm.xlu1 %2271, %v2745_v24  }
 0x13d   :  { %1232 = vperm.xlu0 %2315, %v2715_v5  }
 0x140   :  { %2272 = vset.pattern.permute.xlu1 %v4213_v60 }
 0x141   :  { %684 = vperm.xlu1 %2272, %v2745_v24   ;;  %1248 = vperm.xlu0 %2315, %v2727_v16  }
 0x145   :  { %2273 = vset.pattern.permute.xlu1 %v4205_v1  ;;  %1256 = vperm.xlu0 %2315, %v2738_v21  }
 0x146   :  { %1216 = vperm.xlu1 %2273, %v2745_v24  }
 0x149   :  { %2327 = vset.pattern.permute.xlu0 %v4207_v22 }
 0x14a   :  { %2275 = vset.pattern.permute.xlu1 %v4211_v8  ;;  %530 = vperm.xlu0 %2327, %v2696_v55  }
 0x14b   :  { %1516 = vperm.xlu1 %2275, %v2745_v24  }
 0x14e   :  { %542 = vperm.xlu0 %2327, %v2705_v63  }
 0x14f   :  { %2276 = vset.pattern.permute.xlu1 %v4203_v15 }
 0x150   :  { %834 = vperm.xlu1 %2276, %v2745_v24   ;;  %v439_v24 = vlaneseq }
 0x152   :  { %550 = vperm.xlu0 %2327, %v2715_v5  }
 0x154   :  { %2278 = vset.pattern.permute.xlu1 %v4215_v4 }
 0x155   :  { %386 = vperm.xlu1 %2278, %v2762_v28  }
 0x156   :  { %558 = vperm.xlu0 %2327, %v2722_v11  }
 0x159   :  { %2279 = vset.pattern.permute.xlu1 %v4207_v22 }
 0x15a   :  { %546 = vperm.xlu1 %2279, %v2762_v28   ;;  %566 = vperm.xlu0 %2327, %v2727_v16  }
 0x15e   :  { %2281 = vset.pattern.permute.xlu1 %v4218_v52  ;;  %574 = vperm.xlu0 %2327, %v2738_v21  }
 0x15f   :  { %1378 = vperm.xlu1 %2281, %v2762_v28  }
 0x162   :  { %582 = vperm.xlu0 %2327, %v2751_v27  }
 0x163   :  { %2282 = vset.pattern.permute.xlu1 %v4211_v8 }
 0x164   :  { %1528 = vperm.xlu1 %2282, %v2762_v28  }
 0x166   :  { %2334 = vset.pattern.permute.xlu0 %v4205_v1 }
 0x167   :  { %1264 = vperm.xlu0 %2334, %v2751_v27  }
 0x168   :  { %2283 = vset.pattern.permute.xlu1 %v4209_v59 }
 0x169   :  { %1678 = vperm.xlu1 %2283, %v2762_v28  }
 0x16b   :  { %v2869_v48 = vpop.permute.xlu0 %1362  ;;  %v2871_v49 = vpop.permute.xlu1 %366  ;;  %2335 = vset.pattern.permute.xlu0 %v4218_v52 }
 0x16c   :  { %4265 = vst [vmem:[#allocation21_spill] sm:$0xff] %v2871_v49  ;;  %1402 = vperm.xlu0 %2335, %v2789_v31  }
 0x16d   :  { %2284 = vset.pattern.permute.xlu1 %v4215_v4 }
 0x16e   :  { %381 = vperm.xlu1 %2284, %v2705_v63  }
 0x170   :  { %v2877_v50 = vpop.permute.xlu0 %1662  ;;  %v2879_v51 = vpop.permute.xlu1 %680  ;;  %1410 = vperm.xlu0 %2335, %v2735_v19  }
 0x171   :  { %4266 = vst [vmem:[#allocation22_spill] sm:$0xff] %v2879_v51 }
 0x172   :  { %2285 = vset.pattern.permute.xlu1 %v4213_v60 }
 0x173   :  { %692 = vperm.xlu1 %2285, %v2705_v63  }
 0x174   :  { %1418 = vperm.xlu0 %2335, %v2748_v25  }
 0x175   :  { %v2885_v53 = vpop.permute.xlu1 %1212  ;;  %v2887_v54 = vpop.permute.xlu0 %361 }
 0x177   :  { %2286 = vset.pattern.permute.xlu1 %v4205_v1 }
 0x178   :  { %1224 = vperm.xlu1 %2286, %v2705_v63   ;;  %2338 = vset.pattern.permute.xlu0 %v4211_v8 }
 0x179   :  { %1520 = vperm.xlu0 %2338, %v2732_v17  }
 0x17a   :  { %v2893_v55 = vpop.permute.xlu1 %1512  ;;  %v2895_v56 = vpop.permute.xlu0 %676 }
 0x17c   :  { %2287 = vset.pattern.permute.xlu1 %v4218_v52 }
 0x17d   :  { %1374 = vperm.xlu1 %2287, %v2705_v63   ;;  %1524 = vperm.xlu0 %2338, %v2705_v63  }
 0x17f   :  { %v2900_v57 = vpop.permute.xlu1 %830  ;;  %v2902_v58 = vpop.permute.xlu0 %826 }
 0x180   :  { %4267 = vst [vmem:[#allocation23_spill] sm:$0xff] %v2900_v57 }
 0x181   :  { %2288 = vset.pattern.permute.xlu1 %v4203_v15  ;;  %1540 = vperm.xlu0 %2338, %v2722_v11  }
 0x182   :  { %842 = vperm.xlu1 %2288, %v2705_v63  }
 0x184   :  { %v527_v61 = vpop.permute.xlu1 %526  ;;  %v2907_v62 = vpop.permute.xlu0 %688 }
 0x185   :  { %1548 = vperm.xlu0 %2338, %v2727_v16  }
 0x186   :  { %2289 = vset.pattern.permute.xlu1 %v4209_v59 }
 0x187   :  { %1674 = vperm.xlu1 %2289, %v2705_v63  }
 0x189   :  { %v2912_v0 = vpop.permute.xlu1 %1358  ;;  %1556 = vperm.xlu0 %2338, %v2738_v21   ;;  %v2915_v2 = vpop.permute.xlu0 %1366 }
 0x18a   :  { %4268 = vst [vmem:[#allocation24_spill] sm:$0xff] %v2915_v2 }
 0x18b   :  { %2290 = vset.pattern.permute.xlu1 %v4215_v4 }
 0x18c   :  { %396 = vperm.xlu1 %2290, %v2769_v29  }
 0x18d   :  { %1564 = vperm.xlu0 %2338, %v2751_v27  }
 0x18e   :  { %v2920_v3 = vpop.permute.xlu1 %1508  ;;  %v2922_v6 = vpop.permute.xlu0 %1666 }
 0x18f   :  { %4269 = vst [vmem:[#allocation25_spill] sm:$0xff] %v2922_v6  ;;  %v4285_v6 = vmov 1  }
 0x190   :  { %2291 = vset.pattern.permute.xlu1 %v4207_v22 }
 0x191   :  { %554 = vperm.xlu1 %2291, %v2769_v29   ;;  %2340 = vset.pattern.permute.xlu0 %v4203_v15 }
 0x192   :  { %846 = vperm.xlu0 %2340, %v2762_v28   ;;  %v2959_v28 = vshrl.u32 %v439_v24, 7  ;;  %v42_v24 = vld [vmem:[%s4196_s1] sm:$0xf] }
 0x193   :  { %v2928_v63 = vpop.permute.xlu1 %1658  ;;  %v2930_v10 = vpop.permute.xlu0 %696 }
 0x194   :  { %v441_v22 = vsub.s32 0, %v2959_v28  ;;  %v741_v47 = vsub.s32 2, %v2959_v28  ;;  %v891_v40 = vsub.s32 3, %v2959_v28 }
 0x195   :  { %2292 = vset.pattern.permute.xlu1 %v4205_v1  ;;  %v591_v1 = vsub.s32 1, %v2959_v28 }
 0x196   :  { %1236 = vperm.xlu1 %2292, %v2769_v29   ;;  %850 = vperm.xlu0 %2340, %v2715_v5   ;;  %v2994_v42 = vrot.slane %v43_v44, %v441_v22  ;;  %v3000_v41 = vrot.slane %v42_v24, %v741_v47  ;;  %v3010_v37 = vrot.slane %v42_v24, %v891_v40 }
 0x197   :  { %v2935_v13 = vpop.permute.xlu0 %704  ;;  %v3003_v38 = vrot.slane %v43_v44, %v591_v1 }
 0x198   :  { %4270 = vst [vmem:[#allocation26_spill] sm:$0xff] %v2935_v13  ;;  %v2937_v14 = vpop.permute.xlu1 %376  ;;  %4276 = vst [vmem:[#allocation32_spill] sm:$0xff] %v2994_v42  ;;  %v743_v36 = vadd.f32 %v3000_v41, %v2895_v56  ;;  %v3028_v56 = vstv %s2121_s24 }
 0x199   :  { %4278 = vst [vmem:[#allocation33_spill] sm:$0xff] %v3003_v38  ;;  %v1425_v28 = vadd.f32 %v3003_v38, %v2912_v0 }
 0x19a   :  { %2294 = vset.pattern.permute.xlu1 %v4211_v8  ;;  %862 = vperm.xlu0 %2340, %v2783_v30   ;;  %v2976_v8 = vrot.slane %v42_v24, %v591_v1  ;;  %v3020_v1 = vrot.slane %v43_v44, %v741_v47  ;;  %v1276_v47 = vadd.f32 %v2994_v42, %v2885_v53  ;;  %v760_v33 = vmul.f32 0.2, %v743_v36 }
 0x19b   :  { %1536 = vperm.xlu1 %2294, %v2769_v29  }
 0x19c   :  { %v2942_v17 = vpop.permute.xlu0 %1386  ;;  %v593_v46 = vadd.f32 %v2976_v8, %v527_v61  ;;  %v1575_v7 = vadd.f32 %v3020_v1, %v2920_v3  ;;  %v3058_v3 = vrot.slane %v43_v44, %v891_v40 }
 0x19d   :  { %4271 = vst [vmem:[#allocation27_spill] sm:$0xff] %v2942_v17  ;;  %v2944_v18 = vpop.permute.xlu1 %538 }
 0x19e   :  { %870 = vperm.xlu0 %2340, %v2789_v31   ;;  %v610_v39 = vmul.f32 0.2, %v593_v46  ;;  %v1592_v51 = vmul.f32 0.2, %v1575_v7  ;;  %v1725_v40 = vadd.f32 %v3058_v3, %v2928_v63  ;;  %v596_v44 = vadd.f32 %v2976_v8, %v2944_v18 }
 0x19f   :  { %2295 = vset.pattern.permute.xlu1 %v4203_v15  ;;  %v1726_v18 = vadd.f32 %v3058_v3, %v2877_v50  ;;  %v746_v50 = vadd.f32 %v3000_v41, %v2907_v62 }
 0x1a0   :  { %854 = vperm.xlu1 %2295, %v2769_v29  }
 0x1a1   :  { %v2949_v20 = vpop.permute.xlu0 %1686 }
 0x1a2   :  { %4272 = vst [vmem:[#allocation28_spill] sm:$0xff] %v2949_v20  ;;  %v2951_v23 = vpop.permute.xlu1 %1220  ;;  %878 = vperm.xlu0 %2340, %v2735_v19  }
 0x1a4   :  { %2297 = vset.pattern.permute.xlu1 %v4215_v4 }
 0x1a5   :  { %391 = vperm.xlu1 %2297, %v2715_v5  }
 0x1a6   :  { %886 = vperm.xlu0 %2340, %v2748_v25   ;;  %v2957_v26 = vpop.permute.xlu0 %406 }
 0x1a7   :  { %4273 = vst [vmem:[#allocation29_spill] sm:$0xff] %v2957_v26  ;;  %v2961_v15 = vpop.permute.xlu1 %1370  ;;  %v3045_v26 = vstv %s2997_s27 }
 0x1a9   :  { %2298 = vset.pattern.permute.xlu1 %v4213_v60 }
 0x1aa   :  { %700 = vperm.xlu1 %2298, %v2715_v5   ;;  %2343 = vset.pattern.permute.xlu0 %v4215_v4  ;;  %v2966_v29 = vpop.permute.xlu0 %416  ;;  %v2983_v4 = vrot.slane %v42_v24, %v441_v22  ;;  %v626_v24 = vmax.f32 %v593_v46, %v610_v39  ;;  %v4283_v39 = vmov 0  }
 0x1ab   :  { %4274 = vst [vmem:[#allocation30_spill] sm:$0xff] %v2966_v29  ;;  %426 = vperm.xlu0 %2343, %v2735_v19   ;;  %v3042_v46 = vsel %vm279_vm1, 65537, %v4283_v39 }
 0x1ac   :  { %v2974_v59 = vpop.permute.xlu1 %838 }
 0x1ae   :  { %2299 = vset.pattern.permute.xlu1 %v4218_v52  ;;  %v443_v52 = vadd.f32 %v2983_v4, %v2887_v54 }
 0x1af   :  { %1382 = vperm.xlu1 %2299, %v2715_v5   ;;  %436 = vperm.xlu0 %2343, %v2748_v25   ;;  %v2981_v60 = vpop.permute.xlu0 %1390 }
 0x1b0   :  { %4275 = vst [vmem:[#allocation31_spill] sm:$0xff] %v2981_v60  ;;  %v460_v22 = vmul.f32 0.2, %v443_v52  ;;  %v1442_v60 = vmul.f32 0.2, %v1425_v28 }
 0x1b1   :  { %v2987_v45 = vpop.permute.xlu1 %1670 }
 0x1b2   :  { %v476_v35 = vmax.f32 %v443_v52, %v460_v22  ;;  %v1576_v52 = vadd.f32 %v3020_v1, %v2893_v55  ;;  %v643_v22 = vmul.f32 %v3028_v56, %v626_v24  ;;  %v776_v55 = vmax.f32 %v743_v36, %v760_v33 }
 0x1b3   :  { %2300 = vset.pattern.permute.xlu1 %v4277_v43  ;;  %v1458_v57 = vmax.f32 %v1425_v28, %v1442_v60  ;;  %v3070_v24 = vstv %s3016_s29  ;;  %v3080_v36 = vstv %s3026_s8  ;;  %v446_v60 = vadd.f32 %v2983_v4, %v2937_v14 }
 0x1b4   :  { %1532 = vperm.xlu1 %2300, %v2715_v5   ;;  %v1209_v61 = vpop.permute.xlu0 %1208  ;;  %v1593_v49 = vmul.f32 0.2, %v1576_v52  ;;  %v793_v13 = vmul.f32 %v3070_v24, %v776_v55  ;;  %v1742_v14 = vmul.f32 0.2, %v1725_v40 }
 0x1b5   :  { %v1275_v54 = vadd.f32 %v2994_v42, %v1209_v61 }
 0x1b6   :  { %v3012_v34 = vpop.permute.xlu1 %371  ;;  %v1758_v62 = vmax.f32 %v1725_v40, %v1742_v14 }
 0x1b7   :  { %4279 = vst [vmem:[#allocation34_spill] sm:$0xff] %v3012_v34  ;;  %v1292_v0 = vmul.f32 0.2, %v1275_v54  ;;  %v3035_v34 = vadd.f32 %v3010_v37, %v2902_v58  ;;  %v3056_v58 = vstv %s3005_s28 }
 0x1b8   :  { %2301 = vset.pattern.permute.xlu1 %v4280_v32  ;;  %v3023_v61 = vpop.permute.xlu0 %1228  ;;  %v493_v2 = vmul.f32 %v3056_v58, %v476_v35 }
 0x1b9   :  { %4281 = vst [vmem:[#allocation35_spill] sm:$0xff] %v3023_v61  ;;  %1682 = vperm.xlu1 %2301, %v2715_v5   ;;  %v1426_v5 = vadd.f32 %v3003_v38, %v2869_v48  ;;  %v1293_v48 = vmul.f32 0.2, %v1276_v47  ;;  %v613_v61 = vmul.f32 0.2, %v596_v44 }
 0x1ba   :  { %v659_v28 = vadd.f32 %v643_v22, %v493_v2  ;;  %v3099_v22 = vstv %s3053_s9 }
 0x1bb   :  { %v3039_v29 = vpop.permute.xlu1 %534  ;;  %v1309_v20 = vmax.f32 %v1276_v47, %v1293_v48 }
 0x1bc   :  { %4282 = vst [vmem:[#allocation36_spill] sm:$0xff] %v3039_v29  ;;  %v3051_v53 = vpop.permute.xlu0 %1232  ;;  %v1308_v29 = vmax.f32 %v1275_v54, %v1292_v0  ;;  %v1443_v54 = vmul.f32 0.2, %v1426_v5  ;;  %v3073_v0 = vstv %s3018_s30 }
 0x1bd   :  { %4284 = vst [vmem:[#allocation37_spill] sm:$0xff] %v3051_v53  ;;  %2303 = vset.pattern.permute.xlu1 %v4285_v6  ;;  %v910_v53 = vmul.f32 0.2, %v3035_v34  ;;  %v1326_v55 = vmul.f32 %v3073_v0, %v1309_v20 }
 0x1be   :  { %562 = vperm.xlu1 %2303, %v2783_v30   ;;  %v1325_v63 = vmul.f32 %v3073_v0, %v1308_v29  ;;  %v1459_v2 = vmax.f32 %v1426_v5, %v1443_v54  ;;  %v1609_v29 = vmax.f32 %v1576_v52, %v1593_v49  ;;  %v991_v49 = vunpack.c.l.b16 %v3042_v46 }
 0x1bf   :  { %v926_v17 = vmax.f32 %v3035_v34, %v910_v53  ;;  %v463_v34 = vmul.f32 0.2, %v446_v60  ;;  %v896_v53 = vadd.f32 %v3010_v37, %v2974_v59  ;;  %v629_v52 = vmax.f32 %v596_v44, %v613_v61 }
 0x1c0   :  { %v3075_v35 = vpop.permute.xlu1 %684  ;;  %v3077_v33 = vpop.permute.xlu0 %1248  ;;  %v4289_v54 = vmov 2   ;;  %v1476_v59 = vmul.f32 %v3045_v26, %v1459_v2  ;;  %vm3118_vm3 = vcmp.ne.s32.totalorder %v991_v49, 0 }
 0x1c1   :  { %4286 = vst [vmem:[#allocation38_spill] sm:$0xff] %v3075_v35  ;;  %4287 = vst [vmem:[#allocation39_spill] sm:$0xff] %v3077_v33  ;;  %v1475_v33 = vmul.f32 %v3045_v26, %v1458_v57  ;;  %v1608_v35 = vmax.f32 %v1575_v7, %v1592_v51  ;;  %v809_v51 = vadd.f32 %v793_v13, %v659_v28  ;;  %v1743_v7 = vmul.f32 0.2, %v1726_v18 }
 0x1c2   :  { %2304 = vset.pattern.permute.xlu1 %v4283_v39  ;;  %v1626_v13 = vmul.f32 %v3080_v36, %v1609_v29  ;;  %v479_v20 = vmax.f32 %v446_v60, %v463_v34  ;;  %v913_v46 = vmul.f32 0.2, %v896_v53  ;;  %v1492_v28 = vadd.f32 %v1476_v59, %v1326_v55 }
 0x1c3   :  { %401 = vperm.xlu1 %2304, %v2722_v11   ;;  %v1491_v57 = vadd.f32 %v1475_v33, %v1325_v63  ;;  %v1625_v5 = vmul.f32 %v3080_v36, %v1608_v35  ;;  %v763_v33 = vmul.f32 0.2, %v746_v50  ;;  %v1759_v14 = vmax.f32 %v1726_v18, %v1743_v7 }
 0x1c4   :  { %v3096_v47 = vpop.permute.xlu0 %1256  ;;  %v646_v2 = vmul.f32 %v3028_v56, %v629_v52  ;;  %v976_v60 = vsel %vm280_vm2, 65537, %v4283_v39  ;;  %v4292_v34 = vmov 4   ;;  %v929_v49 = vmax.f32 %v896_v53, %v913_v46 }
 0x1c5   :  { %4288 = vst [vmem:[#allocation40_spill] sm:$0xff] %v3096_v47  ;;  %v3103_v48 = vpop.permute.xlu1 %1216  ;;  %v943_v47 = vmul.f32 %v3099_v22, %v926_v17  ;;  %v1641_v35 = vadd.f32 %v1625_v5, %v1491_v57  ;;  %v3123_v17 = vstv %s3090_s0  ;;  %v496_v57 = vmul.f32 %v3056_v58, %v479_v20 }
 0x1c6   :  { %v1775_v29 = vmul.f32 %v3123_v17, %v1758_v62  ;;  %v992_v9 = vunpack.c.l.b16 %v976_v60  ;;  %v978_v62 = vsel %vm282_vm4, 65537, %v4283_v39  ;;  %v4297_v20 = vmov 0 }
 0x1c7   :  { %2305 = vset.pattern.permute.xlu1 %v4289_v54  ;;  %v959_v40 = vadd.f32 %v943_v47, %v809_v51  ;;  %v779_v47 = vmax.f32 %v746_v50, %v763_v33  ;;  %v1642_v51 = vadd.f32 %v1626_v13, %v1492_v28  ;;  %v1776_v50 = vmul.f32 %v3123_v17, %v1759_v14 }
 0x1c8   :  { %708 = vperm.xlu1 %2305, %v2722_v11   ;;  %v1791_v55 = vadd.f32 %v1775_v29, %v1641_v35  ;;  %v662_v5 = vadd.f32 %v646_v2, %v496_v57  ;;  %v946_v33 = vmul.f32 %v3099_v22, %v929_v49  ;;  %vm3156_vm5 = vcmp.ne.s32.totalorder %v992_v9, 0 }
 0x1c9   :  { %v3114_v63 = vpop.permute.xlu0 %530  ;;  %v3136_v18 = vsel %vm3118_vm3, %v959_v40, -1e+30  ;;  %v796_v53 = vmul.f32 %v3070_v24, %v779_v47  ;;  %v1792_v13 = vadd.f32 %v1776_v50, %v1642_v51  ;;  %v4298_v20 = vsel %vm3156_vm5, 4294967295, %v4297_v20 }
 0x1ca   :  { %v3116_v61 = vpop.permute.xlu1 %1516  ;;  %4293 = vst [vmem:[#allocation41_spill] sm:$0xff] %v3136_v18  ;;  %v3149_v52 = vsel %vm3118_vm3, %v1791_v55, -1e+30  ;;  %4299 = vst [vmem:[#allocation45_spill] sm:$0xff] %v4298_v20  ;;  %v994_v46 = vunpack.c.l.b16 %v978_v62 }
 0x1cb   :  { %4295 = vst [vmem:[#allocation43_spill] sm:$0xff] %v3149_v52  ;;  %v812_v40 = vadd.f32 %v796_v53, %v662_v5  ;;  %v3164_v44 = vsel %vm3156_vm5, %v1792_v13, -1e+30  ;;  %v1428_v53 = vadd.f32 %v3003_v38, %v2961_v15  ;;  %v1278_v13 = vadd.f32 %v2994_v42, %v2951_v23 }
 0x1cc   :  { %2306 = vset.pattern.permute.xlu1 %v4292_v34  ;;  %4300 = vst [vmem:[#allocation46_spill] sm:$0xff] %v3164_v44  ;;  %vm3170_vm6 = vcmp.ne.s32.totalorder %v994_v46, 0  ;;  %v1728_v15 = vadd.f32 %v3058_v3, %v2987_v45 }
 0x1cd   :  { %1240 = vperm.xlu1 %2306, %v2722_v11   ;;  %v3138_v7 = vpop.permute.xlu0 %542  ;;  %v962_v14 = vadd.f32 %v946_v33, %v812_v40  ;;  %v1445_v33 = vmul.f32 0.2, %v1428_v53 }
 0x1ce   :  { %4294 = vst [vmem:[#allocation42_spill] sm:$0xff] %v3138_v7  ;;  %1039 = vmax.xlane.f32.xlu0 %v3136_v18  ;;  %v1745_v23 = vmul.f32 0.2, %v1728_v15 }
 0x1cf   :  { %v3141_v12 = vpop.permute.xlu1 %834  ;;  %v3177_v60 = vsel %vm3170_vm6, %v962_v14, -1e+30  ;;  %v1295_v14 = vmul.f32 0.2, %v1278_v13 }
 0x1d0   :  { %4304 = vst [vmem:[#allocation48_spill] sm:$0xff] %v3177_v60 }
 0x1d1   :  { %2307 = vset.pattern.permute.xlu1 %v4285_v6  ;;  %v3151_v59 = vpop.permute.xlu0 %550  ;;  %v1311_v18 = vmax.f32 %v1278_v13, %v1295_v14 }
 0x1d2   :  { %4296 = vst [vmem:[#allocation44_spill] sm:$0xff] %v3151_v59  ;;  %570 = vperm.xlu1 %2307, %v2789_v31   ;;  %1823 = vmax.xlane.f32.xlu0 %v3149_v52 }
 0x1d3   :  { %v1328_v45 = vmul.f32 %v3073_v0, %v1311_v18 }
 0x1d4   :  { %v3160_v35 = vpop.permute.xlu1 %386 }
 0x1d5   :  { %v3166_v28 = vpop.permute.xlu0 %558 }
 0x1d6   :  { %4301 = vst [vmem:[#allocation47_spill] sm:$0xff] %v3166_v28  ;;  %2308 = vset.pattern.permute.xlu1 %v4283_v39  ;;  %1825 = vmax.xlane.f32.xlu0 %v3164_v44  ;;  %v1461_v44 = vmax.f32 %v1428_v53, %v1445_v33  ;;  %v1761_v53 = vmax.f32 %v1728_v15, %v1745_v23  ;;  %v4316_v23 = vmov 3  }
 0x1d7   :  { %411 = vperm.xlu1 %2308, %v2727_v16  }
 0x1d9   :  { %v547_v29 = vpop.permute.xlu1 %546  ;;  %v3179_v47 = vpop.permute.xlu0 %566 }
 0x1da   :  { %4305 = vst [vmem:[#allocation49_spill] sm:$0xff] %v3179_v47  ;;  %1045 = vmax.xlane.f32.xlu0 %v3177_v60  ;;  %v4314_v60 = vmov 5  }
 0x1db   :  { %2309 = vset.pattern.permute.xlu1 %v4285_v6 }
 0x1dc   :  { %578 = vperm.xlu1 %2309, %v2735_v19  }
 0x1dd   :  { %v3184_v51 = vpop.permute.xlu0 %574 }
 0x1de   :  { %4306 = vst [vmem:[#allocation50_spill] sm:$0xff] %v3184_v51  ;;  %v3186_v57 = vpop.permute.xlu1 %1378 }
 0x1e0   :  { %2310 = vset.pattern.permute.xlu1 %v4283_v39 }
 0x1e1   :  { %421 = vperm.xlu1 %2310, %v2738_v21   ;;  %v3190_v49 = vpop.permute.xlu0 %582 }
 0x1e2   :  { %4307 = vst [vmem:[#allocation51_spill] sm:$0xff] %v3190_v49 }
 0x1e3   :  { %v3192_v55 = vpop.permute.xlu1 %1528 }
 0x1e5   :  { %2311 = vset.pattern.permute.xlu1 %v4285_v6 }
 0x1e6   :  { %586 = vperm.xlu1 %2311, %v2748_v25   ;;  %v3196_v9 = vpop.permute.xlu0 %1264 }
 0x1e7   :  { %4308 = vst [vmem:[#allocation52_spill] sm:$0xff] %v3196_v9 }
 0x1e8   :  { %v3198_v50 = vpop.permute.xlu1 %1678 }
 0x1ea   :  { %2312 = vset.pattern.permute.xlu1 %v4283_v39 }
 0x1eb   :  { %431 = vperm.xlu1 %2312, %v2751_v27   ;;  %v3202_v5 = vpop.permute.xlu0 %1402 }
 0x1ec   :  { %4309 = vst [vmem:[#allocation53_spill] sm:$0xff] %v3202_v5 }
 0x1ed   :  { %v3204_v62 = vpop.permute.xlu1 %381 }
 0x1ee   :  { %4310 = vst [vmem:[#allocation54_spill] sm:$0xff] %v3204_v62 }
 0x1ef   :  { %2313 = vset.pattern.permute.xlu1 %v4292_v34  ;;  %v3209_v6 = vpop.permute.xlu0 %1410 }
 0x1f0   :  { %4311 = vst [vmem:[#allocation55_spill] sm:$0xff] %v3209_v6  ;;  %1244 = vperm.xlu1 %2313, %v2783_v30   ;;  %v1478_v6 = vmul.f32 %v3045_v26, %v1461_v44 }
 0x1f2   :  { %v3214_v46 = vpop.permute.xlu1 %692 }
 0x1f3   :  { %4312 = vst [vmem:[#allocation56_spill] sm:$0xff] %v3214_v46  ;;  %v3216_v40 = vpop.permute.xlu0 %1418 }
 0x1f4   :  { %4313 = vst [vmem:[#allocation57_spill] sm:$0xff] %v3216_v40  ;;  %2316 = vset.pattern.permute.xlu1 %v4314_v60 }
 0x1f5   :  { %1394 = vperm.xlu1 %2316, %v2783_v30  }
 0x1f7   :  { %v1225_v52 = vpop.permute.xlu1 %1224 }
 0x1f8   :  { %v1521_v9 = vpop.permute.xlu0 %1520  ;;  %v1279_v40 = vadd.f32 %v2994_v42, %v1225_v52 }
 0x1f9   :  { %v1578_v49 = vadd.f32 %v3020_v1, %v1521_v9  ;;  %2317 = vset.pattern.permute.xlu1 %v4289_v54  ;;  %v1494_v9 = vadd.f32 %v1478_v6, %v1328_v45 }
 0x1fa   :  { %712 = vperm.xlu1 %2317, %v2783_v30   ;;  %v1296_v14 = vmul.f32 0.2, %v1279_v40 }
 0x1fb   :  { %v1595_v51 = vmul.f32 0.2, %v1578_v49 }
 0x1fc   :  { %v1375_v20 = vpop.permute.xlu1 %1374  ;;  %v1525_v47 = vpop.permute.xlu0 %1524 }
 0x1fd   :  { %v1611_v33 = vmax.f32 %v1578_v49, %v1595_v51  ;;  %v1429_v13 = vadd.f32 %v3003_v38, %v1375_v20  ;;  %v1579_v46 = vadd.f32 %v3020_v1, %v1525_v47  ;;  %v1778_v51 = vmul.f32 %v3123_v17, %v1761_v53 }
 0x1fe   :  { %2318 = vset.pattern.permute.xlu1 %v4277_v43  ;;  %v598_v20 = vadd.f32 %v2976_v8, %v547_v29  ;;  %v1312_v49 = vmax.f32 %v1279_v40, %v1296_v14 }
 0x1ff   :  { %v1628_v5 = vmul.f32 %v3080_v36, %v1611_v33  ;;  %v1446_v44 = vmul.f32 0.2, %v1429_v13  ;;  %1544 = vperm.xlu1 %2318, %v2783_v30   ;;  %v1596_v6 = vmul.f32 0.2, %v1579_v46  ;;  %v2478_v33 = vld [vmem:[%s4198_s3 + $0x10] sm:$0xf] }
 0x200   :  { %v3233_v52 = vpop.permute.xlu0 %1540  ;;  %vm283_vm7 = vcmp.gt.bf16.partialorder %v2478_v33, 0  ;;  %v615_v40 = vmul.f32 0.2, %v598_v20  ;;  %v1329_v14 = vmul.f32 %v3073_v0, %v1312_v49 }
 0x201   :  { %v1462_v18 = vmax.f32 %v1429_v13, %v1446_v44  ;;  %v3235_v28 = vpop.permute.xlu1 %842  ;;  %v1644_v15 = vadd.f32 %v1628_v5, %v1494_v9  ;;  %v448_v5 = vadd.f32 %v2983_v4, %v3160_v35  ;;  %v1430_v9 = vadd.f32 %v3003_v38, %v3186_v57 }
 0x202   :  { %4315 = vst [vmem:[#allocation58_spill] sm:$0xff] %v3235_v28  ;;  %v1612_v44 = vmax.f32 %v1579_v46, %v1596_v6  ;;  %v748_v35 = vadd.f32 %v3000_v41, %v2930_v10  ;;  %v1580_v46 = vadd.f32 %v3020_v1, %v3192_v55  ;;  %v631_v49 = vmax.f32 %v598_v20, %v615_v40 }
 0x203   :  { %2319 = vset.pattern.permute.xlu1 %v4316_v23  ;;  %v1794_v45 = vadd.f32 %v1778_v51, %v1644_v15  ;;  %v1479_v53 = vmul.f32 %v3045_v26, %v1462_v18  ;;  %v979_v18 = vsel %vm283_vm7, 65537, %v4283_v39  ;;  %v4320_v51 = vld [vmem:[#allocation35_spill] sm:$0xff]  ;;  %v465_v33 = vmul.f32 0.2, %v448_v5 }
 0x204   :  { %858 = vperm.xlu1 %2319, %v2722_v11   ;;  %v3241_v47 = vpop.permute.xlu0 %1548  ;;  %v1447_v6 = vmul.f32 0.2, %v1430_v9  ;;  %v1629_v10 = vmul.f32 %v3080_v36, %v1612_v44  ;;  %v1730_v28 = vadd.f32 %v3058_v3, %v3198_v50  ;;  %v1597_v20 = vmul.f32 0.2, %v1580_v46 }
 0x205   :  { %4317 = vst [vmem:[#allocation59_spill] sm:$0xff] %v3241_v47  ;;  %v3251_v29 = vsel %vm3170_vm6, %v1794_v45, -1e+30  ;;  %v1280_v45 = vadd.f32 %v2994_v42, %v4320_v51  ;;  %v1495_v57 = vadd.f32 %v1479_v53, %v1329_v14  ;;  %v995_v51 = vunpack.c.l.b16 %v979_v18  ;;  %v2479_v14 = vld [vmem:[%s4198_s3 + $0x14] sm:$0xf] }
 0x206   :  { %4318 = vst [vmem:[#allocation60_spill] sm:$0xff] %v3251_v29  ;;  %v1675_v13 = vpop.permute.xlu1 %1674  ;;  %1829 = vmax.xlane.f32.xlu0 %v3251_v29  ;;  %v481_v7 = vmax.f32 %v448_v5, %v465_v33  ;;  %v648_v53 = vmul.f32 %v3028_v56, %v631_v49  ;;  %v1463_v40 = vmax.f32 %v1430_v9, %v1447_v6  ;;  %vm284_vm8 = vcmp.gt.bf16.partialorder %v2479_v14, 0 }
 0x207   :  { %v1729_v15 = vadd.f32 %v3058_v3, %v1675_v13  ;;  %v1297_v59 = vmul.f32 0.2, %v1280_v45  ;;  %v1747_v50 = vmul.f32 0.2, %v1730_v28  ;;  %vm3280_vm9 = vcmp.ne.s32.totalorder %v995_v51, 0  ;;  %v4326_v51 = vld [vmem:[#allocation27_spill] sm:$0xff] }
 0x208   :  { %2320 = vset.pattern.permute.xlu1 %v4280_v32  ;;  %v3261_v2 = vpop.permute.xlu0 %1556  ;;  %v498_v18 = vmul.f32 %v3056_v58, %v481_v7 }
 0x209   :  { %4319 = vst [vmem:[#allocation61_spill] sm:$0xff] %v3261_v2  ;;  %v1746_v29 = vmul.f32 0.2, %v1729_v15  ;;  %1690 = vperm.xlu1 %2320, %v2722_v11   ;;  %v765_v2 = vmul.f32 0.2, %v748_v35  ;;  %v1645_v11 = vadd.f32 %v1629_v10, %v1495_v57  ;;  %v1313_v5 = vmax.f32 %v1280_v45, %v1297_v59 }
 0x20a   :  { %v1613_v57 = vmax.f32 %v1580_v46, %v1597_v20  ;;  %v1480_v10 = vmul.f32 %v3045_v26, %v1463_v40  ;;  %v1763_v59 = vmax.f32 %v1730_v28, %v1747_v50  ;;  %v980_v45 = vsel %vm284_vm8, 65537, %v4283_v39 }
 0x20b   :  { %v1762_v13 = vmax.f32 %v1729_v15, %v1746_v29  ;;  %v397_v47 = vpop.permute.xlu1 %396  ;;  %v4322_v15 = vmov 0  ;;  %v1432_v46 = vadd.f32 %v3003_v38, %v4326_v51  ;;  %v996_v50 = vunpack.c.l.b16 %v980_v45 }
 0x20c   :  { %v3272_v62 = vpop.permute.xlu0 %1564  ;;  %v4323_v15 = vsel %vm3280_vm9, 4294967295, %v4322_v15  ;;  %v450_v7 = vadd.f32 %v2983_v4, %v397_v47  ;;  %v1630_v20 = vmul.f32 %v3080_v36, %v1613_v57  ;;  %v4327_v47 = vld [vmem:[#allocation26_spill] sm:$0xff] }
 0x20d   :  { %4321 = vst [vmem:[#allocation35_spill] sm:$0xff] %v3272_v62  ;;  %1694 = vperm.xlu1 %2320, %v2783_v30   ;;  %v1779_v55 = vmul.f32 %v3123_v17, %v1762_v13  ;;  %4324 = vst [vmem:[#allocation62_spill] sm:$0xff] %v4323_v15  ;;  %v781_v30 = vmax.f32 %v748_v35, %v765_v2  ;;  %v664_v35 = vadd.f32 %v648_v53, %v498_v18 }
 0x20e   :  { %v750_v53 = vadd.f32 %v3000_v41, %v4327_v47  ;;  %v1449_v57 = vmul.f32 0.2, %v1432_v46  ;;  %vm3313_vm10 = vcmp.ne.s32.totalorder %v996_v50, 0 }
 0x20f   :  { %v1795_v29 = vadd.f32 %v1779_v55, %v1645_v11  ;;  %v798_v13 = vmul.f32 %v3070_v24, %v781_v30  ;;  %v1330_v11 = vmul.f32 %v3073_v0, %v1313_v5  ;;  %v467_v30 = vmul.f32 0.2, %v450_v7 }
 0x210   :  { %v555_v44 = vpop.permute.xlu1 %554  ;;  %v767_v62 = vmul.f32 0.2, %v750_v53 }
 0x211   :  { %2321 = vset.pattern.permute.xlu1 %v4292_v34  ;;  %v847_v33 = vpop.permute.xlu0 %846  ;;  %v3288_v9 = vsel %vm3280_vm9, %v1795_v29, -1e+30  ;;  %v600_v49 = vadd.f32 %v2976_v8, %v555_v44  ;;  %v814_v14 = vadd.f32 %v798_v13, %v664_v35  ;;  %v1496_v44 = vadd.f32 %v1480_v10, %v1330_v11 }
 0x212   :  { %4325 = vst [vmem:[#allocation63_spill] sm:$0xff] %v3288_v9  ;;  %v898_v6 = vadd.f32 %v3010_v37, %v847_v33  ;;  %1252 = vperm.xlu1 %2321, %v2789_v31   ;;  %v1780_v33 = vmul.f32 %v3123_v17, %v1763_v59  ;;  %v4328_v9 = vld [vmem:[#allocation28_spill] sm:$0xff]  ;;  %v483_v35 = vmax.f32 %v450_v7, %v467_v30 }
 0x213   :  { %v617_v29 = vmul.f32 0.2, %v600_v49  ;;  %v1732_v47 = vadd.f32 %v3058_v3, %v4328_v9  ;;  %v1465_v13 = vmax.f32 %v1432_v46, %v1449_v57  ;;  %v783_v7 = vmax.f32 %v750_v53, %v767_v62 }
 0x214   :  { %v915_v2 = vmul.f32 0.2, %v898_v6 }
 0x215   :  { %v1237_v55 = vpop.permute.xlu1 %1236  ;;  %v1482_v30 = vmul.f32 %v3045_v26, %v1465_v13 }
 0x216   :  { %v931_v40 = vmax.f32 %v898_v6, %v915_v2  ;;  %v1282_v28 = vadd.f32 %v2994_v42, %v1237_v55  ;;  %2322 = vset.pattern.permute.xlu1 %v4314_v60  ;;  %v633_v6 = vmax.f32 %v600_v49, %v617_v29  ;;  %v1646_v55 = vadd.f32 %v1630_v20, %v1496_v44  ;;  %v2480_v20 = vld [vmem:[%s4198_s3 + $0x1c] sm:$0xf] }
 0x217   :  { %1398 = vperm.xlu1 %2322, %v2727_v16   ;;  %vm286_vm11 = vcmp.gt.bf16.partialorder %v2480_v20, 0  ;;  %v1749_v29 = vmul.f32 0.2, %v1732_v47 }
 0x218   :  { %v948_v5 = vmul.f32 %v3099_v22, %v931_v40  ;;  %v1299_v18 = vmul.f32 0.2, %v1282_v28  ;;  %v1796_v59 = vadd.f32 %v1780_v33, %v1646_v55  ;;  %v650_v9 = vmul.f32 %v3028_v56, %v633_v6 }
 0x219   :  { %v1765_v33 = vmax.f32 %v1732_v47, %v1749_v29 }
 0x21a   :  { %v1537_v2 = vpop.permute.xlu1 %1536  ;;  %v964_v51 = vadd.f32 %v948_v5, %v814_v14  ;;  %v1315_v45 = vmax.f32 %v1282_v28, %v1299_v18  ;;  %v500_v14 = vmul.f32 %v3056_v58, %v483_v35  ;;  %v3333_v44 = vsel %vm3313_vm10, %v1796_v59, -1e+30 }
 0x21b   :  { %v1582_v15 = vadd.f32 %v3020_v1, %v1537_v2  ;;  %2323 = vset.pattern.permute.xlu1 %v4289_v54  ;;  %4332 = vst [vmem:[#allocation26_spill] sm:$0xff] %v3333_v44  ;;  %v982_v5 = vsel %vm286_vm11, 65537, %v4283_v39  ;;  %v800_v18 = vmul.f32 %v3070_v24, %v783_v7  ;;  %v1782_v59 = vmul.f32 %v3123_v17, %v1765_v33 }
 0x21c   :  { %716 = vperm.xlu1 %2323, %v2727_v16   ;;  %v3320_v49 = vsel %vm3313_vm10, %v964_v51, -1e+30  ;;  %v1332_v50 = vmul.f32 %v3073_v0, %v1315_v45  ;;  %v666_v53 = vadd.f32 %v650_v9, %v500_v14  ;;  %v998_v51 = vunpack.c.l.b16 %v982_v5  ;;  %v4347_v5 = vld [vmem:[#allocation23_spill] sm:$0xff] }
 0x21d   :  { %4331 = vst [vmem:[#allocation27_spill] sm:$0xff] %v3320_v49  ;;  %v1599_v11 = vmul.f32 0.2, %v1582_v15  ;;  %1049 = vmax.xlane.f32.xlu0 %v3320_v49 }
 0x21e   :  { %v1498_v2 = vadd.f32 %v1482_v30, %v1332_v50  ;;  %v816_v55 = vadd.f32 %v800_v18, %v666_v53  ;;  %vm1014_vm12 = vcmp.ne.s32.totalorder %v998_v51, 0  ;;  %v3410_v18 = vpop.permute.xlu0 %850  ;;  %v4350_v51 = vld [vmem:[#allocation25_spill] sm:$0xff] }
 0x21f   :  { %v1615_v40 = vmax.f32 %v1582_v15, %v1599_v11  ;;  %v855_v28 = vpop.permute.xlu1 %854 }
 0x220   :  { %v900_v46 = vadd.f32 %v3010_v37, %v855_v28  ;;  %720 = vperm.xlu1 %2323, %v2789_v31  }
 0x221   :  { %1833 = vmax.xlane.f32.xlu0 %v3333_v44  ;;  %v1632_v62 = vmul.f32 %v3080_v36, %v1615_v40 }
 0x222   :  { %v917_v15 = vmul.f32 0.2, %v900_v46 }
 0x223   :  { %v1648_v35 = vadd.f32 %v1632_v62, %v1498_v2 }
 0x224   :  { %v933_v57 = vmax.f32 %v900_v46, %v917_v15  ;;  %2324 = vset.pattern.permute.xlu1 %v4277_v43  ;;  %v3341_v6 = vpop.permute.xlu1 %391  ;;  %v4346_v15 = vld [vmem:[#allocation22_spill] sm:$0xff] }
 0x225   :  { %1552 = vperm.xlu1 %2324, %v2789_v31   ;;  %v1798_v11 = vadd.f32 %v1782_v59, %v1648_v35  ;;  %v744_v53 = vadd.f32 %v3000_v41, %v4346_v15 }
 0x226   :  { %v950_v10 = vmul.f32 %v3099_v22, %v933_v57 }
 0x227   :  { %v3356_v20 = vsel %vm1014_vm12, %v1798_v11, -1e+30 }
 0x228   :  { %v966_v45 = vadd.f32 %v950_v10, %v816_v55  ;;  %4335 = vst [vmem:[#allocation65_spill] sm:$0xff] %v3356_v20  ;;  %v1727_v55 = vadd.f32 %v3058_v3, %v4350_v51  ;;  %v4351_v10 = vld [vmem:[#allocation29_spill] sm:$0xff] }
 0x229   :  { %2325 = vset.pattern.permute.xlu1 %v4316_v23  ;;  %v3347_v13 = vpop.permute.xlu1 %700  ;;  %v452_v35 = vadd.f32 %v2983_v4, %v4351_v10 }
 0x22a   :  { %866 = vperm.xlu1 %2325, %v2727_v16   ;;  %v3350_v47 = vsel %vm1014_vm12, %v966_v45, -1e+30  ;;  %v4352_v45 = vld [vmem:[#allocation30_spill] sm:$0xff] }
 0x22b   :  { %4333 = vst [vmem:[#allocation28_spill] sm:$0xff] %v3350_v47  ;;  %1053 = vmax.xlane.f32.xlu0 %v3350_v47  ;;  %v454_v59 = vadd.f32 %v2983_v4, %v4352_v45  ;;  %v469_v47 = vmul.f32 0.2, %v452_v35 }
 0x22d   :  { %v471_v10 = vmul.f32 0.2, %v454_v59 }
 0x22e   :  { %2326 = vset.pattern.permute.xlu1 %v4280_v32  ;;  %v3354_v9 = vpop.permute.xlu1 %1382 }
 0x22f   :  { %4334 = vst [vmem:[#allocation64_spill] sm:$0xff] %v3354_v9  ;;  %1698 = vperm.xlu1 %2326, %v2727_v16   ;;  %1837 = vmax.xlane.f32.xlu0 %v3356_v20  ;;  %v1744_v20 = vmul.f32 0.2, %v1727_v55 }
 0x233   :  { %1702 = vperm.xlu1 %2326, %v2789_v31   ;;  %v3361_v7 = vpop.permute.xlu1 %1532 }
 0x234   :  { %4336 = vst [vmem:[#allocation66_spill] sm:$0xff] %v3361_v7 }
 0x237   :  { %2328 = vset.pattern.permute.xlu1 %v4292_v34 }
 0x238   :  { %1260 = vperm.xlu1 %2328, %v2735_v19   ;;  %v3365_v29 = vpop.permute.xlu1 %1682 }
 0x239   :  { %4337 = vst [vmem:[#allocation67_spill] sm:$0xff] %v3365_v29 }
 0x23c   :  { %2329 = vset.pattern.permute.xlu1 %v4314_v60 }
 0x23d   :  { %1406 = vperm.xlu1 %2329, %v2738_v21   ;;  %v563_v40 = vpop.permute.xlu1 %562 }
 0x23e   :  { %v602_v2 = vadd.f32 %v2976_v8, %v563_v40  ;;  %v761_v40 = vmul.f32 0.2, %v744_v53 }
 0x241   :  { %2330 = vset.pattern.permute.xlu1 %v4289_v54 }
 0x242   :  { %724 = vperm.xlu1 %2330, %v2738_v21   ;;  %v3371_v16 = vpop.permute.xlu1 %401 }
 0x243   :  { %4338 = vst [vmem:[#allocation68_spill] sm:$0xff] %v3371_v16 }
 0x246   :  { %728 = vperm.xlu1 %2330, %v2735_v19  }
 0x247   :  { %v3374_v31 = vpop.permute.xlu1 %708 }
 0x248   :  { %4339 = vst [vmem:[#allocation69_spill] sm:$0xff] %v3374_v31 }
 0x24a   :  { %2331 = vset.pattern.permute.xlu1 %v4277_v43 }
 0x24b   :  { %1560 = vperm.xlu1 %2331, %v2735_v19  }
 0x24c   :  { %v3378_v28 = vpop.permute.xlu1 %1240 }
 0x24d   :  { %v1283_v31 = vadd.f32 %v2994_v42, %v3378_v28 }
 0x24f   :  { %2332 = vset.pattern.permute.xlu1 %v4316_v23 }
 0x250   :  { %874 = vperm.xlu1 %2332, %v2738_v21  }
 0x251   :  { %v3382_v14 = vpop.permute.xlu1 %570 }
 0x254   :  { %2333 = vset.pattern.permute.xlu1 %v4280_v32 }
 0x255   :  { %1706 = vperm.xlu1 %2333, %v2738_v21  }
 0x256   :  { %v3386_v50 = vpop.permute.xlu1 %411 }
 0x257   :  { %4340 = vst [vmem:[#allocation70_spill] sm:$0xff] %v3386_v50  ;;  %v485_v50 = vmax.f32 %v452_v35, %v469_v47 }
 0x259   :  { %1710 = vperm.xlu1 %2333, %v2735_v19   ;;  %v4345_v19 = vld [vmem:[#allocation21_spill] sm:$0xff] }
 0x25a   :  { %4348 = vst [vmem:[#allocation21_spill] sm:$0xff] %v3410_v18 }
 0x25b   :  { %v3389_v46 = vpop.permute.xlu1 %578 }
 0x25c   :  { %4341 = vst [vmem:[#allocation71_spill] sm:$0xff] %v3389_v46  ;;  %v2482_v46 = vld [vmem:[%s4198_s3 + $0x18] sm:$0xf] }
 0x25d   :  { %2336 = vset.pattern.permute.xlu1 %v4292_v34  ;;  %v444_v34 = vadd.f32 %v2983_v4, %v4345_v19  ;;  %v2481_v19 = vld [vmem:[%s4198_s3 + $0x8] sm:$0xf]  ;;  %vm285_vm14 = vcmp.gt.bf16.partialorder %v2482_v46, 0  ;;  %v1583_v46 = vadd.f32 %v3020_v1, %v3233_v52 }
 0x25e   :  { %1268 = vperm.xlu1 %2336, %v2748_v25   ;;  %vm281_vm13 = vcmp.gt.bf16.partialorder %v2481_v19, 0  ;;  %v777_v19 = vmax.f32 %v744_v53, %v761_v40  ;;  %v487_v53 = vmax.f32 %v454_v59, %v471_v10  ;;  %v502_v59 = vmul.f32 %v3056_v58, %v485_v50 }
 0x25f   :  { %v461_v11 = vmul.f32 0.2, %v444_v34  ;;  %v3430_v45 = vsel %vm281_vm13, 65537, %v4283_v39 }
 0x260   :  { %v3393_v30 = vpop.permute.xlu1 %421 }
 0x261   :  { %4342 = vst [vmem:[#allocation72_spill] sm:$0xff] %v3393_v30  ;;  %v477_v44 = vmax.f32 %v444_v34, %v461_v11 }
 0x262   :  { %2337 = vset.pattern.permute.xlu1 %v4314_v60  ;;  %v894_v60 = vadd.f32 %v3010_v37, %v4347_v5 }
 0x263   :  { %1414 = vperm.xlu1 %2337, %v2751_v27  }
 0x264   :  { %v911_v15 = vmul.f32 0.2, %v894_v60 }
 0x265   :  { %v3397_v62 = vpop.permute.xlu1 %586 }
 0x266   :  { %4343 = vst [vmem:[#allocation73_spill] sm:$0xff] %v3397_v62  ;;  %v4353_v62 = vld [vmem:[#allocation31_spill] sm:$0xff] }
 0x267   :  { %2339 = vset.pattern.permute.xlu1 %v4289_v54  ;;  %v4349_v54 = vld [vmem:[#allocation24_spill] sm:$0xff]  ;;  %v3436_v30 = vadd.f32 %v3003_v38, %v4353_v62  ;;  %v3446_v62 = vmul.f32 %v3056_v58, %v477_v44 }
 0x268   :  { %732 = vperm.xlu1 %2339, %v2751_v27   ;;  %v1427_v57 = vadd.f32 %v3003_v38, %v4349_v54  ;;  %v619_v54 = vmul.f32 0.2, %v602_v2 }
 0x269   :  { %v1450_v47 = vmul.f32 0.2, %v3436_v30 }
 0x26a   :  { %v3401_v21 = vpop.permute.xlu1 %431  ;;  %v1444_v5 = vmul.f32 0.2, %v1427_v57  ;;  %v635_v11 = vmax.f32 %v602_v2, %v619_v54  ;;  %v4356_v54 = vld [vmem:[#allocation36_spill] sm:$0xff] }
 0x26b   :  { %4344 = vst [vmem:[#allocation74_spill] sm:$0xff] %v3401_v21  ;;  %v927_v21 = vmax.f32 %v894_v60, %v911_v15 }
 0x26c   :  { %736 = vperm.xlu1 %2339, %v2748_v25   ;;  %v1460_v34 = vmax.f32 %v1427_v57, %v1444_v5  ;;  %v3453_v57 = vmul.f32 %v3070_v24, %v777_v19  ;;  %v652_v28 = vmul.f32 %v3028_v56, %v635_v11  ;;  %v3470_v5 = vmul.f32 %v3056_v58, %v487_v53 }
 0x26d   :  { %v3460_v44 = vmul.f32 %v3099_v22, %v927_v21  ;;  %v1300_v19 = vmul.f32 0.2, %v1283_v31  ;;  %v3479_v11 = vsel %vm285_vm14, 65537, %v4283_v39  ;;  %v1277_v53 = vadd.f32 %v2994_v42, %v3103_v48 }
 0x26e   :  { %4355 = vst [vmem:[#allocation22_spill] sm:$0xff] %v3470_v5 }
 0x26f   :  { %v3412_v33 = vpop.permute.xlu1 %1244  ;;  %v1316_v40 = vmax.f32 %v1283_v31, %v1300_v19 }
 0x270   :  { %2341 = vset.pattern.permute.xlu1 %v4277_v43  ;;  %v863_v43 = vpop.permute.xlu0 %862 }
 0x271   :  { %1568 = vperm.xlu1 %2341, %v2748_v25   ;;  %v902_v49 = vadd.f32 %v3010_v37, %v863_v43  ;;  %v1760_v43 = vmax.f32 %v1727_v55, %v1744_v20  ;;  %v4354_v20 = vld [vmem:[#allocation34_spill] sm:$0xff]  ;;  %v3463_v55 = vmul.f32 %v3045_v26, %v1460_v34 }
 0x272   :  { %v445_v2 = vadd.f32 %v2983_v4, %v4354_v20 }
 0x273   :  { %v919_v15 = vmul.f32 0.2, %v902_v49  ;;  %v3475_v21 = vmul.f32 %v3123_v17, %v1760_v43  ;;  %v668_v43 = vadd.f32 %v652_v28, %v502_v59  ;;  %v1284_v28 = vadd.f32 %v2994_v42, %v3412_v33 }
 0x274   :  { %v1395_v51 = vpop.permute.xlu1 %1394  ;;  %v462_v50 = vmul.f32 0.2, %v445_v2 }
 0x275   :  { %2342 = vset.pattern.permute.xlu1 %v4316_v23  ;;  %v2483_v23 = vld [vmem:[%s4198_s3 + $0x24] sm:$0xf]  ;;  %v935_v10 = vmax.f32 %v902_v49, %v919_v15  ;;  %v2484_v49 = vld [vmem:[%s4198_s3 + $0x20] sm:$0xf] }
 0x276   :  { %882 = vperm.xlu1 %2342, %v2751_v27   ;;  %vm288_vm15 = vcmp.gt.bf16.partialorder %v2483_v23, 0  ;;  %v1466_v23 = vmax.f32 %v3436_v30, %v1450_v47  ;;  %vm287_vm0 = vcmp.gt.bf16.partialorder %v2484_v49, 0  ;;  %v4357_v47 = vld [vmem:[#allocation37_spill] sm:$0xff]  ;;  %v478_v5 = vmax.f32 %v445_v2, %v462_v50  ;;  %v4362_v50 = vld [vmem:[#allocation39_spill] sm:$0xff] }
 0x277   :  { %v3495_v48 = vadd.f32 %v2994_v42, %v4357_v47 }
 0x279   :  { %v713_v60 = vpop.permute.xlu1 %712  ;;  %v3514_v2 = vmul.f32 0.2, %v3495_v48 }
 0x27a   :  { %v752_v16 = vadd.f32 %v3000_v41, %v713_v60  ;;  %2344 = vset.pattern.permute.xlu1 %v4280_v32  ;;  %v984_v32 = vsel %vm288_vm15, 65537, %v4283_v39 }
 0x27b   :  { %1714 = vperm.xlu1 %2344, %v2751_v27   ;;  %v595_v27 = vadd.f32 %v2976_v8, %v4356_v54  ;;  %v1000_v20 = vunpack.c.l.b16 %v984_v32  ;;  %v1434_v32 = vadd.f32 %v3003_v38, %v1395_v51  ;;  %v1577_v54 = vadd.f32 %v3020_v1, %v3116_v61 }
 0x27c   :  { %v769_v35 = vmul.f32 0.2, %v752_v16  ;;  %v1294_v51 = vmul.f32 0.2, %v1277_v53 }
 0x27d   :  { %v612_v15 = vmul.f32 0.2, %v595_v27  ;;  %vm3508_vm1 = vcmp.ne.s32.totalorder %v1000_v20, 0  ;;  %v1451_v33 = vmul.f32 0.2, %v1434_v32 }
 0x27e   :  { %v785_v34 = vmax.f32 %v752_v16, %v769_v35  ;;  %v1545_v60 = vpop.permute.xlu1 %1544  ;;  %v594_v16 = vadd.f32 %v2976_v8, %v3114_v63  ;;  %v952_v63 = vmul.f32 %v3099_v22, %v935_v10  ;;  %v1594_v20 = vmul.f32 0.2, %v1577_v54 }
 0x27f   :  { %1718 = vperm.xlu1 %2344, %v2748_v25   ;;  %v4358_v25 = vld [vmem:[#allocation38_spill] sm:$0xff]  ;;  %v1584_v59 = vadd.f32 %v3020_v1, %v1545_v60  ;;  %v628_v31 = vmax.f32 %v595_v27, %v612_v15  ;;  %v3518_v60 = vadd.f32 %v2994_v42, %v4362_v50  ;;  %v495_v27 = vmul.f32 %v3056_v58, %v478_v5 }
 0x280   :  { %v802_v30 = vmul.f32 %v3070_v24, %v785_v34  ;;  %v745_v35 = vadd.f32 %v3000_v41, %v4358_v25  ;;  %v611_v61 = vmul.f32 0.2, %v594_v16  ;;  %v1600_v25 = vmul.f32 0.2, %v1583_v46 }
 0x281   :  { %v1301_v15 = vmul.f32 0.2, %v1284_v28  ;;  %v895_v50 = vadd.f32 %v3010_v37, %v3141_v12  ;;  %v1467_v9 = vmax.f32 %v1434_v32, %v1451_v33  ;;  %v645_v5 = vmul.f32 %v3028_v56, %v628_v31 }
 0x282   :  { %v818_v52 = vadd.f32 %v802_v30, %v668_v43  ;;  %v762_v19 = vmul.f32 0.2, %v745_v35  ;;  %v1333_v30 = vmul.f32 %v3073_v0, %v1316_v40  ;;  %v627_v29 = vmax.f32 %v594_v16, %v611_v61 }
 0x283   :  { %v3506_v34 = vpop.permute.xlu1 %858  ;;  %2345 = vset.pattern.permute.xlu1 %v4283_v39  ;;  %v1616_v42 = vmax.f32 %v1583_v46, %v1600_v25  ;;  %v1314_v40 = vmax.f32 %v3495_v48, %v3514_v2  ;;  %v3535_v18 = vmul.f32 0.2, %v3518_v60  ;;  %v1317_v16 = vmax.f32 %v1284_v28, %v1301_v15  ;;  %v4377_v48 = vld [vmem:[#allocation49_spill] sm:$0xff] }
 0x284   :  { %4359 = vst [vmem:[#allocation23_spill] sm:$0xff] %v3506_v34  ;;  %v968_v10 = vadd.f32 %v952_v63, %v818_v52  ;;  %v1483_v34 = vmul.f32 %v3045_v26, %v1466_v23  ;;  %v1601_v63 = vmul.f32 0.2, %v1584_v59  ;;  %v1310_v52 = vmax.f32 %v1277_v53, %v1294_v51 }
 0x285   :  { %v983_v12 = vsel %vm287_vm0, 65537, %v4283_v39  ;;  %v912_v32 = vmul.f32 0.2, %v895_v50  ;;  %v3612_v2 = vadd.f32 %v2976_v8, %v4377_v48 }
 0x286   :  { %v3523_v43 = vsel %vm3508_vm1, %v968_v10, -1e+30  ;;  %v778_v10 = vmax.f32 %v745_v35, %v762_v19  ;;  %v1499_v53 = vadd.f32 %v1483_v34, %v1333_v30  ;;  %v1617_v51 = vmax.f32 %v1584_v59, %v1601_v63  ;;  %v4364_v34 = vld [vmem:[#allocation42_spill] sm:$0xff] }
 0x287   :  { %4363 = vst [vmem:[#allocation24_spill] sm:$0xff] %v3523_v43  ;;  %1057 = vmax.xlane.f32.xlu0 %v3523_v43  ;;  %v1610_v43 = vmax.f32 %v1577_v54, %v1594_v20  ;;  %v1327_v46 = vmul.f32 %v3073_v0, %v1310_v52  ;;  %v644_v35 = vmul.f32 %v3028_v56, %v627_v29  ;;  %v999_v33 = vunpack.c.l.b16 %v983_v12  ;;  %v4365_v52 = vld [vmem:[#allocation44_spill] sm:$0xff] }
 0x288   :  { %v1691_v7 = vpop.permute.xlu1 %1690  ;;  %v795_v31 = vmul.f32 %v3070_v24, %v778_v10  ;;  %v1484_v19 = vmul.f32 %v3045_v26, %v1467_v9  ;;  %v597_v49 = vadd.f32 %v2976_v8, %v4364_v34  ;;  %v1334_v29 = vmul.f32 %v3073_v0, %v1317_v16  ;;  %v4369_v16 = vld [vmem:[#allocation54_spill] sm:$0xff] }
 0x289   :  { %v1733_v23 = vadd.f32 %v3058_v3, %v1691_v7  ;;  %v1633_v7 = vmul.f32 %v3080_v36, %v1616_v42  ;;  %v1627_v59 = vmul.f32 %v3080_v36, %v1610_v43  ;;  %v1634_v30 = vmul.f32 %v3080_v36, %v1617_v51 }
 0x28a   :  { %v928_v63 = vmax.f32 %v895_v50, %v912_v32  ;;  %v599_v9 = vadd.f32 %v2976_v8, %v4365_v52  ;;  %v660_v10 = vadd.f32 %v644_v35, %v3446_v62  ;;  %v4366_v43 = vunpack.c.l.b16 %v3430_v45 }
 0x28b   :  { %v1750_v61 = vmul.f32 0.2, %v1733_v23  ;;  %v1649_v20 = vadd.f32 %v1633_v7, %v1499_v53  ;;  %v1493_v53 = vadd.f32 %v3463_v55, %v1327_v46  ;;  %v447_v51 = vadd.f32 %v2983_v4, %v4369_v16 }
 0x28c   :  { %v1695_v25 = vpop.permute.xlu1 %1694  ;;  %vm3556_vm2 = vcmp.ne.s32.totalorder %v4366_v43, 0  ;;  %v1500_v50 = vadd.f32 %v1484_v19, %v1334_v29  ;;  %v614_v7 = vmul.f32 0.2, %v597_v49  ;;  %vm3567_vm3 = vcmp.ne.s32.totalorder %v999_v33, 0 }
 0x28d   :  { %v1766_v54 = vmax.f32 %v1733_v23, %v1750_v61  ;;  %v1734_v28 = vadd.f32 %v3058_v3, %v1695_v25  ;;  %v4370_v25 = vld [vmem:[#allocation47_spill] sm:$0xff]  ;;  %v1643_v35 = vadd.f32 %v1627_v59, %v1493_v53  ;;  %v1318_v19 = vmax.f32 %v3518_v60, %v3535_v18  ;;  %v2485_v18 = vld [vmem:[%s4198_s3 + $0x2c] sm:$0xf] }
 0x28e   :  { %v601_v62 = vadd.f32 %v2976_v8, %v4370_v25  ;;  %v1650_v46 = vadd.f32 %v1634_v30, %v1500_v50  ;;  %v810_v59 = vadd.f32 %v3453_v57, %v660_v10  ;;  %v661_v33 = vadd.f32 %v645_v5, %v495_v27  ;;  %v4376_v10 = vld [vmem:[#allocation53_spill] sm:$0xff] }
 0x28f   :  { %v1751_v42 = vmul.f32 0.2, %v1734_v28  ;;  %v1783_v15 = vmul.f32 %v3123_v17, %v1766_v54  ;;  %v4373_v54 = vld [vmem:[#allocation56_spill] sm:$0xff]  ;;  %v464_v29 = vmul.f32 0.2, %v447_v51  ;;  %v945_v30 = vmul.f32 %v3099_v22, %v928_v63 }
 0x290   :  { %v747_v55 = vadd.f32 %v3000_v41, %v4373_v54  ;;  %v618_v43 = vmul.f32 0.2, %v601_v62  ;;  %v604_v53 = vadd.f32 %v2976_v8, %v3382_v14  ;;  %vm290_vm4 = vcmp.gt.bf16.partialorder %v2485_v18, 0 }
 0x291   :  { %v1767_v61 = vmax.f32 %v1734_v28, %v1751_v42  ;;  %v3563_v12 = vpop.permute.xlu1 %1252  ;;  %v1799_v32 = vadd.f32 %v1783_v15, %v1649_v20  ;;  %v616_v20 = vmul.f32 0.2, %v599_v9  ;;  %v4374_v42 = vld [vmem:[#allocation58_spill] sm:$0xff]  ;;  %v630_v57 = vmax.f32 %v597_v49, %v614_v7 }
 0x292   :  { %v897_v15 = vadd.f32 %v3010_v37, %v4374_v42  ;;  %v764_v60 = vmul.f32 0.2, %v747_v55  ;;  %v1793_v5 = vadd.f32 %v3475_v21, %v1643_v35  ;;  %v3599_v14 = vmul.f32 %v3073_v0, %v1314_v40 }
 0x293   :  { %v1784_v34 = vmul.f32 %v3123_v17, %v1767_v61  ;;  %v3576_v28 = vsel %vm3567_vm3, %v1799_v32, -1e+30  ;;  %v811_v61 = vadd.f32 %v795_v31, %v661_v33  ;;  %v3602_v31 = vmul.f32 %v3073_v0, %v1318_v19 }
 0x294   :  { %v632_v63 = vmax.f32 %v599_v9, %v616_v20  ;;  %v3606_v49 = vadd.f32 %v3003_v38, %v4376_v10  ;;  %v480_v47 = vmax.f32 %v447_v51, %v464_v29  ;;  %v914_v32 = vmul.f32 0.2, %v897_v15  ;;  %v871_v9 = vpop.permute.xlu0 %870 }
 0x295   :  { %v1800_v52 = vadd.f32 %v1784_v34, %v1650_v46  ;;  %v960_v21 = vadd.f32 %v3460_v44, %v810_v59  ;;  %v961_v7 = vadd.f32 %v945_v30, %v811_v61  ;;  %v634_v25 = vmax.f32 %v601_v62, %v618_v43 }
 0x296   :  { %v1399_v16 = vpop.permute.xlu1 %1398  ;;  %v449_v40 = vadd.f32 %v2983_v4, %v3341_v6  ;;  %v621_v35 = vmul.f32 0.2, %v604_v53  ;;  %v647_v54 = vmul.f32 %v3028_v56, %v630_v57  ;;  %v780_v46 = vmax.f32 %v747_v55, %v764_v60  ;;  %v4378_v6 = vld [vmem:[#allocation59_spill] sm:$0xff]  ;;  %v4381_v60 = vld [vmem:[#allocation21_spill] sm:$0xff] }
 0x297   :  { %v3592_v27 = vsel %vm3508_vm1, %v1800_v52, -1e+30  ;;  %v904_v34 = vadd.f32 %v3010_v37, %v871_v9  ;;  %v3622_v44 = vsel %vm3556_vm2, %v1793_v5, -1e+30  ;;  %v3625_v62 = vmul.f32 %v3028_v56, %v632_v63  ;;  %v4382_v5 = vld [vmem:[#allocation64_spill] sm:$0xff] }
 0x298   :  { %4375 = vst [vmem:[#allocation25_spill] sm:$0xff] %v3592_v27  ;;  %1841 = vmax.xlane.f32.xlu0 %v3592_v27  ;;  %v3628_v19 = vmul.f32 0.2, %v3606_v49  ;;  %v3632_v20 = vadd.f32 %v3020_v1, %v4378_v6  ;;  %v749_v55 = vadd.f32 %v3000_v41, %v3347_v13  ;;  %v497_v59 = vmul.f32 %v3056_v58, %v480_v47 }
 0x299   :  { %v930_v33 = vmax.f32 %v897_v15, %v914_v32  ;;  %v3639_v42 = vsel %vm3156_vm5, %v960_v21, -1e+30  ;;  %v3643_v52 = vsel %vm3556_vm2, %v961_v7, -1e+30  ;;  %v3646_v30 = vmul.f32 %v3028_v56, %v634_v25 }
 0x29a   :  { %4380 = vst [vmem:[#allocation29_spill] sm:$0xff] %v3639_v42  ;;  %v3649_v43 = vmul.f32 0.2, %v3612_v2  ;;  %v466_v61 = vmul.f32 0.2, %v449_v40  ;;  %v637_v57 = vmax.f32 %v604_v53, %v621_v35  ;;  %v797_v13 = vmul.f32 %v3070_v24, %v780_v46  ;;  %v4383_v53 = vld [vmem:[#allocation66_spill] sm:$0xff] }
 0x29b   :  { %v3618_v51 = vpop.permute.xlu1 %716  ;;  %v3654_v15 = vadd.f32 %v3010_v37, %v4381_v60  ;;  %v1431_v63 = vadd.f32 %v3003_v38, %v4382_v5  ;;  %v921_v23 = vmul.f32 0.2, %v904_v34  ;;  %v1469_v47 = vmax.f32 %v3606_v49, %v3628_v19 }
 0x29c   :  { %v1602_v32 = vmul.f32 0.2, %v3632_v20  ;;  %v766_v21 = vmul.f32 0.2, %v749_v55  ;;  %v1581_v25 = vadd.f32 %v3020_v1, %v4383_v53  ;;  %v1435_v48 = vadd.f32 %v3003_v38, %v1399_v16  ;;  %v2486_v16 = vld [vmem:[%s4198_s3 + $0x28] sm:$0xf] }
 0x29d   :  { %v663_v9 = vadd.f32 %v647_v54, %v497_v59  ;;  %v947_v35 = vmul.f32 %v3099_v22, %v930_v33  ;;  %v482_v46 = vmax.f32 %v449_v40, %v466_v61  ;;  %v654_v6 = vmul.f32 %v3028_v56, %v637_v57  ;;  %v4384_v59 = vld [vmem:[#allocation67_spill] sm:$0xff] }
 0x29e   :  { %v986_v49 = vsel %vm290_vm4, 65537, %v4283_v39  ;;  %v916_v19 = vmul.f32 0.2, %v3654_v15  ;;  %v1448_v60 = vmul.f32 0.2, %v1431_v63  ;;  %v937_v5 = vmax.f32 %v904_v34, %v921_v23 }
 0x29f   :  { %v721_v10 = vpop.permute.xlu1 %720  ;;  %vm289_vm5 = vcmp.gt.bf16.partialorder %v2486_v16, 0  ;;  %v1618_v40 = vmax.f32 %v3632_v20, %v1602_v32  ;;  %v782_v54 = vmax.f32 %v749_v55, %v766_v21  ;;  %v1731_v33 = vadd.f32 %v3058_v3, %v4384_v59  ;;  %v4387_v21 = vld [vmem:[#allocation32_spill] sm:$0xff] }
 0x2a0   :  { %v754_v7 = vadd.f32 %v3000_v41, %v721_v10  ;;  %v813_v10 = vadd.f32 %v797_v13, %v663_v9  ;;  %v1598_v57 = vmul.f32 0.2, %v1581_v25  ;;  %v1452_v53 = vmul.f32 0.2, %v1435_v48  ;;  %v4385_v13 = vld [vmem:[#allocation68_spill] sm:$0xff] }
 0x2a1   :  { %v1002_v50 = vunpack.c.l.b16 %v986_v49  ;;  %v499_v23 = vmul.f32 %v3056_v58, %v482_v46  ;;  %v451_v9 = vadd.f32 %v2983_v4, %v4385_v13  ;;  %v932_v20 = vmax.f32 %v3654_v15, %v916_v19 }
 0x2a2   :  { %v771_v29 = vmul.f32 0.2, %v754_v7  ;;  %v963_v34 = vadd.f32 %v947_v35, %v813_v10  ;;  %v1464_v55 = vmax.f32 %v1431_v63, %v1448_v60  ;;  %v954_v32 = vmul.f32 %v3099_v22, %v937_v5  ;;  %v4394_v60 = vld [vmem:[#allocation23_spill] sm:$0xff] }
 0x2a3   :  { %1041 = vmax.xlane.f32.xlu1 %v3639_v42  ;;  %v4386_v42 = vld [vmem:[#allocation22_spill] sm:$0xff]  ;;  %v799_v35 = vmul.f32 %v3070_v24, %v782_v54  ;;  %v1748_v46 = vmul.f32 0.2, %v1731_v33  ;;  %v1614_v59 = vmax.f32 %v1581_v25, %v1598_v57  ;;  %vm3691_vm6 = vcmp.ne.s32.totalorder %v1002_v50, 0 }
 0x2a4   :  { %v787_v18 = vmax.f32 %v754_v7, %v771_v29  ;;  %v1553_v61 = vpop.permute.xlu1 %1552  ;;  %v670_v38 = vadd.f32 %v654_v6, %v4386_v42  ;;  %v1286_v7 = vadd.f32 %v4387_v21, %v3563_v12  ;;  %v4388_v29 = vld [vmem:[#allocation69_spill] sm:$0xff]  ;;  %v4391_v12 = vunpack.c.l.b16 %v3479_v11 }
 0x2a5   :  { %v751_v49 = vadd.f32 %v3000_v41, %v4388_v29  ;;  %v1586_v42 = vadd.f32 %v3020_v1, %v1553_v61  ;;  %v468_v19 = vmul.f32 0.2, %v451_v9  ;;  %v901_v5 = vadd.f32 %v3010_v37, %v4394_v60  ;;  %v879_v60 = vpop.permute.xlu0 %878 }
 0x2a6   :  { %v804_v27 = vmul.f32 %v3070_v24, %v787_v18  ;;  %v1468_v18 = vmax.f32 %v1435_v48, %v1452_v53  ;;  %vm3697_vm7 = vcmp.ne.s32.totalorder %v4391_v12, 0  ;;  %v1486_v25 = vmul.f32 %v3045_v26, %v1469_v47 }
 0x2a7   :  { %1043 = vmax.xlane.f32.xlu1 %v3643_v52  ;;  %v1635_v50 = vmul.f32 %v3080_v36, %v1618_v40  ;;  %v1481_v48 = vmul.f32 %v3045_v26, %v1464_v55  ;;  %v1303_v54 = vmul.f32 0.2, %v1286_v7  ;;  %v1764_v11 = vmax.f32 %v1731_v33, %v1748_v46 }
 0x2a8   :  { %v820_v10 = vadd.f32 %v804_v27, %v670_v38  ;;  %v665_v27 = vadd.f32 %v3625_v62, %v499_v23  ;;  %v768_v61 = vmul.f32 0.2, %v751_v49  ;;  %v1631_v13 = vmul.f32 %v3080_v36, %v1614_v59 }
 0x2a9   :  { %v867_v15 = vpop.permute.xlu1 %866  ;;  %v1485_v62 = vmul.f32 %v3045_v26, %v1468_v18  ;;  %v1603_v23 = vmul.f32 0.2, %v1586_v42  ;;  %v3717_v40 = vsel %vm3280_vm9, %v963_v34, -1e+30  ;;  %v949_v55 = vmul.f32 %v3099_v22, %v932_v20 }
 0x2aa   :  { %v970_v38 = vadd.f32 %v954_v32, %v820_v10  ;;  %v815_v53 = vadd.f32 %v799_v35, %v665_v27  ;;  %v484_v33 = vmax.f32 %v451_v9, %v468_v19  ;;  %v4396_v32 = vld [vmem:[#allocation70_spill] sm:$0xff]  ;;  %v918_v29 = vmul.f32 0.2, %v901_v5 }
 0x2ab   :  { %1827 = vmax.xlane.f32.xlu1 %v3622_v44  ;;  %v453_v46 = vadd.f32 %v2983_v4, %v4396_v32  ;;  %v1319_v35 = vmax.f32 %v1286_v7, %v1303_v54  ;;  %v1497_v18 = vadd.f32 %v1481_v48, %v3599_v14  ;;  %v985_v12 = vsel %vm289_vm5, 65537, %v4283_v39 }
 0x2ac   :  { %v3710_v57 = vsel %vm3691_vm6, %v970_v38, -1e+30  ;;  %v784_v34 = vmax.f32 %v751_v49, %v768_v61  ;;  %v753_v20 = vadd.f32 %v3000_v41, %v3618_v51  ;;  %v965_v9 = vadd.f32 %v949_v55, %v815_v53  ;;  %v4397_v53 = vld [vmem:[#allocation63_spill] sm:$0xff] }
 0x2ad   :  { %1061 = vmax.xlane.f32.xlu0 %v3710_v57  ;;  %v1781_v19 = vmul.f32 %v3123_v17, %v1764_v11  ;;  %v1619_v38 = vmax.f32 %v1586_v42, %v1603_v23  ;;  %v1647_v7 = vadd.f32 %v1631_v13, %v1497_v18  ;;  %v1501_v54 = vadd.f32 %v1485_v62, %v3602_v31 }
 0x2ae   :  { %v1699_v10 = vpop.permute.xlu1 %1698  ;;  %v501_v47 = vmul.f32 %v3056_v58, %v484_v33  ;;  %v470_v32 = vmul.f32 0.2, %v453_v46  ;;  %v934_v14 = vmax.f32 %v901_v5, %v918_v29  ;;  %v903_v16 = vadd.f32 %v3010_v37, %v867_v15 }
 0x2af   :  { %v1735_v59 = vadd.f32 %v3058_v3, %v1699_v10  ;;  %1047 = vmax.xlane.f32.xlu1 %v3717_v40  ;;  %v1336_v49 = vmul.f32 %v3073_v0, %v1319_v35  ;;  %v1001_v11 = vunpack.c.l.b16 %v985_v12  ;;  %v801_v42 = vmul.f32 %v3070_v24, %v784_v34 }
 0x2b0   :  { %v770_v13 = vmul.f32 0.2, %v753_v20  ;;  %v3739_v31 = vsel %vm3697_vm7, %v965_v9, -1e+30  ;;  %v1797_v62 = vadd.f32 %v1781_v19, %v1647_v7  ;;  %v1636_v5 = vmul.f32 %v3080_v36, %v1619_v38 }
 0x2b1   :  { %v1752_v27 = vmul.f32 0.2, %v1735_v59  ;;  %v1651_v23 = vadd.f32 %v1635_v50, %v1501_v54  ;;  %v486_v33 = vmax.f32 %v453_v46, %v470_v32  ;;  %v920_v29 = vmul.f32 0.2, %v903_v16  ;;  %v4400_v32 = vld [vmem:[#allocation71_spill] sm:$0xff] }
 0x2b2   :  { %v1703_v48 = vpop.permute.xlu1 %1702  ;;  %v667_v10 = vadd.f32 %v3646_v30, %v501_v47  ;;  %v951_v35 = vmul.f32 %v3099_v22, %v934_v14  ;;  %v1502_v34 = vadd.f32 %v1486_v25, %v1336_v49  ;;  %v636_v50 = vmax.f32 %v3612_v2, %v3649_v43 }
 0x2b3   :  { %v1768_v61 = vmax.f32 %v1735_v59, %v1752_v27  ;;  %v1736_v51 = vadd.f32 %v3058_v3, %v1703_v48  ;;  %1831 = vmax.xlane.f32.xlu1 %v4397_v53  ;;  %v3745_v59 = vpop.permute.xlu0 %886  ;;  %v786_v19 = vmax.f32 %v753_v20, %v770_v13  ;;  %vm3752_vm8 = vcmp.ne.s32.totalorder %v1001_v11, 0 }
 0x2b4   :  { %v817_v38 = vadd.f32 %v801_v42, %v667_v10  ;;  %v1652_v27 = vadd.f32 %v1636_v5, %v1502_v34  ;;  %v503_v54 = vmul.f32 %v3056_v58, %v486_v33  ;;  %v936_v25 = vmax.f32 %v903_v16, %v920_v29  ;;  %v4401_v33 = vld [vmem:[#allocation72_spill] sm:$0xff]  ;;  %v2487_v29 = vld [vmem:[%s4198_s3 + $0x34] sm:$0xf]  ;;  %v4402_v10 = vld [vmem:[#allocation50_spill] sm:$0xff] }
 0x2b5   :  { %v1753_v15 = vmul.f32 0.2, %v1736_v51  ;;  %v1785_v55 = vmul.f32 %v3123_v17, %v1768_v61  ;;  %v3764_v47 = vsel %vm3697_vm7, %v1797_v62, -1e+30  ;;  %v653_v20 = vmul.f32 %v3028_v56, %v636_v50 }
 0x2b6   :  { %v967_v2 = vadd.f32 %v951_v35, %v817_v38  ;;  %v606_v14 = vadd.f32 %v2976_v8, %v4400_v32  ;;  %v803_v48 = vmul.f32 %v3070_v24, %v786_v19  ;;  %v953_v42 = vmul.f32 %v3099_v22, %v936_v25  ;;  %v4403_v38 = vld [vmem:[#allocation33_spill] sm:$0xff] }
 0x2b7   :  { %v1769_v18 = vmax.f32 %v1736_v51, %v1753_v15  ;;  %v3747_v12 = vpop.permute.xlu1 %1260  ;;  %1051 = vmax.xlane.f32.xlu1 %v3739_v31  ;;  %v1801_v9 = vadd.f32 %v1785_v55, %v1651_v23  ;;  %v427_v61 = vpop.permute.xlu0 %426  ;;  %v669_v11 = vadd.f32 %v653_v20, %v503_v54  ;;  %v906_v5 = vadd.f32 %v3010_v37, %v879_v60 }
 0x2b8   :  { %v456_v6 = vadd.f32 %v2983_v4, %v427_v61  ;;  %v3779_v51 = vsel %vm3567_vm3, %v967_v2, -1e+30  ;;  %v623_v13 = vmul.f32 0.2, %v606_v14  ;;  %v455_v45 = vadd.f32 %v2983_v4, %v4401_v33 }
 0x2b9   :  { %v1786_v30 = vmul.f32 %v3123_v17, %v1769_v18  ;;  %v3759_v7 = vsel %vm3752_vm8, %v1801_v9, -1e+30  ;;  %v819_v62 = vadd.f32 %v803_v48, %v669_v11  ;;  %vm292_vm9 = vcmp.gt.bf16.partialorder %v2487_v29, 0  ;;  %v4406_v29 = vld [vmem:[#allocation55_spill] sm:$0xff] }
 0x2ba   :  { %v473_v15 = vmul.f32 0.2, %v456_v6  ;;  %v639_v55 = vmax.f32 %v606_v14, %v623_v13  ;;  %v605_v35 = vadd.f32 %v2976_v8, %v4402_v10  ;;  %v923_v18 = vmul.f32 0.2, %v906_v5 }
 0x2bb   :  { %1835 = vmax.xlane.f32.xlu1 %v3764_v47  ;;  %v1802_v43 = vadd.f32 %v1786_v30, %v1652_v27  ;;  %v969_v23 = vadd.f32 %v953_v42, %v819_v62  ;;  %v472_v54 = vmul.f32 0.2, %v455_v45  ;;  %v988_v2 = vsel %vm292_vm9, 65537, %v4283_v39  ;;  %v2488_v42 = vld [vmem:[%s4198_s3 + $0x30] sm:$0xf] }
 0x2bc   :  { %v1407_v49 = vpop.permute.xlu1 %1406  ;;  %v489_v60 = vmax.f32 %v456_v6, %v473_v15  ;;  %v656_v27 = vmul.f32 %v3028_v56, %v639_v55  ;;  %v622_v32 = vmul.f32 0.2, %v605_v35  ;;  %v939_v14 = vmax.f32 %v906_v5, %v923_v18 }
 0x2bd   :  { %v3773_v16 = vsel %vm3691_vm6, %v1802_v43, -1e+30  ;;  %v3796_v19 = vsel %vm3752_vm8, %v969_v23, -1e+30  ;;  %v1437_v30 = vadd.f32 %v4403_v38, %v1407_v49  ;;  %v4404_v43 = vld [vmem:[#allocation40_spill] sm:$0xff]  ;;  %v1004_v49 = vunpack.c.l.b16 %v988_v2  ;;  %v4405_v23 = vld [vmem:[#allocation61_spill] sm:$0xff] }
 0x2be   :  { %1845 = vmax.xlane.f32.xlu0 %v3773_v16  ;;  %v1287_v20 = vadd.f32 %v4387_v21, %v4404_v43  ;;  %v506_v48 = vmul.f32 %v3056_v58, %v489_v60  ;;  %vm291_vm10 = vcmp.gt.bf16.partialorder %v2488_v42, 0  ;;  %v488_v13 = vmax.f32 %v455_v45, %v472_v54 }
 0x2bf   :  { %1055 = vmax.xlane.f32.xlu1 %v3779_v51  ;;  %v1454_v11 = vmul.f32 0.2, %v1437_v30  ;;  %v638_v5 = vmax.f32 %v605_v35, %v622_v32  ;;  %v1587_v55 = vadd.f32 %v3020_v1, %v4405_v23  ;;  %v1288_v33 = vadd.f32 %v4387_v21, %v3747_v12 }
 0x2c0   :  { %v1304_v15 = vmul.f32 0.2, %v1287_v20  ;;  %v1438_v10 = vadd.f32 %v4403_v38, %v4406_v29  ;;  %v956_v18 = vmul.f32 %v3099_v22, %v939_v14  ;;  %vm3818_vm11 = vcmp.ne.s32.totalorder %v1004_v49, 0 }
 0x2c1   :  { %v725_v63 = vpop.permute.xlu1 %724  ;;  %v505_v35 = vmul.f32 %v3056_v58, %v488_v13  ;;  %v987_v2 = vsel %vm291_vm10, 65537, %v4283_v39  ;;  %v1604_v32 = vmul.f32 0.2, %v1587_v55  ;;  %vm2517_vm1 = vmmov 0  }
 0x2c2   :  { %v755_v9 = vadd.f32 %v3000_v41, %v725_v63  ;;  %v672_v63 = vadd.f32 %v656_v27, %v506_v48  ;;  %v1320_v43 = vmax.f32 %v1287_v20, %v1304_v15  ;;  %v1455_v14 = vmul.f32 0.2, %v1438_v10  ;;  %v2489_v27 = vld [vmem:[%s4198_s3 + $0x3c] sm:$0xf] }
 0x2c3   :  { %1839 = vmax.xlane.f32.xlu1 %v3576_v28  ;;  %v1003_v49 = vunpack.c.l.b16 %v987_v2  ;;  %vm294_vm13 = vcmp.gt.bf16.partialorder %v2489_v27, 0 }
 0x2c4   :  { %v772_v46 = vmul.f32 0.2, %v755_v9  ;;  %v1471_v23 = vmax.f32 %v1438_v10, %v1455_v14 }
 0x2c5   :  { %v729_v34 = vpop.permute.xlu1 %728  ;;  %vm3837_vm12 = vcmp.ne.s32.totalorder %v1003_v49, 0 }
 0x2c6   :  { %v756_v50 = vadd.f32 %v3000_v41, %v729_v34  ;;  %v788_v34 = vmax.f32 %v755_v9, %v772_v46  ;;  %v655_v9 = vmul.f32 %v3028_v56, %v638_v5  ;;  %v1488_v10 = vmul.f32 %v3045_v26, %v1471_v23 }
 0x2c7   :  { %1059 = vmax.xlane.f32.xlu1 %v3796_v19 }
 0x2c8   :  { %v773_v25 = vmul.f32 0.2, %v756_v50  ;;  %v805_v48 = vmul.f32 %v3070_v24, %v788_v34  ;;  %v671_v13 = vadd.f32 %v655_v9, %v505_v35 }
 0x2ca   :  { %v789_v61 = vmax.f32 %v756_v50, %v773_v25  ;;  %v1561_v6 = vpop.permute.xlu1 %1560  ;;  %v1470_v50 = vmax.f32 %v1437_v30, %v1454_v11  ;;  %v1305_v30 = vmul.f32 0.2, %v1288_v33 }
 0x2cb   :  { %1843 = vmax.xlane.f32.xlu1 %v3759_v7  ;;  %v1588_v45 = vadd.f32 %v3020_v1, %v1561_v6 }
 0x2cc   :  { %v806_v62 = vmul.f32 %v3070_v24, %v789_v61  ;;  %v1487_v6 = vmul.f32 %v3045_v26, %v1470_v50  ;;  %v1321_v15 = vmax.f32 %v1288_v33, %v1305_v30 }
 0x2cd   :  { %v1605_v11 = vmul.f32 0.2, %v1588_v45 }
 0x2ce   :  { %v822_v60 = vadd.f32 %v806_v62, %v672_v63  ;;  %v1337_v62 = vmul.f32 %v3073_v0, %v1320_v43  ;;  %v1620_v63 = vmax.f32 %v1587_v55, %v1604_v32  ;;  %v1338_v55 = vmul.f32 %v3073_v0, %v1321_v15  ;;  %v437_v15 = vpop.permute.xlu0 %436 }
 0x2cf   :  { %v875_v54 = vpop.permute.xlu1 %874  ;;  %v458_v23 = vadd.f32 %v2983_v4, %v437_v15 }
 0x2d0   :  { %v905_v25 = vadd.f32 %v3010_v37, %v875_v54  ;;  %v972_v12 = vadd.f32 %v956_v18, %v822_v60  ;;  %v821_v18 = vadd.f32 %v805_v48, %v671_v13  ;;  %v1503_v34 = vadd.f32 %v1487_v6, %v1337_v62  ;;  %v4411_v13 = vld [vmem:[#allocation73_spill] sm:$0xff]  ;;  %v4412_v54 = vld [vmem:[#allocation74_spill] sm:$0xff] }
 0x2d1   :  { %v1621_v60 = vmax.f32 %v1588_v45, %v1605_v11  ;;  %v1637_v35 = vmul.f32 %v3080_v36, %v1620_v63  ;;  %v1504_v14 = vadd.f32 %v1488_v10, %v1338_v55  ;;  %v608_v62 = vadd.f32 %v2976_v8, %v4411_v13 }
 0x2d2   :  { %v922_v46 = vmul.f32 0.2, %v905_v25  ;;  %v3830_v61 = vsel %vm3818_vm11, %v972_v12, -1e+30 }
 0x2d3   :  { %1065 = vmax.xlane.f32.xlu0 %v3830_v61  ;;  %v1638_v45 = vmul.f32 %v3080_v36, %v1621_v60  ;;  %v1653_v30 = vadd.f32 %v1637_v35, %v1503_v34  ;;  %v908_v34 = vadd.f32 %v3010_v37, %v3745_v59  ;;  %v475_v60 = vmul.f32 0.2, %v458_v23 }
 0x2d4   :  { %v938_v42 = vmax.f32 %v905_v25, %v922_v46  ;;  %v1707_v20 = vpop.permute.xlu1 %1706 }
 0x2d5   :  { %v1737_v5 = vadd.f32 %v3058_v3, %v1707_v20 }
 0x2d6   :  { %v955_v29 = vmul.f32 %v3099_v22, %v938_v42  ;;  %v1654_v42 = vadd.f32 %v1638_v45, %v1504_v14 }
 0x2d7   :  { %v1754_v50 = vmul.f32 0.2, %v1737_v5 }
 0x2d8   :  { %v1711_v25 = vpop.permute.xlu1 %1710  ;;  %v971_v12 = vadd.f32 %v955_v29, %v821_v18  ;;  %v625_v29 = vmul.f32 0.2, %v608_v62 }
 0x2d9   :  { %v1770_v33 = vmax.f32 %v1737_v5, %v1754_v50  ;;  %v1738_v2 = vadd.f32 %v3058_v3, %v1711_v25  ;;  %v457_v25 = vadd.f32 %v2983_v4, %v4412_v54 }
 0x2da   :  { %v3847_v43 = vsel %vm3837_vm12, %v971_v12, -1e+30  ;;  %v641_v50 = vmax.f32 %v608_v62, %v625_v29  ;;  %v4413_v12 = vld [vmem:[#allocation51_spill] sm:$0xff]  ;;  %v1040_v29 = vpop.xlane.xlu0 %1039 }
 0x2db   :  { %v1787_v9 = vmul.f32 %v3123_v17, %v1770_v33  ;;  %v1755_v32 = vmul.f32 0.2, %v1738_v2  ;;  %1063 = vmax.xlane.f32.xlu1 %v3847_v43  ;;  %v607_v35 = vadd.f32 %v2976_v8, %v4413_v12  ;;  %v925_v33 = vmul.f32 0.2, %v908_v34  ;;  %v4415_v8 = vld [vmem:[#allocation35_spill] sm:$0xff] }
 0x2dc   :  { %v474_v4 = vmul.f32 0.2, %v457_v25 }
 0x2dd   :  { %v1771_v48 = vmax.f32 %v1738_v2, %v1755_v32  ;;  %v1269_v46 = vpop.permute.xlu1 %1268  ;;  %v1803_v6 = vadd.f32 %v1787_v9, %v1653_v30  ;;  %v491_v2 = vmax.f32 %v458_v23, %v475_v60  ;;  %v658_v9 = vmul.f32 %v3028_v56, %v641_v50  ;;  %v2490_v23 = vld [vmem:[%s4198_s3 + $0x38] sm:$0xf] }
 0x2de   :  { %v990_v30 = vsel %vm294_vm13, 65537, %v4283_v39  ;;  %v624_v14 = vmul.f32 0.2, %v607_v35  ;;  %vm293_vm14 = vcmp.gt.bf16.partialorder %v2490_v23, 0 }
 0x2df   :  { %v1788_v11 = vmul.f32 %v3123_v17, %v1771_v48  ;;  %v3855_v49 = vsel %vm3837_vm12, %v1803_v6, -1e+30  ;;  %v4414_v48 = vld [vmem:[#allocation52_spill] sm:$0xff]  ;;  %v1006_v15 = vunpack.c.l.b16 %v990_v30  ;;  %v4417_v30 = vld [vmem:[#allocation41_spill] sm:$0xff] }
 0x2e0   :  { %1847 = vmax.xlane.f32.xlu1 %v3855_v49  ;;  %v1289_v6 = vadd.f32 %v4387_v21, %v4414_v48  ;;  %v640_v54 = vmax.f32 %v607_v35, %v624_v14  ;;  %v1071_v48 = vsub.f32 %v4417_v30, %v1040_v29  ;;  %v4420_v29 = vld [vmem:[#allocation43_spill] sm:$0xff] }
 0x2e1   :  { %v1804_v20 = vadd.f32 %v1788_v11, %v1654_v42  ;;  %v1589_v11 = vadd.f32 %v3020_v1, %v4415_v8  ;;  %v941_v42 = vmax.f32 %v908_v34, %v925_v33  ;;  %v4416_v34 = vld [vmem:[#allocation57_spill] sm:$0xff]  ;;  %vm3895_vm15 = vcmp.ne.s32.totalorder %v1006_v15, 0 }
 0x2e2   :  { %v1415_v63 = vpop.permute.xlu1 %1414  ;;  %v1306_v27 = vmul.f32 0.2, %v1289_v6  ;;  %v1440_v12 = vadd.f32 %v4403_v38, %v4416_v34 }
 0x2e3   :  { %v3862_v5 = vsel %vm3818_vm11, %v1804_v20, -1e+30  ;;  %v1439_v45 = vadd.f32 %v4403_v38, %v1415_v63  ;;  %v508_v20 = vmul.f32 %v3056_v58, %v491_v2  ;;  %v1606_v33 = vmul.f32 0.2, %v1589_v11 }
 0x2e4   :  { %1849 = vmax.xlane.f32.xlu0 %v3862_v5  ;;  %v958_v2 = vmul.f32 %v3099_v22, %v941_v42  ;;  %v1322_v14 = vmax.f32 %v1289_v6, %v1306_v27 }
 0x2e5   :  { %v1456_v63 = vmul.f32 0.2, %v1439_v45  ;;  %v674_v50 = vadd.f32 %v658_v9, %v508_v20  ;;  %v1824_v20 = vpop.xlane.xlu0 %1823 }
 0x2e6   :  { %v1339_v23 = vmul.f32 %v3073_v0, %v1322_v14 }
 0x2e7   :  { %v733_v18 = vpop.permute.xlu1 %732  ;;  %v1472_v8 = vmax.f32 %v1439_v45, %v1456_v63  ;;  %v1457_v45 = vmul.f32 0.2, %v1440_v12  ;;  %v1087_v63 = vmul.f32 1.442695, %v1071_v48 }
 0x2e8   :  { %v757_v10 = vadd.f32 %v3000_v41, %v733_v18  ;;  %v490_v18 = vmax.f32 %v457_v25, %v474_v4 }
 0x2e9   :  { %2346 = vpow2.f32 %v1087_v63 }
 0x2ea   :  { %v774_v13 = vmul.f32 0.2, %v757_v10  ;;  %v507_v35 = vmul.f32 %v3056_v58, %v490_v18  ;;  %v1489_v58 = vmul.f32 %v3045_v26, %v1472_v8 }
 0x2eb   :  { %v737_v55 = vpop.permute.xlu1 %736 }
 0x2ec   :  { %v758_v59 = vadd.f32 %v3000_v41, %v737_v55  ;;  %v1290_v55 = vadd.f32 %v4387_v21, %v1269_v46  ;;  %v989_v46 = vsel %vm293_vm14, 65537, %v4283_v39  ;;  %v1622_v39 = vmax.f32 %v1589_v11, %v1606_v33 }
 0x2ed   :  { %v1505_v34 = vadd.f32 %v1489_v58, %v1339_v23 }
 0x2ee   :  { %v775_v32 = vmul.f32 0.2, %v758_v59  ;;  %v1307_v42 = vmul.f32 0.2, %v1290_v55  ;;  %v1639_v33 = vmul.f32 %v3080_v36, %v1622_v39  ;;  %v4424_v39 = vld [vmem:[#allocation29_spill] sm:$0xff] }
 0x2f0   :  { %v791_v41 = vmax.f32 %v758_v59, %v775_v32  ;;  %v1569_v62 = vpop.permute.xlu1 %1568  ;;  %v790_v59 = vmax.f32 %v757_v10, %v774_v13  ;;  %v657_v10 = vmul.f32 %v3028_v56, %v640_v54  ;;  %v1323_v18 = vmax.f32 %v1290_v55, %v1307_v42 }
 0x2f1   :  { %v1590_v25 = vadd.f32 %v3020_v1, %v1569_v62  ;;  %v1005_v62 = vunpack.c.l.b16 %v989_v46 }
 0x2f2   :  { %v808_v60 = vmul.f32 %v3070_v24, %v791_v41  ;;  %v807_v1 = vmul.f32 %v3070_v24, %v790_v59  ;;  %v673_v15 = vadd.f32 %v657_v10, %v507_v35  ;;  %v1855_v24 = vsub.f32 %v4420_v29, %v1824_v20 }
 0x2f3   :  { %vm3915_vm0 = vcmp.ne.s32.totalorder %v1005_v62, 0  ;;  %v1340_v55 = vmul.f32 %v3073_v0, %v1323_v18  ;;  %v3936_v42 = vpop.eup %2346 }
 0x2f4   :  { %v824_v32 = vadd.f32 %v808_v60, %v674_v50  ;;  %v1473_v50 = vmax.f32 %v1440_v12, %v1457_v45  ;;  %v823_v27 = vadd.f32 %v807_v1, %v673_v15  ;;  %v1871_v48 = vmul.f32 1.442695, %v1855_v24 }
 0x2f5   :  { %v883_v4 = vpop.permute.xlu1 %882 }
 0x2f6   :  { %v907_v38 = vadd.f32 %v3010_v37, %v883_v4  ;;  %v974_v21 = vadd.f32 %v958_v2, %v824_v32  ;;  %v1607_v37 = vmul.f32 0.2, %v1590_v25  ;;  %2348 = vpow2.f32 %v1871_v48 }
 0x2f8   :  { %v924_v13 = vmul.f32 0.2, %v907_v38  ;;  %v3907_v41 = vsel %vm3895_vm15, %v974_v21, -1e+30  ;;  %v1623_v2 = vmax.f32 %v1590_v25, %v1607_v37  ;;  %v1655_v21 = vadd.f32 %v1639_v33, %v1505_v34  ;;  %v4427_v33 = vld [vmem:[#allocation27_spill] sm:$0xff] }
 0x2f9   :  { %1069 = vmax.xlane.f32.xlu0 %v3907_v41 }
 0x2fa   :  { %v940_v56 = vmax.f32 %v907_v38, %v924_v13  ;;  %v1715_v6 = vpop.permute.xlu1 %1714  ;;  %v1640_v4 = vmul.f32 %v3080_v36, %v1623_v2  ;;  %v4423_v13 = vld [vmem:[#allocation46_spill] sm:$0xff] }
 0x2fb   :  { %v1739_v60 = vadd.f32 %v3058_v3, %v1715_v6  ;;  %v4425_v6 = vld [vmem:[#allocation48_spill] sm:$0xff] }
 0x2fc   :  { %v957_v54 = vmul.f32 %v3099_v22, %v940_v56  ;;  %v1490_v22 = vmul.f32 %v3045_v26, %v1473_v50  ;;  %v4426_v50 = vld [vmem:[#allocation60_spill] sm:$0xff] }
 0x2fd   :  { %v1756_v59 = vmul.f32 0.2, %v1739_v60 }
 0x2fe   :  { %v1719_v32 = vpop.permute.xlu1 %1718  ;;  %v973_v30 = vadd.f32 %v957_v54, %v823_v27  ;;  %v1506_v46 = vadd.f32 %v1490_v22, %v1340_v55  ;;  %v4428_v22 = vld [vmem:[#allocation26_spill] sm:$0xff] }
 0x2ff   :  { %v1772_v8 = vmax.f32 %v1739_v60, %v1756_v59  ;;  %v1740_v12 = vadd.f32 %v3058_v3, %v1719_v32 }
 0x300   :  { %v3925_v25 = vsel %vm3915_vm0, %v973_v30, -1e+30  ;;  %v1656_v14 = vadd.f32 %v1640_v4, %v1506_v46  ;;  %v3944_v20 = vpop.eup %2348 }
 0x301   :  { %v1789_v35 = vmul.f32 %v3123_v17, %v1772_v8  ;;  %v1757_v38 = vmul.f32 0.2, %v1740_v12  ;;  %1067 = vmax.xlane.f32.xlu1 %v3925_v25 }
 0x303   :  { %v1773_v0 = vmax.f32 %v1740_v12, %v1757_v38  ;;  %v1805_v10 = vadd.f32 %v1789_v35, %v1655_v21 }
 0x305   :  { %v1790_v3 = vmul.f32 %v3123_v17, %v1773_v0  ;;  %v3933_v26 = vsel %vm3915_vm0, %v1805_v10, -1e+30  ;;  %v1826_v17 = vpop.xlane.xlu0 %1825  ;;  %v4429_v0 = vld [vmem:[#allocation28_spill] sm:$0xff] }
 0x306   :  { %1851 = vmax.xlane.f32.xlu1 %v3933_v26  ;;  %v1856_v58 = vsub.f32 %v4423_v13, %v1826_v17 }
 0x307   :  { %v1806_v36 = vadd.f32 %v1790_v3, %v1656_v14 }
 0x308   :  { %v1873_v9 = vmul.f32 1.442695, %v1856_v58  ;;  %v4430_v58 = vld [vmem:[#allocation65_spill] sm:$0xff] }
 0x309   :  { %v3940_v45 = vsel %vm3895_vm15, %v1806_v36, -1e+30  ;;  %v1046_v1 = vpop.xlane.xlu0 %1045 }
 0x30a   :  { %1853 = vmax.xlane.f32.xlu0 %v3940_v45  ;;  %1119 = vadd.xlane.f32.xlu1 %v3936_v42  ;;  %v1074_v15 = vsub.f32 %v4425_v6, %v1046_v1 }
 0x30c   :  { %v1093_v60 = vmul.f32 1.442695, %v1074_v15  ;;  %v4431_v15 = vld [vmem:[#allocation24_spill] sm:$0xff] }
 0x30d   :  { %v1830_v62 = vpop.xlane.xlu0 %1829 }
 0x30e   :  { %1903 = vadd.xlane.f32.xlu1 %v3944_v20  ;;  %v1858_v54 = vsub.f32 %v4426_v50, %v1830_v62 }
 0x310   :  { %v1877_v11 = vmul.f32 1.442695, %v1858_v54 }
 0x311   :  { %v1050_v29 = vpop.xlane.xlu0 %1049 }
 0x312   :  { %v1076_v32 = vsub.f32 %v4427_v33, %v1050_v29 }
 0x314   :  { %v1097_v12 = vmul.f32 1.442695, %v1076_v32 }
 0x315   :  { %v1834_v2 = vpop.xlane.xlu0 %1833 }
 0x316   :  { %v1860_v4 = vsub.f32 %v4428_v22, %v1834_v2 }
 0x319   :  { %v1054_v55 = vpop.xlane.xlu0 %1053 }
 0x31a   :  { %v1078_v10 = vsub.f32 %v4429_v0, %v1054_v55 }
 0x31c   :  { %v1101_v13 = vmul.f32 1.442695, %v1078_v10 }
 0x31d   :  { %v1838_v14 = vpop.xlane.xlu0 %1837 }
 0x330   :  { %v1042_v37 = vpop.xlane.xlu1 %1041 }
 0x331   :  { %v1072_v63 = vsub.f32 %v4424_v39, %v1042_v37  ;;  %v1862_v37 = vsub.f32 %v4430_v58, %v1838_v14  ;;  %v1058_v39 = vpop.xlane.xlu0 %1057 }
 0x333   :  { %v1089_v56 = vmul.f32 1.442695, %v1072_v63  ;;  %v1885_v6 = vmul.f32 1.442695, %v1862_v37 }
 0x334   :  { %v1044_v23 = vpop.xlane.xlu1 %1043 }
 0x335   :  { %2350 = vpow2.f32 %v1089_v56  ;;  %v1073_v24 = vsub.f32 %v3643_v52, %v1044_v23  ;;  %v1080_v23 = vsub.f32 %v4431_v15, %v1058_v39 }
 0x336   :  { %2352 = vpow2.f32 %v1873_v9 }
 0x337   :  { %v1091_v18 = vmul.f32 1.442695, %v1073_v24  ;;  %v1842_v24 = vpop.xlane.xlu0 %1841  ;;  %v1105_v54 = vmul.f32 1.442695, %v1080_v23 }
 0x338   :  { %v1828_v27 = vpop.xlane.xlu1 %1827 }
 0x339   :  { %2354 = vpow2.f32 %v1091_v18  ;;  %v1857_v34 = vsub.f32 %v3622_v44, %v1828_v27  ;;  %v4432_v27 = vld [vmem:[#allocation25_spill] sm:$0xff] }
 0x33a   :  { %2356 = vpow2.f32 %v1093_v60 }
 0x33b   :  { %v1875_v59 = vmul.f32 1.442695, %v1857_v34  ;;  %v1864_v34 = vsub.f32 %v4432_v27, %v1842_v24 }
 0x33c   :  { %v1048_v30 = vpop.xlane.xlu1 %1047 }
 0x33d   :  { %2358 = vpow2.f32 %v1875_v59  ;;  %v1075_v48 = vsub.f32 %v3717_v40, %v1048_v30  ;;  %v1881_v40 = vmul.f32 1.442695, %v1860_v4  ;;  %v1062_v59 = vpop.xlane.xlu0 %1061  ;;  %v1889_v30 = vmul.f32 1.442695, %v1864_v34 }
 0x33e   :  { %2360 = vpow2.f32 %v1877_v11 }
 0x33f   :  { %v3955_v52 = vpop.eup %2350  ;;  %v1095_v8 = vmul.f32 1.442695, %v1075_v48  ;;  %v1082_v48 = vsub.f32 %v3710_v57, %v1062_v59 }
 0x340   :  { %v1832_v35 = vpop.xlane.xlu1 %1831  ;;  %1121 = vadd.xlane.f32.xlu0 %v3955_v52  ;;  %v3960_v38 = vpop.eup %2352 }
 0x341   :  { %2362 = vpow2.f32 %v1095_v8  ;;  %v1859_v44 = vsub.f32 %v4397_v53, %v1832_v35  ;;  %v1109_v35 = vmul.f32 1.442695, %v1082_v48 }
 0x342   :  { %2364 = vpow2.f32 %v1097_v12 }
 0x343   :  { %v3962_v21 = vpop.eup %2354  ;;  %v1879_v46 = vmul.f32 1.442695, %v1859_v44 }
 0x344   :  { %v1052_v3 = vpop.xlane.xlu1 %1051  ;;  %1123 = vadd.xlane.f32.xlu1 %v3962_v21  ;;  %1905 = vadd.xlane.f32.xlu0 %v3960_v38  ;;  %v3968_v17 = vpop.eup %2356 }
 0x345   :  { %2366 = vpow2.f32 %v1879_v46  ;;  %v1077_v36 = vsub.f32 %v3739_v31, %v1052_v3  ;;  %v2516_v3 = vmov 0.0  }
 0x346   :  { %2368 = vpow2.f32 %v1881_v40  ;;  %2194 = vmatprep.subr.bf16.mxu1 %v2516_v3  ;;  %2214 = vmatprep.subr.bf16.mxu0 %v2516_v3 }
 0x347   :  { %v3970_v53 = vpop.eup %2358  ;;  %v1099_v1 = vmul.f32 1.442695, %v1077_v36  ;;  %2210 = vmatprep.mubr.msk.bf16.mxu1 %vm2517_vm1, %v2516_v3  ;;  %2230 = vmatprep.mubr.msk.bf16.mxu0 %vm2517_vm1, %v2516_v3 }
 0x348   :  { %v1836_v62 = vpop.xlane.xlu1 %1835  ;;  %1907 = vadd.xlane.f32.xlu1 %v3970_v53  ;;  %1125 = vadd.xlane.f32.xlu0 %v3968_v17  ;;  %v3976_v56 = vpop.eup %2360 }
 0x349   :  { %2370 = vpow2.f32 %v1099_v1  ;;  %v1861_v63 = vsub.f32 %v3764_v47, %v1836_v62 }
 0x34a   :  { %2372 = vpow2.f32 %v1101_v13 }
 0x34b   :  { %v3978_v31 = vpop.eup %2362  ;;  %v1883_v9 = vmul.f32 1.442695, %v1861_v63 }
 0x34c   :  { %v1056_v29 = vpop.xlane.xlu1 %1055  ;;  %1127 = vadd.xlane.f32.xlu1 %v3978_v31  ;;  %1909 = vadd.xlane.f32.xlu0 %v3976_v56  ;;  %v3984_v60 = vpop.eup %2364 }
 0x34d   :  { %2374 = vpow2.f32 %v1883_v9  ;;  %v1079_v18 = vsub.f32 %v3779_v51, %v1056_v29 }
 0x34e   :  { %2376 = vpow2.f32 %v1885_v6 }
 0x34f   :  { %v3986_v47 = vpop.eup %2366  ;;  %v1103_v50 = vmul.f32 1.442695, %v1079_v18 }
 0x350   :  { %v1840_v2 = vpop.xlane.xlu1 %1839  ;;  %1911 = vadd.xlane.f32.xlu1 %v3986_v47  ;;  %1129 = vadd.xlane.f32.xlu0 %v3984_v60  ;;  %v3992_v33 = vpop.eup %2368 }
 0x351   :  { %2378 = vpow2.f32 %v1103_v50  ;;  %v1863_v11 = vsub.f32 %v3576_v28, %v1840_v2  ;;  %v1846_v28 = vpop.xlane.xlu0 %1845 }
 0x352   :  { %2380 = vpow2.f32 %v1105_v54  ;;  %v1866_v57 = vsub.f32 %v3773_v16, %v1846_v28 }
 0x353   :  { %v3994_v51 = vpop.eup %2370  ;;  %v1887_v32 = vmul.f32 1.442695, %v1863_v11 }
 0x354   :  { %v1060_v55 = vpop.xlane.xlu1 %1059  ;;  %1131 = vadd.xlane.f32.xlu1 %v3994_v51  ;;  %1913 = vadd.xlane.f32.xlu0 %v3992_v33  ;;  %v4000_v12 = vpop.eup %2372  ;;  %v1893_v10 = vmul.f32 1.442695, %v1866_v57  ;;  %v1993_v57 = vld [vmem:[%s4201_s6] sm:$0xf] }
 0x355   :  { %2382 = vpow2.f32 %v1887_v32  ;;  %v1081_v8 = vsub.f32 %v3796_v19, %v1060_v55 }
 0x356   :  { %2384 = vpow2.f32 %v1889_v30 }
 0x357   :  { %v4002_v22 = vpop.eup %2374  ;;  %v1107_v4 = vmul.f32 1.442695, %v1081_v8 }
 0x358   :  { %v1844_v44 = vpop.xlane.xlu1 %1843  ;;  %1915 = vadd.xlane.f32.xlu1 %v4002_v22  ;;  %1133 = vadd.xlane.f32.xlu0 %v4000_v12  ;;  %v4008_v40 = vpop.eup %2376 }
 0x359   :  { %2386 = vpow2.f32 %v1107_v4  ;;  %v1865_v46 = vsub.f32 %v3759_v7, %v1844_v44 }
 0x35a   :  { %2388 = vpow2.f32 %v1109_v35  ;;  %v1994_v35 = vld [vmem:[%s4201_s6 + $0x4] sm:$0xf] }
 0x35b   :  { %v4010_v19 = vpop.eup %2378  ;;  %v1891_v0 = vmul.f32 1.442695, %v1865_v46 }
 0x35c   :  { %1135 = vadd.xlane.f32.xlu1 %v4010_v19  ;;  %1917 = vadd.xlane.f32.xlu0 %v4008_v40  ;;  %v4016_v16 = vpop.eup %2380 }
 0x35d   :  { %2390 = vpow2.f32 %v1891_v0 }
 0x35e   :  { %2392 = vpow2.f32 %v1893_v10 }
 0x35f   :  { %v4018_v7 = vpop.eup %2382 }
 0x360   :  { %1919 = vadd.xlane.f32.xlu1 %v4018_v7  ;;  %1137 = vadd.xlane.f32.xlu0 %v4016_v16  ;;  %v1066_v14 = vpop.xlane.xlu0 %1065  ;;  %v4023_v1 = vpop.eup %2384 }
 0x361   :  { %v1084_v36 = vsub.f32 %v3830_v61, %v1066_v14 }
 0x363   :  { %v4025_v13 = vpop.eup %2386  ;;  %v1113_v58 = vmul.f32 1.442695, %v1084_v36 }
 0x364   :  { %1139 = vadd.xlane.f32.xlu1 %v4025_v13  ;;  %1921 = vadd.xlane.f32.xlu0 %v4023_v1  ;;  %v4029_v37 = vpop.eup %2388 }
 0x365   :  { %2394 = vpow2.f32 %v1113_v58 }
 0x367   :  { %v4031_v62 = vpop.eup %2390 }
 0x368   :  { %v1064_v39 = vpop.xlane.xlu1 %1063  ;;  %1923 = vadd.xlane.f32.xlu1 %v4031_v62  ;;  %1141 = vadd.xlane.f32.xlu0 %v4029_v37  ;;  %v4036_v63 = vpop.eup %2392 }
 0x369   :  { %v1083_v61 = vsub.f32 %v3847_v43, %v1064_v39  ;;  %v4433_v39 = vld [vmem:[#allocation6_spill] sm:$0xff] }
 0x36a   :  { %vm343_vm2 = vcmp.gt.f32.partialorder %v4433_v39, 0.0 }
 0x36b   :  { %v1111_v9 = vmul.f32 1.442695, %v1083_v61 }
 0x36c   :  { %1925 = vadd.xlane.f32.xlu0 %v4036_v63 }
 0x36d   :  { %2396 = vpow2.f32 %v1111_v9  ;;  %v1848_v6 = vpop.xlane.xlu1 %1847 }
 0x36e   :  { %v1867_v15 = vsub.f32 %v3855_v49, %v1848_v6  ;;  %v4434_v6 = vld [vmem:[#allocation8_spill] sm:$0xff] }
 0x36f   :  { %v4040_v23 = vpop.eup %2394  ;;  %vm344_vm3 = vcmp.gt.f32.partialorder %v4434_v6, 0.0 }
 0x370   :  { %v1895_v29 = vmul.f32 1.442695, %v1867_v15  ;;  %1145 = vadd.xlane.f32.xlu0 %v4040_v23 }
 0x371   :  { %v1850_v24 = vpop.xlane.xlu0 %1849 }
 0x372   :  { %2398 = vpow2.f32 %v1895_v29  ;;  %v1868_v18 = vsub.f32 %v3862_v5, %v1850_v24 }
 0x374   :  { %v1897_v50 = vmul.f32 1.442695, %v1868_v18 }
 0x376   :  { %2400 = vpow2.f32 %v1897_v50 }
 0x377   :  { %v4044_v43 = vpop.eup %2396 }
 0x378   :  { %1143 = vadd.xlane.f32.xlu1 %v4044_v43 }
 0x37c   :  { %v4047_v54 = vpop.eup %2398 }
 0x37d   :  { %1927 = vadd.xlane.f32.xlu1 %v4047_v54 }
 0x380   :  { %v4050_v49 = vpop.eup %2400 }
 0x381   :  { %1929 = vadd.xlane.f32.xlu0 %v4050_v49 }
 0x386   :  { %v1070_v27 = vpop.xlane.xlu0 %1069 }
 0x387   :  { %v1086_v34 = vsub.f32 %v3907_v41, %v1070_v27 }
 0x389   :  { %v1117_v2 = vmul.f32 1.442695, %v1086_v34 }
 0x38b   :  { %2402 = vpow2.f32 %v1117_v2 }
 0x38e   :  { %v1068_v5 = vpop.xlane.xlu1 %1067 }
 0x38f   :  { %v1085_v59 = vsub.f32 %v3925_v25, %v1068_v5 }
 0x391   :  { %v1115_v11 = vmul.f32 1.442695, %v1085_v59 }
 0x393   :  { %2404 = vpow2.f32 %v1115_v11  ;;  %v1852_v32 = vpop.xlane.xlu1 %1851 }
 0x394   :  { %v1869_v30 = vsub.f32 %v3933_v26, %v1852_v32 }
 0x395   :  { %v4056_v48 = vpop.eup %2402 }
 0x396   :  { %v1899_v55 = vmul.f32 1.442695, %v1869_v30  ;;  %1149 = vadd.xlane.f32.xlu0 %v4056_v48 }
 0x397   :  { %v1854_v8 = vpop.xlane.xlu0 %1853 }
 0x398   :  { %2406 = vpow2.f32 %v1899_v55  ;;  %v1870_v28 = vsub.f32 %v3940_v45, %v1854_v8  ;;  %v1120_v45 = vpop.xlane.xlu1 %1119  ;;  %v4435_v55 = vld [vmem:[#allocation5_spill] sm:$0xff] }
 0x399   :  { %vm345_vm4 = vcmp.gt.f32.partialorder %v4435_v55, 0.0 }
 0x39a   :  { %v1901_v41 = vmul.f32 1.442695, %v1870_v28 }
 0x39c   :  { %2408 = vpow2.f32 %v1901_v41  ;;  %v1904_v44 = vpop.xlane.xlu1 %1903 }
 0x39d   :  { %v4060_v4 = vpop.eup %2404  ;;  %2410 = vrcp.f32 %v1120_v45 }
 0x39e   :  { %1147 = vadd.xlane.f32.xlu1 %v4060_v4 }
 0x3a2   :  { %v4063_v25 = vpop.eup %2406 }
 0x3a3   :  { %1931 = vadd.xlane.f32.xlu1 %v4063_v25 }
 0x3a6   :  { %v4066_v26 = vpop.eup %2408 }
 0x3a7   :  { %1933 = vadd.xlane.f32.xlu0 %v4066_v26  ;;  %v2411_v14 = vpop.eup %2410 }
 0x3a8   :  { %v1167_v61 = vsel %vm343_vm2, %v2411_v14, 0.0 }
 0x3a9   :  { %v1183_v50 = vmul.f32 %v3936_v42, %v1167_v61 }
 0x3b4   :  { %1997 = vperm.xlu1 %2345, %v1993_v57  }
 0x3bd   :  { %2002 = vperm.xlu0 %2343, %v1994_v35   ;;  %v4436_v35 = vld [vmem:[#allocation7_spill] sm:$0xff] }
 0x3be   :  { %vm346_vm5 = vcmp.gt.f32.partialorder %v4436_v35, 0.0 }
 0x3cd   :  { %v1122_v46 = vpop.xlane.xlu0 %1121 }
 0x3ce   :  { %2412 = vrcp.f32 %v1122_v46 }
 0x3cf   :  { %2414 = vrcp.f32 %v1904_v44 }
 0x3d1   :  { %v1124_v0 = vpop.xlane.xlu1 %1123  ;;  %v1906_v10 = vpop.xlane.xlu0 %1905 }
 0x3d2   :  { %2416 = vrcp.f32 %v1124_v0 }
 0x3d3   :  { %2418 = vrcp.f32 %v1906_v10 }
 0x3d5   :  { %v1908_v36 = vpop.xlane.xlu1 %1907  ;;  %v1126_v58 = vpop.xlane.xlu0 %1125 }
 0x3d6   :  { %2420 = vrcp.f32 %v1908_v36 }
 0x3d7   :  { %2422 = vrcp.f32 %v1126_v58 }
 0x3d8   :  { %v2413_v9 = vpop.eup %2412 }
 0x3d9   :  { %v2415_v15 = vpop.eup %2414  ;;  %v1128_v29 = vpop.xlane.xlu1 %1127  ;;  %v1168_v18 = vsel %vm344_vm3, %v2413_v9, 0.0  ;;  %v4437_v9 = vld [vmem:[#allocation10_spill] sm:$0xff] }
 0x3da   :  { %v1910_v24 = vpop.xlane.xlu0 %1909  ;;  %2424 = vrcp.f32 %v1128_v29  ;;  %v1184_v27 = vmul.f32 %v3955_v52, %v1168_v18  ;;  %v1951_v5 = vsel %vm343_vm2, %v2415_v15, 0.0  ;;  %vm347_vm6 = vcmp.gt.f32.partialorder %v4437_v9, 0.0 }
 0x3db   :  { %2426 = vrcp.f32 %v1910_v24  ;;  %v1967_v42 = vmul.f32 %v3944_v20, %v1951_v5  ;;  %v4438_v24 = vld [vmem:[#allocation9_spill] sm:$0xff] }
 0x3dc   :  { %v2417_v34 = vpop.eup %2416  ;;  %v1199_v2 = vpack.c.bf16 %v1184_v27, %v1183_v50  ;;  %vm348_vm7 = vcmp.gt.f32.partialorder %v4438_v24, 0.0 }
 0x3dd   :  { %v2419_v59 = vpop.eup %2418  ;;  %v1912_v11 = vpop.xlane.xlu1 %1911  ;;  %v1169_v28 = vsel %vm345_vm4, %v2417_v34, 0.0 }
 0x3de   :  { %v1130_v32 = vpop.xlane.xlu0 %1129  ;;  %2428 = vrcp.f32 %v1912_v11  ;;  %2195 = vmatpush3.bf16.xpose.msra.mxu1 %v1199_v2  ;;  %v1952_v30 = vsel %vm344_vm3, %v2419_v59, 0.0  ;;  %v1185_v20 = vmul.f32 %v3962_v21, %v1169_v28 }
 0x3df   :  { %2430 = vrcp.f32 %v1130_v32  ;;  %v1968_v52 = vmul.f32 %v3960_v38, %v1952_v30  ;;  %2196 = vmatprep.subr.bf16.mxu1 %v2516_v3 }
 0x3e0   :  { %v2421_v8 = vpop.eup %2420 }
 0x3e1   :  { %v2423_v41 = vpop.eup %2422  ;;  %v1132_v45 = vpop.xlane.xlu1 %1131  ;;  %v1983_v57 = vpack.c.bf16 %v1968_v52, %v1967_v42  ;;  %v1953_v10 = vsel %vm345_vm4, %v2421_v8, 0.0  ;;  %v4439_v42 = vld [vmem:[#allocation12_spill] sm:$0xff] }
 0x3e2   :  { %v1914_v44 = vpop.xlane.xlu0 %1913  ;;  %2432 = vrcp.f32 %v1132_v45  ;;  %v1170_v46 = vsel %vm346_vm5, %v2423_v41, 0.0  ;;  %v1969_v21 = vmul.f32 %v3970_v53, %v1953_v10  ;;  %vm349_vm8 = vcmp.gt.f32.partialorder %v4439_v42, 0.0  ;;  %v4440_v41 = vld [vmem:[#allocation11_spill] sm:$0xff] }
 0x3e3   :  { %2434 = vrcp.f32 %v1914_v44  ;;  %2215 = vmatpush3.bf16.xpose.msra.mxu0 %v1983_v57  ;;  %v1186_v38 = vmul.f32 %v3968_v17, %v1170_v46  ;;  %vm350_vm9 = vcmp.gt.f32.partialorder %v4440_v41, 0.0  ;;  %v4445_v41 = vld [vmem:[#allocation17_spill] sm:$0xff] }
 0x3e4   :  { %v2425_v0 = vpop.eup %2424  ;;  %2216 = vmatprep.subr.bf16.mxu0 %v2516_v3  ;;  %vm356_vm14 = vcmp.gt.f32.partialorder %v4445_v41, 0.0 }
 0x3e5   :  { %v2427_v14 = vpop.eup %2426  ;;  %v1916_v36 = vpop.xlane.xlu1 %1915  ;;  %v1200_v39 = vpack.c.bf16 %v1186_v38, %v1185_v20  ;;  %v1171_v15 = vsel %vm347_vm6, %v2425_v0, 0.0 }
 0x3e6   :  { %v1134_v58 = vpop.xlane.xlu0 %1133  ;;  %2436 = vrcp.f32 %v1916_v36  ;;  %v1954_v61 = vsel %vm346_vm5, %v2427_v14, 0.0  ;;  %v1187_v53 = vmul.f32 %v3978_v31, %v1171_v15 }
 0x3e7   :  { %2438 = vrcp.f32 %v1134_v58  ;;  %2197 = vmatpush3.bf16.xpose.msra.mxu1 %v1200_v39  ;;  %v1970_v17 = vmul.f32 %v3976_v56, %v1954_v61  ;;  %v4441_v58 = vld [vmem:[#allocation14_spill] sm:$0xff] }
 0x3e8   :  { %v2429_v6 = vpop.eup %2428  ;;  %2198 = vmatprep.subr.bf16.mxu1 %v2516_v3  ;;  %vm351_vm10 = vcmp.gt.f32.partialorder %v4441_v58, 0.0 }
 0x3e9   :  { %v2431_v29 = vpop.eup %2430  ;;  %v1136_v18 = vpop.xlane.xlu1 %1135  ;;  %v1984_v27 = vpack.c.bf16 %v1970_v17, %v1969_v21  ;;  %v1955_v5 = vsel %vm347_vm6, %v2429_v6, 0.0  ;;  %v4442_v21 = vld [vmem:[#allocation13_spill] sm:$0xff] }
 0x3ea   :  { %v1918_v50 = vpop.xlane.xlu0 %1917  ;;  %2440 = vrcp.f32 %v1136_v18  ;;  %v1172_v34 = vsel %vm348_vm7, %v2431_v29, 0.0  ;;  %v1971_v31 = vmul.f32 %v3986_v47, %v1955_v5  ;;  %vm352_vm11 = vcmp.gt.f32.partialorder %v4442_v21, 0.0 }
 0x3eb   :  { %2442 = vrcp.f32 %v1918_v50  ;;  %2217 = vmatpush3.bf16.xpose.msra.mxu0 %v1984_v27  ;;  %v1188_v56 = vmul.f32 %v3984_v60, %v1172_v34  ;;  %v4443_v34 = vld [vmem:[#allocation16_spill] sm:$0xff] }
 0x3ec   :  { %v2433_v2 = vpop.eup %2432  ;;  %2218 = vmatprep.subr.bf16.mxu0 %v2516_v3  ;;  %vm353_vm12 = vcmp.gt.f32.partialorder %v4443_v34, 0.0 }
 0x3ed   :  { %v2435_v59 = vpop.eup %2434  ;;  %v1920_v11 = vpop.xlane.xlu1 %1919  ;;  %v1201_v30 = vpack.c.bf16 %v1188_v56, %v1187_v53  ;;  %v1173_v8 = vsel %vm349_vm8, %v2433_v2, 0.0 }
 0x3ee   :  { %v1138_v32 = vpop.xlane.xlu0 %1137  ;;  %2444 = vrcp.f32 %v1920_v11  ;;  %v1956_v55 = vsel %vm348_vm7, %v2435_v59, 0.0  ;;  %v1189_v47 = vmul.f32 %v3994_v51, %v1173_v8  ;;  %v4444_v59 = vld [vmem:[#allocation15_spill] sm:$0xff] }
 0x3ef   :  { %2446 = vrcp.f32 %v1138_v32  ;;  %2199 = vmatpush3.bf16.xpose.msra.mxu1 %v1201_v30  ;;  %v1972_v60 = vmul.f32 %v3992_v33, %v1956_v55  ;;  %vm354_vm13 = vcmp.gt.f32.partialorder %v4444_v59, 0.0 }
 0x3f0   :  { %v2437_v52 = vpop.eup %2436  ;;  %2200 = vmatprep.subr.bf16.mxu1 %v2516_v3 }
 0x3f1   :  { %v2439_v28 = vpop.eup %2438  ;;  %v1140_v35 = vpop.xlane.xlu1 %1139  ;;  %v1985_v44 = vpack.c.bf16 %v1972_v60, %v1971_v31  ;;  %v1957_v20 = vsel %vm349_vm8, %v2437_v52, 0.0 }
 0x3f2   :  { %v1922_v45 = vpop.xlane.xlu0 %1921  ;;  %2448 = vrcp.f32 %v1140_v35  ;;  %v1174_v57 = vsel %vm350_vm9, %v2439_v28, 0.0  ;;  %v1973_v51 = vmul.f32 %v4002_v22, %v1957_v20 }
 0x3f3   :  { %2450 = vrcp.f32 %v1922_v45  ;;  %2219 = vmatpush3.bf16.xpose.msra.mxu0 %v1985_v44  ;;  %v1190_v33 = vmul.f32 %v4000_v12, %v1174_v57  ;;  %v4446_v57 = vld [vmem:[#allocation18_spill] sm:$0xff] }
 0x3f4   :  { %v2441_v46 = vpop.eup %2440  ;;  %2220 = vmatprep.subr.bf16.mxu0 %v2516_v3  ;;  %vm355_vm15 = vcmp.gt.f32.partialorder %v4446_v57, 0.0 }
 0x3f5   :  { %v2443_v38 = vpop.eup %2442  ;;  %v1924_v0 = vpop.xlane.xlu1 %1923  ;;  %v1202_v14 = vpack.c.bf16 %v1190_v33, %v1189_v47  ;;  %v1175_v61 = vsel %vm351_vm10, %v2441_v46, 0.0 }
 0x3f6   :  { %v1142_v10 = vpop.xlane.xlu0 %1141  ;;  %2452 = vrcp.f32 %v1924_v0  ;;  %v1958_v36 = vsel %vm350_vm9, %v2443_v38, 0.0  ;;  %v1191_v29 = vmul.f32 %v4010_v19, %v1175_v61 }
 0x3f7   :  { %2454 = vrcp.f32 %v1142_v10  ;;  %2201 = vmatpush3.bf16.xpose.msra.mxu1 %v1202_v14  ;;  %v1974_v12 = vmul.f32 %v4008_v40, %v1958_v36 }
 0x3f8   :  { %v2445_v39 = vpop.eup %2444  ;;  %2202 = vmatprep.subr.bf16.mxu1 %v2516_v3 }
 0x3f9   :  { %v2447_v9 = vpop.eup %2446  ;;  %v1986_v6 = vpack.c.bf16 %v1974_v12, %v1973_v51  ;;  %v1959_v40 = vsel %vm351_vm10, %v2445_v39, 0.0  ;;  %v4447_v12 = vld [vmem:[#allocation19_spill] sm:$0xff] }
 0x3fa   :  { %v1926_v17 = vpop.xlane.xlu0 %1925  ;;  %v1176_v15 = vsel %vm352_vm11, %v2447_v9, 0.0  ;;  %v1975_v56 = vmul.f32 %v4018_v7, %v1959_v40  ;;  %vm358_vm0 = vcmp.gt.f32.partialorder %v4447_v12, 0.0 }
 0x3fb   :  { %2456 = vrcp.f32 %v1926_v17  ;;  %2221 = vmatpush3.bf16.xpose.msra.mxu0 %v1986_v6  ;;  %v1192_v22 = vmul.f32 %v4016_v16, %v1176_v15 }
 0x3fc   :  { %v2449_v24 = vpop.eup %2448  ;;  %2222 = vmatprep.subr.bf16.mxu0 %v2516_v3 }
 0x3fd   :  { %v2451_v18 = vpop.eup %2450  ;;  %v1203_v50 = vpack.c.bf16 %v1192_v22, %v1191_v29  ;;  %v1177_v16 = vsel %vm353_vm12, %v2449_v24, 0.0  ;;  %v2491_v22 = vld [vmem:[%s4196_s1] sm:$0xf] }
 0x3fe   :  { %v1960_v27 = vsel %vm352_vm11, %v2451_v18, 0.0  ;;  %v1146_v53 = vpop.xlane.xlu0 %1145  ;;  %v1193_v30 = vmul.f32 %v4025_v13, %v1177_v16  ;;  %v1991_v24 = vpack.c.bf16 %v2491_v22, %v2491_v22 }
 0x3ff   :  { %2203 = vmatpush3.bf16.xpose.msra.mxu1 %v1203_v50  ;;  %v1976_v2 = vmul.f32 %v4023_v1, %v1960_v27  ;;  %2458 = vrcp.f32 %v1146_v53 }
 0x400   :  { %v2453_v19 = vpop.eup %2452  ;;  %2204 = vmatprep.subr.bf16.mxu1 %v2516_v3 }
 0x401   :  { %v2455_v5 = vpop.eup %2454  ;;  %v1987_v11 = vpack.c.bf16 %v1976_v2, %v1975_v56  ;;  %v1961_v7 = vsel %vm353_vm12, %v2453_v19, 0.0 }
 0x402   :  { %v1178_v32 = vsel %vm354_vm13, %v2455_v5, 0.0  ;;  %v1977_v52 = vmul.f32 %v4031_v62, %v1961_v7 }
 0x403   :  { %2223 = vmatpush3.bf16.xpose.msra.mxu0 %v1987_v11  ;;  %v1194_v55 = vmul.f32 %v4029_v37, %v1178_v32 }
 0x404   :  { %2224 = vmatprep.subr.bf16.mxu0 %v2516_v3 }
 0x405   :  { %v2457_v1 = vpop.eup %2456  ;;  %v1144_v42 = vpop.xlane.xlu1 %1143  ;;  %v1204_v31 = vpack.c.bf16 %v1194_v55, %v1193_v30 }
 0x406   :  { %v1962_v60 = vsel %vm354_vm13, %v2457_v1, 0.0  ;;  %2460 = vrcp.f32 %v1144_v42 }
 0x407   :  { %v1978_v8 = vmul.f32 %v4036_v63, %v1962_v60  ;;  %2205 = vmatpush3.bf16.xpose.msra.mxu1 %v1204_v31 }
 0x408   :  { %2206 = vmatprep.subr.bf16.mxu1 %v2516_v3 }
 0x409   :  { %v1988_v28 = vpack.c.bf16 %v1978_v8, %v1977_v52  ;;  %v2459_v37 = vpop.eup %2458 }
 0x40a   :  { %v1928_v13 = vpop.xlane.xlu1 %1927  ;;  %v1180_v45 = vsel %vm356_vm14, %v2459_v37, 0.0 }
 0x40b   :  { %2462 = vrcp.f32 %v1928_v13  ;;  %2225 = vmatpush3.bf16.xpose.msra.mxu0 %v1988_v28  ;;  %v1196_v47 = vmul.f32 %v4040_v23, %v1180_v45 }
 0x40c   :  { %2226 = vmatprep.subr.bf16.mxu0 %v2516_v3 }
 0x40e   :  { %v1930_v35 = vpop.xlane.xlu0 %1929 }
 0x40f   :  { %2464 = vrcp.f32 %v1930_v35 }
 0x410   :  { %v2461_v44 = vpop.eup %2460 }
 0x411   :  { %v1179_v62 = vsel %vm355_vm15, %v2461_v44, 0.0 }
 0x412   :  { %v1195_v63 = vmul.f32 %v4044_v43, %v1179_v62 }
 0x414   :  { %v1205_v33 = vpack.c.bf16 %v1196_v47, %v1195_v63 }
 0x415   :  { %v2463_v46 = vpop.eup %2462 }
 0x416   :  { %2207 = vmatpush3.bf16.xpose.msra.mxu1 %v1205_v33  ;;  %v1963_v20 = vsel %vm355_vm15, %v2463_v46, 0.0 }
 0x417   :  { %2208 = vmatprep.subr.bf16.mxu1 %v2516_v3  ;;  %v1979_v10 = vmul.f32 %v4047_v54, %v1963_v20 }
 0x419   :  { %v2465_v38 = vpop.eup %2464 }
 0x41a   :  { %v1964_v0 = vsel %vm356_vm14, %v2465_v38, 0.0 }
 0x41b   :  { %v1980_v14 = vmul.f32 %v4050_v49, %v1964_v0  ;;  %v4448_v49 = vld [vmem:[#allocation20_spill] sm:$0xff] }
 0x41c   :  { %vm357_vm1 = vcmp.gt.f32.partialorder %v4448_v49, 0.0 }
 0x41d   :  { %v1989_v36 = vpack.c.bf16 %v1980_v14, %v1979_v10 }
 0x41f   :  { %2227 = vmatpush3.bf16.xpose.msra.mxu0 %v1989_v36 }
 0x420   :  { %2228 = vmatprep.subr.bf16.mxu0 %v2516_v3 }
 0x423   :  { %v1150_v58 = vpop.xlane.xlu0 %1149 }
 0x424   :  { %2466 = vrcp.f32 %v1150_v58 }
 0x42b   :  { %v1148_v43 = vpop.xlane.xlu1 %1147 }
 0x42c   :  { %2468 = vrcp.f32 %v1148_v43 }
 0x42e   :  { %v2467_v51 = vpop.eup %2466 }
 0x42f   :  { %v1182_v54 = vsel %vm358_vm0, %v2467_v51, 0.0 }
 0x430   :  { %v1932_v23 = vpop.xlane.xlu1 %1931  ;;  %v1198_v21 = vmul.f32 %v4056_v48, %v1182_v54  ;;  %v2492_v48 = vld [vmem:[%s4196_s1 + $0x4] sm:$0xf] }
 0x431   :  { %2470 = vrcp.f32 %v1932_v23  ;;  %v1992_v27 = vpack.c.bf16 %v2492_v48, %v2492_v48 }
 0x434   :  { %v1934_v39 = vpop.xlane.xlu0 %1933  ;;  %v1998_v34 = vpop.permute.xlu1 %1997 }
 0x435   :  { %2472 = vrcp.f32 %v1934_v39 }
 0x436   :  { %v2469_v61 = vpop.eup %2468 }
 0x437   :  { %v1181_v9 = vsel %vm357_vm1, %v2469_v61, 0.0 }
 0x438   :  { %v1197_v3 = vmul.f32 %v4060_v4, %v1181_v9 }
 0x43a   :  { %v1206_v17 = vpack.c.bf16 %v1198_v21, %v1197_v3 }
 0x43b   :  { %v2471_v6 = vpop.eup %2470 }
 0x43c   :  { %2209 = vmatpush3.bf16.xpose.msra.mxu1 %v1206_v17  ;;  %v1965_v15 = vsel %vm357_vm1, %v2471_v6, 0.0 }
 0x43d   :  { %v1981_v18 = vmul.f32 %v4063_v25, %v1965_v15  ;;  %v2003_v25 = vpop.permute.xlu0 %2002 }
 0x43f   :  { %v2473_v29 = vpop.eup %2472 }
 0x440   :  { %v1966_v40 = vsel %vm358_vm0, %v2473_v29, 0.0 }
 0x441   :  { %v1982_v50 = vmul.f32 %v4066_v26, %v1966_v40 }
 0x443   :  { %2211 = vmatmul.mubr.bf16.vlgmr.msra.gmra.mrb[0].mxu1 %v1991_v24  ;;  %v1990_v4 = vpack.c.bf16 %v1982_v50, %v1981_v18 }
 0x445   :  { %2229 = vmatpush3.bf16.xpose.msra.mxu0 %v1990_v4 }
 0x44c   :  { %2231 = vmatmul.mubr.bf16.vlgmr.msra.gmra.mrb[16].mxu0 %v1992_v27 }
 0x516   :  { %v2039_v53 = vpop.f32.mrb[0].mxu1 }
 0x517   :  { %v2040_v56 = vadd.f32 %v2039_v53, %v1998_v34  ;;  %v2212_v2 = vpop.f32.mrb[1].mxu1 }
 0x518   :  { %v2042_v19 = vpop.f32.mrb[2].mxu1 }
 0x519   :  { %v2087_v16 = vmin.f32 %v2040_v56, 0.0  ;;  %v2213_v5 = vpop.f32.mrb[3].mxu1  ;;  %vm2085_vm2 = vcmp.gt.f32.partialorder %v2040_v56, 0.0 }
 0x51b   :  { %v2089_v59 = vmul.f32 1.442695, %v2087_v16 }
 0x51d   :  { %2474 = vpow2.f32 %v2089_v59 }
 0x51f   :  { %v2079_v26 = vpop.f32.mrb[16].mxu0 }
 0x520   :  { %v2080_v11 = vadd.f32 %v2079_v26, %v2003_v25  ;;  %v2232_v32 = vpop.f32.mrb[17].mxu0 }
 0x521   :  { %v2082_v30 = vpop.f32.mrb[18].mxu0 }
 0x522   :  { %v2088_v55 = vmin.f32 %v2080_v11, 0.0  ;;  %v2233_v7 = vpop.f32.mrb[19].mxu0  ;;  %vm2086_vm3 = vcmp.gt.f32.partialorder %v2080_v11, 0.0 }
 0x524   :  { %v2091_v1 = vmul.f32 1.442695, %v2088_v55 }
 0x526   :  { %2476 = vpow2.f32 %v2091_v1 }
 0x527   :  { %v2475_v42 = vpop.eup %2474 }
 0x528   :  { %v2128_v31 = vadd.f32 -1.0, %v2475_v42 }
 0x52a   :  { %v2095_v60 = vsel %vm2085_vm2, %v2040_v56, %v2128_v31 }
 0x52b   :  { %2097 = vst [vmem:[%s4202_s7] sm:$0xf] %v2095_v60 }
 0x530   :  { %v2477_v52 = vpop.eup %2476 }
 0x531   :  { %v2129_v8 = vadd.f32 -1.0, %v2477_v52 }
 0x533   :  { %v2096_v28 = vsel %vm2086_vm3, %v2080_v11, %v2129_v8 }
 0x534   :  { %2098 = vst [vmem:[%s4202_s7 + $0x4] sm:$0xf] %v2096_v28 }
 0x535   :  { %2103 = vsyncpa [#allocation3], 1 }

// kernel: gatnet_forward.2
= control target key start
LH: loop header
LB: loop body
LE: loop exit
PB: predicated region body
PF: predicated region fallthrough
CT: control target
= control target key end

     0   :  { %12 = vsyncpa [#allocation3], 0  ;;  %s6698_s0 = inlined_call_operand.vmem [shape: f32[1,16], index: 0, kind: input, shape index: {}]   ;;  %s6699_s1 = inlined_call_operand.vmem [shape: f32[2,8,128], index: 1, kind: input, shape index: {}]   ;;  %s6700_s2 = inlined_call_operand.vmem [shape: f32[128,8], index: 2, kind: input, shape index: {}]   ;;  %s6701_s3 = inlined_call_operand.vmem [shape: bf16[128,128], index: 3, kind: input, shape index: {}]   ;;  %s6702_s4 = inlined_call_operand.vmem [shape: f32[8,16], index: 4, kind: input, shape index: {}]   ;;  %s6703_s5 = inlined_call_operand.vmem [shape: f32[1,16], index: 5, kind: input, shape index: {}]   ;;  %s6704_s6 = inlined_call_operand.vmem [shape: f32[2,8,1], index: 6, kind: input, shape index: {}]   ;;  %s6705_s7 = inlined_call_operand.vmem [shape: f32[2,8,128], index: 7, kind: output, shape index: {}]  }
   0x1   :  { %s19_s26 = sshll.u32 %s6698_s0, 4  ;;  %s20_s26 = int_to_ptr.vmem [resolvable:$true] %s19_s26 }
   0x2   :  { %s3770_s27 = scalar_lea.vmem %s20_s26, 16  ;;  %p3775_p1 = scmp.lt.s32.totalorder %s20_s26, %s20_s26 }
   0x3   :  { %p3771_p0 = scmp.ne.s32.totalorder %s20_s26, %s3770_s27  ;;  %p3776_p2 = scmp.lt.s32.totalorder %s3770_s27, %s3770_s27 }
   0x5   :  { %p3777_p3 = por %p3776_p2, %p3775_p1 }
   0x7   :  { %p3778_p4 = pnand %p3777_p3, %p3771_p0 }
   0x9   :  { %3781 = shalt.err (!%p3778_p4)
}
   0xa   :  { %s3784_s28 = smov [#allocation2]  }
   0xb   :  { %22 = dma.vmem_to_smem %s20_s26, 16, %s3784_s28, [#allocation3]  }
   0xc   :  { %3782 = dma.done.wait [#allocation3], 16  }
   0xd   :  { %3783 = vsyncadd [#allocation3], 4294967280 }
   0xe   :  { %38 = sfence }
   0xf   :  { %v60_v0 = vld [vmem:[%s6702_s4] sm:$0xff]  ;;  %vm68_vm0 = vcmask 64512   ;;  %v45_v2 = vld [vmem:[%s6700_s2 + $0x8] sm:$0xff]  ;;  %v46_v3 = vld [vmem:[%s6700_s2 + $0x10] sm:$0xff]  ;;  %v6717_v4 = vmov 0   ;;  %v6713_v50 = vmov 1  }
  0x10   :  { %v44_v1 = vld [vmem:[%s6700_s2] sm:$0xff]  ;;  %3372 = vmatprep.subr.mxu0 %v60_v0  ;;  %3457 = vset.pattern.permute.xlu1 %v6717_v4  ;;  %v47_v5 = vld [vmem:[%s6700_s2 + $0x18] sm:$0xff]  ;;  %v3876_v8 = vld [vmem:[%s6701_s3 + $0x8] sm:$0xf]  ;;  %v6719_v57 = vmov 3   ;;  %v6708_v58 = vmov 2  }
  0x11   :  { %3374 = vmatprep.mubr.msk.f32.mxu0 %vm68_vm0, %v44_v1  ;;  %3373 = vmatpush3.msra.mxu0 %v60_v0  ;;  %v48_v6 = vld [vmem:[%s6700_s2 + $0x20] sm:$0xff]  ;;  %v296_v11 = vunpack.c.l.bf16 %v3876_v8  ;;  %v265_v12 = vld [vmem:[%s6701_s3 + $0xc] sm:$0xf]  ;;  %v50_v15 = vld [vmem:[%s6700_s2 + $0x30] sm:$0xff]  ;;  %v6706_v61 = vmov 5   ;;  %v6710_v62 = vmov 4  }
  0x12   :  { %3375 = vmatmul.mubr.msk.f32.vlgmr.msra.gmra.mrb[0].mxu0 %vm68_vm0, %v45_v2  ;;  %v3871_v7 = vld [vmem:[%s6701_s3] sm:$0xf]  ;;  %v263_v9 = vld [vmem:[%s6701_s3 + $0x4] sm:$0xf]  ;;  %v49_v13 = vld [vmem:[%s6700_s2 + $0x28] sm:$0xff]  ;;  %v297_v16 = vunpack.c.l.bf16 %v265_v12  ;;  %3458 = vset.pattern.permute.xlu0 %v6713_v50  ;;  %s3320_s22 = sld [smem:[#allocation2 + $0x1]] }
  0x13   :  { %3377 = vmatprep.mubr.msk.f32.mxu0 %vm68_vm0, %v46_v3  ;;  %v294_v10 = vunpack.c.l.bf16 %v3871_v7  ;;  %v295_v14 = vunpack.c.l.bf16 %v263_v9  ;;  %314 = vmax.xlane.f32.xlu1 %v296_v11  ;;  %v266_v17 = vld [vmem:[%s6701_s3 + $0x10] sm:$0xf]  ;;  %v267_v18 = vld [vmem:[%s6701_s3 + $0x14] sm:$0xf]  ;;  %v51_v19 = vld [vmem:[%s6700_s2 + $0x38] sm:$0xff]  ;;  %s458_s23 = sld [smem:[#allocation2]] }
  0x14   :  { %v298_v20 = vunpack.c.l.bf16 %v266_v17  ;;  %v52_v21 = vld [vmem:[%s6700_s2 + $0x40] sm:$0xff]  ;;  %v299_v22 = vunpack.c.l.bf16 %v267_v18  ;;  %v268_v23 = vld [vmem:[%s6701_s3 + $0x18] sm:$0xf]  ;;  %v269_v24 = vld [vmem:[%s6701_s3 + $0x1c] sm:$0xf]  ;;  %s3321_s24 = sld [smem:[#allocation2 + $0x2]] }
  0x15   :  { %310 = vmax.xlane.f32.xlu0 %v294_v10  ;;  %v53_v25 = vld [vmem:[%s6700_s2 + $0x48] sm:$0xff]  ;;  %v300_v26 = vunpack.c.l.bf16 %v268_v23  ;;  %v54_v27 = vld [vmem:[%s6700_s2 + $0x50] sm:$0xff]  ;;  %v301_v28 = vunpack.c.l.bf16 %v269_v24  ;;  %v270_v29 = vld [vmem:[%s6701_s3 + $0x20] sm:$0xf]  ;;  %s4467_s25 = sld [smem:[#allocation2 + $0x3]]  ;;  %s4473_s26 = sld [smem:[#allocation2 + $0x4]] }
  0x16   :  { %3378 = vmatmul.mubr.msk.f32.gmra.mrb[2].mxu0 %vm68_vm0, %v47_v5  ;;  %v271_v30 = vld [vmem:[%s6701_s3 + $0x24] sm:$0xf]  ;;  %v55_v31 = vld [vmem:[%s6700_s2 + $0x58] sm:$0xff]  ;;  %v302_v32 = vunpack.c.l.bf16 %v270_v29  ;;  %v272_v35 = vld [vmem:[%s6701_s3 + $0x28] sm:$0xf]  ;;  %s4500_s27 = sld [smem:[#allocation2 + $0x5]] }
  0x17   :  { %3380 = vmatprep.mubr.msk.f32.mxu0 %vm68_vm0, %v48_v6  ;;  %316 = vmax.xlane.f32.xlu1 %v297_v16  ;;  %v56_v33 = vld [vmem:[%s6700_s2 + $0x60] sm:$0xff]  ;;  %v303_v34 = vunpack.c.l.bf16 %v271_v30  ;;  %v273_v36 = vld [vmem:[%s6701_s3 + $0x2c] sm:$0xf]  ;;  %v304_v38 = vunpack.c.l.bf16 %v272_v35  ;;  %v58_v39 = vld [vmem:[%s6700_s2 + $0x70] sm:$0xff]  ;;  %vm278_vm1 = vcmp.gt.bf16.partialorder %v3871_v7, 0  ;;  %vm280_vm2 = vcmp.gt.bf16.partialorder %v3876_v8, 0 }
  0x18   :  { %v57_v37 = vld [vmem:[%s6700_s2 + $0x68] sm:$0xff]  ;;  %v305_v40 = vunpack.c.l.bf16 %v273_v36  ;;  %v274_v41 = vld [vmem:[%s6701_s3 + $0x30] sm:$0xf]  ;;  %v275_v42 = vld [vmem:[%s6701_s3 + $0x34] sm:$0xf]  ;;  %s4653_s28 = sld [smem:[#allocation2 + $0x6]] }
  0x19   :  { %312 = vmax.xlane.f32.xlu0 %v295_v14  ;;  %v59_v43 = vld [vmem:[%s6700_s2 + $0x78] sm:$0xff]  ;;  %v306_v44 = vunpack.c.l.bf16 %v274_v41  ;;  %v307_v45 = vunpack.c.l.bf16 %v275_v42  ;;  %v3972_v51 = vld [vmem:[%s6703_s5] ss:$0 sm:$0xff]  ;;  %s4726_s29 = sld [smem:[#allocation2 + $0x7]]  ;;  %s3328_s9 = sld [smem:[#allocation2 + $0x9]] }
  0x1a   :  { %3381 = vmatmul.mubr.msk.f32.gmra.mrb[4].mxu0 %vm68_vm0, %v49_v13  ;;  %v276_v46 = vld [vmem:[%s6701_s3 + $0x38] sm:$0xf]  ;;  %v277_v47 = vld [vmem:[%s6701_s3 + $0x3c] sm:$0xf]  ;;  %s3327_s0 = sld [smem:[#allocation2 + $0x8]]  ;;  %s3329_s10 = sld [smem:[#allocation2 + $0xa]] }
  0x1b   :  { %3383 = vmatprep.mubr.msk.f32.mxu0 %vm68_vm0, %v50_v15  ;;  %320 = vmax.xlane.f32.xlu1 %v299_v22  ;;  %v308_v48 = vunpack.c.l.bf16 %v276_v46  ;;  %v309_v49 = vunpack.c.l.bf16 %v277_v47  ;;  %s5911_s11 = sld [smem:[#allocation2 + $0xb]]  ;;  %s5928_s12 = sld [smem:[#allocation2 + $0xc]] }
  0x1c   :  { %s5940_s4 = sld [smem:[#allocation2 + $0xd]]  ;;  %s5969_s13 = sld [smem:[#allocation2 + $0xe]] }
  0x1d   :  { %318 = vmax.xlane.f32.xlu0 %v298_v20  ;;  %s5972_s14 = sld [smem:[#allocation2 + $0xf]] }
  0x1e   :  { %3384 = vmatmul.mubr.msk.f32.gmra.mrb[6].mxu0 %vm68_vm0, %v51_v19 }
  0x1f   :  { %3386 = vmatprep.mubr.msk.f32.mxu0 %vm68_vm0, %v52_v21  ;;  %324 = vmax.xlane.f32.xlu1 %v301_v28 }
  0x21   :  { %322 = vmax.xlane.f32.xlu0 %v300_v26 }
  0x22   :  { %3387 = vmatmul.mubr.msk.f32.gmra.mrb[8].mxu0 %vm68_vm0, %v53_v25 }
  0x23   :  { %3389 = vmatprep.mubr.msk.f32.mxu0 %vm68_vm0, %v54_v27  ;;  %328 = vmax.xlane.f32.xlu1 %v303_v34 }
  0x25   :  { %326 = vmax.xlane.f32.xlu0 %v302_v32 }
  0x26   :  { %3390 = vmatmul.mubr.msk.f32.gmra.mrb[10].mxu0 %vm68_vm0, %v55_v31 }
  0x27   :  { %3392 = vmatprep.mubr.msk.f32.mxu0 %vm68_vm0, %v56_v33  ;;  %332 = vmax.xlane.f32.xlu1 %v305_v40 }
  0x29   :  { %330 = vmax.xlane.f32.xlu0 %v304_v38 }
  0x2a   :  { %3393 = vmatmul.mubr.msk.f32.gmra.mrb[12].mxu0 %vm68_vm0, %v57_v37 }
  0x2b   :  { %3395 = vmatprep.mubr.msk.f32.mxu0 %vm68_vm0, %v58_v39  ;;  %336 = vmax.xlane.f32.xlu1 %v307_v45 }
  0x2d   :  { %334 = vmax.xlane.f32.xlu0 %v306_v44 }
  0x2e   :  { %3396 = vmatmul.mubr.msk.f32.gmra.mrb[14].mxu0 %vm68_vm0, %v59_v43 }
  0x2f   :  { %340 = vmax.xlane.f32.xlu1 %v309_v49 }
  0x31   :  { %338 = vmax.xlane.f32.xlu0 %v308_v48 }
  0xa0   :  { %v4089_v27 = vpop.xlane.xlu1 %314 }
  0xa1   :  { %6882 = vst [vmem:[#allocation21_spill] sm:$0xff] %v4089_v27 }
  0xa2   :  { %v4091_v28 = vpop.xlane.xlu0 %310 }
  0xa3   :  { %6883 = vst [vmem:[#allocation22_spill] sm:$0xff] %v4091_v28 }
  0xa4   :  { %v4099_v29 = vpop.xlane.xlu1 %316 }
  0xa5   :  { %6884 = vst [vmem:[#allocation23_spill] sm:$0xff] %v4099_v29  ;;  %v6909_v29 = vmov 0  }
  0xa6   :  { %v4101_v30 = vpop.xlane.xlu0 %312 }
  0xa7   :  { %6885 = vst [vmem:[#allocation24_spill] sm:$0xff] %v4101_v30 }
  0xa8   :  { %v4107_v31 = vpop.xlane.xlu1 %320 }
  0xa9   :  { %6886 = vst [vmem:[#allocation25_spill] sm:$0xff] %v4107_v31 }
  0xaa   :  { %v4109_v32 = vpop.xlane.xlu0 %318 }
  0xab   :  { %6887 = vst [vmem:[#allocation26_spill] sm:$0xff] %v4109_v32 }
  0xac   :  { %v4115_v33 = vpop.xlane.xlu1 %324 }
  0xad   :  { %6888 = vst [vmem:[#allocation27_spill] sm:$0xff] %v4115_v33 }
  0xae   :  { %v4117_v34 = vpop.xlane.xlu0 %322 }
  0xaf   :  { %6889 = vst [vmem:[#allocation28_spill] sm:$0xff] %v4117_v34  ;;  %v6907_v34 = vmov 3  }
  0xb0   :  { %v4123_v35 = vpop.xlane.xlu1 %328 }
  0xb1   :  { %6890 = vst [vmem:[#allocation29_spill] sm:$0xff] %v4123_v35 }
  0xb2   :  { %v4125_v36 = vpop.xlane.xlu0 %326 }
  0xb3   :  { %6891 = vst [vmem:[#allocation30_spill] sm:$0xff] %v4125_v36  ;;  %v6731_v36 = vmov 6  }
  0xb4   :  { %v4133_v37 = vpop.xlane.xlu1 %332 }
  0xb5   :  { %6892 = vst [vmem:[#allocation31_spill] sm:$0xff] %v4133_v37 }
  0xb6   :  { %v4135_v38 = vpop.xlane.xlu0 %330 }
  0xb7   :  { %6893 = vst [vmem:[#allocation32_spill] sm:$0xff] %v4135_v38  ;;  %v6905_v38 = vmov 1  }
  0xb8   :  { %v4143_v39 = vpop.xlane.xlu1 %336 }
  0xb9   :  { %6894 = vst [vmem:[#allocation33_spill] sm:$0xff] %v4143_v39 }
  0xba   :  { %v4145_v40 = vpop.xlane.xlu0 %334 }
  0xbb   :  { %6895 = vst [vmem:[#allocation34_spill] sm:$0xff] %v4145_v40 }
  0xbc   :  { %v4151_v41 = vpop.xlane.xlu1 %340 }
  0xbd   :  { %6896 = vst [vmem:[#allocation35_spill] sm:$0xff] %v4151_v41 }
  0xbe   :  { %v4153_v42 = vpop.xlane.xlu0 %338 }
  0xbf   :  { %6897 = vst [vmem:[#allocation36_spill] sm:$0xff] %v4153_v42  ;;  %v6900_v42 = vmov 5  }
  0xe5   :  { %v3376_v52 = vpop.f32.mrb[0].mxu0 }
  0xe6   :  { %v3975_v53 = vadd.f32 %v3376_v52, %v3972_v51  ;;  %v183_v54 = vpop.f32.mrb[1].mxu0 }
  0xe7   :  { %v3996_v3 = vadd.f32 %v3972_v51, %v183_v54 }
  0xe8   :  { %6866 = vst [vmem:[#allocation5_spill] sm:$0xff] %v3975_v53  ;;  %529 = vperm.xlu0 %3458, %v3975_v53   ;;  %365 = vperm.xlu1 %3457, %v3975_v53  }
  0xe9   :  { %v3379_v55 = vpop.f32.mrb[2].mxu0  ;;  %6869 = vst [vmem:[#allocation8_spill] sm:$0xff] %v3996_v3 }
  0xea   :  { %v3979_v56 = vpop.f32.mrb[3].mxu0  ;;  %v4026_v17 = vadd.f32 %v3379_v55, %v3972_v51 }
  0xeb   :  { %v4058_v24 = vadd.f32 %v3972_v51, %v3979_v56 }
  0xec   :  { %3460 = vset.pattern.permute.xlu0 %v6719_v57  ;;  %3459 = vset.pattern.permute.xlu1 %v6708_v58  ;;  %6875 = vst [vmem:[#allocation14_spill] sm:$0xff] %v4026_v17 }
  0xed   :  { %829 = vperm.xlu0 %3460, %v3975_v53   ;;  %679 = vperm.xlu1 %3459, %v3975_v53   ;;  %v3382_v59 = vpop.f32.mrb[4].mxu0  ;;  %6880 = vst [vmem:[#allocation19_spill] sm:$0xff] %v4058_v24 }
  0xee   :  { %v203_v60 = vpop.f32.mrb[5].mxu0  ;;  %v4040_v20 = vadd.f32 %v3382_v59, %v3972_v51 }
  0xef   :  { %v4054_v23 = vadd.f32 %v3972_v51, %v203_v60 }
  0xf0   :  { %6877 = vst [vmem:[#allocation16_spill] sm:$0xff] %v4040_v20 }
  0xf1   :  { %3462 = vset.pattern.permute.xlu0 %v6706_v61  ;;  %3461 = vset.pattern.permute.xlu1 %v6710_v62  ;;  %v3385_v63 = vpop.f32.mrb[6].mxu0  ;;  %6879 = vst [vmem:[#allocation18_spill] sm:$0xff] %v4054_v23 }
  0xf2   :  { %1129 = vperm.xlu0 %3462, %v3975_v53   ;;  %979 = vperm.xlu1 %3461, %v3975_v53   ;;  %v3990_v0 = vadd.f32 %v3385_v63, %v3972_v51  ;;  %v213_v1 = vpop.f32.mrb[7].mxu0 }
  0xf3   :  { %v3993_v2 = vadd.f32 %v3972_v51, %v213_v1 }
  0xf4   :  { %6867 = vst [vmem:[#allocation6_spill] sm:$0xff] %v3990_v0 }
  0xf5   :  { %6868 = vst [vmem:[#allocation7_spill] sm:$0xff] %v3993_v2  ;;  %v3388_v5 = vpop.f32.mrb[8].mxu0 }
  0xf6   :  { %3463 = vset.pattern.permute.xlu0 %v6717_v4  ;;  %3464 = vset.pattern.permute.xlu1 %v6713_v50  ;;  %v4001_v6 = vadd.f32 %v3388_v5, %v3972_v51  ;;  %v223_v9 = vpop.f32.mrb[9].mxu0 }
  0xf7   :  { %525 = vperm.xlu1 %3464, %v3996_v3   ;;  %360 = vperm.xlu0 %3463, %v3996_v3   ;;  %v4006_v10 = vadd.f32 %v3972_v51, %v223_v9 }
  0xf8   :  { %6870 = vst [vmem:[#allocation9_spill] sm:$0xff] %v4001_v6 }
  0xf9   :  { %6871 = vst [vmem:[#allocation10_spill] sm:$0xff] %v4006_v10  ;;  %v3391_v11 = vpop.f32.mrb[10].mxu0 }
  0xfa   :  { %v4009_v12 = vadd.f32 %v3391_v11, %v3972_v51  ;;  %v233_v13 = vpop.f32.mrb[11].mxu0 }
  0xfb   :  { %3466 = vset.pattern.permute.xlu1 %v6719_v57  ;;  %3465 = vset.pattern.permute.xlu0 %v6708_v58  ;;  %v4014_v14 = vadd.f32 %v3972_v51, %v233_v13 }
  0xfc   :  { %6872 = vst [vmem:[#allocation11_spill] sm:$0xff] %v4009_v12  ;;  %825 = vperm.xlu1 %3466, %v3996_v3   ;;  %675 = vperm.xlu0 %3465, %v3996_v3  }
  0xfd   :  { %6873 = vst [vmem:[#allocation12_spill] sm:$0xff] %v4014_v14  ;;  %v3394_v15 = vpop.f32.mrb[12].mxu0 }
  0xfe   :  { %v4019_v16 = vadd.f32 %v3394_v15, %v3972_v51  ;;  %v243_v18 = vpop.f32.mrb[13].mxu0 }
  0xff   :  { %v4033_v19 = vadd.f32 %v3972_v51, %v243_v18 }
 0x100   :  { %6874 = vst [vmem:[#allocation13_spill] sm:$0xff] %v4019_v16  ;;  %3468 = vset.pattern.permute.xlu1 %v6706_v61  ;;  %3467 = vset.pattern.permute.xlu0 %v6710_v62 }
 0x101   :  { %1125 = vperm.xlu1 %3468, %v3996_v3   ;;  %975 = vperm.xlu0 %3467, %v3996_v3   ;;  %6876 = vst [vmem:[#allocation15_spill] sm:$0xff] %v4033_v19  ;;  %v3397_v21 = vpop.f32.mrb[14].mxu0 }
 0x102   :  { %v4047_v22 = vadd.f32 %v3397_v21, %v3972_v51  ;;  %v253_v25 = vpop.f32.mrb[15].mxu0 }
 0x103   :  { %v4069_v26 = vadd.f32 %v3972_v51, %v253_v25 }
 0x104   :  { %6878 = vst [vmem:[#allocation17_spill] sm:$0xff] %v4047_v22 }
 0x105   :  { %3469 = vset.pattern.permute.xlu1 %v6717_v4  ;;  %3471 = vset.pattern.permute.xlu0 %v6708_v58  ;;  %6881 = vst [vmem:[#allocation20_spill] sm:$0xff] %v4069_v26 }
 0x106   :  { %375 = vperm.xlu1 %3469, %v4026_v17   ;;  %687 = vperm.xlu0 %3471, %v4026_v17  }
 0x10a   :  { %3470 = vset.pattern.permute.xlu1 %v6713_v50  ;;  %3473 = vset.pattern.permute.xlu0 %v6710_v62 }
 0x10b   :  { %537 = vperm.xlu1 %3470, %v4026_v17   ;;  %987 = vperm.xlu0 %3473, %v4026_v17  }
 0x10f   :  { %3472 = vset.pattern.permute.xlu1 %v6719_v57  ;;  %3483 = vset.pattern.permute.xlu0 %v6708_v58 }
 0x110   :  { %837 = vperm.xlu1 %3472, %v4026_v17   ;;  %695 = vperm.xlu0 %3483, %v4040_v20  }
 0x114   :  { %3474 = vset.pattern.permute.xlu1 %v6706_v61  ;;  %3485 = vset.pattern.permute.xlu0 %v6710_v62 }
 0x115   :  { %1137 = vperm.xlu1 %3474, %v4026_v17   ;;  %995 = vperm.xlu0 %3485, %v4040_v20  }
 0x119   :  { %3475 = vset.pattern.permute.xlu1 %v6717_v4  ;;  %3488 = vset.pattern.permute.xlu0 %v6713_v50 }
 0x11a   :  { %370 = vperm.xlu1 %3475, %v4058_v24   ;;  %541 = vperm.xlu0 %3488, %v4054_v23  }
 0x11e   :  { %3476 = vset.pattern.permute.xlu1 %v6713_v50  ;;  %3490 = vset.pattern.permute.xlu0 %v6719_v57 }
 0x11f   :  { %533 = vperm.xlu1 %3476, %v4058_v24   ;;  %841 = vperm.xlu0 %3490, %v4054_v23  }
 0x123   :  { %3477 = vset.pattern.permute.xlu1 %v6708_v58  ;;  %3492 = vset.pattern.permute.xlu0 %v6706_v61 }
 0x124   :  { %683 = vperm.xlu1 %3477, %v4058_v24   ;;  %1141 = vperm.xlu0 %3492, %v4054_v23  }
 0x128   :  { %3478 = vset.pattern.permute.xlu1 %v6719_v57  ;;  %3495 = vset.pattern.permute.xlu0 %v6708_v58 }
 0x129   :  { %833 = vperm.xlu1 %3478, %v4058_v24   ;;  %703 = vperm.xlu0 %3495, %v3990_v0  }
 0x12d   :  { %3479 = vset.pattern.permute.xlu1 %v6710_v62  ;;  %3497 = vset.pattern.permute.xlu0 %v6710_v62 }
 0x12e   :  { %983 = vperm.xlu1 %3479, %v4058_v24   ;;  %1003 = vperm.xlu0 %3497, %v3990_v0  }
 0x132   :  { %3480 = vset.pattern.permute.xlu1 %v6706_v61  ;;  %3500 = vset.pattern.permute.xlu0 %v6713_v50 }
 0x133   :  { %1133 = vperm.xlu1 %3480, %v4058_v24   ;;  %549 = vperm.xlu0 %3500, %v3993_v2  }
 0x137   :  { %3481 = vset.pattern.permute.xlu1 %v6717_v4  ;;  %3502 = vset.pattern.permute.xlu0 %v6719_v57 }
 0x138   :  { %385 = vperm.xlu1 %3481, %v4040_v20   ;;  %849 = vperm.xlu0 %3502, %v3993_v2  }
 0x13c   :  { %3482 = vset.pattern.permute.xlu1 %v6713_v50  ;;  %3504 = vset.pattern.permute.xlu0 %v6706_v61 }
 0x13d   :  { %545 = vperm.xlu1 %3482, %v4040_v20   ;;  %1149 = vperm.xlu0 %3504, %v3993_v2  }
 0x141   :  { %3484 = vset.pattern.permute.xlu1 %v6719_v57  ;;  %3505 = vset.pattern.permute.xlu0 %v6717_v4 }
 0x142   :  { %845 = vperm.xlu1 %3484, %v4040_v20   ;;  %405 = vperm.xlu0 %3505, %v4001_v6  }
 0x146   :  { %3486 = vset.pattern.permute.xlu1 %v6706_v61  ;;  %3507 = vset.pattern.permute.xlu0 %v6708_v58 }
 0x147   :  { %1145 = vperm.xlu1 %3486, %v4040_v20   ;;  %711 = vperm.xlu0 %3507, %v4001_v6  }
 0x14b   :  { %3487 = vset.pattern.permute.xlu1 %v6717_v4  ;;  %3509 = vset.pattern.permute.xlu0 %v6710_v62 }
 0x14c   :  { %380 = vperm.xlu1 %3487, %v4054_v23   ;;  %1011 = vperm.xlu0 %3509, %v4001_v6  }
 0x150   :  { %3489 = vset.pattern.permute.xlu1 %v6708_v58  ;;  %3512 = vset.pattern.permute.xlu0 %v6713_v50 }
 0x151   :  { %691 = vperm.xlu1 %3489, %v4054_v23   ;;  %557 = vperm.xlu0 %3512, %v4006_v10  }
 0x155   :  { %3491 = vset.pattern.permute.xlu1 %v6710_v62  ;;  %3514 = vset.pattern.permute.xlu0 %v6719_v57 }
 0x156   :  { %991 = vperm.xlu1 %3491, %v4054_v23   ;;  %857 = vperm.xlu0 %3514, %v4006_v10  }
 0x15a   :  { %3493 = vset.pattern.permute.xlu1 %v6717_v4  ;;  %3516 = vset.pattern.permute.xlu0 %v6706_v61 }
 0x15b   :  { %395 = vperm.xlu1 %3493, %v3990_v0   ;;  %1157 = vperm.xlu0 %3516, %v4006_v10  }
 0x15f   :  { %3494 = vset.pattern.permute.xlu1 %v6713_v50  ;;  %3517 = vset.pattern.permute.xlu0 %v6717_v4 }
 0x160   :  { %553 = vperm.xlu1 %3494, %v3990_v0   ;;  %415 = vperm.xlu0 %3517, %v4009_v12  }
 0x164   :  { %3496 = vset.pattern.permute.xlu1 %v6719_v57  ;;  %3519 = vset.pattern.permute.xlu0 %v6708_v58 }
 0x165   :  { %853 = vperm.xlu1 %3496, %v3990_v0   ;;  %719 = vperm.xlu0 %3519, %v4009_v12  }
 0x167   :  { %v4159_v43 = vpop.permute.xlu0 %529  ;;  %v4161_v44 = vpop.permute.xlu1 %365 }
 0x169   :  { %3498 = vset.pattern.permute.xlu1 %v6706_v61  ;;  %3521 = vset.pattern.permute.xlu0 %v6710_v62 }
 0x16a   :  { %1153 = vperm.xlu1 %3498, %v3990_v0   ;;  %1019 = vperm.xlu0 %3521, %v4009_v12  }
 0x16c   :  { %v4167_v45 = vpop.permute.xlu0 %829  ;;  %v4169_v46 = vpop.permute.xlu1 %679 }
 0x16e   :  { %3499 = vset.pattern.permute.xlu1 %v6717_v4  ;;  %3523 = vset.pattern.permute.xlu0 %v6713_v50 }
 0x16f   :  { %390 = vperm.xlu1 %3499, %v3993_v2   ;;  %565 = vperm.xlu0 %3523, %v4014_v14  }
 0x171   :  { %v4175_v47 = vpop.permute.xlu0 %1129  ;;  %v4177_v48 = vpop.permute.xlu1 %979 }
 0x173   :  { %3501 = vset.pattern.permute.xlu1 %v6708_v58  ;;  %3525 = vset.pattern.permute.xlu0 %v6719_v57 }
 0x174   :  { %699 = vperm.xlu1 %3501, %v3993_v2   ;;  %865 = vperm.xlu0 %3525, %v4014_v14  }
 0x176   :  { %v4183_v49 = vpop.permute.xlu1 %525  ;;  %v4185_v51 = vpop.permute.xlu0 %360 }
 0x178   :  { %3503 = vset.pattern.permute.xlu1 %v6710_v62  ;;  %3527 = vset.pattern.permute.xlu0 %v6717_v4 }
 0x179   :  { %999 = vperm.xlu1 %3503, %v3993_v2   ;;  %425 = vperm.xlu0 %3527, %v4019_v16  }
 0x17b   :  { %v4191_v52 = vpop.permute.xlu1 %825  ;;  %v4193_v54 = vpop.permute.xlu0 %675 }
 0x17d   :  { %3506 = vset.pattern.permute.xlu1 %v6713_v50  ;;  %3529 = vset.pattern.permute.xlu0 %v6708_v58 }
 0x17e   :  { %561 = vperm.xlu1 %3506, %v4001_v6   ;;  %727 = vperm.xlu0 %3529, %v4019_v16  }
 0x180   :  { %v4199_v55 = vpop.permute.xlu1 %1125  ;;  %v4201_v56 = vpop.permute.xlu0 %975 }
 0x182   :  { %3508 = vset.pattern.permute.xlu1 %v6719_v57  ;;  %3531 = vset.pattern.permute.xlu0 %v6710_v62 }
 0x183   :  { %861 = vperm.xlu1 %3508, %v4001_v6   ;;  %1027 = vperm.xlu0 %3531, %v4019_v16  }
 0x185   :  { %v4207_v59 = vpop.permute.xlu1 %375  ;;  %v4209_v60 = vpop.permute.xlu0 %687 }
 0x187   :  { %3510 = vset.pattern.permute.xlu1 %v6706_v61  ;;  %3533 = vset.pattern.permute.xlu0 %v6713_v50 }
 0x188   :  { %1161 = vperm.xlu1 %3510, %v4001_v6   ;;  %573 = vperm.xlu0 %3533, %v4033_v19  }
 0x18a   :  { %v4215_v63 = vpop.permute.xlu1 %537  ;;  %v4217_v1 = vpop.permute.xlu0 %987 }
 0x18c   :  { %3511 = vset.pattern.permute.xlu1 %v6717_v4  ;;  %3535 = vset.pattern.permute.xlu0 %v6719_v57 }
 0x18d   :  { %400 = vperm.xlu1 %3511, %v4006_v10   ;;  %873 = vperm.xlu0 %3535, %v4033_v19  }
 0x18f   :  { %v4223_v5 = vpop.permute.xlu1 %837  ;;  %v4225_v9 = vpop.permute.xlu0 %695 }
 0x191   :  { %3513 = vset.pattern.permute.xlu1 %v6708_v58  ;;  %3537 = vset.pattern.permute.xlu0 %v6717_v4 }
 0x192   :  { %707 = vperm.xlu1 %3513, %v4006_v10   ;;  %435 = vperm.xlu0 %3537, %v4047_v22  }
 0x194   :  { %v4231_v11 = vpop.permute.xlu1 %1137  ;;  %v4233_v13 = vpop.permute.xlu0 %995 }
 0x196   :  { %3515 = vset.pattern.permute.xlu1 %v6710_v62  ;;  %3539 = vset.pattern.permute.xlu0 %v6708_v58 }
 0x197   :  { %1007 = vperm.xlu1 %3515, %v4006_v10   ;;  %735 = vperm.xlu0 %3539, %v4047_v22  }
 0x199   :  { %v4239_v15 = vpop.permute.xlu1 %370  ;;  %v4241_v18 = vpop.permute.xlu0 %541 }
 0x19b   :  { %3518 = vset.pattern.permute.xlu1 %v6713_v50  ;;  %3541 = vset.pattern.permute.xlu0 %v6710_v62 }
 0x19c   :  { %569 = vperm.xlu1 %3518, %v4009_v12   ;;  %1035 = vperm.xlu0 %3541, %v4047_v22  }
 0x19e   :  { %v4247_v21 = vpop.permute.xlu1 %533  ;;  %v4249_v25 = vpop.permute.xlu0 %841 }
 0x1a0   :  { %3520 = vset.pattern.permute.xlu1 %v6719_v57  ;;  %3543 = vset.pattern.permute.xlu0 %v6713_v50  ;;  %v6899_v50 = vmov 2  }
 0x1a1   :  { %869 = vperm.xlu1 %3520, %v4009_v12   ;;  %581 = vperm.xlu0 %3543, %v4069_v26  }
 0x1a3   :  { %v4255_v61 = vpop.permute.xlu1 %683  ;;  %v4257_v58 = vpop.permute.xlu0 %1141 }
 0x1a5   :  { %3522 = vset.pattern.permute.xlu1 %v6717_v4  ;;  %3545 = vset.pattern.permute.xlu0 %v6719_v57  ;;  %v6902_v57 = vmov 4  }
 0x1a6   :  { %410 = vperm.xlu1 %3522, %v4014_v14   ;;  %881 = vperm.xlu0 %3545, %v4069_v26  }
 0x1a8   :  { %v4263_v62 = vpop.permute.xlu1 %833  ;;  %v4265_v41 = vpop.permute.xlu0 %703 }
 0x1a9   :  { %6898 = vst [vmem:[#allocation37_spill] sm:$0xff] %v4265_v41 }
 0x1aa   :  { %3524 = vset.pattern.permute.xlu1 %v6899_v50  ;;  %3546 = vset.pattern.permute.xlu0 %v6900_v42 }
 0x1ab   :  { %715 = vperm.xlu1 %3524, %v4014_v14   ;;  %1165 = vperm.xlu0 %3546, %v4014_v14  }
 0x1ad   :  { %v4271_v39 = vpop.permute.xlu1 %983  ;;  %v4273_v4 = vpop.permute.xlu0 %1003 }
 0x1ae   :  { %6901 = vst [vmem:[#allocation38_spill] sm:$0xff] %v4273_v4 }
 0x1af   :  { %3526 = vset.pattern.permute.xlu1 %v6902_v57  ;;  %1173 = vperm.xlu0 %3546, %v4033_v19  }
 0x1b0   :  { %1015 = vperm.xlu1 %3526, %v4014_v14  }
 0x1b2   :  { %v4278_v40 = vpop.permute.xlu1 %1133  ;;  %v4280_v37 = vpop.permute.xlu0 %549 }
 0x1b3   :  { %6903 = vst [vmem:[#allocation39_spill] sm:$0xff] %v4278_v40  ;;  %6904 = vst [vmem:[#allocation40_spill] sm:$0xff] %v4280_v37  ;;  %1181 = vperm.xlu0 %3546, %v4069_v26  }
 0x1b4   :  { %3528 = vset.pattern.permute.xlu1 %v6905_v38 }
 0x1b5   :  { %577 = vperm.xlu1 %3528, %v4019_v16  }
 0x1b7   :  { %v4285_v35 = vpop.permute.xlu1 %385  ;;  %3549 = vset.pattern.permute.xlu0 %v6731_v36  ;;  %v4288_v33 = vpop.permute.xlu0 %849 }
 0x1b8   :  { %6906 = vst [vmem:[#allocation41_spill] sm:$0xff] %v4288_v33  ;;  %1275 = vperm.xlu0 %3549, %v3996_v3  }
 0x1b9   :  { %3530 = vset.pattern.permute.xlu1 %v6907_v34 }
 0x1ba   :  { %877 = vperm.xlu1 %3530, %v4019_v16  }
 0x1bc   :  { %v4293_v31 = vpop.permute.xlu1 %545  ;;  %1287 = vperm.xlu0 %3549, %v4026_v17   ;;  %v4296_v32 = vpop.permute.xlu0 %1149 }
 0x1bd   :  { %6908 = vst [vmem:[#allocation42_spill] sm:$0xff] %v4296_v32 }
 0x1be   :  { %3532 = vset.pattern.permute.xlu1 %v6909_v29 }
 0x1bf   :  { %420 = vperm.xlu1 %3532, %v4033_v19  }
 0x1c0   :  { %1295 = vperm.xlu0 %3549, %v4040_v20  }
 0x1c1   :  { %v4301_v36 = vpop.permute.xlu1 %845  ;;  %v4303_v27 = vpop.permute.xlu0 %405 }
 0x1c2   :  { %6910 = vst [vmem:[#allocation43_spill] sm:$0xff] %v4301_v36  ;;  %6911 = vst [vmem:[#allocation44_spill] sm:$0xff] %v4303_v27 }
 0x1c3   :  { %3534 = vset.pattern.permute.xlu1 %v6899_v50 }
 0x1c4   :  { %723 = vperm.xlu1 %3534, %v4033_v19   ;;  %1303 = vperm.xlu0 %3549, %v3990_v0  }
 0x1c6   :  { %v4308_v28 = vpop.permute.xlu1 %1145  ;;  %v4310_v30 = vpop.permute.xlu0 %711 }
 0x1c7   :  { %6912 = vst [vmem:[#allocation45_spill] sm:$0xff] %v4308_v28  ;;  %6913 = vst [vmem:[#allocation46_spill] sm:$0xff] %v4310_v30 }
 0x1c8   :  { %3536 = vset.pattern.permute.xlu1 %v6902_v57  ;;  %1311 = vperm.xlu0 %3549, %v4001_v6  }
 0x1c9   :  { %1023 = vperm.xlu1 %3536, %v4033_v19  }
 0x1cb   :  { %v4315_v32 = vpop.permute.xlu1 %380  ;;  %v4317_v33 = vpop.permute.xlu0 %1011 }
 0x1cc   :  { %6914 = vst [vmem:[#allocation47_spill] sm:$0xff] %v4315_v32  ;;  %6915 = vst [vmem:[#allocation48_spill] sm:$0xff] %v4317_v33  ;;  %1319 = vperm.xlu0 %3549, %v4009_v12  }
 0x1cd   :  { %3538 = vset.pattern.permute.xlu1 %v6905_v38  ;;  %v6735_v38 = vmov 7  }
 0x1ce   :  { %585 = vperm.xlu1 %3538, %v4047_v22  }
 0x1d0   :  { %v4322_v27 = vpop.permute.xlu1 %691  ;;  %1327 = vperm.xlu0 %3549, %v4019_v16   ;;  %v4325_v30 = vpop.permute.xlu0 %557 }
 0x1d1   :  { %6916 = vst [vmem:[#allocation49_spill] sm:$0xff] %v4322_v27  ;;  %6917 = vst [vmem:[#allocation50_spill] sm:$0xff] %v4325_v30 }
 0x1d2   :  { %3540 = vset.pattern.permute.xlu1 %v6907_v34 }
 0x1d3   :  { %885 = vperm.xlu1 %3540, %v4047_v22  }
 0x1d4   :  { %1335 = vperm.xlu0 %3549, %v4047_v22  }
 0x1d5   :  { %v4330_v28 = vpop.permute.xlu1 %991  ;;  %v4332_v33 = vpop.permute.xlu0 %857 }
 0x1d6   :  { %6918 = vst [vmem:[#allocation51_spill] sm:$0xff] %v4330_v28  ;;  %6919 = vst [vmem:[#allocation52_spill] sm:$0xff] %v4332_v33 }
 0x1d7   :  { %3542 = vset.pattern.permute.xlu1 %v6909_v29 }
 0x1d8   :  { %430 = vperm.xlu1 %3542, %v4069_v26   ;;  %3552 = vset.pattern.permute.xlu0 %v6735_v38 }
 0x1d9   :  { %1429 = vperm.xlu0 %3552, %v3975_v53  }
 0x1da   :  { %v4338_v30 = vpop.permute.xlu1 %395  ;;  %v4340_v34 = vpop.permute.xlu0 %1157 }
 0x1db   :  { %6920 = vst [vmem:[#allocation53_spill] sm:$0xff] %v4338_v30  ;;  %6921 = vst [vmem:[#allocation54_spill] sm:$0xff] %v4340_v34 }
 0x1dc   :  { %3544 = vset.pattern.permute.xlu1 %v6899_v50 }
 0x1dd   :  { %731 = vperm.xlu1 %3544, %v4069_v26   ;;  %1441 = vperm.xlu0 %3552, %v4054_v23  }
 0x1df   :  { %v4345_v33 = vpop.permute.xlu1 %553  ;;  %v4347_v28 = vpop.permute.xlu0 %415 }
 0x1e0   :  { %6922 = vst [vmem:[#allocation55_spill] sm:$0xff] %v4345_v33  ;;  %6923 = vst [vmem:[#allocation56_spill] sm:$0xff] %v4347_v28 }
 0x1e1   :  { %3547 = vset.pattern.permute.xlu1 %v6902_v57  ;;  %1449 = vperm.xlu0 %3552, %v3993_v2  }
 0x1e2   :  { %1031 = vperm.xlu1 %3547, %v4069_v26  }
 0x1e4   :  { %v4352_v38 = vpop.permute.xlu1 %853  ;;  %v4354_v30 = vpop.permute.xlu0 %719 }
 0x1e5   :  { %6924 = vst [vmem:[#allocation57_spill] sm:$0xff] %v4352_v38  ;;  %6925 = vst [vmem:[#allocation58_spill] sm:$0xff] %v4354_v30  ;;  %1457 = vperm.xlu0 %3552, %v4006_v10  }
 0x1e6   :  { %3548 = vset.pattern.permute.xlu1 %v6900_v42  ;;  %v6930_v42 = vmov 6  }
 0x1e7   :  { %1169 = vperm.xlu1 %3548, %v4009_v12  }
 0x1e9   :  { %v4359_v50 = vpop.permute.xlu1 %1153  ;;  %1465 = vperm.xlu0 %3552, %v4014_v14   ;;  %v4362_v28 = vpop.permute.xlu0 %1019 }
 0x1ea   :  { %6926 = vst [vmem:[#allocation59_spill] sm:$0xff] %v4359_v50  ;;  %6927 = vst [vmem:[#allocation60_spill] sm:$0xff] %v4362_v28  ;;  %v438_v28 = vlaneseq }
 0x1eb   :  { %1177 = vperm.xlu1 %3548, %v4019_v16   ;;  %v4477_v16 = vstv %s3321_s24 }
 0x1ed   :  { %1473 = vperm.xlu0 %3552, %v4033_v19  }
 0x1ee   :  { %v4366_v57 = vpop.permute.xlu1 %390  ;;  %v4368_v34 = vpop.permute.xlu0 %565 }
 0x1ef   :  { %6928 = vst [vmem:[#allocation61_spill] sm:$0xff] %v4366_v57  ;;  %6929 = vst [vmem:[#allocation62_spill] sm:$0xff] %v4368_v34  ;;  %1185 = vperm.xlu1 %3548, %v4047_v22   ;;  %v4383_v34 = vshrl.u32 %v438_v28, 7 }
 0x1f1   :  { %1481 = vperm.xlu0 %3552, %v4069_v26   ;;  %6935 = vst [vmem:[#allocation67_spill] sm:$0xff] %v4383_v34  ;;  %v6947_v36 = vsub.s32 4, %v4383_v34 }
 0x1f3   :  { %3550 = vset.pattern.permute.xlu1 %v6930_v42  ;;  %v4373_v30 = vpop.permute.xlu1 %699  ;;  %v4375_v50 = vpop.permute.xlu0 %865 }
 0x1f4   :  { %6931 = vst [vmem:[#allocation63_spill] sm:$0xff] %v4373_v30  ;;  %6932 = vst [vmem:[#allocation64_spill] sm:$0xff] %v4375_v50  ;;  %1279 = vperm.xlu1 %3550, %v3975_v53   ;;  %v6742_v30 = vsub.s32 1, %v4383_v34  ;;  %v6743_v50 = vsub.s32 0, %v4383_v34  ;;  %v4395_v53 = vld [vmem:[%s6699_s1] sm:$0xff] }
 0x1f5   :  { %6938 = vst [vmem:[#allocation70_spill] sm:$0xff] %v4395_v53 }
 0x1f8   :  { %1283 = vperm.xlu1 %3550, %v4058_v24   ;;  %v4379_v38 = vpop.permute.xlu1 %999  ;;  %v4381_v57 = vpop.permute.xlu0 %425 }
 0x1f9   :  { %6933 = vst [vmem:[#allocation65_spill] sm:$0xff] %v4379_v38  ;;  %6934 = vst [vmem:[#allocation66_spill] sm:$0xff] %v4381_v57  ;;  %v6748_v38 = vsub.s32 2, %v4383_v34 }
 0x1fc   :  { %1291 = vperm.xlu1 %3550, %v4054_v23   ;;  %v4405_v23 = vrot.slane %v4395_v53, %v6742_v30  ;;  %v4421_v30 = vrot.slane %v4395_v53, %v6748_v38 }
 0x1fd   :  { %v4386_v33 = vpop.permute.xlu1 %561  ;;  %v4388_v42 = vpop.permute.xlu0 %727 }
 0x1fe   :  { %6936 = vst [vmem:[#allocation68_spill] sm:$0xff] %v4386_v33  ;;  %6937 = vst [vmem:[#allocation69_spill] sm:$0xff] %v4388_v42  ;;  %v4410_v42 = vrot.slane %v4395_v53, %v6743_v50  ;;  %v743_v38 = vadd.f32 %v4421_v30, %v4169_v46  ;;  %v595_v40 = vadd.f32 %v4405_v23, %v4215_v63  ;;  %v6951_v63 = vmov 7  }
 0x200   :  { %1299 = vperm.xlu1 %3550, %v3993_v2   ;;  %v593_v2 = vadd.f32 %v4405_v23, %v4159_v43  ;;  %v592_v43 = vadd.f32 %v4405_v23, %v4183_v49  ;;  %v6945_v49 = vsub.s32 3, %v4383_v34 }
 0x202   :  { %v4398_v57 = vpop.permute.xlu1 %861  ;;  %v4400_v28 = vpop.permute.xlu0 %1027  ;;  %v609_v27 = vmul.f32 0.2, %v592_v43 }
 0x203   :  { %6939 = vst [vmem:[#allocation71_spill] sm:$0xff] %v4398_v57  ;;  %6940 = vst [vmem:[#allocation72_spill] sm:$0xff] %v4400_v28  ;;  %v443_v28 = vadd.f32 %v4410_v42, %v4161_v44  ;;  %v442_v44 = vadd.f32 %v4410_v42, %v4185_v51  ;;  %v4446_v51 = vrot.slane %v4395_v53, %v6945_v49 }
 0x204   :  { %1307 = vperm.xlu1 %3550, %v4006_v10   ;;  %v610_v10 = vmul.f32 0.2, %v593_v2 }
 0x205   :  { %v460_v22 = vmul.f32 0.2, %v443_v28  ;;  %6946 = vst [vmem:[#allocation77_spill] sm:$0xff] %v4446_v51  ;;  %v459_v32 = vmul.f32 0.2, %v442_v44  ;;  %v893_v49 = vadd.f32 %v4446_v51, %v4167_v45 }
 0x206   :  { %v626_v46 = vmax.f32 %v593_v2, %v610_v10  ;;  %v892_v2 = vadd.f32 %v4446_v51, %v4191_v52 }
 0x207   :  { %v4423_v57 = vpop.permute.xlu1 %1161  ;;  %v4425_v33 = vpop.permute.xlu0 %573  ;;  %v476_v37 = vmax.f32 %v443_v28, %v460_v22  ;;  %v475_v28 = vmax.f32 %v442_v44, %v459_v32  ;;  %v445_v32 = vadd.f32 %v4410_v42, %v4207_v59 }
 0x208   :  { %6941 = vst [vmem:[#allocation73_spill] sm:$0xff] %v4423_v57  ;;  %6942 = vst [vmem:[#allocation74_spill] sm:$0xff] %v4425_v33  ;;  %1315 = vperm.xlu1 %3550, %v4014_v14   ;;  %v742_v33 = vadd.f32 %v4421_v30, %v4193_v54  ;;  %v760_v57 = vmul.f32 0.2, %v743_v38  ;;  %v4451_v54 = vrot.slane %v4395_v53, %v6947_v36 }
 0x209   :  { %v625_v36 = vmax.f32 %v592_v43, %v609_v27  ;;  %v910_v43 = vmul.f32 0.2, %v893_v49 }
 0x20a   :  { %v776_v4 = vmax.f32 %v743_v38, %v760_v57  ;;  %v1043_v52 = vadd.f32 %v4451_v54, %v4177_v48  ;;  %v1042_v27 = vadd.f32 %v4451_v54, %v4201_v56  ;;  %v909_v57 = vmul.f32 0.2, %v892_v2 }
 0x20c   :  { %1323 = vperm.xlu1 %3550, %v4033_v19   ;;  %v4439_v50 = vpop.permute.xlu1 %400  ;;  %v4441_v14 = vpop.permute.xlu0 %873  ;;  %v4453_v19 = vstv %s3320_s22 }
 0x20d   :  { %6943 = vst [vmem:[#allocation75_spill] sm:$0xff] %v4439_v50  ;;  %6944 = vst [vmem:[#allocation76_spill] sm:$0xff] %v4441_v14  ;;  %v4455_v50 = vstv %s458_s23  ;;  %v759_v14 = vmul.f32 0.2, %v742_v33  ;;  %v642_v48 = vmul.f32 %v4453_v19, %v625_v36  ;;  %v745_v36 = vadd.f32 %v4421_v30, %v4209_v60 }
 0x20e   :  { %6948 = vst [vmem:[#allocation78_spill] sm:$0xff] %v4453_v19  ;;  %v493_v45 = vmul.f32 %v4455_v50, %v476_v37  ;;  %v6952_v37 = vsub.s32 5, %v4383_v34 }
 0x20f   :  { %v762_v41 = vmul.f32 0.2, %v745_v36 }
 0x210   :  { %1331 = vperm.xlu1 %3550, %v4069_v26   ;;  %v643_v26 = vmul.f32 %v4453_v19, %v626_v46  ;;  %v4487_v38 = vrot.slane %v4395_v53, %v6952_v37  ;;  %v793_v46 = vmul.f32 %v4477_v16, %v776_v4  ;;  %v462_v53 = vmul.f32 0.2, %v445_v32 }
 0x211   :  { %v4463_v10 = vpop.permute.xlu1 %707  ;;  %v4465_v22 = vpop.permute.xlu0 %435  ;;  %v4508_v4 = vstv %s4467_s25 }
 0x212   :  { %6949 = vst [vmem:[#allocation79_spill] sm:$0xff] %v4463_v10  ;;  %6950 = vst [vmem:[#allocation80_spill] sm:$0xff] %v4465_v22  ;;  %v775_v22 = vmax.f32 %v742_v33, %v759_v14  ;;  %v492_v14 = vmul.f32 %v4455_v50, %v475_v28  ;;  %v612_v33 = vmul.f32 0.2, %v595_v40  ;;  %v659_v44 = vadd.f32 %v643_v26, %v493_v45 }
 0x213   :  { %6953 = vst [vmem:[#allocation81_spill] sm:$0xff] %v4487_v38  ;;  %v1059_v10 = vmul.f32 0.2, %v1042_v27  ;;  %v1193_v28 = vadd.f32 %v4487_v38, %v4175_v47  ;;  %v1192_v26 = vadd.f32 %v4487_v38, %v4199_v55  ;;  %v478_v55 = vmax.f32 %v445_v32, %v462_v53 }
 0x214   :  { %3551 = vset.pattern.permute.xlu1 %v6951_v63  ;;  %v1060_v63 = vmul.f32 0.2, %v1043_v52  ;;  %v792_v37 = vmul.f32 %v4477_v16, %v775_v22  ;;  %v658_v22 = vadd.f32 %v642_v48, %v492_v14  ;;  %v628_v45 = vmax.f32 %v595_v40, %v612_v33 }
 0x215   :  { %1425 = vperm.xlu1 %3551, %v3996_v3   ;;  %v926_v3 = vmax.f32 %v893_v49, %v910_v43  ;;  %v809_v60 = vadd.f32 %v793_v46, %v659_v44  ;;  %v4513_v49 = vstv %s4473_s26  ;;  %v1210_v12 = vmul.f32 0.2, %v1193_v28 }
 0x216   :  { %v4492_v56 = vpop.permute.xlu1 %1007  ;;  %v4494_v59 = vpop.permute.xlu0 %735  ;;  %v1076_v43 = vmax.f32 %v1043_v52, %v1060_v63  ;;  %v1209_v48 = vmul.f32 0.2, %v1192_v26  ;;  %v1045_v52 = vadd.f32 %v4451_v54, %v4217_v1  ;;  %v495_v33 = vmul.f32 %v4455_v50, %v478_v55 }
 0x217   :  { %6954 = vst [vmem:[#allocation82_spill] sm:$0xff] %v4492_v56  ;;  %6955 = vst [vmem:[#allocation83_spill] sm:$0xff] %v4494_v59  ;;  %v925_v56 = vmax.f32 %v892_v2, %v909_v57  ;;  %v895_v59 = vadd.f32 %v4446_v51, %v4223_v5  ;;  %v808_v2 = vadd.f32 %v792_v37, %v658_v22  ;;  %v4537_v46 = vstv %s4500_s27 }
 0x218   :  { %v1075_v57 = vmax.f32 %v1042_v27, %v1059_v10  ;;  %v645_v5 = vmul.f32 %v4453_v19, %v628_v45  ;;  %v747_v10 = vadd.f32 %v4421_v30, %v4225_v9  ;;  %v1226_v9 = vmax.f32 %v1193_v28, %v1210_v12 }
 0x219   :  { %1433 = vperm.xlu1 %3551, %v4058_v24   ;;  %v943_v24 = vmul.f32 %v4508_v4, %v926_v3  ;;  %v942_v40 = vmul.f32 %v4508_v4, %v925_v56  ;;  %v912_v14 = vmul.f32 0.2, %v895_v59  ;;  %v1093_v3 = vmul.f32 %v4513_v49, %v1076_v43 }
 0x21a   :  { %v1092_v32 = vmul.f32 %v4513_v49, %v1075_v57  ;;  %v778_v56 = vmax.f32 %v745_v36, %v762_v41  ;;  %v1225_v63 = vmax.f32 %v1192_v26, %v1209_v48  ;;  %v594_v37 = vadd.f32 %v4405_v23, %v4247_v21 }
 0x21b   :  { %v4515_v34 = vpop.permute.xlu1 %569  ;;  %v4517_v47 = vpop.permute.xlu0 %1035  ;;  %v959_v53 = vadd.f32 %v943_v24, %v809_v60  ;;  %v958_v27 = vadd.f32 %v942_v40, %v808_v2  ;;  %v661_v24 = vadd.f32 %v645_v5, %v495_v33  ;;  %v1062_v22 = vmul.f32 0.2, %v1045_v52 }
 0x21c   :  { %v928_v45 = vmax.f32 %v895_v59, %v912_v14  ;;  %v764_v60 = vmul.f32 0.2, %v747_v10  ;;  %v4545_v41 = vsel %vm278_vm1, 65537, %v6909_v29  ;;  %v1195_v36 = vadd.f32 %v4487_v38, %v4231_v11 }
 0x21d   :  { %1437 = vperm.xlu1 %3551, %v4026_v17   ;;  %6956 = vst [vmem:[#allocation84_spill] sm:$0xff] %v4545_v41  ;;  %v444_v12 = vadd.f32 %v4410_v42, %v4239_v15  ;;  %v1047_v21 = vadd.f32 %v4451_v54, %v4233_v13  ;;  %v4556_v28 = vsel %vm280_vm2, 65537, %v6909_v29  ;;  %v1109_v59 = vadd.f32 %v1093_v3, %v959_v53 }
 0x21e   :  { %6957 = vst [vmem:[#allocation85_spill] sm:$0xff] %v4556_v28  ;;  %v1108_v26 = vadd.f32 %v1092_v32, %v958_v27  ;;  %v795_v7 = vmul.f32 %v4477_v16, %v778_v56  ;;  %v1243_v43 = vmul.f32 %v4537_v46, %v1226_v9  ;;  %v1242_v2 = vmul.f32 %v4537_v46, %v1225_v63 }
 0x21f   :  { %v611_v11 = vmul.f32 0.2, %v594_v37  ;;  %v744_v15 = vadd.f32 %v4421_v30, %v4255_v61  ;;  %v1078_v8 = vmax.f32 %v1045_v52, %v1062_v22  ;;  %v945_v40 = vmul.f32 %v4508_v4, %v928_v45 }
 0x220   :  { %v4532_v44 = vpop.permute.xlu1 %869  ;;  %v4534_v1 = vpop.permute.xlu0 %581  ;;  %v811_v55 = vadd.f32 %v795_v7, %v661_v24  ;;  %v780_v48 = vmax.f32 %v747_v10, %v764_v60  ;;  %v1212_v5 = vmul.f32 0.2, %v1195_v36  ;;  %v461_v14 = vmul.f32 0.2, %v444_v12 }
 0x221   :  { %1445 = vperm.xlu1 %3551, %v4040_v20   ;;  %v1064_v53 = vmul.f32 0.2, %v1047_v21  ;;  %v596_v3 = vadd.f32 %v4405_v23, %v4241_v18  ;;  %v894_v61 = vadd.f32 %v4446_v51, %v4263_v62  ;;  %v4573_v27 = vadd.f32 %v1243_v43, %v1109_v59 }
 0x222   :  { %v4575_v32 = vadd.f32 %v1242_v2, %v1108_v26  ;;  %v627_v33 = vmax.f32 %v594_v37, %v611_v11  ;;  %v761_v56 = vmul.f32 0.2, %v744_v15  ;;  %v896_v52 = vadd.f32 %v4446_v51, %v4249_v25  ;;  %v6960_v11 = vld [vmem:[#allocation11_spill] sm:$0xff] }
 0x223   :  { %6958 = vst [vmem:[#allocation86_spill] sm:$0xff] %v4573_v27  ;;  %v597_v10 = vadd.f32 %v4405_v23, %v4293_v31  ;;  %v1095_v9 = vmul.f32 %v4513_v49, %v1078_v8  ;;  %v961_v18 = vadd.f32 %v945_v40, %v811_v55  ;;  %v4584_v63 = vmul.f32 %v4477_v16, %v780_v48 }
 0x224   :  { %6959 = vst [vmem:[#allocation87_spill] sm:$0xff] %v4575_v32  ;;  %v1044_v62 = vadd.f32 %v4451_v54, %v4271_v39  ;;  %v1228_v22 = vmax.f32 %v1195_v36, %v1212_v5  ;;  %v477_v25 = vmax.f32 %v444_v12, %v461_v14  ;;  %v1080_v45 = vmax.f32 %v1047_v21, %v1064_v53  ;;  %v6961_v12 = vld [vmem:[#allocation37_spill] sm:$0xff]  ;;  %v6964_v5 = vld [vmem:[#allocation39_spill] sm:$0xff] }
 0x225   :  { %1453 = vperm.xlu1 %3551, %v3990_v0   ;;  %v4564_v13 = vpop.permute.xlu1 %410  ;;  %v4566_v57 = vpop.permute.xlu0 %881  ;;  %v447_v31 = vadd.f32 %v4410_v42, %v4285_v35  ;;  %v613_v60 = vmul.f32 0.2, %v596_v3  ;;  %v911_v59 = vmul.f32 0.2, %v894_v61  ;;  %v1196_v26 = vadd.f32 %v4487_v38, %v4257_v58  ;;  %v6962_v35 = vld [vmem:[#allocation38_spill] sm:$0xff] }
 0x226   :  { %v644_v7 = vmul.f32 %v4453_v19, %v627_v33  ;;  %v777_v43 = vmax.f32 %v744_v15, %v761_v56  ;;  %v913_v2 = vmul.f32 0.2, %v896_v52  ;;  %v614_v39 = vmul.f32 0.2, %v597_v10 }
 0x227   :  { %v6767_v8 = vmov 8   ;;  %v1061_v36 = vmul.f32 0.2, %v1044_v62  ;;  %v749_v21 = vadd.f32 %v4421_v30, %v6961_v12  ;;  %v1049_v55 = vadd.f32 %v4451_v54, %v6962_v35 }
 0x228   :  { %3554 = vset.pattern.permute.xlu0 %v6767_v8  ;;  %v1111_v58 = vadd.f32 %v1095_v9, %v961_v18  ;;  %v1245_v48 = vmul.f32 %v4537_v46, %v1228_v22  ;;  %v494_v15 = vmul.f32 %v4455_v50, %v477_v25  ;;  %v1194_v14 = vadd.f32 %v4487_v38, %v6964_v5  ;;  %v6966_v22 = vld [vmem:[#allocation13_spill] sm:$0xff]  ;;  %v6967_v5 = vld [vmem:[#allocation43_spill] sm:$0xff] }
 0x229   :  { %1461 = vperm.xlu1 %3551, %v4001_v6   ;;  %v464_v53 = vmul.f32 0.2, %v447_v31  ;;  %v4612_v56 = vmul.f32 %v4513_v49, %v1080_v45  ;;  %v629_v12 = vmax.f32 %v596_v3, %v613_v60  ;;  %v927_v8 = vmax.f32 %v894_v61, %v911_v59  ;;  %v6969_v3 = vld [vmem:[#allocation40_spill] sm:$0xff]  ;;  %v6970_v60 = vld [vmem:[#allocation47_spill] sm:$0xff] }
 0x22a   :  { %v4588_v24 = vpop.permute.xlu1 %715  ;;  %v4590_v37 = vpop.permute.xlu0 %1165  ;;  %v660_v35 = vadd.f32 %v644_v7, %v494_v15  ;;  %v794_v6 = vmul.f32 %v4477_v16, %v777_v43  ;;  %v929_v9 = vmax.f32 %v896_v52, %v913_v2  ;;  %v630_v18 = vmax.f32 %v597_v10, %v614_v39 }
 0x22b   :  { %v1077_v25 = vmax.f32 %v1044_v62, %v1061_v36  ;;  %v766_v0 = vmul.f32 0.2, %v749_v21  ;;  %v1066_v20 = vmul.f32 0.2, %v1049_v55  ;;  %v897_v17 = vadd.f32 %v4446_v51, %v6967_v5  ;;  %v6973_v36 = vld [vmem:[#allocation49_spill] sm:$0xff] }
 0x22c   :  { %v1211_v45 = vmul.f32 0.2, %v1194_v14  ;;  %v480_v27 = vmax.f32 %v447_v31, %v464_v53  ;;  %v598_v61 = vadd.f32 %v4405_v23, %v6969_v3  ;;  %v446_v59 = vadd.f32 %v4410_v42, %v6970_v60  ;;  %v6974_v53 = vld [vmem:[#allocation17_spill] sm:$0xff] }
 0x22d   :  { %1469 = vperm.xlu1 %3551, %v6960_v11   ;;  %v1213_v11 = vmul.f32 0.2, %v1196_v26  ;;  %v4625_v52 = vmul.f32 %v4453_v19, %v629_v12  ;;  %v944_v10 = vmul.f32 %v4508_v4, %v927_v8  ;;  %v4630_v43 = vadd.f32 %v1245_v48, %v1111_v58  ;;  %v6976_v3 = vld [vmem:[#allocation41_spill] sm:$0xff] }
 0x22e   :  { %v4603_v40 = vpop.permute.xlu0 %1173  ;;  %v810_v2 = vadd.f32 %v794_v6, %v660_v35  ;;  %v4633_v39 = vmul.f32 %v4508_v4, %v929_v9  ;;  %v647_v31 = vmul.f32 %v4453_v19, %v630_v18  ;;  %v746_v15 = vadd.f32 %v4421_v30, %v6973_v36  ;;  %v6977_v36 = vld [vmem:[#allocation67_spill] sm:$0xff] }
 0x22f   :  { %6963 = vst [vmem:[#allocation37_spill] sm:$0xff] %v4603_v40  ;;  %v4609_v33 = vpop.permute.xlu1 %1015  ;;  %v1229_v62 = vmax.f32 %v1196_v26, %v1213_v11  ;;  %6972 = vst [vmem:[#allocation40_spill] sm:$0xff] %v4630_v43  ;;  %v1094_v12 = vmul.f32 %v4513_v49, %v1077_v25  ;;  %v782_v5 = vmax.f32 %v749_v21, %v766_v0  ;;  %v914_v26 = vmul.f32 0.2, %v897_v17  ;;  %v6978_v0 = vld [vmem:[#allocation42_spill] sm:$0xff]  ;;  %v6979_v21 = vld [vmem:[#allocation44_spill] sm:$0xff] }
 0x230   :  { %6965 = vst [vmem:[#allocation38_spill] sm:$0xff] %v4609_v33  ;;  %v1082_v8 = vmax.f32 %v1049_v55, %v1066_v20  ;;  %v1227_v11 = vmax.f32 %v1194_v14, %v1211_v45  ;;  %v497_v58 = vmul.f32 %v4455_v50, %v480_v27  ;;  %v615_v48 = vmul.f32 0.2, %v598_v61 }
 0x231   :  { %1477 = vperm.xlu1 %3551, %v6966_v22   ;;  %v463_v6 = vmul.f32 0.2, %v446_v59  ;;  %v960_v9 = vadd.f32 %v944_v10, %v810_v2  ;;  %v4644_v18 = vmul.f32 %v4537_v46, %v1229_v62  ;;  %v898_v60 = vadd.f32 %v4446_v51, %v6976_v3 }
 0x232   :  { %v4618_v32 = vpop.permute.xlu0 %1181  ;;  %v663_v25 = vadd.f32 %v647_v31, %v497_v58  ;;  %v1198_v20 = vadd.f32 %v4487_v38, %v6978_v0  ;;  %v451_v27 = vadd.f32 %v4410_v42, %v6979_v21  ;;  %v763_v55 = vmul.f32 0.2, %v746_v15  ;;  %v6982_v31 = vld [vmem:[#allocation45_spill] sm:$0xff] }
 0x233   :  { %6968 = vst [vmem:[#allocation39_spill] sm:$0xff] %v4618_v32  ;;  %v6981_v45 = vmov 8   ;;  %v4659_v10 = vmul.f32 %v4477_v16, %v782_v5  ;;  %v4662_v62 = vmul.f32 %v4513_v49, %v1082_v8  ;;  %v930_v2 = vmax.f32 %v897_v17, %v914_v26  ;;  %v6985_v5 = vld [vmem:[#allocation55_spill] sm:$0xff]  ;;  %v6987_v17 = vld [vmem:[#allocation70_spill] sm:$0xff] }
 0x234   :  { %v4628_v7 = vpop.permute.xlu1 %577  ;;  %v1197_v58 = vadd.f32 %v4487_v38, %v6982_v31  ;;  %v1110_v3 = vadd.f32 %v1094_v12, %v960_v9  ;;  %v1244_v0 = vmul.f32 %v4537_v46, %v1227_v11  ;;  %v631_v21 = vmax.f32 %v598_v61, %v615_v48  ;;  %v6990_v31 = vld [vmem:[#allocation53_spill] sm:$0xff]  ;;  %v6994_v32 = vld [vmem:[#allocation50_spill] sm:$0xff] }
 0x235   :  { %6971 = vst [vmem:[#allocation43_spill] sm:$0xff] %v4628_v7  ;;  %1485 = vperm.xlu1 %3551, %v6974_v53   ;;  %v479_v53 = vmax.f32 %v446_v59, %v463_v6  ;;  %v915_v43 = vmul.f32 0.2, %v898_v60  ;;  %v6986_v8 = vsub.s32 6, %v6977_v36  ;;  %v813_v12 = vadd.f32 %v4584_v63, %v663_v25  ;;  %v6989_v6 = vld [vmem:[#allocation51_spill] sm:$0xff]  ;;  %v6992_v25 = vld [vmem:[#allocation48_spill] sm:$0xff] }
 0x236   :  { %v1215_v9 = vmul.f32 0.2, %v1198_v20  ;;  %v468_v11 = vmul.f32 0.2, %v451_v27  ;;  %v779_v61 = vmax.f32 %v746_v15, %v763_v55  ;;  %v947_v59 = vmul.f32 %v4508_v4, %v930_v2 }
 0x237   :  { %v4641_v35 = vpop.permute.xlu0 %1275  ;;  %v4676_v26 = vrot.slane %v6987_v17, %v6986_v8  ;;  %v1214_v48 = vmul.f32 0.2, %v1197_v58  ;;  %v4687_v8 = vmul.f32 %v4453_v19, %v631_v21  ;;  %v496_v63 = vmul.f32 %v4455_v50, %v479_v53 }
 0x238   :  { %6975 = vst [vmem:[#allocation47_spill] sm:$0xff] %v4641_v35  ;;  %v599_v35 = vadd.f32 %v4405_v23, %v6985_v5  ;;  %v449_v5 = vadd.f32 %v4410_v42, %v6990_v31  ;;  %v1051_v15 = vadd.f32 %v4451_v54, %v6992_v25  ;;  %v4692_v55 = vadd.f32 %v1244_v0, %v1110_v3 }
 0x239   :  { %v4655_v14 = vpop.permute.xlu1 %877  ;;  %3553 = vset.pattern.permute.xlu1 %v6981_v45  ;;  %6988 = vst [vmem:[#allocation42_spill] sm:$0xff] %v4676_v26  ;;  %v931_v2 = vmax.f32 %v898_v60, %v915_v43  ;;  %v1231_v31 = vmax.f32 %v1198_v20, %v1215_v9  ;;  %v796_v21 = vmul.f32 %v4477_v16, %v779_v61  ;;  %v4700_v28 = vstv %s4653_s28  ;;  %v6997_v60 = vld [vmem:[#allocation52_spill] sm:$0xff] }
 0x23a   :  { %6980 = vst [vmem:[#allocation49_spill] sm:$0xff] %v4655_v14  ;;  %v6984_v14 = vld [vmem:[#allocation46_spill] sm:$0xff]  ;;  %6993 = vst [vmem:[#allocation45_spill] sm:$0xff] %v4692_v55  ;;  %v616_v26 = vmul.f32 0.2, %v599_v35  ;;  %v963_v53 = vadd.f32 %v947_v59, %v813_v12  ;;  %v1230_v41 = vmax.f32 %v1197_v58, %v1214_v48  ;;  %v662_v3 = vadd.f32 %v4625_v52, %v496_v63  ;;  %v7001_v59 = vld [vmem:[#allocation63_spill] sm:$0xff] }
 0x23b   :  { %v4667_v22 = vpop.permute.xlu0 %1287  ;;  %v751_v45 = vadd.f32 %v4421_v30, %v6984_v14  ;;  %v1046_v14 = vadd.f32 %v4451_v54, %v6989_v6  ;;  %v600_v6 = vadd.f32 %v4405_v23, %v6994_v32  ;;  %6996 = vst [vmem:[#allocation55_spill] sm:$0xff] %v4700_v28  ;;  %v466_v25 = vmul.f32 0.2, %v449_v5  ;;  %v6998_v32 = vld [vmem:[#allocation61_spill] sm:$0xff] }
 0x23c   :  { %6983 = vst [vmem:[#allocation41_spill] sm:$0xff] %v4667_v22  ;;  %v1068_v43 = vmul.f32 0.2, %v1051_v15  ;;  %v900_v0 = vadd.f32 %v4446_v51, %v6997_v60  ;;  %v448_v55 = vadd.f32 %v4410_v42, %v6998_v32  ;;  %v632_v9 = vmax.f32 %v599_v35, %v616_v26 }
 0x23d   :  { %v768_v7 = vmul.f32 0.2, %v751_v45  ;;  %v1063_v40 = vmul.f32 0.2, %v1046_v14  ;;  %v4712_v58 = vmul.f32 %v4508_v4, %v931_v2  ;;  %v4715_v52 = vmul.f32 %v4537_v46, %v1231_v31 }
 0x23e   :  { %v4684_v22 = vpop.permute.xlu1 %420  ;;  %v812_v61 = vadd.f32 %v796_v21, %v662_v3  ;;  %v748_v48 = vadd.f32 %v4421_v30, %v7001_v59  ;;  %v1113_v35 = vadd.f32 %v4612_v56, %v963_v53  ;;  %v1247_v26 = vmul.f32 %v4537_v46, %v1230_v41 }
 0x23f   :  { %6991 = vst [vmem:[#allocation44_spill] sm:$0xff] %v4684_v22  ;;  %v4696_v33 = vpop.permute.xlu0 %1295  ;;  %v484_v22 = vmax.f32 %v451_v27, %v468_v11  ;;  %v784_v20 = vmax.f32 %v751_v45, %v768_v7  ;;  %v617_v27 = vmul.f32 0.2, %v600_v6  ;;  %v7000_v11 = vld [vmem:[#allocation57_spill] sm:$0xff]  ;;  %v1079_v60 = vmax.f32 %v1046_v14, %v1063_v40 }
 0x240   :  { %6995 = vst [vmem:[#allocation46_spill] sm:$0xff] %v4696_v33  ;;  %v899_v12 = vadd.f32 %v4446_v51, %v7000_v11  ;;  %v482_v7 = vmax.f32 %v449_v5, %v466_v25  ;;  %v1084_v2 = vmax.f32 %v1051_v15, %v1068_v43  ;;  %v917_v32 = vmul.f32 0.2, %v900_v0  ;;  %v7004_v5 = vld [vmem:[#allocation54_spill] sm:$0xff]  ;;  %v7005_v43 = vld [vmem:[#allocation56_spill] sm:$0xff]  ;;  %v7008_v15 = vld [vmem:[#allocation59_spill] sm:$0xff] }
 0x241   :  { %v4720_v63 = vmul.f32 %v4455_v50, %v484_v22  ;;  %v465_v11 = vmul.f32 0.2, %v448_v55  ;;  %v4729_v31 = vmul.f32 %v4477_v16, %v784_v20  ;;  %v633_v21 = vmax.f32 %v600_v6, %v617_v27  ;;  %v7006_v20 = vld [vmem:[#allocation68_spill] sm:$0xff] }
 0x242   :  { %v649_v22 = vmul.f32 %v4453_v19, %v632_v9  ;;  %v916_v3 = vmul.f32 0.2, %v899_v12  ;;  %v962_v14 = vadd.f32 %v4633_v39, %v812_v61  ;;  %v1200_v56 = vadd.f32 %v4487_v38, %v7004_v5 }
 0x243   :  { %v4707_v33 = vpop.permute.xlu1 %723  ;;  %v4722_v45 = vpop.permute.xlu0 %1303  ;;  %v765_v41 = vmul.f32 0.2, %v748_v48  ;;  %v1096_v53 = vmul.f32 %v4513_v49, %v1079_v60  ;;  %v499_v25 = vmul.f32 %v4455_v50, %v482_v7  ;;  %v453_v6 = vadd.f32 %v4410_v42, %v7005_v43  ;;  %v7009_v7 = vld [vmem:[#allocation58_spill] sm:$0xff] }
 0x244   :  { %6999 = vst [vmem:[#allocation70_spill] sm:$0xff] %v4707_v33  ;;  %7002 = vst [vmem:[#allocation51_spill] sm:$0xff] %v4722_v45  ;;  %v601_v27 = vadd.f32 %v4405_v23, %v7006_v20  ;;  %v4745_v9 = vmul.f32 %v4513_v49, %v1084_v2  ;;  %v933_v39 = vmax.f32 %v900_v0, %v917_v32  ;;  %v1217_v2 = vmul.f32 0.2, %v1200_v56  ;;  %v7011_v0 = vld [vmem:[#allocation65_spill] sm:$0xff] }
 0x245   :  { %v481_v61 = vmax.f32 %v448_v55, %v465_v11  ;;  %v4747_v59 = vadd.f32 %v1247_v26, %v1113_v35  ;;  %v665_v5 = vadd.f32 %v649_v22, %v499_v25  ;;  %v932_v45 = vmax.f32 %v899_v12, %v916_v3  ;;  %v7031_v33 = vld [vmem:[#allocation73_spill] sm:$0xff] }
 0x246   :  { %v1199_v60 = vadd.f32 %v4487_v38, %v7008_v15  ;;  %v4756_v20 = vmul.f32 %v4453_v19, %v633_v21  ;;  %v781_v28 = vmax.f32 %v748_v48, %v765_v41  ;;  %v1048_v55 = vadd.f32 %v4451_v54, %v7011_v0  ;;  %v7014_v15 = vld [vmem:[#allocation60_spill] sm:$0xff] }
 0x247   :  { %7007 = vst [vmem:[#allocation48_spill] sm:$0xff] %v4747_v59  ;;  %v4753_v43 = vpop.permute.xlu0 %1311  ;;  %v1112_v12 = vadd.f32 %v1096_v53, %v962_v14  ;;  %v470_v26 = vmul.f32 0.2, %v453_v6  ;;  %v618_v32 = vmul.f32 0.2, %v601_v27  ;;  %v7013_v11 = vsub.s32 7, %v6977_v36 }
 0x248   :  { %v4732_v40 = vpop.permute.xlu1 %1023  ;;  %7010 = vst [vmem:[#allocation50_spill] sm:$0xff] %v4753_v43  ;;  %v4768_v3 = vmul.f32 %v4508_v4, %v933_v39  ;;  %v498_v21 = vmul.f32 %v4455_v50, %v481_v61  ;;  %v1053_v48 = vadd.f32 %v4451_v54, %v7014_v15  ;;  %v4774_v41 = vstv %s4726_s29  ;;  %v7017_v43 = vld [vmem:[#allocation71_spill] sm:$0xff] }
 0x249   :  { %7003 = vst [vmem:[#allocation53_spill] sm:$0xff] %v4732_v40  ;;  %v753_v40 = vadd.f32 %v4421_v30, %v7009_v7  ;;  %v4765_v22 = vrot.slane %v6987_v17, %v7013_v11  ;;  %7015 = vst [vmem:[#allocation61_spill] sm:$0xff] %v4774_v41  ;;  %v815_v25 = vadd.f32 %v4659_v10, %v665_v5  ;;  %v1216_v53 = vmul.f32 0.2, %v1199_v60  ;;  %v3754_v17 = vld [vmem:[%s6701_s3 + $0x4] sm:$0xf] }
 0x24a   :  { %v949_v14 = vmul.f32 %v4508_v4, %v932_v45  ;;  %vm279_vm3 = vcmp.gt.bf16.partialorder %v3754_v17, 0  ;;  %v1233_v39 = vmax.f32 %v1200_v56, %v1217_v2  ;;  %v798_v0 = vmul.f32 %v4477_v16, %v781_v28  ;;  %v7016_v11 = vld [vmem:[#allocation62_spill] sm:$0xff]  ;;  %v7021_v2 = vld [vmem:[#allocation64_spill] sm:$0xff] }
 0x24b   :  { %v770_v7 = vmul.f32 0.2, %v753_v40  ;;  %v1065_v61 = vmul.f32 0.2, %v1048_v55  ;;  %v602_v15 = vadd.f32 %v4405_v23, %v7016_v11  ;;  %v486_v36 = vmax.f32 %v453_v6, %v470_v26  ;;  %v4788_v45 = vpop.permute.xlu0 %1319  ;;  %v7022_v11 = vld [vmem:[#allocation75_spill] sm:$0xff]  ;;  %v7036_v17 = vld [vmem:[#allocation82_spill] sm:$0xff] }
 0x24c   :  { %v634_v59 = vmax.f32 %v601_v27, %v618_v32  ;;  %v4786_v10 = vadd.f32 %v4446_v51, %v7017_v43  ;;  %7018 = vst [vmem:[#allocation57_spill] sm:$0xff] %v4788_v45  ;;  %v664_v56 = vadd.f32 %v4687_v8, %v498_v21  ;;  %v1070_v28 = vmul.f32 0.2, %v1053_v48  ;;  %v7023_v32 = vld [vmem:[#allocation66_spill] sm:$0xff] }
 0x24d   :  { %v4760_v35 = vpop.permute.xlu1 %585  ;;  %v902_v41 = vadd.f32 %v4446_v51, %v7021_v2  ;;  %v450_v6 = vadd.f32 %v4410_v42, %v7022_v11  ;;  %v965_v27 = vadd.f32 %v949_v14, %v815_v25  ;;  %v1232_v26 = vmax.f32 %v1199_v60, %v1216_v53  ;;  %v7024_v2 = vld [vmem:[#allocation79_spill] sm:$0xff]  ;;  %v7026_v14 = vld [vmem:[#allocation69_spill] sm:$0xff] }
 0x24e   :  { %7012 = vst [vmem:[#allocation52_spill] sm:$0xff] %v4760_v35  ;;  %v4793_v35 = vadd.f32 %v4644_v18, %v1112_v12  ;;  %v786_v43 = vmax.f32 %v753_v40, %v770_v7  ;;  %v455_v45 = vadd.f32 %v4410_v42, %v7023_v32  ;;  %v4805_v18 = vld [vmem:[%s6701_s3 + $0x10] sm:$0xf]  ;;  %v814_v8 = vadd.f32 %v798_v0, %v664_v56 }
 0x24f   :  { %vm282_vm4 = vcmp.gt.bf16.partialorder %v4805_v18, 0  ;;  %v1081_v12 = vmax.f32 %v1048_v55, %v1065_v61  ;;  %v619_v21 = vmul.f32 0.2, %v602_v15  ;;  %v4811_v25 = vmul.f32 %v4537_v46, %v1233_v39  ;;  %v3756_v39 = vld [vmem:[%s6701_s3 + $0x18] sm:$0xf] }
 0x250   :  { %7020 = vst [vmem:[#allocation54_spill] sm:$0xff] %v4793_v35  ;;  %v651_v40 = vmul.f32 %v4453_v19, %v634_v59  ;;  %v918_v60 = vmul.f32 0.2, %v4786_v10  ;;  %v755_v53 = vadd.f32 %v4421_v30, %v7026_v14  ;;  %v4818_v7 = vmul.f32 %v4455_v50, %v486_v36 }
 0x251   :  { %7025 = vst [vmem:[#allocation56_spill] sm:$0xff] %v4811_v25  ;;  %v1086_v11 = vmax.f32 %v1053_v48, %v1070_v28  ;;  %v919_v0 = vmul.f32 0.2, %v902_v41  ;;  %v467_v55 = vmul.f32 0.2, %v450_v6  ;;  %vm284_vm5 = vcmp.gt.bf16.partialorder %v3756_v39, 0 }
 0x252   :  { %v4790_v5 = vpop.permute.xlu1 %885  ;;  %7027 = vst [vmem:[#allocation68_spill] sm:$0xff] %v4818_v7  ;;  %v1249_v59 = vmul.f32 %v4537_v46, %v1232_v26  ;;  %v4827_v56 = vmul.f32 %v4477_v16, %v786_v43  ;;  %v472_v32 = vmul.f32 0.2, %v455_v45  ;;  %v1115_v36 = vadd.f32 %v4662_v62, %v965_v27  ;;  %v3757_v48 = vld [vmem:[%s6701_s3 + $0x20] sm:$0xf]  ;;  %v7033_v7 = vld [vmem:[#allocation72_spill] sm:$0xff] }
 0x253   :  { %7019 = vst [vmem:[#allocation63_spill] sm:$0xff] %v4790_v5  ;;  %v750_v5 = vadd.f32 %v4421_v30, %v7024_v2  ;;  %v4829_v2 = vpop.permute.xlu0 %1327  ;;  %vm286_vm6 = vcmp.gt.bf16.partialorder %v3757_v48, 0  ;;  %v964_v28 = vadd.f32 %v4712_v58, %v814_v8  ;;  %v1098_v14 = vmul.f32 %v4513_v49, %v1081_v12  ;;  %v7034_v12 = vld [vmem:[#allocation74_spill] sm:$0xff] }
 0x254   :  { %7029 = vst [vmem:[#allocation58_spill] sm:$0xff] %v4827_v56  ;;  %7030 = vst [vmem:[#allocation65_spill] sm:$0xff] %v4829_v2  ;;  %v635_v35 = vmax.f32 %v602_v15, %v619_v21  ;;  %v667_v26 = vadd.f32 %v651_v40, %v4720_v63  ;;  %v934_v43 = vmax.f32 %v4786_v10, %v918_v60  ;;  %v772_v56 = vmul.f32 0.2, %v755_v53  ;;  %v3761_v39 = vld [vmem:[%s6701_s3 + $0xc] sm:$0xf] }
 0x255   :  { %v1201_v2 = vadd.f32 %v4487_v38, %v7031_v33  ;;  %v4842_v62 = vmul.f32 %v4513_v49, %v1086_v11  ;;  %v935_v27 = vmax.f32 %v902_v41, %v919_v0  ;;  %v1055_v25 = vadd.f32 %v4451_v54, %v7033_v7  ;;  %v3758_v41 = vld [vmem:[%s6701_s3 + $0x28] sm:$0xf] }
 0x256   :  { %v483_v58 = vmax.f32 %v450_v6, %v467_v55  ;;  %v488_v8 = vmax.f32 %v455_v45, %v472_v32  ;;  %v4848_v15 = vadd.f32 %v4405_v23, %v7034_v12  ;;  %v4854_v10 = vsel %vm279_vm3, 65537, %v6909_v29  ;;  %v3759_v45 = vld [vmem:[%s6701_s3 + $0x30] sm:$0xf] }
 0x257   :  { %v4820_v61 = vpop.permute.xlu1 %430  ;;  %7032 = vst [vmem:[#allocation60_spill] sm:$0xff] %v4842_v62  ;;  %v4856_v33 = vadd.f32 %v1249_v59, %v1115_v36  ;;  %vm288_vm7 = vcmp.gt.bf16.partialorder %v3758_v41, 0  ;;  %vm290_vm8 = vcmp.gt.bf16.partialorder %v3759_v45, 0  ;;  %v1114_v6 = vadd.f32 %v1098_v14, %v964_v28  ;;  %v4871_v59 = vpop.permute.xlu0 %1335 }
 0x258   :  { %7028 = vst [vmem:[#allocation59_spill] sm:$0xff] %v4820_v61  ;;  %v767_v61 = vmul.f32 0.2, %v750_v5  ;;  %v4865_v21 = vmul.f32 %v4453_v19, %v635_v35  ;;  %v1050_v60 = vadd.f32 %v4451_v54, %v7036_v17  ;;  %v817_v7 = vadd.f32 %v4729_v31, %v667_v26  ;;  %7037 = vst [vmem:[#allocation71_spill] sm:$0xff] %v4871_v59 }
 0x259   :  { %7035 = vst [vmem:[#allocation62_spill] sm:$0xff] %v4856_v33  ;;  %v951_v11 = vmul.f32 %v4508_v4, %v934_v43  ;;  %v788_v0 = vmax.f32 %v755_v53, %v772_v56  ;;  %v1218_v55 = vmul.f32 0.2, %v1201_v2  ;;  %v4874_v32 = vmul.f32 %v4508_v4, %v935_v27  ;;  %v7040_v27 = vld [vmem:[#allocation80_spill] sm:$0xff] }
 0x25a   :  { %v783_v40 = vmax.f32 %v750_v5, %v767_v61  ;;  %v1072_v36 = vmul.f32 0.2, %v1055_v25  ;;  %v500_v28 = vmul.f32 %v4455_v50, %v483_v58  ;;  %v3760_v5 = vld [vmem:[%s6701_s3 + $0x38] sm:$0xf]  ;;  %v4882_v31 = vmul.f32 %v4455_v50, %v488_v8 }
 0x25b   :  { %vm292_vm9 = vcmp.gt.bf16.partialorder %v3760_v5, 0  ;;  %v621_v53 = vmul.f32 0.2, %v4848_v15  ;;  %v7039_v61 = vld [vmem:[#allocation76_spill] sm:$0xff]  ;;  %v4890_v14 = vsel %vm282_vm4, 65537, %v6909_v29  ;;  %v457_v58 = vadd.f32 %v4410_v42, %v7040_v27 }
 0x25c   :  { %v4850_v63 = vpop.permute.xlu1 %731  ;;  %7038 = vst [vmem:[#allocation64_spill] sm:$0xff] %v4882_v31  ;;  %v904_v56 = vadd.f32 %v4446_v51, %v7039_v61  ;;  %v800_v26 = vmul.f32 %v4477_v16, %v783_v40  ;;  %v1067_v43 = vmul.f32 0.2, %v1050_v60  ;;  %v4898_v8 = vadd.f32 %v4715_v52, %v1114_v6 }
 0x25d   :  { %v967_v17 = vadd.f32 %v951_v11, %v817_v7  ;;  %v4901_v35 = vmul.f32 %v4477_v16, %v788_v0  ;;  %v1234_v61 = vmax.f32 %v1201_v2, %v1218_v55  ;;  %v603_v18 = vadd.f32 %v4405_v23, %v4515_v34  ;;  %v7042_v7 = vld [vmem:[#allocation83_spill] sm:$0xff]  ;;  %v1430_v0 = vpop.permute.xlu0 %1429 }
 0x25e   :  { %v1088_v59 = vmax.f32 %v1055_v25, %v1072_v36  ;;  %v666_v40 = vadd.f32 %v4756_v20, %v500_v28  ;;  %v4909_v27 = vsel %vm284_vm5, 65537, %v6909_v29  ;;  %v637_v52 = vmax.f32 %v4848_v15, %v621_v53 }
 0x25f   :  { %7041 = vst [vmem:[#allocation75_spill] sm:$0xff] %v4901_v35  ;;  %v921_v6 = vmul.f32 0.2, %v904_v56  ;;  %v757_v11 = vadd.f32 %v4421_v30, %v7042_v7  ;;  %v4916_v2 = vsel %vm286_vm6, 65537, %v6909_v29  ;;  %v1083_v25 = vmax.f32 %v1050_v60, %v1067_v43  ;;  %v7058_v35 = vld [vmem:[#allocation44_spill] sm:$0xff] }
 0x260   :  { %v816_v34 = vadd.f32 %v800_v26, %v666_v40  ;;  %v474_v20 = vmul.f32 0.2, %v457_v58  ;;  %v452_v55 = vadd.f32 %v4410_v42, %v4564_v13  ;;  %vm281_vm10 = vcmp.gt.bf16.partialorder %v3761_v39, 0  ;;  %v7066_v39 = vld [vmem:[#allocation58_spill] sm:$0xff] }
 0x261   :  { %v4895_v12 = vpop.permute.xlu1 %1031  ;;  %v1251_v15 = vmul.f32 %v4537_v46, %v1234_v61  ;;  %v620_v36 = vmul.f32 0.2, %v603_v18  ;;  %v1057_v28 = vadd.f32 %v4451_v54, %v4517_v47  ;;  %v1117_v53 = vadd.f32 %v4745_v9, %v967_v17 }
 0x262   :  { %v4930_v60 = vmul.f32 %v4513_v49, %v1088_v59  ;;  %v752_v13 = vadd.f32 %v4421_v30, %v4588_v24  ;;  %v937_v40 = vmax.f32 %v904_v56, %v921_v6  ;;  %v774_v61 = vmul.f32 0.2, %v757_v11  ;;  %v4949_v6 = vpop.permute.xlu0 %1441 }
 0x263   :  { %v4938_v7 = vsel %vm288_vm7, 65537, %v6909_v29  ;;  %v4942_v47 = vsel %vm290_vm8, 65537, %v6909_v29  ;;  %v966_v9 = vadd.f32 %v4768_v3, %v816_v34  ;;  %v1100_v59 = vmul.f32 %v4513_v49, %v1083_v25 }
 0x264   :  { %7044 = vst [vmem:[#allocation79_spill] sm:$0xff] %v4930_v60  ;;  %v490_v17 = vmax.f32 %v457_v58, %v474_v20  ;;  %v469_v24 = vmul.f32 0.2, %v452_v55  ;;  %v4947_v26 = vmul.f32 %v4453_v19, %v637_v52  ;;  %v636_v43 = vmax.f32 %v603_v18, %v620_v36 }
 0x265   :  { %v1074_v56 = vmul.f32 0.2, %v1057_v28  ;;  %v4953_v33 = vadd.f32 %v1251_v15, %v1117_v53  ;;  %v606_v45 = vadd.f32 %v4405_v23, %v4534_v1  ;;  %v769_v60 = vmul.f32 0.2, %v752_v13  ;;  %v3762_v1 = vld [vmem:[%s6701_s3 + $0x14] sm:$0xf] }
 0x266   :  { %v4926_v48 = vpop.permute.xlu1 %1169  ;;  %v4960_v58 = vsel %vm292_vm9, 65537, %v6909_v29  ;;  %v4963_v52 = vmul.f32 %v4508_v4, %v937_v40  ;;  %v790_v18 = vmax.f32 %v757_v11, %v774_v61  ;;  %v4967_v34 = vadd.f32 %v4446_v51, %v4532_v44 }
 0x267   :  { %7043 = vst [vmem:[#allocation66_spill] sm:$0xff] %v4926_v48  ;;  %7046 = vst [vmem:[#allocation73_spill] sm:$0xff] %v4953_v33  ;;  %vm283_vm11 = vcmp.gt.bf16.partialorder %v3762_v1, 0  ;;  %v1116_v20 = vadd.f32 %v1100_v59, %v966_v9  ;;  %v4974_v5 = vmul.f32 %v4455_v50, %v490_v17  ;;  %v485_v15 = vmax.f32 %v452_v55, %v469_v24  ;;  %v7049_v9 = vld [vmem:[#allocation37_spill] sm:$0xff]  ;;  %v7050_v17 = vld [vmem:[#allocation84_spill] sm:$0xff] }
 0x268   :  { %v906_v36 = vadd.f32 %v4446_v51, %v4566_v57  ;;  %v653_v11 = vmul.f32 %v4453_v19, %v636_v43  ;;  %v1090_v53 = vmax.f32 %v1057_v28, %v1074_v56  ;;  %v1202_v44 = vadd.f32 %v4487_v38, %v4590_v37  ;;  %v1450_v37 = vpop.permute.xlu0 %1449  ;;  %v7071_v51 = vld [vmem:[#allocation53_spill] sm:$0xff] }
 0x269   :  { %7047 = vst [vmem:[#allocation72_spill] sm:$0xff] %v4974_v5  ;;  %v623_v25 = vmul.f32 0.2, %v606_v45  ;;  %v785_v3 = vmax.f32 %v752_v13, %v769_v60  ;;  %v1204_v59 = vadd.f32 %v4487_v38, %v7049_v9  ;;  %v4988_v24 = vmul.f32 %v4477_v16, %v790_v18  ;;  %v7053_v60 = vld [vmem:[#allocation56_spill] sm:$0xff] }
 0x26a   :  { %v4951_v41 = vpop.permute.xlu1 %1177  ;;  %v4991_v57 = vmul.f32 0.2, %v4967_v34  ;;  %v1493_v28 = vadd.f32 %v4765_v22, %v1430_v0  ;;  %v502_v61 = vmul.f32 %v4455_v50, %v485_v15  ;;  %v923_v33 = vmul.f32 0.2, %v906_v36  ;;  %v7055_v18 = vld [vmem:[#allocation68_spill] sm:$0xff]  ;;  %v7057_v0 = vld [vmem:[#allocation38_spill] sm:$0xff] }
 0x26b   :  { %7045 = vst [vmem:[#allocation69_spill] sm:$0xff] %v4951_v41  ;;  %7051 = vst [vmem:[#allocation82_spill] sm:$0xff] %v4988_v24  ;;  %v4997_v13 = vadd.f32 %v7053_v60, %v1116_v20  ;;  %v5001_v9 = vsel %vm281_vm10, 65537, %v6909_v29  ;;  %v669_v55 = vadd.f32 %v653_v11, %v7055_v18  ;;  %v5005_v24 = vmul.f32 %v4513_v49, %v1090_v53  ;;  %v7059_v11 = vld [vmem:[#allocation42_spill] sm:$0xff] }
 0x26c   :  { %7054 = vst [vmem:[#allocation76_spill] sm:$0xff] %v5001_v9  ;;  %v1219_v5 = vmul.f32 0.2, %v1202_v44  ;;  %v639_v56 = vmax.f32 %v606_v45, %v623_v25  ;;  %v802_v15 = vmul.f32 %v4477_v16, %v785_v3  ;;  %v1221_v41 = vmul.f32 0.2, %v1204_v59  ;;  %v7061_v3 = vld [vmem:[#allocation59_spill] sm:$0xff]  ;;  %v1458_v9 = vpop.permute.xlu0 %1457 }
 0x26d   :  { %7056 = vst [vmem:[#allocation80_spill] sm:$0xff] %v5005_v24  ;;  %v454_v20 = vadd.f32 %v4410_v42, %v7058_v35  ;;  %v1510_v43 = vmul.f32 0.2, %v1493_v28  ;;  %v668_v24 = vadd.f32 %v4865_v21, %v502_v61  ;;  %v939_v48 = vmax.f32 %v906_v36, %v923_v33 }
 0x26e   :  { %v4981_v40 = vpop.permute.xlu1 %1185  ;;  %v456_v25 = vadd.f32 %v4410_v42, %v7061_v3  ;;  %v7062_v35 = vunpack.c.l.b16 %v4854_v10  ;;  %v7063_v31 = vmov 0  ;;  %v5028_v62 = vadd.f32 %v7066_v39, %v669_v55 }
 0x26f   :  { %7048 = vst [vmem:[#allocation74_spill] sm:$0xff] %v4981_v40  ;;  %v1052_v40 = vadd.f32 %v4451_v54, %v7057_v0  ;;  %v7060_v0 = vld [vmem:[#allocation70_spill] sm:$0xff]  ;;  %v5031_v33 = vmul.f32 %v4453_v19, %v639_v56  ;;  %v818_v36 = vadd.f32 %v802_v15, %v668_v24  ;;  %v1237_v61 = vmax.f32 %v1204_v59, %v1221_v41  ;;  %v7070_v19 = vld [vmem:[#allocation61_spill] sm:$0xff] }
 0x270   :  { %v754_v45 = vadd.f32 %v4421_v30, %v7060_v0  ;;  %vm5023_vm12 = vcmp.ne.s32.totalorder %v7062_v35, 0  ;;  %v471_v0 = vmul.f32 0.2, %v454_v20  ;;  %v1526_v10 = vmax.f32 %v1493_v28, %v1510_v43  ;;  %v7067_v28 = vld [vmem:[#allocation39_spill] sm:$0xff] }
 0x271   :  { %v7064_v31 = vsel %vm5023_vm12, 4294967295, %v7063_v31  ;;  %v1069_v53 = vmul.f32 0.2, %v1052_v40  ;;  %v1496_v3 = vadd.f32 %v4765_v22, %v4949_v6  ;;  %v5039_v55 = vsel %vm283_vm11, 65537, %v6909_v29  ;;  %v7068_v43 = vld [vmem:[#allocation55_spill] sm:$0xff] }
 0x272   :  { %7065 = vst [vmem:[#allocation83_spill] sm:$0xff] %v7064_v31  ;;  %v473_v56 = vmul.f32 0.2, %v456_v25  ;;  %v756_v41 = vadd.f32 %v4421_v30, %v4850_v63  ;;  %v5051_v6 = vadd.f32 %v4487_v38, %v7067_v28  ;;  %v5055_v15 = vmul.f32 %v4537_v46, %v1237_v61  ;;  %v1466_v63 = vpop.permute.xlu0 %1465 }
 0x273   :  { %v1280_v60 = vpop.permute.xlu1 %1279  ;;  %v1085_v24 = vmax.f32 %v1052_v40, %v1069_v53  ;;  %v487_v39 = vmax.f32 %v454_v20, %v471_v0  ;;  %v1513_v30 = vmul.f32 0.2, %v1496_v3  ;;  %v7069_v40 = vld [vmem:[#allocation86_spill] sm:$0xff]  ;;  %v1543_v28 = vmul.f32 %v7070_v19, %v1526_v10  ;;  %v7076_v10 = vld [vmem:[#allocation43_spill] sm:$0xff] }
 0x274   :  { %v1343_v18 = vadd.f32 %v7059_v11, %v1280_v60  ;;  %v1235_v60 = vmax.f32 %v1202_v44, %v1219_v5  ;;  %v5042_v5 = vmul.f32 %v4508_v4, %v939_v48  ;;  %v771_v44 = vmul.f32 0.2, %v754_v45 }
 0x275   :  { %v968_v48 = vadd.f32 %v4874_v32, %v818_v36  ;;  %v489_v61 = vmax.f32 %v456_v25, %v473_v56  ;;  %v773_v29 = vmul.f32 0.2, %v756_v41  ;;  %v7072_v32 = vunpack.c.l.b16 %v4890_v14 }
 0x276   :  { %v1360_v21 = vmul.f32 0.2, %v1343_v18  ;;  %v5047_v59 = vmul.f32 %v4537_v46, %v1235_v60  ;;  %v787_v38 = vmax.f32 %v754_v45, %v771_v44  ;;  %v7073_v20 = vmov 0 }
 0x277   :  { %v5033_v42 = vpop.permute.xlu1 %1283  ;;  %vm5066_vm13 = vcmp.ne.s32.totalorder %v7072_v32, 0  ;;  %v5072_v36 = vmul.f32 0.2, %v5051_v6  ;;  %v5076_v45 = vadd.f32 %v4405_v23, %v7076_v10  ;;  %v1500_v14 = vadd.f32 %v4765_v22, %v1458_v9 }
 0x278   :  { %v1376_v35 = vmax.f32 %v1343_v18, %v1360_v21  ;;  %v1498_v18 = vadd.f32 %v4765_v22, %v1450_v37  ;;  %v7074_v20 = vsel %vm5066_vm13, 4294967295, %v7073_v20  ;;  %v1102_v37 = vmul.f32 %v4513_v49, %v1085_v24 }
 0x279   :  { %7075 = vst [vmem:[#allocation37_spill] sm:$0xff] %v7074_v20  ;;  %v1529_v56 = vmax.f32 %v1496_v3, %v1513_v30  ;;  %v506_v32 = vmul.f32 %v4455_v50, %v489_v61  ;;  %v789_v10 = vmax.f32 %v756_v41, %v773_v29  ;;  %v7078_v9 = vmov 0 }
 0x27a   :  { %v1393_v1 = vmul.f32 %v7068_v43, %v1376_v35  ;;  %v1054_v35 = vadd.f32 %v4451_v54, %v7071_v51  ;;  %v504_v51 = vmul.f32 %v4455_v50, %v487_v39  ;;  %v1515_v25 = vmul.f32 0.2, %v1498_v18 }
 0x27b   :  { %v1292_v21 = vpop.permute.xlu1 %1291  ;;  %v7077_v39 = vunpack.c.l.b16 %v4909_v27  ;;  %v1118_v3 = vadd.f32 %v1102_v37, %v968_v48  ;;  %v1056_v30 = vadd.f32 %v4451_v54, %v4895_v12  ;;  %v1517_v29 = vmul.f32 0.2, %v1500_v14 }
 0x27c   :  { %v1346_v60 = vadd.f32 %v7059_v11, %v1292_v21  ;;  %v1409_v53 = vadd.f32 %v1393_v1, %v7069_v40  ;;  %v1531_v50 = vmax.f32 %v1498_v18, %v1515_v25  ;;  %v1502_v41 = vadd.f32 %v4765_v22, %v1466_v63 }
 0x27d   :  { %vm5090_vm14 = vcmp.ne.s32.totalorder %v7077_v39, 0  ;;  %v7081_v39 = vld [vmem:[#allocation54_spill] sm:$0xff]  ;;  %v1546_v48 = vmul.f32 %v7070_v19, %v1529_v56  ;;  %v672_v12 = vadd.f32 %v5031_v33, %v506_v32  ;;  %v7083_v18 = vmov 0 }
 0x27e   :  { %v1363_v0 = vmul.f32 0.2, %v1346_v60  ;;  %v1559_v1 = vadd.f32 %v1543_v28, %v1409_v53  ;;  %v804_v53 = vmul.f32 %v4477_v16, %v787_v38  ;;  %v1071_v28 = vmul.f32 0.2, %v1054_v35 }
 0x27f   :  { %v1300_v44 = vpop.permute.xlu1 %1299  ;;  %v7079_v9 = vsel %vm5090_vm14, 4294967295, %v7078_v9  ;;  %v1073_v63 = vmul.f32 0.2, %v1056_v30  ;;  %v1548_v33 = vmul.f32 %v7070_v19, %v1531_v50  ;;  %v7087_v50 = vunpack.c.l.b16 %v4938_v7  ;;  %v3763_v7 = vld [vmem:[%s6701_s3 + $0x1c] sm:$0xf] }
 0x280   :  { %v1379_v21 = vmax.f32 %v1346_v60, %v1363_v0  ;;  %v1348_v40 = vadd.f32 %v7059_v11, %v1300_v44  ;;  %v5083_v24 = vsel %vm5023_vm12, %v1559_v1, -1e+30  ;;  %7080 = vst [vmem:[#allocation84_spill] sm:$0xff] %v7079_v9  ;;  %v1474_v60 = vpop.permute.xlu0 %1473  ;;  %v670_v1 = vadd.f32 %v4947_v26, %v504_v51 }
 0x281   :  { %1640 = vmax.xlane.f32.xlu1 %v5083_v24  ;;  %v1087_v54 = vmax.f32 %v1054_v35, %v1071_v28  ;;  %v7082_v26 = vunpack.c.l.b16 %v4916_v2  ;;  %v5112_v56 = vadd.f32 %v4765_v22, %v1474_v60  ;;  %vm5130_vm0 = vcmp.ne.s32.totalorder %v7087_v50, 0 }
 0x282   :  { %v1396_v0 = vmul.f32 %v7068_v43, %v1379_v21  ;;  %v1365_v38 = vmul.f32 0.2, %v1348_v40  ;;  %v820_v37 = vadd.f32 %v804_v53, %v670_v1  ;;  %v806_v21 = vmul.f32 %v4477_v16, %v789_v10  ;;  %v7086_v10 = vld [vmem:[#allocation47_spill] sm:$0xff] }
 0x283   :  { %v1308_v61 = vpop.permute.xlu1 %1307  ;;  %vm5106_vm15 = vcmp.ne.s32.totalorder %v7082_v26, 0  ;;  %v1104_v60 = vmul.f32 %v4513_v49, %v1087_v54  ;;  %vm285_vm1 = vcmp.gt.bf16.partialorder %v3763_v7, 0  ;;  %v1239_v26 = vmax.f32 %v5051_v6, %v5072_v36 }
 0x284   :  { %v1381_v27 = vmax.f32 %v1348_v40, %v1365_v38  ;;  %v1350_v44 = vadd.f32 %v7059_v11, %v1308_v61  ;;  %v1412_v31 = vadd.f32 %v1396_v0, %v7081_v39  ;;  %v7084_v18 = vsel %vm5106_vm15, 4294967295, %v7083_v18  ;;  %v1482_v16 = vpop.permute.xlu0 %1481 }
 0x285   :  { %7085 = vst [vmem:[#allocation56_spill] sm:$0xff] %v7084_v18  ;;  %v1533_v0 = vmax.f32 %v1500_v14, %v1517_v29  ;;  %v1519_v38 = vmul.f32 0.2, %v1502_v41  ;;  %v970_v14 = vadd.f32 %v4963_v52, %v820_v37  ;;  %v822_v1 = vadd.f32 %v806_v21, %v672_v12 }
 0x286   :  { %v1398_v51 = vmul.f32 %v7068_v43, %v1381_v27  ;;  %v1367_v25 = vmul.f32 0.2, %v1350_v44  ;;  %v1562_v40 = vadd.f32 %v1546_v48, %v1412_v31  ;;  %v5123_v31 = vadd.f32 %v7059_v11, %v7086_v10 }
 0x287   :  { %v1316_v35 = vpop.permute.xlu1 %1315  ;;  %v7088_v29 = vmov 0  ;;  %v1089_v61 = vmax.f32 %v1056_v30, %v1073_v63  ;;  %v1535_v39 = vmax.f32 %v1502_v41, %v1519_v38  ;;  %v1521_v48 = vmul.f32 0.2, %v5112_v56 }
 0x288   :  { %v1383_v53 = vmax.f32 %v1350_v44, %v1367_v25  ;;  %v1352_v2 = vadd.f32 %v7059_v11, %v1316_v35  ;;  %v5118_v28 = vsel %vm5066_vm13, %v1562_v40, -1e+30  ;;  %v1414_v32 = vadd.f32 %v1398_v51, %v4898_v8 }
 0x289   :  { %1646 = vmax.xlane.f32.xlu1 %v5118_v28  ;;  %v7089_v29 = vsel %vm5130_vm0, 4294967295, %v7088_v29  ;;  %v5137_v52 = vadd.f32 %v4765_v22, %v1482_v16  ;;  %v1550_v54 = vmul.f32 %v7070_v19, %v1533_v0  ;;  %v1120_v63 = vadd.f32 %v1104_v60, %v970_v14  ;;  %v7096_v14 = vld [vmem:[#allocation41_spill] sm:$0xff] }
 0x28a   :  { %7090 = vst [vmem:[#allocation68_spill] sm:$0xff] %v7089_v29  ;;  %v1400_v8 = vmul.f32 %v7068_v43, %v1383_v53  ;;  %v1369_v27 = vmul.f32 0.2, %v1352_v2  ;;  %v1564_v44 = vadd.f32 %v1548_v33, %v1414_v32  ;;  %v972_v51 = vadd.f32 %v5042_v5, %v822_v1 }
 0x28b   :  { %v1324_v37 = vpop.permute.xlu1 %1323  ;;  %v1268_v25 = vadd.f32 %v5047_v59, %v1118_v3  ;;  %v7091_v40 = vunpack.c.l.b16 %v4942_v47  ;;  %v7092_v0 = vmov 0  ;;  %v1106_v38 = vmul.f32 %v4513_v49, %v1089_v61 }
 0x28c   :  { %v1385_v12 = vmax.f32 %v1352_v2, %v1369_v27  ;;  %v1354_v30 = vadd.f32 %v7059_v11, %v1324_v37  ;;  %v5146_v21 = vsel %vm5090_vm14, %v1564_v44, -1e+30  ;;  %v1416_v41 = vadd.f32 %v1400_v8, %v4997_v13  ;;  %v3764_v2 = vld [vmem:[%s6701_s3 + $0x24] sm:$0xf] }
 0x28d   :  { %1650 = vmax.xlane.f32.xlu1 %v5146_v21  ;;  %vm5156_vm2 = vcmp.ne.s32.totalorder %v7091_v40, 0  ;;  %v1359_v6 = vmul.f32 0.2, %v5123_v31  ;;  %v1537_v5 = vmax.f32 %v5112_v56, %v1521_v48  ;;  %v1523_v36 = vmul.f32 0.2, %v5137_v52 }
 0x28e   :  { %v7093_v0 = vsel %vm5156_vm2, 4294967295, %v7092_v0  ;;  %v1402_v13 = vmul.f32 %v7068_v43, %v1385_v12  ;;  %v1371_v35 = vmul.f32 0.2, %v1354_v30  ;;  %v1566_v33 = vadd.f32 %v1550_v54, %v1416_v41 }
 0x28f   :  { %7094 = vst [vmem:[#allocation38_spill] sm:$0xff] %v7093_v0  ;;  %v1332_v16 = vpop.permute.xlu1 %1331  ;;  %v1552_v59 = vmul.f32 %v7070_v19, %v1535_v39  ;;  %vm287_vm3 = vcmp.gt.bf16.partialorder %v3764_v2, 0  ;;  %v7095_v56 = vmax.f32 %v4967_v34, %v4991_v57  ;;  %v622_v10 = vmul.f32 0.2, %v5076_v45 }
 0x290   :  { %v1387_v47 = vmax.f32 %v1354_v30, %v1371_v35  ;;  %v1356_v3 = vadd.f32 %v7059_v11, %v1332_v16  ;;  %v5169_v53 = vsel %vm5106_vm15, %v1566_v33, -1e+30  ;;  %v1418_v49 = vadd.f32 %v1402_v13, %v1268_v25  ;;  %v7105_v25 = vld [vmem:[#allocation46_spill] sm:$0xff] }
 0x291   :  { %v953_v32 = vmul.f32 %v4508_v4, %v7095_v56  ;;  %v1345_v60 = vadd.f32 %v7059_v11, %v7096_v14  ;;  %1654 = vmax.xlane.f32.xlu1 %v5169_v53  ;;  %v1270_v1 = vadd.f32 %v5055_v15, %v1120_v63  ;;  %v7097_v50 = vunpack.c.l.b16 %v4960_v58 }
 0x292   :  { %v7098_v61 = vmov 0  ;;  %v1122_v8 = vadd.f32 %v1106_v38, %v972_v51  ;;  %v1404_v34 = vmul.f32 %v7068_v43, %v1387_v47  ;;  %v1373_v57 = vmul.f32 0.2, %v1356_v3 }
 0x293   :  { %vm5185_vm4 = vcmp.ne.s32.totalorder %v7097_v50, 0  ;;  %v1568_v27 = vadd.f32 %v1552_v59, %v1418_v49  ;;  %v1256_v44 = vmul.f32 %v4537_v46, %v1239_v26  ;;  %v1375_v39 = vmax.f32 %v5123_v31, %v1359_v6  ;;  %v7110_v50 = vld [vmem:[#allocation52_spill] sm:$0xff] }
 0x294   :  { %v7099_v61 = vsel %vm5185_vm4, 4294967295, %v7098_v61  ;;  %v1554_v48 = vmul.f32 %v7070_v19, %v1537_v5  ;;  %v1595_v37 = vunpack.c.l.b16 %v5039_v55  ;;  %v1539_v15 = vmax.f32 %v5137_v52, %v1523_v36  ;;  %v1426_v54 = vpop.permute.xlu1 %1425  ;;  %v7108_v36 = vld [vmem:[#allocation77_spill] sm:$0xff] }
 0x295   :  { %7100 = vst [vmem:[#allocation44_spill] sm:$0xff] %v7099_v61  ;;  %v1389_v58 = vmax.f32 %v1356_v3, %v1373_v57  ;;  %v5197_v12 = vsel %vm5130_vm0, %v1568_v27, -1e+30  ;;  %v1420_v30 = vadd.f32 %v1404_v34, %v1270_v1  ;;  %v7101_v41 = vunpack.c.l.b16 %v7050_v17  ;;  %v7111_v57 = vld [vmem:[#allocation51_spill] sm:$0xff] }
 0x296   :  { %v7102_v63 = vmov 0  ;;  %v638_v31 = vmax.f32 %v5076_v45, %v622_v10  ;;  %v1362_v26 = vmul.f32 0.2, %v1345_v60  ;;  %v1344_v51 = vadd.f32 %v7059_v11, %v5033_v42  ;;  %1658 = vmax.xlane.f32.xlu1 %v5197_v12  ;;  %v7107_v42 = vld [vmem:[#allocation49_spill] sm:$0xff] }
 0x297   :  { %vm5201_vm5 = vcmp.ne.s32.totalorder %v7101_v41, 0  ;;  %v1492_v52 = vadd.f32 %v4765_v22, %v1426_v54  ;;  %v1347_v40 = vadd.f32 %v7059_v11, %v7105_v25  ;;  %v1406_v38 = vmul.f32 %v7068_v43, %v1389_v58  ;;  %v7119_v25 = vld [vmem:[#allocation64_spill] sm:$0xff] }
 0x298   :  { %v7103_v63 = vsel %vm5201_vm5, 4294967295, %v7102_v63  ;;  %v1570_v17 = vadd.f32 %v1554_v48, %v1420_v30  ;;  %v1272_v13 = vadd.f32 %v1256_v44, %v1122_v8  ;;  %v969_v35 = vadd.f32 %v953_v32, %v5028_v62  ;;  %v1434_v59 = vpop.permute.xlu1 %1433  ;;  %v7109_v62 = vld [vmem:[#allocation78_spill] sm:$0xff]  ;;  %v7113_v30 = vld [vmem:[#allocation76_spill] sm:$0xff] }
 0x299   :  { %7104 = vst [vmem:[#allocation42_spill] sm:$0xff] %v7103_v63  ;;  %v1392_v33 = vmul.f32 %v7068_v43, %v1375_v39  ;;  %v1509_v45 = vmul.f32 0.2, %v1492_v52  ;;  %v7106_v6 = vmov 0   ;;  %v5221_v16 = vadd.f32 %v7108_v36, %v7107_v42  ;;  %v7112_v39 = vld [vmem:[#allocation87_spill] sm:$0xff] }
 0x29a   :  { %v5217_v5 = vsel %vm285_vm1, 65537, %v7106_v6  ;;  %v5225_v47 = vsel %vm5156_vm2, %v1570_v17, -1e+30  ;;  %v1422_v3 = vadd.f32 %v1406_v38, %v1272_v13  ;;  %v1556_v49 = vmul.f32 %v7070_v19, %v1539_v15 }
 0x29b   :  { %v655_v56 = vmul.f32 %v7109_v62, %v638_v31  ;;  %v1361_v32 = vmul.f32 0.2, %v1344_v51  ;;  %v1525_v10 = vmax.f32 %v1492_v52, %v1509_v45  ;;  %v1494_v7 = vadd.f32 %v4765_v22, %v1434_v59  ;;  %1662 = vmax.xlane.f32.xlu1 %v5225_v47 }
 0x29c   :  { %v1378_v14 = vmax.f32 %v1345_v60, %v1362_v26  ;;  %v1364_v1 = vmul.f32 0.2, %v1347_v40  ;;  %v607_v8 = vadd.f32 %v4405_v23, %v7110_v50  ;;  %v1572_v34 = vadd.f32 %v1556_v49, %v1422_v3  ;;  %v1438_v54 = vpop.permute.xlu1 %1437  ;;  %v7118_v26 = vld [vmem:[#allocation60_spill] sm:$0xff]  ;;  %v7121_v50 = vld [vmem:[#allocation66_spill] sm:$0xff] }
 0x29d   :  { %v5235_v27 = vadd.f32 %v7059_v11, %v7111_v57  ;;  %v1511_v44 = vmul.f32 0.2, %v1494_v7  ;;  %v1408_v48 = vadd.f32 %v1392_v33, %v7112_v39  ;;  %v1542_v15 = vmul.f32 %v7070_v19, %v1525_v10 }
 0x29e   :  { %v922_v58 = vmul.f32 0.2, %v5221_v16  ;;  %v5242_v60 = vsel %vm5185_vm4, %v1572_v34, -1e+30  ;;  %v7114_v41 = vunpack.c.l.b16 %v7113_v30  ;;  %v7115_v23 = vmov 0  ;;  %v7122_v34 = vld [vmem:[#allocation81_spill] sm:$0xff] }
 0x29f   :  { %v5252_v31 = vsel %vm287_vm3, 65537, %v7106_v6  ;;  %v5255_v52 = vadd.f32 %v7118_v26, %v969_v35  ;;  %v671_v38 = vadd.f32 %v655_v56, %v7119_v25  ;;  %v1377_v17 = vmax.f32 %v1344_v51, %v1361_v32  ;;  %1666 = vmax.xlane.f32.xlu1 %v5242_v60  ;;  %v7120_v56 = vld [vmem:[#allocation50_spill] sm:$0xff]  ;;  %v7129_v30 = vld [vmem:[#allocation63_spill] sm:$0xff]  ;;  %v7130_v26 = vld [vmem:[#allocation40_spill] sm:$0xff] }
 0x2a0   :  { %vm5246_vm6 = vcmp.ne.s32.totalorder %v7114_v41, 0  ;;  %v1495_v13 = vadd.f32 %v4765_v22, %v1438_v54  ;;  %v1558_v33 = vadd.f32 %v1542_v15, %v1408_v48  ;;  %v1395_v45 = vmul.f32 %v7068_v43, %v1378_v14 }
 0x2a1   :  { %v7116_v23 = vsel %vm5246_vm6, 4294967295, %v7115_v23  ;;  %v1380_v42 = vmax.f32 %v1347_v40, %v1364_v1  ;;  %v624_v59 = vmul.f32 0.2, %v607_v8  ;;  %v1597_v3 = vunpack.c.l.b16 %v5217_v5  ;;  %v1446_v40 = vpop.permute.xlu1 %1445  ;;  %v7123_v5 = vld [vmem:[#allocation85_spill] sm:$0xff] }
 0x2a2   :  { %7117 = vst [vmem:[#allocation70_spill] sm:$0xff] %v7116_v23  ;;  %v1366_v2 = vmul.f32 0.2, %v5235_v27  ;;  %v1527_v49 = vmax.f32 %v1494_v7, %v1511_v44  ;;  %v1512_v10 = vmul.f32 0.2, %v1495_v13  ;;  %v938_v51 = vmax.f32 %v5221_v16, %v922_v58  ;;  %v7128_v44 = vld [vmem:[#allocation75_spill] sm:$0xff] }
 0x2a3   :  { %v5265_v35 = vsel %vm5201_vm5, %v1558_v33, -1e+30  ;;  %v1351_v32 = vadd.f32 %v7059_v11, %v7120_v56  ;;  %v1203_v14 = vadd.f32 %v7122_v34, %v7121_v50  ;;  %v7124_v1 = vunpack.c.l.b16 %v7123_v5 }
 0x2a4   :  { %1638 = vmax.xlane.f32.xlu0 %v5265_v35  ;;  %v7125_v7 = vmov 0  ;;  %v821_v39 = vadd.f32 %v7128_v44, %v671_v38  ;;  %v1394_v16 = vmul.f32 %v7068_v43, %v1377_v17  ;;  %v1528_v48 = vmax.f32 %v1495_v13, %v1512_v10  ;;  %v7131_v17 = vld [vmem:[#allocation57_spill] sm:$0xff] }
 0x2a5   :  { %vm5275_vm7 = vcmp.ne.s32.totalorder %v7124_v1, 0  ;;  %v1497_v15 = vadd.f32 %v4765_v22, %v1446_v40  ;;  %v1397_v58 = vmul.f32 %v7068_v43, %v1380_v42  ;;  %v640_v54 = vmax.f32 %v607_v8, %v624_v59  ;;  %v7132_v42 = vld [vmem:[#allocation69_spill] sm:$0xff] }
 0x2a6   :  { %v7126_v7 = vsel %vm5275_vm7, 4294967295, %v7125_v7  ;;  %v907_v41 = vadd.f32 %v7108_v36, %v7129_v30  ;;  %v1411_v25 = vadd.f32 %v1395_v45, %v7130_v26  ;;  %v1382_v33 = vmax.f32 %v5235_v27, %v1366_v2  ;;  %v1454_v36 = vpop.permute.xlu1 %1453  ;;  %v3765_v45 = vld [vmem:[%s6701_s3 + $0x2c] sm:$0xf]  ;;  %v7136_v40 = vld [vmem:[#allocation45_spill] sm:$0xff] }
 0x2a7   :  { %7127 = vst [vmem:[#allocation59_spill] sm:$0xff] %v7126_v7  ;;  %v1514_v56 = vmul.f32 0.2, %v1497_v15  ;;  %v1545_v50 = vmul.f32 %v7070_v19, %v1528_v48  ;;  %v1544_v38 = vmul.f32 %v7070_v19, %v1527_v49  ;;  %v1368_v5 = vmul.f32 0.2, %v1351_v32 }
 0x2a8   :  { %v5292_v13 = vadd.f32 %v7059_v11, %v7131_v17  ;;  %v1220_v10 = vmul.f32 0.2, %v1203_v14  ;;  %v5296_v8 = vadd.f32 %v7122_v34, %v7132_v42  ;;  %vm5300_vm8 = vcmp.ne.s32.totalorder %v1595_v37, 0  ;;  %v7137_v37 = vld [vmem:[#allocation48_spill] sm:$0xff] }
 0x2a9   :  { %v7133_v27 = vmov 0  ;;  %vm289_vm9 = vcmp.gt.bf16.partialorder %v3765_v45, 0  ;;  %v1530_v59 = vmax.f32 %v1497_v15, %v1514_v56  ;;  %v1499_v2 = vadd.f32 %v4765_v22, %v1454_v36 }
 0x2aa   :  { %v7134_v27 = vsel %vm5300_vm8, 4294967295, %v7133_v27  ;;  %v1561_v49 = vadd.f32 %v1545_v50, %v1411_v25  ;;  %v1410_v1 = vadd.f32 %v1394_v16, %v7136_v40  ;;  %v955_v44 = vmul.f32 %v4508_v4, %v938_v51  ;;  %v1462_v51 = vpop.permute.xlu1 %1461 }
 0x2ab   :  { %7135 = vst [vmem:[#allocation58_spill] sm:$0xff] %v7134_v27  ;;  %v657_v48 = vmul.f32 %v7109_v62, %v640_v54  ;;  %v924_v55 = vmul.f32 0.2, %v907_v41  ;;  %v1413_v30 = vadd.f32 %v1397_v58, %v7137_v37  ;;  %v1516_v26 = vmul.f32 0.2, %v1499_v2 }
 0x2ac   :  { %v5314_v17 = vsel %vm5246_vm6, %v1561_v49, -1e+30  ;;  %v1560_v42 = vadd.f32 %v1544_v38, %v1410_v1  ;;  %v1547_v15 = vmul.f32 %v7070_v19, %v1530_v59  ;;  %v1399_v56 = vmul.f32 %v7068_v43, %v1382_v33  ;;  %v3766_v58 = vld [vmem:[%s6701_s3 + $0x34] sm:$0xf]  ;;  %v7141_v38 = vld [vmem:[#allocation74_spill] sm:$0xff] }
 0x2ad   :  { %v1384_v25 = vmax.f32 %v1351_v32, %v1368_v5  ;;  %v1370_v16 = vmul.f32 0.2, %v5292_v13  ;;  %v1236_v50 = vmax.f32 %v1203_v14, %v1220_v10  ;;  %1644 = vmax.xlane.f32.xlu0 %v5314_v17  ;;  %vm5320_vm10 = vcmp.ne.s32.totalorder %v1597_v3, 0  ;;  %v7142_v10 = vld [vmem:[#allocation72_spill] sm:$0xff]  ;;  %v7143_v3 = vld [vmem:[#allocation65_spill] sm:$0xff] }
 0x2ae   :  { %v7138_v62 = vmov 0  ;;  %vm291_vm11 = vcmp.gt.bf16.partialorder %v3766_v58, 0  ;;  %v1222_v54 = vmul.f32 0.2, %v5296_v8  ;;  %v1207_v32 = vadd.f32 %v7122_v34, %v7141_v38 }
 0x2af   :  { %v7139_v62 = vsel %vm5320_vm10, 4294967295, %v7138_v62  ;;  %v1532_v33 = vmax.f32 %v1499_v2, %v1516_v26  ;;  %v1501_v14 = vadd.f32 %v4765_v22, %v1462_v51  ;;  %v971_v5 = vadd.f32 %v955_v44, %v821_v39  ;;  %v1470_v44 = vpop.permute.xlu1 %1469 }
 0x2b0   :  { %7140 = vst [vmem:[#allocation39_spill] sm:$0xff] %v7139_v62  ;;  %v673_v36 = vadd.f32 %v657_v48, %v7142_v10  ;;  %v1355_v59 = vadd.f32 %v7059_v11, %v7143_v3  ;;  %v940_v49 = vmax.f32 %v907_v41, %v924_v55  ;;  %v5336_v1 = vsel %vm5275_vm7, %v1560_v42, -1e+30  ;;  %v7144_v48 = vld [vmem:[#allocation62_spill] sm:$0xff]  ;;  %v7148_v10 = vld [vmem:[#allocation73_spill] sm:$0xff]  ;;  %v7149_v3 = vld [vmem:[#allocation79_spill] sm:$0xff] }
 0x2b1   :  { %v1518_v40 = vmul.f32 0.2, %v1501_v14  ;;  %v1563_v37 = vadd.f32 %v1547_v15, %v1413_v30  ;;  %v1549_v57 = vmul.f32 %v7070_v19, %v1532_v33  ;;  %v1401_v34 = vmul.f32 %v7068_v43, %v1384_v25  ;;  %1642 = vmax.xlane.f32.xlu0 %v5336_v1  ;;  %v7145_v15 = vld [vmem:[#allocation82_spill] sm:$0xff]  ;;  %v7146_v33 = vld [vmem:[#allocation71_spill] sm:$0xff] }
 0x2b2   :  { %v1386_v2 = vmax.f32 %v5292_v13, %v1370_v16  ;;  %v1253_v39 = vmul.f32 %v4537_v46, %v1236_v50  ;;  %v1415_v26 = vadd.f32 %v1399_v56, %v7144_v48  ;;  %v1238_v41 = vmax.f32 %v5296_v8, %v1222_v54  ;;  %v7147_v16 = vld [vmem:[#allocation8_spill] sm:$0xff] }
 0x2b3   :  { %v1224_v55 = vmul.f32 0.2, %v1207_v32  ;;  %v1534_v51 = vmax.f32 %v1501_v14, %v1518_v40  ;;  %v1503_v42 = vadd.f32 %v4765_v22, %v1470_v44  ;;  %v1372_v30 = vmul.f32 0.2, %v1355_v59  ;;  %1807 = vperm.xlu1 %3553, %v7147_v16   ;;  %v1478_v14 = vpop.permute.xlu1 %1477 }
 0x2b4   :  { %v823_v38 = vadd.f32 %v7145_v15, %v673_v36  ;;  %v957_v25 = vmul.f32 %v4508_v4, %v940_v49  ;;  %v1357_v13 = vadd.f32 %v7059_v11, %v7146_v33  ;;  %v5353_v56 = vsel %vm5300_vm8, %v1563_v37, -1e+30  ;;  %v7150_v33 = vld [vmem:[#allocation19_spill] sm:$0xff] }
 0x2b5   :  { %v1520_v50 = vmul.f32 0.2, %v1503_v42  ;;  %v1565_v8 = vadd.f32 %v1549_v57, %v1415_v26  ;;  %v1551_v54 = vmul.f32 %v7070_v19, %v1534_v51  ;;  %1648 = vmax.xlane.f32.xlu0 %v5353_v56  ;;  %v1417_v36 = vadd.f32 %v1401_v34, %v7148_v10 }
 0x2b6   :  { %v1269_v4 = vadd.f32 %v1253_v39, %v5255_v52  ;;  %v1585_v11 = vsel %vm289_vm9, 65537, %v7106_v6  ;;  %v1121_v49 = vadd.f32 %v7149_v3, %v971_v5  ;;  %v1255_v40 = vmul.f32 %v4537_v46, %v1238_v41 }
 0x2b7   :  { %v1240_v44 = vmax.f32 %v1207_v32, %v1224_v55  ;;  %v1536_v37 = vmax.f32 %v1503_v42, %v1520_v50  ;;  %v1505_v57 = vadd.f32 %v4765_v22, %v1478_v14  ;;  %v1403_v48 = vmul.f32 %v7068_v43, %v1386_v2  ;;  %1815 = vperm.xlu1 %3553, %v7150_v33   ;;  %v1486_v39 = vpop.permute.xlu1 %1485  ;;  %v3767_v50 = vld [vmem:[%s6701_s3 + $0x3c] sm:$0xf] }
 0x2b8   :  { %v1388_v26 = vmax.f32 %v1355_v59, %v1372_v30  ;;  %v973_v51 = vadd.f32 %v957_v25, %v823_v38  ;;  %v1374_v15 = vmul.f32 0.2, %v1357_v13  ;;  %v5368_v52 = vsel %vm5320_vm10, %v1565_v8, -1e+30  ;;  %v7156_v14 = vld [vmem:[#allocation80_spill] sm:$0xff] }
 0x2b9   :  { %v1522_v34 = vmul.f32 0.2, %v1505_v57  ;;  %v1567_v45 = vadd.f32 %v1551_v54, %v1417_v36  ;;  %v1553_v5 = vmul.f32 %v7070_v19, %v1536_v37  ;;  %1652 = vmax.xlane.f32.xlu0 %v5368_v52  ;;  %v7151_v32 = vunpack.c.l.b16 %v5252_v31  ;;  %v7155_v54 = vld [vmem:[#allocation14_spill] sm:$0xff] }
 0x2ba   :  { %v7152_v2 = vmov 0  ;;  %v1419_v59 = vadd.f32 %v1403_v48, %v1269_v4  ;;  %v1601_v41 = vunpack.c.l.b16 %v1585_v11  ;;  %v1587_v55 = vsel %vm291_vm11, 65537, %v7106_v6 }
 0x2bb   :  { %vm5374_vm1 = vcmp.ne.s32.totalorder %v7151_v32, 0  ;;  %v1257_v42 = vmul.f32 %v4537_v46, %v1240_v44  ;;  %v1538_v30 = vmax.f32 %v1505_v57, %v1522_v34  ;;  %v1507_v38 = vadd.f32 %v4765_v22, %v1486_v39  ;;  %1819 = vperm.xlu1 %3553, %v7155_v54   ;;  %v7160_v44 = vld [vmem:[#allocation18_spill] sm:$0xff] }
 0x2bc   :  { %v7153_v2 = vsel %vm5374_vm1, 4294967295, %v7152_v2  ;;  %v1271_v25 = vadd.f32 %v1255_v40, %v1121_v49  ;;  %vm293_vm3 = vcmp.gt.bf16.partialorder %v3767_v50, 0  ;;  %v1405_v31 = vmul.f32 %v7068_v43, %v1388_v26  ;;  %v7175_v50 = vld [vmem:[#allocation12_spill] sm:$0xff] }
 0x2bd   :  { %7154 = vst [vmem:[#allocation55_spill] sm:$0xff] %v7153_v2  ;;  %v1390_v8 = vmax.f32 %v1357_v13, %v1374_v15  ;;  %v1123_v10 = vadd.f32 %v7156_v14, %v973_v51  ;;  %v1524_v58 = vmul.f32 0.2, %v1507_v38  ;;  %v5390_v46 = vsel %vm5374_vm1, %v1567_v45, -1e+30  ;;  %v7164_v45 = vld [vmem:[#allocation16_spill] sm:$0xff] }
 0x2be   :  { %v1569_v36 = vadd.f32 %v1553_v5, %v1419_v59  ;;  %v1555_v22 = vmul.f32 %v7070_v19, %v1538_v30  ;;  %1656 = vmax.xlane.f32.xlu0 %v5390_v46  ;;  %vm5394_vm9 = vcmp.ne.s32.totalorder %v1601_v41, 0  ;;  %v7157_v4 = vmov 0  ;;  %v7169_v59 = vld [vmem:[#allocation6_spill] sm:$0xff]  ;;  %v7173_v30 = vld [vmem:[#allocation13_spill] sm:$0xff]  ;;  %v7177_v14 = vld [vmem:[#allocation20_spill] sm:$0xff] }
 0x2bf   :  { %v7158_v4 = vsel %vm5394_vm9, 4294967295, %v7157_v4  ;;  %v1603_v11 = vunpack.c.l.b16 %v1587_v55  ;;  %v1540_v13 = vmax.f32 %v1507_v38, %v1524_v58  ;;  %v1421_v3 = vadd.f32 %v1405_v31, %v1271_v25  ;;  %1823 = vperm.xlu1 %3553, %v7160_v44   ;;  %v7170_v41 = vld [vmem:[#allocation10_spill] sm:$0xff]  ;;  %v7171_v55 = vld [vmem:[#allocation9_spill] sm:$0xff] }
 0x2c0   :  { %7159 = vst [vmem:[#allocation86_spill] sm:$0xff] %v7158_v4  ;;  %v1273_v49 = vadd.f32 %v1257_v42, %v1123_v10  ;;  %v1589_v40 = vsel %vm293_vm3, 65537, %v7106_v6  ;;  %v1407_v37 = vmul.f32 %v7068_v43, %v1390_v8  ;;  %v5403_v57 = vsel %vm5394_vm9, %v1569_v36, -1e+30  ;;  %v7172_v42 = vld [vmem:[#allocation11_spill] sm:$0xff]  ;;  %v7174_v25 = vld [vmem:[#allocation5_spill] sm:$0xff] }
 0x2c1   :  { %v1571_v48 = vadd.f32 %v1555_v22, %v1421_v3  ;;  %v1557_v26 = vmul.f32 %v7070_v19, %v1540_v13  ;;  %vm5407_vm11 = vcmp.ne.s32.totalorder %v1603_v11, 0  ;;  %v7161_v51 = vmov 0  ;;  %v7168_v19 = vld [vmem:[#allocation7_spill] sm:$0xff] }
 0x2c2   :  { %1660 = vmax.xlane.f32.xlu0 %v5403_v57  ;;  %v7162_v51 = vsel %vm5407_vm11, 4294967295, %v7161_v51  ;;  %v1605_v15 = vunpack.c.l.b16 %v1589_v40  ;;  %v1423_v34 = vadd.f32 %v1407_v37, %v1273_v49  ;;  %v7165_v39 = vmov 0  ;;  %v7176_v8 = vld [vmem:[#allocation15_spill] sm:$0xff] }
 0x2c3   :  { %7163 = vst [vmem:[#allocation61_spill] sm:$0xff] %v7162_v51  ;;  %1827 = vperm.xlu1 %3553, %v7164_v45   ;;  %v5414_v43 = vsel %vm5407_vm11, %v1571_v48, -1e+30  ;;  %v6794_v38 = vmov 9   ;;  %v6798_v31 = vmov 10   ;;  %v6809_v10 = vmov 11  }
 0x2c4   :  { %v1573_v5 = vadd.f32 %v1557_v26, %v1423_v34  ;;  %vm5417_vm3 = vcmp.ne.s32.totalorder %v1605_v15, 0  ;;  %v6800_v58 = vmov 15   ;;  %v6796_v36 = vmov 12  }
 0x2c5   :  { %v7166_v39 = vsel %vm5417_vm3, 4294967295, %v7165_v39  ;;  %v6792_v22 = vmov 13   ;;  %v6806_v11 = vmov 14   ;;  %v7194_v29 = vmov 13  }
 0x2c6   :  { %1664 = vmax.xlane.f32.xlu0 %v5414_v43  ;;  %7167 = vst [vmem:[#allocation53_spill] sm:$0xff] %v7166_v39  ;;  %v5424_v32 = vsel %vm5417_vm3, %v1573_v5, -1e+30  ;;  %v7196_v27 = vmov 10   ;;  %v7198_v63 = vmov 14  }
 0x2c7   :  { %1831 = vperm.xlu1 %3553, %v7168_v19  }
 0x2ca   :  { %1668 = vmax.xlane.f32.xlu0 %v5424_v32 }
 0x2cb   :  { %1835 = vperm.xlu1 %3553, %v7169_v59  }
 0x2cf   :  { %1839 = vperm.xlu1 %3553, %v7170_v41  }
 0x2d3   :  { %1843 = vperm.xlu1 %3553, %v7171_v55  }
 0x2d7   :  { %1851 = vperm.xlu1 %3553, %v7172_v42  }
 0x2db   :  { %1859 = vperm.xlu1 %3553, %v7173_v30  }
 0x2df   :  { %3555 = vset.pattern.permute.xlu1 %v6794_v38 }
 0x2e0   :  { %1811 = vperm.xlu0 %3554, %v7174_v25   ;;  %1957 = vperm.xlu1 %3555, %v7147_v16  }
 0x2e4   :  { %1847 = vperm.xlu0 %3554, %v7175_v50   ;;  %3556 = vset.pattern.permute.xlu1 %v6798_v31 }
 0x2e5   :  { %2107 = vperm.xlu1 %3556, %v7147_v16  }
 0x2e8   :  { %1855 = vperm.xlu0 %3554, %v7176_v8  }
 0x2e9   :  { %2111 = vperm.xlu1 %3556, %v7174_v25  }
 0x2ec   :  { %1863 = vperm.xlu0 %3554, %v7177_v14  }
 0x2ed   :  { %3557 = vset.pattern.permute.xlu1 %v6809_v10 }
 0x2ee   :  { %2261 = vperm.xlu1 %3557, %v7174_v25  }
 0x2f0   :  { %3565 = vset.pattern.permute.xlu0 %v6800_v58 }
 0x2f1   :  { %2861 = vperm.xlu0 %3565, %v7174_v25  }
 0x2f2   :  { %3558 = vset.pattern.permute.xlu1 %v6796_v36 }
 0x2f3   :  { %2407 = vperm.xlu1 %3558, %v7147_v16  }
 0x2f5   :  { %3566 = vset.pattern.permute.xlu0 %v6792_v22 }
 0x2f6   :  { %2557 = vperm.xlu0 %3566, %v7147_v16  }
 0x2f7   :  { %3559 = vset.pattern.permute.xlu1 %v6794_v38 }
 0x2f8   :  { %1965 = vperm.xlu1 %3559, %v7150_v33  }
 0x2fa   :  { %2569 = vperm.xlu0 %3566, %v7155_v54  }
 0x2fc   :  { %1969 = vperm.xlu1 %3559, %v7155_v54  }
 0x300   :  { %3560 = vset.pattern.permute.xlu1 %v6792_v22 }
 0x301   :  { %2561 = vperm.xlu1 %3560, %v7174_v25  }
 0x305   :  { %3561 = vset.pattern.permute.xlu1 %v6798_v31 }
 0x306   :  { %2115 = vperm.xlu1 %3561, %v7150_v33  }
 0x30a   :  { %3562 = vset.pattern.permute.xlu1 %v6806_v11 }
 0x30b   :  { %2707 = vperm.xlu1 %3562, %v7147_v16  }
 0x30e   :  { %v1641_v13 = vpop.xlane.xlu1 %1640 }
 0x30f   :  { %2711 = vperm.xlu1 %3562, %v7174_v25   ;;  %v1671_v3 = vsub.f32 %v5083_v24, %v1641_v13 }
 0x311   :  { %v1688_v49 = vmul.f32 1.442695, %v1671_v3 }
 0x313   :  { %3563 = vset.pattern.permute.xlu1 %v6809_v10  ;;  %3622 = vpow2.f32 %v1688_v49 }
 0x314   :  { %2269 = vperm.xlu1 %3563, %v7155_v54  }
 0x316   :  { %v5465_v40 = vpop.xlane.xlu1 %1646 }
 0x318   :  { %3564 = vset.pattern.permute.xlu1 %v6800_v58 }
 0x319   :  { %2857 = vperm.xlu1 %3564, %v7147_v16  }
 0x31a   :  { %v5469_v37 = vpop.xlane.xlu1 %1650 }
 0x31d   :  { %3567 = vset.pattern.permute.xlu1 %v6796_v36  ;;  %v5471_v48 = vpop.eup %3622 }
 0x31e   :  { %2415 = vperm.xlu1 %3567, %v7150_v33   ;;  %v5474_v24 = vpop.xlane.xlu1 %1654  ;;  %1720 = vadd.xlane.f32.xlu0 %v5471_v48 }
 0x322   :  { %2419 = vperm.xlu1 %3567, %v7155_v54  }
 0x323   :  { %v5479_v26 = vpop.xlane.xlu1 %1658 }
 0x326   :  { %3568 = vset.pattern.permute.xlu1 %v6794_v38 }
 0x327   :  { %1977 = vperm.xlu1 %3568, %v7164_v45  }
 0x328   :  { %v5482_v15 = vpop.xlane.xlu1 %1662 }
 0x32b   :  { %3569 = vset.pattern.permute.xlu1 %v6792_v22 }
 0x32c   :  { %2565 = vperm.xlu1 %3569, %v7150_v33   ;;  %v5485_v34 = vpop.xlane.xlu1 %1666 }
 0x330   :  { %3570 = vset.pattern.permute.xlu1 %v6798_v31 }
 0x331   :  { %2123 = vperm.xlu1 %3570, %v7160_v44   ;;  %v1639_v13 = vpop.xlane.xlu0 %1638 }
 0x332   :  { %v5489_v5 = vpop.permute.xlu1 %1807 }
 0x333   :  { %7178 = vst [vmem:[#allocation43_spill] sm:$0xff] %v5489_v5 }
 0x335   :  { %2127 = vperm.xlu1 %3570, %v7164_v45  }
 0x336   :  { %v5492_v3 = vpop.permute.xlu1 %1815 }
 0x339   :  { %3571 = vset.pattern.permute.xlu1 %v6806_v11 }
 0x33a   :  { %2719 = vperm.xlu1 %3571, %v7155_v54   ;;  %v1645_v49 = vpop.xlane.xlu0 %1644  ;;  %v5498_v31 = vpop.permute.xlu1 %1819 }
 0x33b   :  { %v1673_v22 = vsub.f32 %v5314_v17, %v1645_v49  ;;  %7179 = vst [vmem:[#allocation54_spill] sm:$0xff] %v5498_v31 }
 0x33d   :  { %v1692_v38 = vmul.f32 1.442695, %v1673_v22  ;;  %v1670_v22 = vsub.f32 %v5265_v35, %v1639_v13  ;;  %v1674_v13 = vsub.f32 %v5118_v28, %v5465_v40 }
 0x33e   :  { %v1643_v36 = vpop.xlane.xlu0 %1642  ;;  %3572 = vset.pattern.permute.xlu1 %v6809_v10  ;;  %v5501_v39 = vpop.permute.xlu1 %1823 }
 0x33f   :  { %3624 = vpow2.f32 %v1692_v38  ;;  %7180 = vst [vmem:[#allocation47_spill] sm:$0xff] %v5501_v39  ;;  %v1686_v10 = vmul.f32 1.442695, %v1670_v22 }
 0x342   :  { %v1649_v58 = vpop.xlane.xlu0 %1648  ;;  %v5508_v49 = vpop.permute.xlu1 %1827 }
 0x343   :  { %v1675_v61 = vsub.f32 %v5353_v56, %v1649_v58 }
 0x345   :  { %v1696_v51 = vmul.f32 1.442695, %v1675_v61  ;;  %v1672_v61 = vsub.f32 %v5336_v1, %v1643_v36 }
 0x346   :  { %v1653_v0 = vpop.xlane.xlu0 %1652 }
 0x347   :  { %3626 = vpow2.f32 %v1696_v51  ;;  %v1677_v11 = vsub.f32 %v5368_v52, %v1653_v0 }
 0x349   :  { %v5504_v4 = vpop.eup %3624  ;;  %v1700_v17 = vmul.f32 1.442695, %v1677_v11  ;;  %v5515_v11 = vpop.permute.xlu1 %1831 }
 0x34a   :  { %1724 = vadd.xlane.f32.xlu0 %v5504_v4  ;;  %7181 = vst [vmem:[#allocation41_spill] sm:$0xff] %v5515_v11  ;;  %v7212_v11 = vld [vmem:[#allocation24_spill] sm:$0xff] }
 0x34b   :  { %v1657_v38 = vpop.xlane.xlu0 %1656  ;;  %3628 = vpow2.f32 %v1700_v17  ;;  %v1690_v17 = vmul.f32 1.442695, %v1672_v61  ;;  %v1678_v61 = vsub.f32 %v5169_v53, %v5474_v24  ;;  %v1682_v24 = vsub.f32 %v5225_v47, %v5482_v15 }
 0x34c   :  { %v1679_v56 = vsub.f32 %v5390_v46, %v1657_v38  ;;  %vm6826_vm4 = vcmp.gt.f32.partialorder %v7212_v11, 0.0 }
 0x34d   :  { %v5526_v28 = vpop.permute.xlu1 %1835 }
 0x34e   :  { %v1704_v58 = vmul.f32 1.442695, %v1679_v56  ;;  %v1676_v56 = vsub.f32 %v5146_v21, %v5469_v37  ;;  %v1680_v37 = vsub.f32 %v5197_v12, %v5479_v26  ;;  %v1710_v12 = vmul.f32 1.442695, %v1682_v24 }
 0x34f   :  { %v1661_v51 = vpop.xlane.xlu0 %1660  ;;  %v1684_v26 = vsub.f32 %v5242_v60, %v5485_v34  ;;  %v7190_v24 = vmov 15  }
 0x350   :  { %3630 = vpow2.f32 %v1704_v58  ;;  %v1681_v0 = vsub.f32 %v5403_v57, %v1661_v51  ;;  %v1694_v57 = vmul.f32 1.442695, %v1674_v13  ;;  %v1706_v53 = vmul.f32 1.442695, %v1680_v37 }
 0x351   :  { %v5513_v52 = vpop.eup %3626  ;;  %3632 = vpow2.f32 %v1686_v10  ;;  %v5538_v21 = vpop.permute.xlu1 %1839  ;;  %v1714_v47 = vmul.f32 1.442695, %v1684_v26 }
 0x352   :  { %v1708_v35 = vmul.f32 1.442695, %v1681_v0  ;;  %1728 = vadd.xlane.f32.xlu0 %v5513_v52  ;;  %7182 = vst [vmem:[#allocation46_spill] sm:$0xff] %v5538_v21 }
 0x353   :  { %v1665_v46 = vpop.xlane.xlu0 %1664 }
 0x354   :  { %3634 = vpow2.f32 %v1708_v35  ;;  %v1683_v1 = vsub.f32 %v5414_v43, %v1665_v46  ;;  %v1698_v43 = vmul.f32 1.442695, %v1676_v56 }
 0x355   :  { %v5521_v36 = vpop.eup %3628  ;;  %3636 = vpow2.f32 %v1690_v17  ;;  %v5552_v17 = vpop.permute.xlu1 %1843 }
 0x356   :  { %v1712_v22 = vmul.f32 1.442695, %v1683_v1  ;;  %1732 = vadd.xlane.f32.xlu0 %v5521_v36  ;;  %7183 = vst [vmem:[#allocation49_spill] sm:$0xff] %v5552_v17 }
 0x357   :  { %v1669_v38 = vpop.xlane.xlu0 %1668 }
 0x358   :  { %3638 = vpow2.f32 %v1712_v22  ;;  %v1685_v10 = vsub.f32 %v5424_v32, %v1669_v38  ;;  %v1702_v32 = vmul.f32 1.442695, %v1678_v61 }
 0x359   :  { %3640 = vpow2.f32 %v1694_v57  ;;  %v5564_v57 = vpop.permute.xlu1 %1851 }
 0x35a   :  { %v5529_v40 = vpop.eup %3630  ;;  %v1716_v58 = vmul.f32 1.442695, %v1685_v10  ;;  %7184 = vst [vmem:[#allocation77_spill] sm:$0xff] %v5564_v57 }
 0x35b   :  { %1736 = vadd.xlane.f32.xlu0 %v5529_v40  ;;  %v5534_v51 = vpop.eup %3632 }
 0x35c   :  { %3642 = vpow2.f32 %v1716_v58 }
 0x35d   :  { %3644 = vpow2.f32 %v1698_v43  ;;  %v5570_v38 = vpop.permute.xlu1 %1859  ;;  %v6811_v43 = vmov 0.0  }
 0x35e   :  { %v5536_v0 = vpop.eup %3634  ;;  %1718 = vadd.xlane.f32.xlu1 %v5534_v51  ;;  %3646 = vpow2.f32 %v1702_v32  ;;  %7185 = vst [vmem:[#allocation78_spill] sm:$0xff] %v5570_v38  ;;  %3398 = vmatprep.subr.bf16.mxu1 %v6811_v43  ;;  %v7188_v32 = vmov 11   ;;  %v7197_v38 = vld [vmem:[#allocation17_spill] sm:$0xff] }
 0x35f   :  { %1740 = vadd.xlane.f32.xlu0 %v5536_v0  ;;  %v5544_v35 = vpop.eup %3636  ;;  %3648 = vpow2.f32 %v1706_v53  ;;  %3418 = vmatprep.subr.bf16.mxu0 %v6811_v43  ;;  %v5631_v23 = vpop.permute.xlu0 %1811 }
 0x360   :  { %3650 = vpow2.f32 %v1710_v12 }
 0x361   :  { %3652 = vpow2.f32 %v1714_v47  ;;  %v5577_v34 = vpop.permute.xlu1 %1957  ;;  %v7193_v47 = vmov 9  }
 0x362   :  { %v5546_v13 = vpop.eup %3638  ;;  %1722 = vadd.xlane.f32.xlu1 %v5544_v35  ;;  %7186 = vst [vmem:[#allocation52_spill] sm:$0xff] %v5577_v34 }
 0x363   :  { %1744 = vadd.xlane.f32.xlu0 %v5546_v13  ;;  %v5554_v46 = vpop.eup %3640  ;;  %v5639_v9 = vpop.permute.xlu0 %1847 }
 0x364   :  { %7199 = vst [vmem:[#allocation64_spill] sm:$0xff] %v5639_v9 }
 0x365   :  { %v5583_v58 = vpop.permute.xlu1 %2107 }
 0x366   :  { %v5556_v1 = vpop.eup %3642  ;;  %1726 = vadd.xlane.f32.xlu1 %v5554_v46  ;;  %7187 = vst [vmem:[#allocation51_spill] sm:$0xff] %v5583_v58 }
 0x367   :  { %1748 = vadd.xlane.f32.xlu0 %v5556_v1  ;;  %v5562_v22 = vpop.eup %3644  ;;  %v5647_v20 = vpop.permute.xlu0 %1855 }
 0x368   :  { %v5567_v15 = vpop.eup %3646  ;;  %7201 = vst [vmem:[#allocation66_spill] sm:$0xff] %v5647_v20 }
 0x369   :  { %v5572_v56 = vpop.eup %3648  ;;  %v5589_v61 = vpop.permute.xlu1 %2111 }
 0x36a   :  { %1730 = vadd.xlane.f32.xlu1 %v5562_v22  ;;  %v5575_v60 = vpop.eup %3650 }
 0x36b   :  { %v5580_v10 = vpop.eup %3652 }
 0x36d   :  { %v5593_v37 = vpop.permute.xlu1 %2261 }
 0x36e   :  { %1734 = vadd.xlane.f32.xlu1 %v5567_v15 }
 0x372   :  { %1738 = vadd.xlane.f32.xlu1 %v5572_v56  ;;  %v5597_v53 = vpop.permute.xlu1 %2407 }
 0x373   :  { %7189 = vst [vmem:[#allocation87_spill] sm:$0xff] %v5597_v53 }
 0x376   :  { %1742 = vadd.xlane.f32.xlu1 %v5575_v60 }
 0x377   :  { %v5603_v12 = vpop.permute.xlu1 %1965 }
 0x37a   :  { %1746 = vadd.xlane.f32.xlu1 %v5580_v10 }
 0x37b   :  { %v5608_v26 = vpop.permute.xlu1 %1969 }
 0x37c   :  { %7192 = vst [vmem:[#allocation76_spill] sm:$0xff] %v5608_v26 }
 0x37d   :  { %2581 = vperm.xlu0 %3566, %v7168_v19  }
 0x380   :  { %v5616_v43 = vpop.permute.xlu1 %2561 }
 0x381   :  { %2593 = vperm.xlu0 %3566, %v7171_v55  }
 0x385   :  { %3591 = vset.pattern.permute.xlu0 %v7188_v32  ;;  %v5621_v2 = vpop.permute.xlu1 %2115 }
 0x386   :  { %2257 = vperm.xlu0 %3591, %v7147_v16   ;;  %v7191_v16 = vmov 12  }
 0x38a   :  { %2265 = vperm.xlu0 %3591, %v7150_v33   ;;  %v5626_v62 = vpop.permute.xlu1 %2707 }
 0x38b   :  { %2273 = vperm.xlu1 %3572, %v7160_v44   ;;  %7195 = vst [vmem:[#allocation60_spill] sm:$0xff] %v5626_v62 }
 0x38e   :  { %2277 = vperm.xlu0 %3591, %v7164_v45   ;;  %v5634_v18 = vpop.permute.xlu1 %2711 }
 0x38f   :  { %3573 = vset.pattern.permute.xlu1 %v7190_v24 }
 0x390   :  { %2865 = vperm.xlu1 %3573, %v7150_v33  }
 0x392   :  { %2289 = vperm.xlu0 %3591, %v7170_v41  }
 0x393   :  { %v5643_v62 = vpop.permute.xlu1 %2269 }
 0x394   :  { %2869 = vperm.xlu1 %3573, %v7155_v54   ;;  %7200 = vst [vmem:[#allocation50_spill] sm:$0xff] %v5643_v62 }
 0x396   :  { %2301 = vperm.xlu0 %3591, %v7172_v42  }
 0x398   :  { %3574 = vset.pattern.permute.xlu1 %v7191_v16  ;;  %v5650_v26 = vpop.permute.xlu1 %2857 }
 0x399   :  { %2427 = vperm.xlu1 %3574, %v7164_v45   ;;  %7202 = vst [vmem:[#allocation81_spill] sm:$0xff] %v5650_v26 }
 0x39a   :  { %3595 = vset.pattern.permute.xlu0 %v7193_v47 }
 0x39b   :  { %1961 = vperm.xlu0 %3595, %v7174_v25  }
 0x39d   :  { %3575 = vset.pattern.permute.xlu1 %v7193_v47  ;;  %v5657_v53 = vpop.permute.xlu1 %2415 }
 0x39e   :  { %1981 = vperm.xlu1 %3575, %v7168_v19   ;;  %7204 = vst [vmem:[#allocation75_spill] sm:$0xff] %v5657_v53 }
 0x39f   :  { %1973 = vperm.xlu0 %3595, %v7160_v44  }
 0x3a1   :  { %v5667_v26 = vpop.permute.xlu1 %2419 }
 0x3a2   :  { %3576 = vset.pattern.permute.xlu1 %v7194_v29  ;;  %7205 = vst [vmem:[#allocation63_spill] sm:$0xff] %v5667_v26 }
 0x3a3   :  { %1985 = vperm.xlu0 %3595, %v7169_v59   ;;  %2573 = vperm.xlu1 %3576, %v7160_v44  }
 0x3a6   :  { %v5674_v62 = vpop.permute.xlu1 %1977 }
 0x3a7   :  { %1997 = vperm.xlu0 %3595, %v7175_v50   ;;  %2577 = vperm.xlu1 %3576, %v7164_v45  }
 0x3ab   :  { %2009 = vperm.xlu0 %3595, %v7173_v30   ;;  %3577 = vset.pattern.permute.xlu1 %v7196_v27 }
 0x3ac   :  { %2135 = vperm.xlu1 %3577, %v7169_v59  }
 0x3af   :  { %2017 = vperm.xlu0 %3595, %v7197_v38  }
 0x3b0   :  { %3578 = vset.pattern.permute.xlu1 %v7198_v63 }
 0x3b1   :  { %2723 = vperm.xlu1 %3578, %v7160_v44  }
 0x3b3   :  { %3607 = vset.pattern.permute.xlu0 %v7196_v27 }
 0x3b4   :  { %2119 = vperm.xlu0 %3607, %v7155_v54   ;;  %v5655_v54 = vpop.permute.xlu0 %1863 }
 0x3b5   :  { %3579 = vset.pattern.permute.xlu1 %v7188_v32  ;;  %7203 = vst [vmem:[#allocation85_spill] sm:$0xff] %v5655_v54 }
 0x3b6   :  { %2281 = vperm.xlu1 %3579, %v7168_v19  }
 0x3b8   :  { %2131 = vperm.xlu0 %3607, %v7168_v19   ;;  %v5662_v20 = vpop.permute.xlu0 %2861 }
 0x3ba   :  { %2285 = vperm.xlu1 %3579, %v7169_v59  }
 0x3bc   :  { %2143 = vperm.xlu0 %3607, %v7171_v55   ;;  %v5671_v54 = vpop.permute.xlu0 %2557 }
 0x3bd   :  { %7206 = vst [vmem:[#allocation40_spill] sm:$0xff] %v5671_v54 }
 0x3be   :  { %3580 = vset.pattern.permute.xlu1 %v7190_v24 }
 0x3bf   :  { %2877 = vperm.xlu1 %3580, %v7164_v45  }
 0x3c0   :  { %2155 = vperm.xlu0 %3607, %v7176_v8   ;;  %v5679_v9 = vpop.permute.xlu0 %2569 }
 0x3c1   :  { %7207 = vst [vmem:[#allocation57_spill] sm:$0xff] %v5679_v9 }
 0x3c3   :  { %3581 = vset.pattern.permute.xlu1 %v7191_v16 }
 0x3c4   :  { %2163 = vperm.xlu0 %3607, %v7177_v14   ;;  %2431 = vperm.xlu1 %3581, %v7168_v19   ;;  %v1721_v26 = vpop.xlane.xlu0 %1720 }
 0x3c5   :  { %3654 = vrcp.f32 %v1721_v26 }
 0x3c8   :  { %3609 = vset.pattern.permute.xlu0 %v7191_v16  ;;  %3582 = vset.pattern.permute.xlu1 %v7193_v47 }
 0x3c9   :  { %2411 = vperm.xlu0 %3609, %v7174_v25   ;;  %1989 = vperm.xlu1 %3582, %v7170_v41   ;;  %v5682_v25 = vpop.permute.xlu1 %2565 }
 0x3ca   :  { %7208 = vst [vmem:[#allocation69_spill] sm:$0xff] %v5682_v25 }
 0x3cd   :  { %2423 = vperm.xlu0 %3609, %v7160_v44   ;;  %1993 = vperm.xlu1 %3582, %v7171_v55   ;;  %v5687_v54 = vpop.permute.xlu1 %2123 }
 0x3ce   :  { %7209 = vst [vmem:[#allocation45_spill] sm:$0xff] %v5687_v54  ;;  %v7213_v54 = vld [vmem:[#allocation22_spill] sm:$0xff] }
 0x3cf   :  { %vm6828_vm3 = vcmp.gt.f32.partialorder %v7213_v54, 0.0 }
 0x3d1   :  { %2435 = vperm.xlu0 %3609, %v7169_v59   ;;  %3583 = vset.pattern.permute.xlu1 %v7194_v29  ;;  %v5694_v57 = vpop.permute.xlu1 %2127 }
 0x3d2   :  { %2585 = vperm.xlu1 %3583, %v7169_v59   ;;  %7210 = vst [vmem:[#allocation48_spill] sm:$0xff] %v5694_v57 }
 0x3d5   :  { %2447 = vperm.xlu0 %3609, %v7175_v50   ;;  %v5700_v34 = vpop.permute.xlu1 %2719 }
 0x3d6   :  { %3584 = vset.pattern.permute.xlu1 %v7196_v27  ;;  %7211 = vst [vmem:[#allocation74_spill] sm:$0xff] %v5700_v34  ;;  %v3655_v34 = vpop.eup %3654 }
 0x3d7   :  { %2139 = vperm.xlu1 %3584, %v7170_v41   ;;  %v1725_v58 = vpop.xlane.xlu0 %1724 }
 0x3d9   :  { %2459 = vperm.xlu0 %3609, %v7173_v30  }
 0x3db   :  { %3585 = vset.pattern.permute.xlu1 %v7198_v63 }
 0x3dc   :  { %2731 = vperm.xlu1 %3585, %v7168_v19  }
 0x3dd   :  { %2467 = vperm.xlu0 %3609, %v7197_v38  }
 0x3df   :  { %v1729_v9 = vpop.xlane.xlu0 %1728 }
 0x3e0   :  { %2735 = vperm.xlu1 %3585, %v7169_v59  }
 0x3e1   :  { %3615 = vset.pattern.permute.xlu0 %v7198_v63 }
 0x3e2   :  { %2715 = vperm.xlu0 %3615, %v7150_v33  }
 0x3e3   :  { %v1733_v17 = vpop.xlane.xlu0 %1732 }
 0x3e4   :  { %3586 = vset.pattern.permute.xlu1 %v7188_v32 }
 0x3e5   :  { %2293 = vperm.xlu1 %3586, %v7171_v55  }
 0x3e6   :  { %2727 = vperm.xlu0 %3615, %v7164_v45  }
 0x3e8   :  { %v5702_v21 = vpop.xlane.xlu0 %1736 }
 0x3e9   :  { %3587 = vset.pattern.permute.xlu1 %v7190_v24 }
 0x3ea   :  { %2739 = vperm.xlu0 %3615, %v7170_v41   ;;  %2881 = vperm.xlu1 %3587, %v7168_v19  }
 0x3eb   :  { %v1719_v7 = vpop.xlane.xlu1 %1718 }
 0x3ec   :  { %v5707_v33 = vpop.xlane.xlu0 %1740  ;;  %3656 = vrcp.f32 %v1719_v7  ;;  %v1767_v7 = vsel %vm6826_vm4, %v3655_v34, 0.0 }
 0x3ed   :  { %3658 = vrcp.f32 %v1725_v58  ;;  %v1783_v11 = vmul.f32 %v5471_v48, %v1767_v7  ;;  %v7219_v7 = vld [vmem:[#allocation26_spill] sm:$0xff] }
 0x3ee   :  { %2751 = vperm.xlu0 %3615, %v7172_v42   ;;  %3588 = vset.pattern.permute.xlu1 %v7191_v16 }
 0x3ef   :  { %2439 = vperm.xlu1 %3588, %v7170_v41   ;;  %v1723_v45 = vpop.xlane.xlu1 %1722 }
 0x3f0   :  { %3660 = vrcp.f32 %v1723_v45  ;;  %v5712_v26 = vpop.xlane.xlu0 %1744 }
 0x3f2   :  { %2759 = vperm.xlu0 %3615, %v7173_v30  }
 0x3f3   :  { %2443 = vperm.xlu1 %3588, %v7171_v55   ;;  %v1727_v19 = vpop.xlane.xlu1 %1726 }
 0x3f4   :  { %3662 = vrcp.f32 %v1727_v19  ;;  %v5721_v45 = vpop.xlane.xlu0 %1748  ;;  %v7214_v19 = vld [vmem:[#allocation21_spill] sm:$0xff] }
 0x3f5   :  { %3664 = vrcp.f32 %v1729_v9  ;;  %vm6829_vm4 = vcmp.gt.f32.partialorder %v7214_v19, 0.0 }
 0x3f6   :  { %2763 = vperm.xlu0 %3615, %v7177_v14   ;;  %v3657_v58 = vpop.eup %3656 }
 0x3f7   :  { %3589 = vset.pattern.permute.xlu1 %v7193_v47  ;;  %v1731_v39 = vpop.xlane.xlu1 %1730  ;;  %v1766_v31 = vsel %vm6828_vm3, %v3657_v58, 0.0  ;;  %v3659_v34 = vpop.eup %3658  ;;  %v7216_v58 = vld [vmem:[#allocation23_spill] sm:$0xff] }
 0x3f8   :  { %2001 = vperm.xlu1 %3589, %v7172_v42   ;;  %v1782_v25 = vmul.f32 %v5534_v51, %v1766_v31  ;;  %vm6830_vm3 = vcmp.gt.f32.partialorder %v7216_v58, 0.0  ;;  %v7217_v31 = vmov 0.0   ;;  %3666 = vrcp.f32 %v1731_v39 }
 0x3f9   :  { %v1769_v48 = vsel %vm6830_vm3, %v3659_v34, 0.0  ;;  %3668 = vrcp.f32 %v1733_v17  ;;  %v7220_v34 = vld [vmem:[#allocation25_spill] sm:$0xff] }
 0x3fa   :  { %3617 = vset.pattern.permute.xlu0 %v7190_v24  ;;  %v3661_v5 = vpop.eup %3660  ;;  %v1798_v57 = vpack.c.bf16 %v1783_v11, %v1782_v25  ;;  %v1785_v25 = vmul.f32 %v5504_v4, %v1769_v48  ;;  %vm6833_vm3 = vcmp.gt.f32.partialorder %v7220_v34, 0.0 }
 0x3fb   :  { %2873 = vperm.xlu0 %3617, %v7160_v44   ;;  %v1735_v53 = vpop.xlane.xlu1 %1734  ;;  %v1768_v9 = vsel %vm6829_vm4, %v3661_v5, 0.0  ;;  %vm6832_vm4 = vcmp.gt.f32.partialorder %v7219_v7, 0.0  ;;  %v7222_v7 = vld [vmem:[#allocation28_spill] sm:$0xff] }
 0x3fc   :  { %v5732_v14 = vpop.permute.xlu0 %2581  ;;  %3590 = vset.pattern.permute.xlu1 %v7194_v29  ;;  %3399 = vmatpush3.bf16.xpose.msra.mxu1 %v1798_v57  ;;  %v1784_v44 = vmul.f32 %v5544_v35, %v1768_v9  ;;  %3670 = vrcp.f32 %v1735_v53 }
 0x3fd   :  { %7215 = vst [vmem:[#allocation72_spill] sm:$0xff] %v5732_v14  ;;  %2589 = vperm.xlu1 %3590, %v7170_v41   ;;  %3400 = vmatprep.subr.bf16.mxu1 %v7217_v31  ;;  %3672 = vrcp.f32 %v5702_v21  ;;  %v7223_v21 = vld [vmem:[#allocation27_spill] sm:$0xff] }
 0x3fe   :  { %v3663_v5 = vpop.eup %3662  ;;  %v1799_v39 = vpack.c.bf16 %v1785_v25, %v1784_v44 }
 0x3ff   :  { %2885 = vperm.xlu0 %3617, %v7169_v59   ;;  %v1739_v11 = vpop.xlane.xlu1 %1738  ;;  %v3665_v57 = vpop.eup %3664  ;;  %v1770_v35 = vsel %vm6832_vm4, %v3663_v5, 0.0  ;;  %vm6837_vm4 = vcmp.gt.f32.partialorder %v7222_v7, 0.0  ;;  %v7227_v7 = vld [vmem:[#allocation29_spill] sm:$0xff] }
 0x400   :  { %v5744_v51 = vpop.permute.xlu0 %2593  ;;  %v1771_v4 = vsel %vm6833_vm3, %v3665_v57, 0.0  ;;  %v1786_v9 = vmul.f32 %v5554_v46, %v1770_v35  ;;  %vm6835_vm3 = vcmp.gt.f32.partialorder %v7223_v21, 0.0  ;;  %3674 = vrcp.f32 %v1739_v11 }
 0x401   :  { %7218 = vst [vmem:[#allocation65_spill] sm:$0xff] %v5744_v51  ;;  %3592 = vset.pattern.permute.xlu1 %v7196_v27  ;;  %v1787_v25 = vmul.f32 %v5513_v52, %v1771_v4  ;;  %3676 = vrcp.f32 %v5707_v33  ;;  %v5909_v51 = vstv %s3328_s9 }
 0x402   :  { %2147 = vperm.xlu1 %3592, %v7175_v50   ;;  %v3667_v44 = vpop.eup %3666 }
 0x403   :  { %2897 = vperm.xlu0 %3617, %v7175_v50   ;;  %v1743_v59 = vpop.xlane.xlu1 %1742  ;;  %v1800_v53 = vpack.c.bf16 %v1787_v25, %v1786_v9  ;;  %v1772_v46 = vsel %vm6837_vm4, %v3667_v44, 0.0  ;;  %vm6841_vm4 = vcmp.gt.f32.partialorder %v7227_v7, 0.0 }
 0x404   :  { %3401 = vmatpush3.bf16.xpose.msra.mxu1 %v1799_v39  ;;  %v3669_v39 = vpop.eup %3668  ;;  %v1788_v4 = vmul.f32 %v5562_v22, %v1772_v46  ;;  %3678 = vrcp.f32 %v1743_v59  ;;  %v7230_v59 = vld [vmem:[#allocation31_spill] sm:$0xff] }
 0x405   :  { %v5754_v17 = vpop.permute.xlu0 %2257  ;;  %3402 = vmatprep.subr.bf16.mxu1 %v7217_v31  ;;  %v1773_v52 = vsel %vm6835_vm3, %v3669_v39, 0.0  ;;  %v7225_v39 = vld [vmem:[#allocation30_spill] sm:$0xff]  ;;  %3680 = vrcp.f32 %v5712_v26 }
 0x406   :  { %7221 = vst [vmem:[#allocation62_spill] sm:$0xff] %v5754_v17  ;;  %2151 = vperm.xlu1 %3592, %v7172_v42   ;;  %v3671_v44 = vpop.eup %3670  ;;  %vm6839_vm3 = vcmp.gt.f32.partialorder %v7225_v39, 0.0 }
 0x407   :  { %2905 = vperm.xlu0 %3617, %v7176_v8   ;;  %v1747_v48 = vpop.xlane.xlu1 %1746  ;;  %v3673_v21 = vpop.eup %3672  ;;  %v1774_v46 = vsel %vm6839_vm3, %v3671_v44, 0.0 }
 0x408   :  { %3682 = vrcp.f32 %v1747_v48  ;;  %v7233_v48 = vld [vmem:[#allocation33_spill] sm:$0xff] }
 0x409   :  { %v5763_v5 = vpop.permute.xlu0 %2265  ;;  %3684 = vrcp.f32 %v5721_v45 }
 0x40a   :  { %3593 = vset.pattern.permute.xlu1 %v7198_v63 }
 0x40b   :  { %2917 = vperm.xlu0 %3617, %v7197_v38   ;;  %2743 = vperm.xlu1 %3593, %v7171_v55   ;;  %v5770_v57 = vpop.permute.xlu1 %2273 }
 0x40c   :  { %3403 = vmatpush3.bf16.xpose.msra.mxu1 %v1800_v53  ;;  %v1789_v53 = vmul.f32 %v5521_v36, %v1773_v52  ;;  %v1775_v36 = vsel %vm6841_vm4, %v3673_v21, 0.0  ;;  %v1790_v52 = vmul.f32 %v5567_v15, %v1774_v46  ;;  %vm6843_vm4 = vcmp.gt.f32.partialorder %v7230_v59, 0.0 }
 0x40d   :  { %v5775_v35 = vpop.permute.xlu0 %2277  ;;  %3404 = vmatprep.subr.bf16.mxu1 %v7217_v31 }
 0x40e   :  { %v1801_v11 = vpack.c.bf16 %v1789_v53, %v1788_v4  ;;  %v3675_v4 = vpop.eup %3674  ;;  %v1791_v53 = vmul.f32 %v5529_v40, %v1775_v36 }
 0x40f   :  { %3620 = vset.pattern.permute.xlu0 %v7106_v6  ;;  %3594 = vset.pattern.permute.xlu1 %v7188_v32  ;;  %v5783_v9 = vpop.permute.xlu1 %2865  ;;  %v3677_v39 = vpop.eup %3676 }
 0x410   :  { %2297 = vperm.xlu1 %3594, %v7175_v50   ;;  %v1802_v34 = vpack.c.bf16 %v1791_v53, %v1790_v52  ;;  %v3679_v46 = vpop.eup %3678 }
 0x411   :  { %v5787_v25 = vpop.permute.xlu0 %2289  ;;  %v3681_v52 = vpop.eup %3680 }
 0x412   :  { %7224 = vst [vmem:[#allocation82_spill] sm:$0xff] %v5787_v25 }
 0x413   :  { %v5791_v22 = vpop.permute.xlu1 %2869 }
 0x414   :  { %7226 = vst [vmem:[#allocation71_spill] sm:$0xff] %v5791_v22  ;;  %3596 = vset.pattern.permute.xlu1 %v7190_v24  ;;  %3405 = vmatpush3.bf16.xpose.msra.mxu1 %v1801_v11 }
 0x415   :  { %v5797_v33 = vpop.permute.xlu0 %2301  ;;  %2889 = vperm.xlu1 %3596, %v7170_v41   ;;  %3406 = vmatprep.subr.bf16.mxu1 %v7217_v31  ;;  %v7229_v41 = vld [vmem:[#allocation32_spill] sm:$0xff] }
 0x416   :  { %7228 = vst [vmem:[#allocation8_spill] sm:$0xff] %v5797_v33  ;;  %vm6842_vm3 = vcmp.gt.f32.partialorder %v7229_v41, 0.0 }
 0x417   :  { %v1776_v21 = vsel %vm6842_vm3, %v3675_v4, 0.0  ;;  %v7231_v4 = vld [vmem:[#allocation34_spill] sm:$0xff] }
 0x418   :  { %v5805_v44 = vpop.permute.xlu1 %2427  ;;  %v1792_v40 = vmul.f32 %v5572_v56, %v1776_v21  ;;  %vm6845_vm3 = vcmp.gt.f32.partialorder %v7231_v4, 0.0  ;;  %v7236_v4 = vld [vmem:[#allocation36_spill] sm:$0xff] }
 0x419   :  { %2893 = vperm.xlu1 %3596, %v7171_v55   ;;  %v1777_v55 = vsel %vm6843_vm4, %v3677_v39, 0.0  ;;  %v1778_v56 = vsel %vm6845_vm3, %v3679_v46, 0.0  ;;  %vm6849_vm4 = vcmp.gt.f32.partialorder %v7233_v48, 0.0  ;;  %vm356_vm3 = vcmp.gt.f32.partialorder %v7236_v4, 0.0  ;;  %v7237_v48 = vld [vmem:[#allocation35_spill] sm:$0xff] }
 0x41a   :  { %v1962_v11 = vpop.permute.xlu0 %1961  ;;  %v7241_v4 = vld [vmem:[#allocation67_spill] sm:$0xff] }
 0x41b   :  { %v7256_v6 = vsub.s32 4, %v7241_v4 }
 0x41c   :  { %3407 = vmatpush3.bf16.xpose.msra.mxu1 %v1802_v34  ;;  %v1793_v34 = vmul.f32 %v5536_v0, %v1777_v55  ;;  %v1779_v0 = vsel %vm6849_vm4, %v3681_v52, 0.0  ;;  %v1794_v55 = vmul.f32 %v5575_v60, %v1778_v56  ;;  %vm357_vm4 = vcmp.gt.f32.partialorder %v7237_v48, 0.0 }
 0x41d   :  { %3597 = vset.pattern.permute.xlu1 %v7191_v16  ;;  %v5814_v15 = vpop.permute.xlu1 %1981  ;;  %3408 = vmatprep.subr.bf16.mxu1 %v7217_v31  ;;  %v1795_v46 = vmul.f32 %v5546_v13, %v1779_v0  ;;  %v7242_v48 = vsub.s32 1, %v7241_v4 }
 0x41e   :  { %v5816_v26 = vpop.permute.xlu0 %1973  ;;  %2451 = vperm.xlu1 %3597, %v7172_v42   ;;  %v1803_v39 = vpack.c.bf16 %v1793_v34, %v1792_v40  ;;  %v3683_v40 = vpop.eup %3682 }
 0x41f   :  { %v1804_v41 = vpack.c.bf16 %v1795_v46, %v1794_v55  ;;  %v1780_v52 = vsel %vm356_vm3, %v3683_v40, 0.0  ;;  %v43_v46 = vld [vmem:[%s6699_s1 + $0x8] sm:$0xff] }
 0x420   :  { %v1796_v56 = vmul.f32 %v5580_v10, %v1780_v52 }
 0x422   :  { %v5825_v36 = vpop.permute.xlu0 %1985  ;;  %3598 = vset.pattern.permute.xlu1 %v7193_v47  ;;  %v5829_v53 = vpop.permute.xlu1 %2573 }
 0x423   :  { %7232 = vst [vmem:[#allocation73_spill] sm:$0xff] %v5829_v53  ;;  %2005 = vperm.xlu1 %3598, %v7176_v8  }
 0x424   :  { %3409 = vmatpush3.bf16.xpose.msra.mxu1 %v1803_v39  ;;  %v3685_v39 = vpop.eup %3684 }
 0x425   :  { %3410 = vmatprep.subr.bf16.mxu1 %v7217_v31  ;;  %v1781_v13 = vsel %vm357_vm4, %v3685_v39, 0.0  ;;  %v5871_v39 = vrot.slane %v43_v46, %v7242_v48  ;;  %v7246_v48 = vsub.s32 2, %v7241_v4 }
 0x426   :  { %v5835_v45 = vpop.permute.xlu0 %1997  ;;  %v5840_v21 = vpop.permute.xlu1 %2577  ;;  %v1797_v55 = vmul.f32 %v5556_v1, %v1781_v13  ;;  %v7244_v1 = vsub.s32 0, %v7241_v4 }
 0x427   :  { %7234 = vst [vmem:[#allocation79_spill] sm:$0xff] %v5835_v45  ;;  %3599 = vset.pattern.permute.xlu1 %v7194_v29  ;;  %v2025_v13 = vadd.f32 %v5871_v39, %v1962_v11 }
 0x428   :  { %2597 = vperm.xlu1 %3599, %v7175_v50   ;;  %v5878_v52 = vrot.slane %v43_v46, %v7244_v1 }
 0x429   :  { %v2042_v19 = vmul.f32 0.2, %v2025_v13 }
 0x42a   :  { %v5846_v34 = vpop.permute.xlu0 %2009  ;;  %7245 = vst [vmem:[#allocation7_spill] sm:$0xff] %v5878_v52 }
 0x42b   :  { %7235 = vst [vmem:[#allocation19_spill] sm:$0xff] %v5846_v34  ;;  %v2136_v59 = vpop.permute.xlu1 %2135 }
 0x42c   :  { %2601 = vperm.xlu1 %3599, %v7172_v42   ;;  %3411 = vmatpush3.bf16.xpose.msra.mxu1 %v1804_v41  ;;  %v1805_v41 = vpack.c.bf16 %v1797_v55, %v1796_v56  ;;  %v1875_v55 = vadd.f32 %v5878_v52, %v5631_v23  ;;  %v7248_v23 = vsub.s32 3, %v7241_v4 }
 0x42d   :  { %3412 = vmatprep.subr.bf16.mxu1 %v7217_v31 }
 0x42e   :  { %v5853_v60 = vpop.permute.xlu0 %2017  ;;  %v1892_v11 = vmul.f32 0.2, %v1875_v55  ;;  %v5898_v58 = vrot.slane %v43_v46, %v7248_v23 }
 0x42f   :  { %7238 = vst [vmem:[#allocation14_spill] sm:$0xff] %v5853_v60 }
 0x430   :  { %3600 = vset.pattern.permute.xlu1 %v7196_v27  ;;  %v5860_v0 = vpop.permute.xlu1 %2723  ;;  %v1908_v34 = vmax.f32 %v1875_v55, %v1892_v11  ;;  %v5922_v11 = vstv %s3327_s0 }
 0x431   :  { %7239 = vst [vmem:[#allocation80_spill] sm:$0xff] %v5860_v0  ;;  %2159 = vperm.xlu1 %3600, %v7173_v30  }
 0x433   :  { %v5864_v40 = vpop.permute.xlu0 %2119 }
 0x434   :  { %7240 = vst [vmem:[#allocation18_spill] sm:$0xff] %v5864_v40  ;;  %3413 = vmatpush3.bf16.xpose.msra.mxu1 %v1805_v41  ;;  %v5888_v41 = vrot.slane %v43_v46, %v7246_v48  ;;  %v2058_v48 = vmax.f32 %v2025_v13, %v2042_v19  ;;  %v7251_v19 = vsub.s32 5, %v7241_v4 }
 0x435   :  { %3601 = vset.pattern.permute.xlu1 %v7198_v63  ;;  %v5874_v10 = vpop.permute.xlu1 %2281 }
 0x436   :  { %7243 = vst [vmem:[#allocation16_spill] sm:$0xff] %v5874_v10  ;;  %2747 = vperm.xlu1 %3601, %v7175_v50   ;;  %v2175_v50 = vadd.f32 %v5888_v41, %v5589_v61  ;;  %v2325_v61 = vadd.f32 %v5898_v58, %v5593_v37  ;;  %v5915_v13 = vrot.slane %v43_v46, %v7251_v19 }
 0x437   :  { %v5882_v56 = vpop.permute.xlu0 %2131  ;;  %v2075_v23 = vmul.f32 %v5909_v51, %v2058_v48  ;;  %v1925_v48 = vmul.f32 %v5922_v11, %v1908_v34  ;;  %v5948_v34 = vrot.slane %v43_v46, %v7256_v6  ;;  %v2176_v53 = vadd.f32 %v5888_v41, %v5621_v2 }
 0x438   :  { %v2192_v60 = vmul.f32 0.2, %v2175_v50  ;;  %v2342_v33 = vmul.f32 0.2, %v2325_v61 }
 0x439   :  { %v2286_v7 = vpop.permute.xlu1 %2285  ;;  %v2091_v40 = vadd.f32 %v2075_v23, %v1925_v48  ;;  %v5967_v23 = vstv %s5911_s11 }
 0x43a   :  { %3602 = vset.pattern.permute.xlu1 %v7188_v32  ;;  %v2208_v37 = vmax.f32 %v2175_v50, %v2192_v60  ;;  %v5938_v50 = vstv %s3329_s10  ;;  %v2358_v17 = vmax.f32 %v2325_v61, %v2342_v33 }
 0x43b   :  { %v5891_v1 = vpop.permute.xlu0 %2143  ;;  %2305 = vperm.xlu1 %3602, %v7176_v8  }
 0x43c   :  { %7247 = vst [vmem:[#allocation6_spill] sm:$0xff] %v5891_v1  ;;  %v1881_v1 = vadd.f32 %v5878_v52, %v5526_v28  ;;  %v7253_v28 = vsub.s32 7, %v7241_v4 }
 0x43e   :  { %v5900_v54 = vpop.permute.xlu1 %2877  ;;  %v1898_v60 = vmul.f32 0.2, %v1881_v1 }
 0x43f   :  { %7249 = vst [vmem:[#allocation10_spill] sm:$0xff] %v5900_v54  ;;  %v5902_v31 = vpop.permute.xlu0 %2155  ;;  %2309 = vperm.xlu1 %3602, %v7173_v30   ;;  %v5926_v54 = vrot.slane %v43_v46, %v7253_v28  ;;  %v7255_v28 = vsub.s32 6, %v7241_v4 }
 0x440   :  { %7250 = vst [vmem:[#allocation9_spill] sm:$0xff] %v5902_v31  ;;  %v2031_v31 = vadd.f32 %v5871_v39, %v5825_v36  ;;  %v2625_v36 = vadd.f32 %v5915_v13, %v5616_v43 }
 0x441   :  { %v5944_v22 = vrot.slane %v43_v46, %v7255_v28  ;;  %v5954_v45 = vadd.f32 %v5926_v54, %v5662_v20  ;;  %v1914_v20 = vmax.f32 %v1881_v1, %v1898_v60 }
 0x442   :  { %v2048_v43 = vmul.f32 0.2, %v2031_v31 }
 0x443   :  { %v5920_v55 = vpop.permute.xlu0 %2163  ;;  %3603 = vset.pattern.permute.xlu1 %v7190_v24  ;;  %v5931_v19 = vpop.permute.xlu1 %2431  ;;  %v2775_v25 = vadd.f32 %v5944_v22, %v5634_v18  ;;  %v2642_v24 = vmul.f32 0.2, %v2625_v36  ;;  %v2942_v48 = vmul.f32 0.2, %v5954_v45 }
 0x444   :  { %7252 = vst [vmem:[#allocation11_spill] sm:$0xff] %v5920_v55  ;;  %7254 = vst [vmem:[#allocation13_spill] sm:$0xff] %v5931_v19  ;;  %v2181_v55 = vadd.f32 %v5888_v41, %v2136_v59  ;;  %2901 = vperm.xlu1 %3603, %v7172_v42   ;;  %v2331_v59 = vadd.f32 %v5898_v58, %v2286_v7  ;;  %v2225_v42 = vmul.f32 %v5938_v50, %v2208_v37 }
 0x445   :  { %v5964_v7 = vadd.f32 %v5878_v52, %v5492_v3  ;;  %v2064_v33 = vmax.f32 %v2031_v31, %v2048_v43  ;;  %v2026_v3 = vadd.f32 %v5871_v39, %v5603_v12  ;;  %v2792_v1 = vmul.f32 0.2, %v2775_v25 }
 0x446   :  { %v2198_v6 = vmul.f32 0.2, %v2181_v55  ;;  %v2241_v18 = vadd.f32 %v2225_v42, %v2091_v40  ;;  %v2348_v61 = vmul.f32 0.2, %v2331_v59  ;;  %v1931_v43 = vmul.f32 %v5922_v11, %v1914_v20 }
 0x447   :  { %v1893_v31 = vmul.f32 0.2, %v5964_v7  ;;  %v5988_v42 = vstv %s5940_s4  ;;  %v7259_v12 = vmov 8   ;;  %v2081_v19 = vmul.f32 %v5909_v51, %v2064_v33 }
 0x448   :  { %v2412_v28 = vpop.permute.xlu0 %2411  ;;  %3604 = vset.pattern.permute.xlu1 %v7191_v16  ;;  %v5960_v46 = vpop.permute.xlu1 %1989  ;;  %v2658_v16 = vmax.f32 %v2625_v36, %v2642_v24  ;;  %v2214_v0 = vmax.f32 %v2181_v55, %v2198_v6  ;;  %v2958_v36 = vmax.f32 %v5954_v45, %v2942_v48  ;;  %v2043_v6 = vmul.f32 0.2, %v2026_v3 }
 0x449   :  { %v2475_v4 = vadd.f32 %v5948_v34, %v2412_v28  ;;  %7257 = vst [vmem:[#allocation5_spill] sm:$0xff] %v5960_v46  ;;  %2455 = vperm.xlu1 %3604, %v7176_v8   ;;  %v5976_v28 = vstv %s5928_s12  ;;  %v2375_v46 = vmul.f32 %v5967_v23, %v2358_v17  ;;  %v2364_v17 = vmax.f32 %v2331_v59, %v2348_v61 }
 0x44a   :  { %v2326_v20 = vadd.f32 %v5898_v58, %v5763_v5  ;;  %v2231_v33 = vmul.f32 %v5938_v50, %v2214_v0  ;;  %v2097_v5 = vadd.f32 %v2081_v19, %v1931_v43  ;;  %v2059_v48 = vmax.f32 %v2026_v3, %v2043_v6  ;;  %v7264_v6 = vld [vmem:[#allocation48_spill] sm:$0xff] }
 0x44b   :  { %v2492_v37 = vmul.f32 0.2, %v2475_v4  ;;  %v2391_v24 = vadd.f32 %v2375_v46, %v2241_v18  ;;  %v2193_v46 = vmul.f32 0.2, %v2176_v53  ;;  %v6007_v18 = vstv %s5969_s13 }
 0x44c   :  { %v5980_v60 = vpop.permute.xlu0 %2423  ;;  %v5983_v40 = vpop.permute.xlu1 %1993  ;;  %v2381_v61 = vmul.f32 %v5967_v23, %v2364_v17  ;;  %v2247_v19 = vadd.f32 %v2231_v33, %v2097_v5 }
 0x44d   :  { %v2508_v14 = vmax.f32 %v2475_v4, %v2492_v37  ;;  %7258 = vst [vmem:[#allocation12_spill] sm:$0xff] %v5983_v40  ;;  %3605 = vset.pattern.permute.xlu1 %v7259_v12  ;;  %v2808_v4 = vmax.f32 %v2775_v25, %v2792_v1  ;;  %v2675_v37 = vmul.f32 %v5988_v42, %v2658_v16  ;;  %v6012_v25 = vstv %s5972_s14 }
 0x44e   :  { %1867 = vperm.xlu1 %3605, %v7197_v38   ;;  %v2975_v17 = vmul.f32 %v6012_v25, %v2958_v36  ;;  %v2209_v40 = vmax.f32 %v2176_v53, %v2193_v46  ;;  %v2397_v10 = vadd.f32 %v2381_v61, %v2247_v19  ;;  %v2076_v53 = vmul.f32 %v5909_v51, %v2059_v48 }
 0x44f   :  { %v2525_v55 = vmul.f32 %v5976_v28, %v2508_v14  ;;  %v6004_v14 = vadd.f32 %v5878_v52, %v5508_v49  ;;  %v2825_v1 = vmul.f32 %v6007_v18, %v2808_v4  ;;  %v2029_v49 = vadd.f32 %v5871_v39, %v5674_v62  ;;  %v7265_v62 = vld [vmem:[#allocation43_spill] sm:$0xff] }
 0x450   :  { %v2436_v2 = vpop.permute.xlu0 %2435  ;;  %v2179_v4 = vadd.f32 %v5888_v41, %v7264_v6  ;;  %v2329_v61 = vadd.f32 %v5898_v58, %v5775_v35  ;;  %v2226_v48 = vmul.f32 %v5938_v50, %v2209_v40  ;;  %v7273_v35 = vld [vmem:[#allocation47_spill] sm:$0xff]  ;;  %v2479_v40 = vadd.f32 %v5948_v34, %v5805_v44 }
 0x451   :  { %v2541_v12 = vadd.f32 %v2525_v55, %v2391_v24  ;;  %v2481_v59 = vadd.f32 %v5948_v34, %v2436_v2  ;;  %v6009_v45 = vpop.permute.xlu1 %2585  ;;  %v2343_v24 = vmul.f32 0.2, %v2326_v20  ;;  %v7261_v55 = vld [vmem:[#allocation20_spill] sm:$0xff]  ;;  %v2046_v36 = vmul.f32 0.2, %v2029_v49 }
 0x452   :  { %7260 = vst [vmem:[#allocation15_spill] sm:$0xff] %v6009_v45  ;;  %3606 = vset.pattern.permute.xlu1 %v7193_v47  ;;  %v1909_v45 = vmax.f32 %v5964_v7, %v1893_v31  ;;  %v7263_v47 = vld [vmem:[#allocation75_spill] sm:$0xff] }
 0x453   :  { %v2498_v16 = vmul.f32 0.2, %v2481_v59  ;;  %v2691_v0 = vadd.f32 %v2675_v37, %v2541_v12  ;;  %2013 = vperm.xlu1 %3606, %v7261_v55   ;;  %v2476_v3 = vadd.f32 %v5948_v34, %v7263_v47  ;;  %v6030_v12 = vadd.f32 %v5878_v52, %v7265_v62 }
 0x454   :  { %v6020_v2 = vpop.permute.xlu0 %2447  ;;  %v2359_v33 = vmax.f32 %v2326_v20, %v2343_v24  ;;  %v1926_v5 = vmul.f32 %v5922_v11, %v1909_v45  ;;  %v2196_v24 = vmul.f32 0.2, %v2179_v4  ;;  %v2062_v62 = vmax.f32 %v2029_v49, %v2046_v36 }
 0x455   :  { %7262 = vst [vmem:[#allocation17_spill] sm:$0xff] %v6020_v2  ;;  %v2514_v43 = vmax.f32 %v2481_v59, %v2498_v16  ;;  %v2841_v37 = vadd.f32 %v2825_v1, %v2691_v0  ;;  %v1896_v2 = vmul.f32 0.2, %v6004_v14  ;;  %v7268_v16 = vld [vmem:[#allocation69_spill] sm:$0xff]  ;;  %v2493_v20 = vmul.f32 0.2, %v2476_v3 }
 0x456   :  { %v6034_v31 = vpop.permute.xlu1 %2139  ;;  %v2626_v0 = vadd.f32 %v5915_v13, %v7268_v16  ;;  %v6054_v45 = vmul.f32 0.2, %v6030_v12  ;;  %v2028_v36 = vadd.f32 %v5871_v39, %v5816_v26 }
 0x457   :  { %v2531_v7 = vmul.f32 %v5976_v28, %v2514_v43  ;;  %7266 = vst [vmem:[#allocation67_spill] sm:$0xff] %v6034_v31  ;;  %3608 = vset.pattern.permute.xlu1 %v7194_v29  ;;  %v2991_v46 = vadd.f32 %v2975_v17, %v2841_v37  ;;  %v7272_v17 = vld [vmem:[#allocation54_spill] sm:$0xff]  ;;  %v1912_v6 = vmax.f32 %v6004_v14, %v1896_v2 }
 0x458   :  { %v6038_v59 = vpop.permute.xlu0 %2459  ;;  %2605 = vperm.xlu1 %3608, %v7176_v8   ;;  %v6058_v47 = vadd.f32 %v5878_v52, %v7272_v17  ;;  %v2092_v37 = vadd.f32 %v2076_v53, %v1926_v5  ;;  %v2643_v19 = vmul.f32 0.2, %v2626_v0  ;;  %v2346_v17 = vmul.f32 0.2, %v2329_v61 }
 0x459   :  { %7267 = vst [vmem:[#allocation20_spill] sm:$0xff] %v6038_v59  ;;  %v6045_v1 = vadd.f32 %v2531_v7, %v2397_v10  ;;  %v6051_v43 = vsel %vm5023_vm12, %v2991_v46, -1e+30  ;;  %v6062_v10 = vadd.f32 %v5878_v52, %v7273_v35  ;;  %v2376_v7 = vmul.f32 %v5967_v23, %v2359_v33 }
 0x45a   :  { %7271 = vst [vmem:[#allocation48_spill] sm:$0xff] %v6051_v43  ;;  %3024 = vmax.xlane.f32.xlu0 %v6051_v43  ;;  %v2629_v35 = vadd.f32 %v5915_v13, %v5840_v21  ;;  %v2242_v44 = vadd.f32 %v2226_v48, %v2092_v37  ;;  %v2509_v59 = vmax.f32 %v2476_v3, %v2493_v20  ;;  %v2496_v53 = vmul.f32 0.2, %v2479_v40  ;;  %v7276_v48 = vld [vmem:[#allocation45_spill] sm:$0xff] }
 0x45b   :  { %7269 = vst [vmem:[#allocation75_spill] sm:$0xff] %v6045_v1  ;;  %v6069_v46 = vpop.permute.xlu1 %2731  ;;  %v2212_v43 = vmax.f32 %v2179_v4, %v2196_v24  ;;  %v2926_v14 = vadd.f32 %v5926_v54, %v5783_v9  ;;  %v1895_v2 = vmul.f32 0.2, %v6062_v10  ;;  %v6084_v33 = vmul.f32 0.2, %v6058_v47 }
 0x45c   :  { %v6071_v16 = vpop.permute.xlu0 %2467  ;;  %2609 = vperm.xlu1 %3608, %v7173_v30   ;;  %v1929_v21 = vmul.f32 %v5922_v11, %v1912_v6  ;;  %v2079_v3 = vmul.f32 %v5909_v51, %v2062_v62  ;;  %v2392_v4 = vadd.f32 %v2376_v7, %v2242_v44  ;;  %v2659_v9 = vmax.f32 %v2626_v0, %v2643_v19  ;;  %v7277_v7 = vld [vmem:[#allocation41_spill] sm:$0xff] }
 0x45d   :  { %7274 = vst [vmem:[#allocation43_spill] sm:$0xff] %v6071_v16  ;;  %v6092_v20 = vadd.f32 %v5888_v41, %v7276_v48  ;;  %v2362_v24 = vmax.f32 %v2329_v61, %v2346_v17  ;;  %v2646_v37 = vmul.f32 0.2, %v2629_v35  ;;  %v2526_v49 = vmul.f32 %v5976_v28, %v2509_v59 }
 0x45e   :  { %v2229_v16 = vmul.f32 %v5938_v50, %v2212_v43  ;;  %v2943_v6 = vmul.f32 0.2, %v2926_v14  ;;  %v1911_v0 = vmax.f32 %v6062_v10, %v1895_v2  ;;  %v6102_v19 = vadd.f32 %v5878_v52, %v7277_v7 }
 0x45f   :  { %v6088_v5 = vpop.permute.xlu1 %2735  ;;  %v2512_v61 = vmax.f32 %v2479_v40, %v2496_v53  ;;  %v2045_v17 = vmul.f32 0.2, %v2028_v36  ;;  %v2095_v44 = vadd.f32 %v2079_v3, %v1929_v21  ;;  %v2030_v59 = vadd.f32 %v5871_v39, %v5814_v15 }
 0x460   :  { %7275 = vst [vmem:[#allocation69_spill] sm:$0xff] %v6088_v5  ;;  %3610 = vset.pattern.permute.xlu1 %v7196_v27  ;;  %v2542_v27 = vadd.f32 %v2526_v49, %v2392_v4  ;;  %v2676_v43 = vmul.f32 %v5988_v42, %v2659_v9  ;;  %v2379_v1 = vmul.f32 %v5967_v23, %v2362_v24 }
 0x461   :  { %v2716_v26 = vpop.permute.xlu0 %2715  ;;  %2167 = vperm.xlu1 %3610, %v7197_v38   ;;  %v2662_v5 = vmax.f32 %v2629_v35, %v2646_v37  ;;  %v2245_v7 = vadd.f32 %v2229_v16, %v2095_v44  ;;  %v2959_v31 = vmax.f32 %v2926_v14, %v2943_v6  ;;  %v6115_v15 = vadd.f32 %v5898_v58, %v5770_v57 }
 0x462   :  { %v2776_v62 = vadd.f32 %v5944_v22, %v2716_v26  ;;  %v2195_v26 = vmul.f32 0.2, %v6092_v20  ;;  %v2529_v49 = vmul.f32 %v5976_v28, %v2512_v61  ;;  %v2061_v21 = vmax.f32 %v2028_v36, %v2045_v17 }
 0x463   :  { %v2180_v35 = vadd.f32 %v5888_v41, %v5882_v56  ;;  %v2047_v3 = vmul.f32 0.2, %v2030_v59  ;;  %v2692_v4 = vadd.f32 %v2676_v43, %v2542_v27  ;;  %v1928_v9 = vmul.f32 %v5922_v11, %v1911_v0  ;;  %v7278_v43 = vld [vmem:[#allocation16_spill] sm:$0xff] }
 0x464   :  { %v2793_v48 = vmul.f32 0.2, %v2776_v62  ;;  %v6109_v10 = vpop.permute.xlu1 %2293  ;;  %v2395_v24 = vadd.f32 %v2379_v1, %v2245_v7  ;;  %v2679_v37 = vmul.f32 %v5988_v42, %v2662_v5  ;;  %v2478_v57 = vadd.f32 %v5948_v34, %v5980_v60 }
 0x465   :  { %v2728_v2 = vpop.permute.xlu0 %2727  ;;  %3611 = vset.pattern.permute.xlu1 %v7198_v63  ;;  %v1897_v36 = vmul.f32 0.2, %v6102_v19  ;;  %v2976_v61 = vmul.f32 %v6012_v25, %v2959_v31  ;;  %v2211_v17 = vmax.f32 %v6092_v20, %v2195_v26  ;;  %v2078_v0 = vmul.f32 %v5909_v51, %v2061_v21  ;;  %v7279_v31 = vld [vmem:[#allocation13_spill] sm:$0xff] }
 0x466   :  { %v2809_v40 = vmax.f32 %v2776_v62, %v2793_v48  ;;  %v2779_v53 = vadd.f32 %v5944_v22, %v2728_v2  ;;  %2755 = vperm.xlu1 %3611, %v7176_v8   ;;  %v2545_v44 = vadd.f32 %v2529_v49, %v2395_v24  ;;  %v2197_v1 = vmul.f32 0.2, %v2180_v35 }
 0x467   :  { %v2345_v5 = vmul.f32 0.2, %v6115_v15  ;;  %v2063_v60 = vmax.f32 %v2030_v59, %v2047_v3  ;;  %v2330_v2 = vadd.f32 %v5898_v58, %v7278_v43  ;;  %v2480_v20 = vadd.f32 %v5948_v34, %v7279_v31 }
 0x468   :  { %v2826_v16 = vmul.f32 %v6007_v18, %v2809_v40  ;;  %v2796_v14 = vmul.f32 0.2, %v2779_v53  ;;  %v2495_v26 = vmul.f32 0.2, %v2478_v57  ;;  %v2695_v40 = vadd.f32 %v2679_v37, %v2545_v44 }
 0x469   :  { %v6126_v6 = vpop.permute.xlu0 %2739  ;;  %v2882_v62 = vpop.permute.xlu1 %2881  ;;  %v7283_v3 = vmax.f32 %v6030_v12, %v6054_v45  ;;  %v1910_v37 = vmax.f32 %v6058_v47, %v6084_v33  ;;  %v2080_v12 = vmul.f32 %v5909_v51, %v2063_v60  ;;  %v2228_v45 = vmul.f32 %v5938_v50, %v2211_v17  ;;  %v7288_v33 = vld [vmem:[#allocation72_spill] sm:$0xff] }
 0x46a   :  { %v2812_v56 = vmax.f32 %v2779_v53, %v2796_v14  ;;  %v2842_v8 = vadd.f32 %v2826_v16, %v2692_v4  ;;  %3612 = vset.pattern.permute.xlu1 %v7188_v32  ;;  %v1913_v32 = vmax.f32 %v6102_v19, %v1897_v36  ;;  %v7280_v53 = vld [vmem:[#allocation73_spill] sm:$0xff]  ;;  %v2094_v14 = vadd.f32 %v2078_v0, %v1928_v9  ;;  %v7285_v36 = vld [vmem:[#allocation46_spill] sm:$0xff]  ;;  %v7289_v60 = vld [vmem:[#allocation80_spill] sm:$0xff] }
 0x46b   :  { %2313 = vperm.xlu1 %3612, %v7261_v55   ;;  %v2628_v59 = vadd.f32 %v5915_v13, %v7280_v53  ;;  %v6153_v16 = vmul.f32 %v5922_v11, %v7283_v3  ;;  %v2213_v4 = vmax.f32 %v2180_v35, %v2197_v1  ;;  %v2347_v35 = vmul.f32 0.2, %v2330_v2  ;;  %v7287_v1 = vld [vmem:[#allocation52_spill] sm:$0xff] }
 0x46c   :  { %v2829_v27 = vmul.f32 %v6007_v18, %v2812_v56  ;;  %v2992_v48 = vadd.f32 %v2976_v61, %v2842_v8  ;;  %v1882_v56 = vadd.f32 %v5878_v52, %v7285_v36  ;;  %v2361_v8 = vmax.f32 %v6115_v15, %v2345_v5 }
 0x46d   :  { %v6140_v7 = vpop.permute.xlu0 %2751  ;;  %v2497_v9 = vmul.f32 0.2, %v2480_v20  ;;  %v2511_v61 = vmax.f32 %v2478_v57, %v2495_v26  ;;  %v1930_v0 = vmul.f32 %v5922_v11, %v1913_v32  ;;  %v2024_v47 = vadd.f32 %v5871_v39, %v7287_v1  ;;  %v7290_v26 = vld [vmem:[#allocation49_spill] sm:$0xff] }
 0x46e   :  { %v6147_v21 = vsel %vm5275_vm7, %v2992_v48, -1e+30  ;;  %v6155_v24 = vpop.permute.xlu1 %2439  ;;  %v6158_v19 = vadd.f32 %v2829_v27, %v2695_v40  ;;  %v2630_v27 = vadd.f32 %v5915_v13, %v7288_v33  ;;  %v2645_v15 = vmul.f32 0.2, %v2628_v59 }
 0x46f   :  { %7282 = vst [vmem:[#allocation83_spill] sm:$0xff] %v6147_v21  ;;  %3026 = vmax.xlane.f32.xlu0 %v6147_v21  ;;  %2317 = vperm.xlu1 %3612, %v7197_v38   ;;  %v2244_v5 = vadd.f32 %v2228_v45, %v2094_v14  ;;  %v2778_v48 = vadd.f32 %v5944_v22, %v7289_v60  ;;  %v1899_v31 = vmul.f32 0.2, %v1882_v56  ;;  %v7291_v49 = vmov 15  }
 0x470   :  { %7284 = vst [vmem:[#allocation54_spill] sm:$0xff] %v6158_v19  ;;  %v2230_v17 = vmul.f32 %v5938_v50, %v2213_v4  ;;  %v2780_v57 = vadd.f32 %v5944_v22, %v6069_v46  ;;  %v1883_v40 = vadd.f32 %v5878_v52, %v7290_v26  ;;  %v2378_v32 = vmul.f32 %v5967_v23, %v2361_v8 }
 0x471   :  { %v6168_v44 = vpop.permute.xlu0 %2759  ;;  %v2096_v53 = vadd.f32 %v2080_v12, %v1930_v0  ;;  %v2363_v3 = vmax.f32 %v2330_v2, %v2347_v35  ;;  %v2513_v14 = vmax.f32 %v2480_v20, %v2497_v9  ;;  %v2528_v36 = vmul.f32 %v5976_v28, %v2511_v61  ;;  %v7293_v35 = vld [vmem:[#allocation77_spill] sm:$0xff] }
 0x472   :  { %7286 = vst [vmem:[#allocation47_spill] sm:$0xff] %v6168_v44  ;;  %v6180_v43 = vpop.permute.xlu1 %2443  ;;  %v2930_v4 = vadd.f32 %v5926_v54, %v2882_v62  ;;  %v6192_v45 = vmul.f32 %v5922_v11, %v1910_v37  ;;  %v2041_v1 = vmul.f32 0.2, %v2024_v47  ;;  %v2647_v33 = vmul.f32 0.2, %v2630_v27  ;;  %v7294_v62 = vld [vmem:[#allocation51_spill] sm:$0xff] }
 0x473   :  { %3613 = vset.pattern.permute.xlu1 %v7291_v49  ;;  %v2661_v60 = vmax.f32 %v2628_v59, %v2645_v15  ;;  %v2795_v8 = vmul.f32 0.2, %v2778_v48  ;;  %v2246_v12 = vadd.f32 %v2230_v17, %v2096_v53  ;;  %v2394_v0 = vadd.f32 %v2378_v32, %v2244_v5 }
 0x474   :  { %2909 = vperm.xlu1 %3613, %v7173_v30   ;;  %v2797_v26 = vmul.f32 0.2, %v2780_v57  ;;  %v1915_v2 = vmax.f32 %v1882_v56, %v1899_v31  ;;  %v1900_v20 = vmul.f32 0.2, %v1883_v40  ;;  %v6196_v9 = vadd.f32 %v5878_v52, %v7293_v35  ;;  %v7296_v56 = vld [vmem:[#allocation64_spill] sm:$0xff] }
 0x475   :  { %v6189_v46 = vpop.permute.xlu0 %2763  ;;  %v2174_v30 = vadd.f32 %v5888_v41, %v7294_v62  ;;  %v2380_v37 = vmul.f32 %v5967_v23, %v2363_v3  ;;  %v2530_v21 = vmul.f32 %v5976_v28, %v2513_v14  ;;  %v2544_v59 = vadd.f32 %v2528_v36, %v2394_v0 }
 0x476   :  { %7292 = vst [vmem:[#allocation45_spill] sm:$0xff] %v6189_v46  ;;  %v2947_v15 = vmul.f32 0.2, %v2930_v4  ;;  %v7295_v17 = vmov 12   ;;  %v2057_v5 = vmax.f32 %v2024_v47, %v2041_v1  ;;  %v1884_v31 = vadd.f32 %v5878_v52, %v7296_v56 }
 0x477   :  { %v6200_v61 = vpop.permute.xlu1 %2001  ;;  %v2663_v32 = vmax.f32 %v2630_v27, %v2647_v33  ;;  %v2678_v53 = vmul.f32 %v5988_v42, %v2661_v60  ;;  %v2811_v62 = vmax.f32 %v2778_v48, %v2795_v8  ;;  %v2396_v46 = vadd.f32 %v2380_v37, %v2246_v12  ;;  %v7297_v8 = vld [vmem:[#allocation87_spill] sm:$0xff]  ;;  %v7298_v12 = vld [vmem:[#allocation5_spill] sm:$0xff]  ;;  %v7299_v37 = vld [vmem:[#allocation76_spill] sm:$0xff] }
 0x478   :  { %3614 = vset.pattern.permute.xlu1 %v7295_v17  ;;  %v2813_v44 = vmax.f32 %v2780_v57, %v2797_v26  ;;  %v6211_v14 = vmul.f32 %v5922_v11, %v1915_v2  ;;  %v1916_v36 = vmax.f32 %v1883_v40, %v1900_v20  ;;  %v6214_v47 = vmul.f32 0.2, %v6196_v9 }
 0x479   :  { %2463 = vperm.xlu1 %3614, %v7261_v55   ;;  %v2191_v1 = vmul.f32 0.2, %v2174_v30  ;;  %v2546_v0 = vadd.f32 %v2530_v21, %v2396_v46  ;;  %v2963_v27 = vmax.f32 %v2930_v4, %v2947_v15  ;;  %v2694_v17 = vadd.f32 %v2678_v53, %v2544_v59  ;;  %v7300_v15 = vld [vmem:[#allocation67_spill] sm:$0xff] }
 0x47a   :  { %v2874_v35 = vpop.permute.xlu0 %2873  ;;  %v2074_v56 = vmul.f32 %v5909_v51, %v2057_v5  ;;  %v1901_v48 = vmul.f32 0.2, %v1884_v31  ;;  %v2474_v57 = vadd.f32 %v5948_v34, %v7297_v8  ;;  %v2032_v26 = vadd.f32 %v5871_v39, %v7298_v12 }
 0x47b   :  { %v2928_v3 = vadd.f32 %v5926_v54, %v2874_v35  ;;  %v2680_v40 = vmul.f32 %v5988_v42, %v2663_v32  ;;  %v2828_v2 = vmul.f32 %v6007_v18, %v2811_v62  ;;  %v2830_v21 = vmul.f32 %v6007_v18, %v2813_v44 }
 0x47c   :  { %v2590_v60 = vpop.permute.xlu1 %2589  ;;  %v6227_v46 = vmul.f32 %v5922_v11, %v1916_v36  ;;  %v2207_v20 = vmax.f32 %v2174_v30, %v2191_v1  ;;  %v2027_v59 = vadd.f32 %v5871_v39, %v7299_v37  ;;  %v2182_v5 = vadd.f32 %v5888_v41, %v7300_v15  ;;  %v7301_v1 = vld [vmem:[#allocation40_spill] sm:$0xff]  ;;  %v7304_v37 = vld [vmem:[#allocation79_spill] sm:$0xff] }
 0x47d   :  { %v2945_v33 = vmul.f32 0.2, %v2928_v3  ;;  %3616 = vset.pattern.permute.xlu1 %v7194_v29  ;;  %v2844_v32 = vadd.f32 %v2828_v2, %v2694_v17  ;;  %v2696_v53 = vadd.f32 %v2680_v40, %v2546_v0  ;;  %v2980_v35 = vmul.f32 %v6012_v25, %v2963_v27  ;;  %v7302_v27 = vld [vmem:[#allocation62_spill] sm:$0xff] }
 0x47e   :  { %2613 = vperm.xlu1 %3616, %v7261_v55   ;;  %v1917_v62 = vmax.f32 %v1884_v31, %v1901_v48  ;;  %v2049_v36 = vmul.f32 0.2, %v2032_v26  ;;  %v2090_v30 = vadd.f32 %v2074_v56, %v6153_v16  ;;  %v2624_v8 = vadd.f32 %v5915_v13, %v7301_v1  ;;  %v7303_v31 = vld [vmem:[#allocation82_spill] sm:$0xff] }
 0x47f   :  { %v2961_v4 = vmax.f32 %v2928_v3, %v2945_v33  ;;  %v2491_v3 = vmul.f32 0.2, %v2474_v57  ;;  %v2224_v0 = vmul.f32 %v5938_v50, %v2207_v20  ;;  %v2044_v17 = vmul.f32 0.2, %v2027_v59 }
 0x480   :  { %v2324_v40 = vadd.f32 %v5898_v58, %v7302_v27  ;;  %v2199_v2 = vmul.f32 0.2, %v2182_v5  ;;  %v6246_v48 = vadd.f32 %v5898_v58, %v7303_v31  ;;  %v2034_v16 = vadd.f32 %v5871_v39, %v7304_v37  ;;  %v7307_v31 = vld [vmem:[#allocation57_spill] sm:$0xff] }
 0x481   :  { %v2978_v29 = vmul.f32 %v6012_v25, %v2961_v4  ;;  %v2148_v33 = vpop.permute.xlu1 %2147  ;;  %v2846_v4 = vadd.f32 %v2830_v21, %v2696_v53  ;;  %v6255_v21 = vmul.f32 %v5922_v11, %v1917_v62  ;;  %v2507_v20 = vmax.f32 %v2474_v57, %v2491_v3 }
 0x482   :  { %2617 = vperm.xlu1 %3616, %v7197_v38   ;;  %v2482_v53 = vadd.f32 %v5948_v34, %v6155_v24  ;;  %v2641_v27 = vmul.f32 0.2, %v2624_v8  ;;  %v6264_v37 = vadd.f32 %v5915_v13, %v7307_v31  ;;  %v2184_v62 = vadd.f32 %v5888_v41, %v2148_v33  ;;  %v7311_v33 = vld [vmem:[#allocation18_spill] sm:$0xff] }
 0x483   :  { %v2994_v12 = vadd.f32 %v2978_v29, %v2844_v32  ;;  %v2996_v29 = vadd.f32 %v2980_v35, %v2846_v4  ;;  %v2065_v32 = vmax.f32 %v2032_v26, %v2049_v36  ;;  %v2240_v57 = vadd.f32 %v2224_v0, %v2090_v30 }
 0x484   :  { %v2341_v26 = vmul.f32 0.2, %v2324_v40  ;;  %v2215_v3 = vmax.f32 %v2182_v5, %v2199_v2  ;;  %v2632_v24 = vadd.f32 %v5915_v13, %v2590_v60  ;;  %v2060_v36 = vmax.f32 %v2027_v59, %v2044_v17  ;;  %v7312_v2 = vld [vmem:[#allocation50_spill] sm:$0xff] }
 0x485   :  { %v6252_v15 = vsel %vm5066_vm13, %v2994_v12, -1e+30  ;;  %v6259_v1 = vpop.permute.xlu1 %2151  ;;  %v7308_v12 = vld [vmem:[#allocation60_spill] sm:$0xff]  ;;  %v2349_v4 = vmul.f32 0.2, %v6246_v48  ;;  %v2082_v5 = vmul.f32 %v5909_v51, %v2065_v32 }
 0x486   :  { %7306 = vst [vmem:[#allocation41_spill] sm:$0xff] %v6252_v15  ;;  %3030 = vmax.xlane.f32.xlu0 %v6252_v15  ;;  %v2774_v35 = vadd.f32 %v5944_v22, %v7308_v12  ;;  %3618 = vset.pattern.permute.xlu1 %v7198_v63  ;;  %v2051_v56 = vmul.f32 0.2, %v2034_v16  ;;  %v6275_v44 = vsel %vm5090_vm14, %v2996_v29, -1e+30  ;;  %v6278_v12 = vmul.f32 %v5976_v28, %v2507_v20 }
 0x487   :  { %2767 = vperm.xlu1 %3618, %v7197_v38   ;;  %7310 = vst [vmem:[#allocation16_spill] sm:$0xff] %v6275_v44  ;;  %v2177_v63 = vadd.f32 %v5888_v41, %v7311_v33  ;;  %v2499_v30 = vmul.f32 0.2, %v2482_v53  ;;  %v2657_v38 = vmax.f32 %v2624_v8, %v2641_v27  ;;  %v6285_v60 = vmul.f32 0.2, %v6264_v37 }
 0x488   :  { %v2791_v59 = vmul.f32 0.2, %v2774_v35  ;;  %v2201_v0 = vmul.f32 0.2, %v2184_v62  ;;  %v2327_v29 = vadd.f32 %v5898_v58, %v7312_v2  ;;  %v2357_v20 = vmax.f32 %v2324_v40, %v2341_v26 }
 0x489   :  { %v2232_v31 = vmul.f32 %v5938_v50, %v2215_v3  ;;  %v2649_v33 = vmul.f32 0.2, %v2632_v24  ;;  %v2077_v32 = vmul.f32 %v5909_v51, %v2060_v36  ;;  %v2365_v8 = vmax.f32 %v6246_v48, %v2349_v4 }
 0x48a   :  { %3034 = vmax.xlane.f32.xlu0 %v6275_v44  ;;  %v6287_v17 = vpop.permute.xlu1 %2743  ;;  %v2067_v27 = vmax.f32 %v2034_v16, %v2051_v56  ;;  %v7313_v44 = vld [vmem:[#allocation17_spill] sm:$0xff]  ;;  %v2194_v52 = vmul.f32 0.2, %v2177_v63  ;;  %v2098_v19 = vadd.f32 %v2082_v5, %v6211_v14  ;;  %v2782_v40 = vadd.f32 %v5944_v22, %v6126_v6 }
 0x48b   :  { %3619 = vset.pattern.permute.xlu1 %v7291_v49  ;;  %v2484_v15 = vadd.f32 %v5948_v34, %v7313_v44  ;;  %v2515_v26 = vmax.f32 %v2482_v53, %v2499_v30  ;;  %v2674_v3 = vmul.f32 %v5988_v42, %v2657_v38  ;;  %v2807_v36 = vmax.f32 %v2774_v35, %v2791_v59 }
 0x48c   :  { %2913 = vperm.xlu1 %3619, %v7261_v55   ;;  %v2217_v48 = vmax.f32 %v2184_v62, %v2201_v0  ;;  %v2344_v16 = vmul.f32 0.2, %v2327_v29  ;;  %v2374_v4 = vmul.f32 %v5967_v23, %v2357_v20  ;;  %v2248_v44 = vadd.f32 %v2232_v31, %v2098_v19  ;;  %v7315_v19 = vld [vmem:[#allocation63_spill] sm:$0xff] }
 0x48d   :  { %v2665_v56 = vmax.f32 %v2632_v24, %v2649_v33  ;;  %v2093_v2 = vadd.f32 %v2077_v32, %v6192_v45  ;;  %v2084_v14 = vmul.f32 %v5909_v51, %v2067_v27  ;;  %v2501_v5 = vmul.f32 0.2, %v2484_v15  ;;  %v7316_v27 = vld [vmem:[#allocation81_spill] sm:$0xff] }
 0x48e   :  { %v7314_v53 = vmov 0   ;;  %v2382_v30 = vmul.f32 %v5967_v23, %v2365_v8  ;;  %v2210_v38 = vmax.f32 %v2177_v63, %v2194_v52  ;;  %v2799_v35 = vmul.f32 0.2, %v2782_v40 }
 0x48f   :  { %v2298_v55 = vpop.permute.xlu1 %2297  ;;  %v2532_v62 = vmul.f32 %v5976_v28, %v2515_v26  ;;  %v2824_v59 = vmul.f32 %v6007_v18, %v2807_v36  ;;  %v2477_v24 = vadd.f32 %v5948_v34, %v7315_v19  ;;  %v2234_v45 = vmul.f32 %v5938_v50, %v2217_v48 }
 0x490   :  { %v2334_v6 = vadd.f32 %v5898_v58, %v2298_v55  ;;  %3621 = vset.pattern.permute.xlu1 %v7314_v53  ;;  %v2360_v20 = vmax.f32 %v2327_v29, %v2344_v16  ;;  %v2390_v31 = vadd.f32 %v2374_v4, %v2240_v57  ;;  %v2398_v33 = vadd.f32 %v2382_v30, %v2248_v44  ;;  %v7317_v29 = vld [vmem:[#allocation74_spill] sm:$0xff] }
 0x491   :  { %v2682_v32 = vmul.f32 %v5988_v42, %v2665_v56  ;;  %v2924_v8 = vadd.f32 %v5926_v54, %v7316_v27  ;;  %v2100_v52 = vadd.f32 %v2084_v14, %v6255_v21  ;;  %v2517_v63 = vmax.f32 %v2484_v15, %v2501_v5  ;;  %v7318_v5 = vld [vmem:[#allocation71_spill] sm:$0xff]  ;;  %v7320_v27 = vld [vmem:[#allocation12_spill] sm:$0xff] }
 0x492   :  { %v2351_v0 = vmul.f32 0.2, %v2334_v6  ;;  %v2227_v36 = vmul.f32 %v5938_v50, %v2210_v38  ;;  %v2815_v53 = vmax.f32 %v2782_v40, %v2799_v35  ;;  %v2548_v19 = vadd.f32 %v2532_v62, %v2398_v33  ;;  %v7319_v35 = vld [vmem:[#allocation8_spill] sm:$0xff] }
 0x493   :  { %v2494_v49 = vmul.f32 0.2, %v2477_v24  ;;  %v2777_v57 = vadd.f32 %v5944_v22, %v7317_v29  ;;  %v2250_v16 = vadd.f32 %v2234_v45, %v2100_v52  ;;  %v2377_v44 = vmul.f32 %v5967_v23, %v2360_v20 }
 0x494   :  { %v2367_v26 = vmax.f32 %v2334_v6, %v2351_v0  ;;  %v2890_v55 = vpop.permute.xlu1 %2889  ;;  %v2698_v56 = vadd.f32 %v2682_v32, %v2548_v19  ;;  %v2540_v15 = vadd.f32 %v6278_v12, %v2390_v31  ;;  %v2941_v14 = vmul.f32 0.2, %v2924_v8  ;;  %v7321_v19 = vld [vmem:[#allocation65_spill] sm:$0xff] }
 0x495   :  { %v2932_v48 = vadd.f32 %v5926_v54, %v2890_v55  ;;  %v2927_v40 = vadd.f32 %v5926_v54, %v7318_v5  ;;  %v2534_v6 = vmul.f32 %v5976_v28, %v2517_v63  ;;  %v2335_v62 = vadd.f32 %v5898_v58, %v7319_v35 }
 0x496   :  { %v2384_v4 = vmul.f32 %v5967_v23, %v2367_v26  ;;  %v2243_v45 = vadd.f32 %v2227_v36, %v2093_v2  ;;  %v2832_v0 = vmul.f32 %v6007_v18, %v2815_v53  ;;  %v2510_v33 = vmax.f32 %v2477_v24, %v2494_v49  ;;  %v7322_v53 = vld [vmem:[#allocation6_spill] sm:$0xff] }
 0x497   :  { %v2949_v21 = vmul.f32 0.2, %v2932_v48  ;;  %v2794_v32 = vmul.f32 0.2, %v2777_v57  ;;  %v2035_v12 = vadd.f32 %v5871_v39, %v6200_v61  ;;  %v2033_v52 = vadd.f32 %v5871_v39, %v7320_v27 }
 0x498   :  { %v2400_v30 = vadd.f32 %v2384_v4, %v2250_v16  ;;  %v6329_v38 = vpop.permute.xlu1 %2893  ;;  %v2848_v26 = vadd.f32 %v2832_v0, %v2698_v56  ;;  %v2690_v55 = vadd.f32 %v2674_v3, %v2540_v15  ;;  %v6343_v2 = vadd.f32 %v5915_v13, %v7321_v19 }
 0x499   :  { %v2965_v20 = vmax.f32 %v2932_v48, %v2949_v21  ;;  %v2944_v36 = vmul.f32 0.2, %v2927_v40  ;;  %v2183_v49 = vadd.f32 %v5888_v41, %v7322_v53  ;;  %v2185_v61 = vadd.f32 %v5888_v41, %v6259_v1  ;;  %v2886_v53 = vpop.permute.xlu0 %2885 }
 0x49a   :  { %v6336_v31 = vadd.f32 %v2534_v6, %v2400_v30  ;;  %v2957_v24 = vmax.f32 %v2924_v8, %v2941_v14  ;;  %v2352_v48 = vmul.f32 0.2, %v2335_v62  ;;  %v2393_v29 = vadd.f32 %v2377_v44, %v2243_v45 }
 0x49b   :  { %v2982_v63 = vmul.f32 %v6012_v25, %v2965_v20  ;;  %v7323_v56 = vmax.f32 %v6196_v9, %v6214_v47  ;;  %v7324_v21 = vmax.f32 %v6264_v37, %v6285_v60  ;;  %v2527_v5 = vmul.f32 %v5976_v28, %v2510_v33  ;;  %v7326_v20 = vld [vmem:[#allocation10_spill] sm:$0xff] }
 0x49c   :  { %v2052_v6 = vmul.f32 0.2, %v2035_v12  ;;  %v2810_v30 = vmax.f32 %v2777_v57, %v2794_v32  ;;  %v2050_v1 = vmul.f32 0.2, %v2033_v52  ;;  %v2840_v14 = vadd.f32 %v2824_v59, %v2690_v55  ;;  %v7327_v32 = vld [vmem:[#allocation15_spill] sm:$0xff] }
 0x49d   :  { %v2452_v16 = vpop.permute.xlu1 %2451  ;;  %v2998_v4 = vadd.f32 %v2982_v63, %v2848_v26  ;;  %v1935_v3 = vmul.f32 %v5922_v11, %v7323_v56  ;;  %v2677_v15 = vmul.f32 %v5988_v42, %v7324_v21  ;;  %v6363_v35 = vmul.f32 0.2, %v6343_v2 }
 0x49e   :  { %v2960_v9 = vmax.f32 %v2927_v40, %v2944_v36  ;;  %v2200_v47 = vmul.f32 0.2, %v2183_v49  ;;  %v2202_v45 = vmul.f32 0.2, %v2185_v61  ;;  %v2368_v37 = vmax.f32 %v2335_v62, %v2352_v48 }
 0x49f   :  { %v6360_v44 = vsel %vm5106_vm15, %v2998_v4, -1e+30  ;;  %v2333_v60 = vadd.f32 %v5898_v58, %v6109_v10  ;;  %v2974_v57 = vmul.f32 %v6012_v25, %v2957_v24  ;;  %v2543_v0 = vadd.f32 %v2527_v5, %v2393_v29  ;;  %v7328_v29 = vld [vmem:[#allocation69_spill] sm:$0xff] }
 0x4a0   :  { %3038 = vmax.xlane.f32.xlu0 %v6360_v44  ;;  %v2929_v33 = vadd.f32 %v5926_v54, %v7326_v20  ;;  %v2631_v59 = vadd.f32 %v5915_v13, %v7327_v32  ;;  %v2068_v27 = vmax.f32 %v2035_v12, %v2052_v6  ;;  %v2485_v40 = vadd.f32 %v5948_v34, %v2452_v16 }
 0x4a1   :  { %v2827_v26 = vmul.f32 %v6007_v18, %v2810_v30  ;;  %v2066_v62 = vmax.f32 %v2033_v52, %v2050_v1  ;;  %v2483_v10 = vadd.f32 %v5948_v34, %v6180_v43  ;;  %v2990_v55 = vadd.f32 %v2974_v57, %v2840_v14  ;;  %v7330_v14 = vld [vmem:[#allocation19_spill] sm:$0xff] }
 0x4a2   :  { %v6374_v63 = vpop.permute.xlu1 %2005  ;;  %v2666_v19 = vmax.f32 %v6343_v2, %v6363_v35  ;;  %v2216_v36 = vmax.f32 %v2183_v49, %v2200_v47  ;;  %v2218_v24 = vmax.f32 %v2185_v61, %v2202_v45  ;;  %v2977_v48 = vmul.f32 %v6012_v25, %v2960_v9 }
 0x4a3   :  { %v2385_v12 = vmul.f32 %v5967_v23, %v2368_v37  ;;  %v2781_v16 = vadd.f32 %v5944_v22, %v7328_v29  ;;  %v2350_v4 = vmul.f32 0.2, %v2333_v60  ;;  %v2693_v56 = vadd.f32 %v2677_v15, %v2543_v0 }
 0x4a4   :  { %v2946_v52 = vmul.f32 0.2, %v2929_v33  ;;  %v2648_v21 = vmul.f32 0.2, %v2631_v59  ;;  %v2085_v43 = vmul.f32 %v5909_v51, %v2068_v27  ;;  %v2502_v5 = vmul.f32 0.2, %v2485_v40 }
 0x4a5   :  { %v2083_v6 = vmul.f32 %v5909_v51, %v2066_v62  ;;  %v2500_v30 = vmul.f32 0.2, %v2483_v10  ;;  %v2931_v49 = vadd.f32 %v5926_v54, %v2886_v53  ;;  %v6390_v8 = vsel %vm5201_vm5, %v2990_v55, -1e+30 }
 0x4a6   :  { %v6394_v9 = vadd.f32 %v5871_v39, %v7330_v14  ;;  %v2233_v15 = vmul.f32 %v5938_v50, %v2216_v36  ;;  %v2785_v47 = vadd.f32 %v5944_v22, %v6140_v7  ;;  %v2235_v45 = vmul.f32 %v5938_v50, %v2218_v24 }
 0x4a7   :  { %v2598_v61 = vpop.permute.xlu1 %2597  ;;  %v2798_v37 = vmul.f32 0.2, %v2781_v16  ;;  %v2366_v57 = vmax.f32 %v2333_v60, %v2350_v4  ;;  %v2783_v0 = vadd.f32 %v5944_v22, %v6287_v17  ;;  %v2843_v20 = vadd.f32 %v2827_v26, %v2693_v56 }
 0x4a8   :  { %v2962_v32 = vmax.f32 %v2929_v33, %v2946_v52  ;;  %v2664_v27 = vmax.f32 %v2631_v59, %v2648_v21  ;;  %v2101_v62 = vadd.f32 %v2085_v43, %v1935_v3  ;;  %v2518_v55 = vmax.f32 %v2485_v40, %v2502_v5  ;;  %v2898_v21 = vpop.permute.xlu0 %2897 }
 0x4a9   :  { %v2099_v53 = vadd.f32 %v2083_v6, %v6227_v46  ;;  %v2516_v29 = vmax.f32 %v2483_v10, %v2500_v30  ;;  %v2948_v1 = vmul.f32 0.2, %v2931_v49  ;;  %v2933_v36 = vadd.f32 %v5926_v54, %v6329_v38 }
 0x4aa   :  { %v2802_v14 = vmul.f32 0.2, %v2785_v47  ;;  %v2251_v24 = vadd.f32 %v2235_v45, %v2101_v62  ;;  %v2634_v60 = vadd.f32 %v5915_v13, %v2598_v61  ;;  %v2814_v17 = vmax.f32 %v2781_v16, %v2798_v37 }
 0x4ab   :  { %v2602_v7 = vpop.permute.xlu1 %2601  ;;  %v2383_v33 = vmul.f32 %v5967_v23, %v2366_v57  ;;  %v2800_v59 = vmul.f32 0.2, %v2783_v0  ;;  %v2993_v3 = vadd.f32 %v2977_v48, %v2843_v20  ;;  %v2681_v40 = vmul.f32 %v5988_v42, %v2664_v27 }
 0x4ac   :  { %v2635_v4 = vadd.f32 %v5915_v13, %v2602_v7  ;;  %v2535_v46 = vmul.f32 %v5976_v28, %v2518_v55  ;;  %v2979_v10 = vmul.f32 %v6012_v25, %v2962_v32  ;;  %v2249_v38 = vadd.f32 %v2233_v15, %v2099_v53  ;;  %v7333_v53 = vld [vmem:[#allocation54_spill] sm:$0xff]  ;;  %v7335_v7 = vld [vmem:[#allocation7_spill] sm:$0xff] }
 0x4ad   :  { %v2533_v56 = vmul.f32 %v5976_v28, %v2516_v29  ;;  %v2964_v52 = vmax.f32 %v2931_v49, %v2948_v1  ;;  %v2950_v43 = vmul.f32 0.2, %v2933_v36  ;;  %v2818_v5 = vmax.f32 %v2785_v47, %v2802_v14  ;;  %v7332_v47 = vld [vmem:[#allocation75_spill] sm:$0xff]  ;;  %v7334_v1 = vld [vmem:[#allocation78_spill] sm:$0xff] }
 0x4ae   :  { %v2652_v26 = vmul.f32 0.2, %v2635_v4  ;;  %v2401_v6 = vadd.f32 %v2385_v12, %v2251_v24  ;;  %v2651_v16 = vmul.f32 0.2, %v2634_v60  ;;  %v2831_v48 = vmul.f32 %v6007_v18, %v2814_v17 }
 0x4af   :  { %v2399_v45 = vadd.f32 %v2383_v33, %v2249_v38  ;;  %v2816_v37 = vmax.f32 %v2783_v0, %v2800_v59  ;;  %v6416_v20 = vsel %vm5246_vm6, %v2993_v3, -1e+30  ;;  %v2934_v15 = vadd.f32 %v5926_v54, %v2898_v21 }
 0x4b0   :  { %v2668_v30 = vmax.f32 %v2635_v4, %v2652_v26  ;;  %v2160_v61 = vpop.permute.xlu1 %2159  ;;  %3022 = vmax.xlane.f32.xlu1 %v6390_v8  ;;  %v2551_v49 = vadd.f32 %v2535_v46, %v2401_v6  ;;  %v2697_v12 = vadd.f32 %v2681_v40, %v7332_v47  ;;  %v2981_v62 = vmul.f32 %v6012_v25, %v2964_v52 }
 0x4b1   :  { %v2549_v27 = vadd.f32 %v2533_v56, %v2399_v45  ;;  %v2966_v55 = vmax.f32 %v2933_v36, %v2950_v43  ;;  %v2995_v29 = vadd.f32 %v2979_v10, %v7333_v53  ;;  %v1887_v0 = vadd.f32 %v7335_v7, %v7334_v1 }
 0x4b2   :  { %v2685_v32 = vmul.f32 %v5988_v42, %v2668_v30  ;;  %v2835_v14 = vmul.f32 %v6007_v18, %v2818_v5  ;;  %v2667_v24 = vmax.f32 %v2634_v60, %v2651_v16  ;;  %v2683_v17 = vmul.f32 %v5988_v42, %v2666_v19 }
 0x4b3   :  { %v2833_v33 = vmul.f32 %v6007_v18, %v2816_v37  ;;  %v2187_v36 = vadd.f32 %v5888_v41, %v2160_v61  ;;  %v2847_v3 = vadd.f32 %v2831_v48, %v2697_v12  ;;  %v2054_v40 = vmul.f32 0.2, %v6394_v9  ;;  %v7337_v48 = vld [vmem:[#allocation20_spill] sm:$0xff]  ;;  %v7342_v37 = vld [vmem:[#allocation66_spill] sm:$0xff] }
 0x4b4   :  { %v2701_v4 = vadd.f32 %v2685_v32, %v2551_v49  ;;  %3028 = vmax.xlane.f32.xlu1 %v6416_v20  ;;  %v2951_v46 = vmul.f32 0.2, %v2934_v15  ;;  %v2983_v10 = vmul.f32 %v6012_v25, %v2966_v55  ;;  %v6438_v56 = vsel %vm5300_vm8, %v2995_v29, -1e+30 }
 0x4b5   :  { %v2748_v59 = vpop.permute.xlu1 %2747  ;;  %v2997_v2 = vadd.f32 %v2981_v62, %v2847_v3  ;;  %v2699_v35 = vadd.f32 %v2683_v17, %v2549_v27  ;;  %v2684_v19 = vmul.f32 %v5988_v42, %v2667_v24  ;;  %v1904_v21 = vmul.f32 0.2, %v1887_v0  ;;  %v2906_v17 = vpop.permute.xlu0 %2905 }
 0x4b6   :  { %v2784_v26 = vadd.f32 %v5944_v22, %v2748_v59  ;;  %v2851_v60 = vadd.f32 %v2835_v14, %v2701_v4  ;;  %v2204_v43 = vmul.f32 0.2, %v2187_v36  ;;  %v2967_v6 = vmax.f32 %v2934_v15, %v2951_v46 }
 0x4b7   :  { %v2849_v5 = vadd.f32 %v2833_v33, %v2699_v35  ;;  %v2070_v61 = vmax.f32 %v6394_v9, %v2054_v40  ;;  %v2487_v45 = vadd.f32 %v5948_v34, %v7337_v48  ;;  %v6447_v57 = vsel %vm5320_vm10, %v2997_v2, -1e+30 }
 0x4b8   :  { %v2801_v52 = vmul.f32 0.2, %v2784_v26  ;;  %3032 = vmax.xlane.f32.xlu1 %v6438_v56  ;;  %v2700_v32 = vadd.f32 %v2684_v19, %v6336_v31  ;;  %v1920_v12 = vmax.f32 %v1887_v0, %v1904_v21  ;;  %v2220_v15 = vmax.f32 %v2187_v36, %v2204_v43 }
 0x4b9   :  { %v2999_v49 = vadd.f32 %v2983_v10, %v2849_v5  ;;  %v2984_v27 = vmul.f32 %v6012_v25, %v2967_v6  ;;  %v2087_v55 = vmul.f32 %v5909_v51, %v2070_v61  ;;  %v2504_v53 = vmul.f32 0.2, %v2487_v45 }
 0x4ba   :  { %v2817_v16 = vmax.f32 %v2784_v26, %v2801_v52  ;;  %v2306_v30 = vpop.permute.xlu1 %2305  ;;  %v1937_v24 = vmul.f32 %v5922_v11, %v1920_v12  ;;  %v2237_v0 = vmul.f32 %v5938_v50, %v2220_v15  ;;  %v2036_v48 = vadd.f32 %v5871_v39, %v6374_v63  ;;  %v7343_v12 = vld [vmem:[#allocation9_spill] sm:$0xff] }
 0x4bb   :  { %v6457_v14 = vsel %vm5374_vm1, %v2999_v49, -1e+30  ;;  %v2520_v59 = vmax.f32 %v2487_v45, %v2504_v53  ;;  %v1886_v49 = vadd.f32 %v7335_v7, %v7342_v37  ;;  %v2186_v15 = vadd.f32 %v5888_v41, %v7343_v12 }
 0x4bc   :  { %v2834_v47 = vmul.f32 %v6007_v18, %v2817_v16  ;;  %3036 = vmax.xlane.f32.xlu1 %v6447_v57  ;;  %v2103_v36 = vadd.f32 %v2087_v55, %v1937_v24  ;;  %vm3802_vm14 = vmmov 0  }
 0x4bd   :  { %v2537_v2 = vmul.f32 %v5976_v28, %v2520_v59  ;;  %v2203_v63 = vmul.f32 0.2, %v2186_v15 }
 0x4be   :  { %v2310_v62 = vpop.permute.xlu1 %2309  ;;  %v2850_v9 = vadd.f32 %v2834_v47, %v2700_v32  ;;  %v2253_v26 = vadd.f32 %v2237_v0, %v2103_v36  ;;  %v2053_v32 = vmul.f32 0.2, %v2036_v48  ;;  %v1903_v47 = vmul.f32 0.2, %v1886_v49 }
 0x4bf   :  { %v2337_v29 = vadd.f32 %v5898_v58, %v2310_v62 }
 0x4c0   :  { %3040 = vmax.xlane.f32.xlu1 %v6457_v14  ;;  %v3000_v31 = vadd.f32 %v2984_v27, %v2850_v9  ;;  %v7344_v27 = vld [vmem:[#allocation47_spill] sm:$0xff]  ;;  %v2336_v9 = vadd.f32 %v5898_v58, %v2306_v30  ;;  %v2069_v55 = vmax.f32 %v2036_v48, %v2053_v32  ;;  %v2219_v30 = vmax.f32 %v2186_v15, %v2203_v63 }
 0x4c1   :  { %v2354_v4 = vmul.f32 0.2, %v2337_v29  ;;  %v2787_v62 = vadd.f32 %v5944_v22, %v7344_v27 }
 0x4c2   :  { %v6464_v33 = vsel %vm5130_vm0, %v3000_v31, -1e+30  ;;  %v2353_v24 = vmul.f32 0.2, %v2336_v9  ;;  %v2086_v36 = vmul.f32 %v5909_v51, %v2069_v55 }
 0x4c3   :  { %v2370_v3 = vmax.f32 %v2337_v29, %v2354_v4  ;;  %v2902_v40 = vpop.permute.xlu1 %2901  ;;  %3042 = vmax.xlane.f32.xlu0 %v6464_v33  ;;  %v1919_v29 = vmax.f32 %v1886_v49, %v1903_v47  ;;  %v2804_v31 = vmul.f32 0.2, %v2787_v62  ;;  %v7345_v47 = vld [vmem:[#allocation14_spill] sm:$0xff] }
 0x4c4   :  { %v2935_v46 = vadd.f32 %v5926_v54, %v2902_v40  ;;  %v2039_v12 = vadd.f32 %v5871_v39, %v7345_v47 }
 0x4c5   :  { %v2387_v10 = vmul.f32 %v5967_v23, %v2370_v3  ;;  %v1936_v40 = vmul.f32 %v5922_v11, %v1919_v29 }
 0x4c6   :  { %v2952_v38 = vmul.f32 0.2, %v2935_v46 }
 0x4c7   :  { %v2403_v35 = vadd.f32 %v2387_v10, %v2253_v26  ;;  %v2369_v26 = vmax.f32 %v2336_v9, %v2353_v24 }
 0x4c8   :  { %v2968_v19 = vmax.f32 %v2935_v46, %v2952_v38  ;;  %v2456_v52 = vpop.permute.xlu1 %2455  ;;  %v2820_v46 = vmax.f32 %v2787_v62, %v2804_v31  ;;  %v2056_v31 = vmul.f32 0.2, %v2039_v12 }
 0x4c9   :  { %v2553_v21 = vadd.f32 %v2537_v2, %v2403_v35  ;;  %v2486_v53 = vadd.f32 %v5948_v34, %v2456_v52  ;;  %v2936_v35 = vadd.f32 %v5926_v54, %v2906_v17  ;;  %v2386_v37 = vmul.f32 %v5967_v23, %v2369_v26 }
 0x4ca   :  { %v2985_v43 = vmul.f32 %v6012_v25, %v2968_v19  ;;  %v2102_v19 = vadd.f32 %v2086_v36, %v1936_v40  ;;  %v2837_v48 = vmul.f32 %v6007_v18, %v2820_v46  ;;  %v7346_v36 = vld [vmem:[#allocation43_spill] sm:$0xff]  ;;  %v2072_v26 = vmax.f32 %v2039_v12, %v2056_v31 }
 0x4cb   :  { %v2503_v59 = vmul.f32 0.2, %v2486_v53  ;;  %v2953_v15 = vmul.f32 0.2, %v2936_v35 }
 0x4cc   :  { %v3001_v5 = vadd.f32 %v2985_v43, %v2851_v60 }
 0x4cd   :  { %v1868_v6 = vpop.permute.xlu1 %1867  ;;  %v2519_v52 = vmax.f32 %v2486_v53, %v2503_v59  ;;  %v2969_v24 = vmax.f32 %v2936_v35, %v2953_v15  ;;  %v2489_v59 = vadd.f32 %v5948_v34, %v7346_v36 }
 0x4ce   :  { %v6473_v61 = vsel %vm5394_vm9, %v3001_v5, -1e+30  ;;  %v2236_v5 = vmul.f32 %v5938_v50, %v2219_v30  ;;  %v1889_v16 = vadd.f32 %v7335_v7, %v1868_v6 }
 0x4cf   :  { %3044 = vmax.xlane.f32.xlu1 %v6473_v61  ;;  %v2536_v9 = vmul.f32 %v5976_v28, %v2519_v52 }
 0x4d0   :  { %v2252_v62 = vadd.f32 %v2236_v5, %v2102_v19  ;;  %v1906_v6 = vmul.f32 0.2, %v1889_v16  ;;  %v2986_v19 = vmul.f32 %v6012_v25, %v2969_v24 }
 0x4d2   :  { %v2014_v45 = vpop.permute.xlu1 %2013  ;;  %v2402_v29 = vadd.f32 %v2386_v37, %v2252_v62 }
 0x4d3   :  { %v2038_v40 = vadd.f32 %v5871_v39, %v2014_v45  ;;  %v2089_v39 = vmul.f32 %v5909_v51, %v2072_v26  ;;  %v7348_v45 = vld [vmem:[#allocation11_spill] sm:$0xff] }
 0x4d7   :  { %v2606_v60 = vpop.permute.xlu1 %2605 }
 0x4d8   :  { %v2636_v0 = vadd.f32 %v5915_v13, %v2606_v60 }
 0x4da   :  { %v2653_v10 = vmul.f32 0.2, %v2636_v0 }
 0x4db   :  { %v2610_v1 = vpop.permute.xlu1 %2609 }
 0x4dc   :  { %v2637_v4 = vadd.f32 %v5915_v13, %v2610_v1  ;;  %v2669_v49 = vmax.f32 %v2636_v0, %v2653_v10  ;;  %v2552_v0 = vadd.f32 %v2536_v9, %v2402_v29 }
 0x4de   :  { %v2654_v3 = vmul.f32 0.2, %v2637_v4  ;;  %v2686_v63 = vmul.f32 %v5988_v42, %v2669_v49  ;;  %v2188_v49 = vadd.f32 %v5888_v41, %v7348_v45 }
 0x4e0   :  { %v2670_v38 = vmax.f32 %v2637_v4, %v2654_v3  ;;  %v2168_v2 = vpop.permute.xlu1 %2167  ;;  %v1922_v3 = vmax.f32 %v1889_v16, %v1906_v6  ;;  %v2702_v30 = vadd.f32 %v2686_v63, %v2552_v0  ;;  %v2055_v16 = vmul.f32 0.2, %v2038_v40 }
 0x4e1   :  { %v2189_v60 = vadd.f32 %v5888_v41, %v2168_v2  ;;  %v2205_v41 = vmul.f32 0.2, %v2188_v49 }
 0x4e2   :  { %v2687_v43 = vmul.f32 %v5988_v42, %v2670_v38  ;;  %v7347_v38 = vld [vmem:[#allocation85_spill] sm:$0xff]  ;;  %v1939_v5 = vmul.f32 %v5922_v11, %v1922_v3  ;;  %v2071_v6 = vmax.f32 %v2038_v40, %v2055_v16 }
 0x4e3   :  { %v1888_v2 = vadd.f32 %v7335_v7, %v7347_v38 }
 0x4e4   :  { %v2703_v32 = vadd.f32 %v2687_v43, %v2553_v21  ;;  %v2206_v21 = vmul.f32 0.2, %v2189_v60  ;;  %v2506_v43 = vmul.f32 0.2, %v2489_v59  ;;  %v2105_v62 = vadd.f32 %v2089_v39, %v1939_v5 }
 0x4e5   :  { %v2756_v27 = vpop.permute.xlu1 %2755  ;;  %v1905_v7 = vmul.f32 0.2, %v1888_v2 }
 0x4e6   :  { %v2786_v55 = vadd.f32 %v5944_v22, %v2756_v27  ;;  %v2853_v53 = vadd.f32 %v2837_v48, %v2703_v32  ;;  %v2222_v10 = vmax.f32 %v2189_v60, %v2206_v21  ;;  %v2522_v27 = vmax.f32 %v2489_v59, %v2506_v43 }
 0x4e7   :  { %v1921_v31 = vmax.f32 %v1888_v2, %v1905_v7  ;;  %v2221_v59 = vmax.f32 %v2188_v49, %v2205_v41 }
 0x4e8   :  { %v2803_v1 = vmul.f32 0.2, %v2786_v55  ;;  %v2239_v32 = vmul.f32 %v5938_v50, %v2222_v10  ;;  %v2539_v24 = vmul.f32 %v5976_v28, %v2522_v27 }
 0x4ea   :  { %v2819_v4 = vmax.f32 %v2786_v55, %v2803_v1  ;;  %v2314_v17 = vpop.permute.xlu1 %2313  ;;  %v2255_v63 = vadd.f32 %v2239_v32, %v2105_v62 }
 0x4eb   :  { %v2338_v12 = vadd.f32 %v5898_v58, %v2314_v17 }
 0x4ec   :  { %v2836_v46 = vmul.f32 %v6007_v18, %v2819_v4  ;;  %v2088_v4 = vmul.f32 %v5909_v51, %v2071_v6 }
 0x4ed   :  { %v2355_v21 = vmul.f32 0.2, %v2338_v12 }
 0x4ee   :  { %v2318_v35 = vpop.permute.xlu1 %2317  ;;  %v2852_v52 = vadd.f32 %v2836_v46, %v2702_v30  ;;  %v1938_v30 = vmul.f32 %v5922_v11, %v1921_v31  ;;  %v7350_v46 = vld [vmem:[#allocation45_spill] sm:$0xff] }
 0x4ef   :  { %v2339_v48 = vadd.f32 %v5898_v58, %v2318_v35  ;;  %v2788_v26 = vadd.f32 %v5944_v22, %v7350_v46  ;;  %v2371_v10 = vmax.f32 %v2338_v12, %v2355_v21 }
 0x4f0   :  { %v3002_v37 = vadd.f32 %v2986_v19, %v2852_v52  ;;  %v2104_v19 = vadd.f32 %v2088_v4, %v1938_v30  ;;  %v2238_v52 = vmul.f32 %v5938_v50, %v2221_v59 }
 0x4f1   :  { %v2356_v47 = vmul.f32 0.2, %v2339_v48  ;;  %v2805_v5 = vmul.f32 0.2, %v2788_v26 }
 0x4f2   :  { %v6518_v60 = vsel %vm5156_vm2, %v3002_v37, -1e+30  ;;  %v2254_v39 = vadd.f32 %v2238_v52, %v2104_v19 }
 0x4f3   :  { %v2372_v9 = vmax.f32 %v2339_v48, %v2356_v47  ;;  %v2910_v55 = vpop.permute.xlu1 %2909  ;;  %3046 = vmax.xlane.f32.xlu0 %v6518_v60  ;;  %v2918_v48 = vpop.permute.xlu0 %2917  ;;  %v2821_v50 = vmax.f32 %v2788_v26, %v2805_v5 }
 0x4f4   :  { %v2937_v29 = vadd.f32 %v5926_v54, %v2910_v55 }
 0x4f5   :  { %v2389_v1 = vmul.f32 %v5967_v23, %v2372_v9  ;;  %v7352_v9 = vld [vmem:[#allocation48_spill] sm:$0xff]  ;;  %v2838_v6 = vmul.f32 %v6007_v18, %v2821_v50 }
 0x4f6   :  { %v2954_v58 = vmul.f32 0.2, %v2937_v29  ;;  %v7359_v50 = vld [vmem:[#allocation16_spill] sm:$0xff] }
 0x4f7   :  { %v2405_v0 = vadd.f32 %v2389_v1, %v2255_v63  ;;  %v3025_v32 = vpop.xlane.xlu0 %3024 }
 0x4f8   :  { %v2970_v17 = vmax.f32 %v2937_v29, %v2954_v58  ;;  %v2464_v36 = vpop.permute.xlu1 %2463  ;;  %v3055_v55 = vsub.f32 %v7352_v9, %v3025_v32 }
 0x4f9   :  { %v2488_v3 = vadd.f32 %v5948_v34, %v2464_v36  ;;  %v2555_v40 = vadd.f32 %v2539_v24, %v2405_v0  ;;  %v2388_v34 = vmul.f32 %v5967_v23, %v2371_v10  ;;  %v2939_v23 = vadd.f32 %v5926_v54, %v2918_v48 }
 0x4fa   :  { %v2987_v38 = vmul.f32 %v6012_v25, %v2970_v17  ;;  %v3072_v21 = vmul.f32 1.442695, %v3055_v55 }
 0x4fb   :  { %v2505_v2 = vmul.f32 0.2, %v2488_v3  ;;  %v2404_v47 = vadd.f32 %v2388_v34, %v2254_v39  ;;  %v2956_v63 = vmul.f32 0.2, %v2939_v23  ;;  %v7358_v34 = vld [vmem:[#allocation41_spill] sm:$0xff] }
 0x4fc   :  { %v3003_v35 = vadd.f32 %v2987_v38, %v2853_v53  ;;  %3686 = vpow2.f32 %v3072_v21  ;;  %v7353_v38 = vld [vmem:[#allocation53_spill] sm:$0xff]  ;;  %v3027_v19 = vpop.xlane.xlu0 %3026 }
 0x4fd   :  { %v2521_v51 = vmax.f32 %v2488_v3, %v2505_v2  ;;  %v2614_v43 = vpop.permute.xlu1 %2613  ;;  %v2972_v24 = vmax.f32 %v2939_v23, %v2956_v63  ;;  %vm7354_vm12 = vnez %v7353_v38 }
 0x4fe   :  { %v2638_v16 = vadd.f32 %v5915_v13, %v2614_v43  ;;  %v6535_v37 = vsel %vm5407_vm11, %v3003_v35, -1e+30 }
 0x4ff   :  { %3048 = vmax.xlane.f32.xlu1 %v6535_v37  ;;  %v2538_v45 = vmul.f32 %v5976_v28, %v2521_v51  ;;  %v2989_v30 = vmul.f32 %v6012_v25, %v2972_v24 }
 0x500   :  { %v2655_v53 = vmul.f32 0.2, %v2638_v16 }
 0x501   :  { %v2618_v49 = vpop.permute.xlu1 %2617  ;;  %v2554_v15 = vadd.f32 %v2538_v45, %v2404_v47 }
 0x502   :  { %v2671_v7 = vmax.f32 %v2638_v16, %v2655_v53  ;;  %v2639_v12 = vadd.f32 %v5915_v13, %v2618_v49 }
 0x504   :  { %v2688_v27 = vmul.f32 %v5988_v42, %v2671_v7  ;;  %v2656_v62 = vmul.f32 0.2, %v2639_v12 }
 0x506   :  { %v2704_v29 = vadd.f32 %v2688_v27, %v2554_v15  ;;  %v2672_v28 = vmax.f32 %v2639_v12, %v2656_v62  ;;  %v2768_v41 = vpop.permute.xlu1 %2767 }
 0x507   :  { %v2789_v1 = vadd.f32 %v5944_v22, %v2768_v41 }
 0x508   :  { %v2854_v31 = vadd.f32 %v2838_v6, %v2704_v29  ;;  %v2689_v13 = vmul.f32 %v5988_v42, %v2672_v28 }
 0x509   :  { %v2806_v58 = vmul.f32 0.2, %v2789_v1 }
 0x50a   :  { %v2705_v36 = vadd.f32 %v2689_v13, %v2555_v40 }
 0x50b   :  { %v2822_v0 = vmax.f32 %v2789_v1, %v2806_v58  ;;  %v2914_v4 = vpop.permute.xlu1 %2913 }
 0x50c   :  { %v2938_v17 = vadd.f32 %v5926_v54, %v2914_v4  ;;  %v7355_v54 = vld [vmem:[#allocation44_spill] sm:$0xff] }
 0x50d   :  { %v2839_v59 = vmul.f32 %v6007_v18, %v2822_v0  ;;  %vm7356_vm13 = vnez %v7355_v54  ;;  %v6559_v18 = vpop.eup %3686 }
 0x50e   :  { %v2955_v3 = vmul.f32 0.2, %v2938_v17 }
 0x50f   :  { %v2855_v46 = vadd.f32 %v2839_v59, %v2705_v36 }
 0x510   :  { %v2971_v26 = vmax.f32 %v2938_v17, %v2955_v3 }
 0x511   :  { %v3005_v22 = vadd.f32 %v2989_v30, %v2855_v46 }
 0x512   :  { %v2988_v10 = vmul.f32 %v6012_v25, %v2971_v26  ;;  %v7357_v25 = vld [vmem:[#allocation83_spill] sm:$0xff] }
 0x513   :  { %v6552_v42 = vsel %vm7354_vm12, %v3005_v22, -1e+30  ;;  %v3031_v35 = vpop.xlane.xlu0 %3030  ;;  %v3056_v52 = vsub.f32 %v7357_v25, %v3027_v19  ;;  %v3768_v25 = vld [vmem:[%s6699_s1] sm:$0xff] }
 0x514   :  { %3052 = vmax.xlane.f32.xlu1 %v6552_v42  ;;  %v3004_v2 = vadd.f32 %v2988_v10, %v2854_v31  ;;  %v3058_v16 = vsub.f32 %v7358_v34, %v3031_v35 }
 0x515   :  { %v3074_v48 = vmul.f32 1.442695, %v3056_v52  ;;  %v7360_v52 = vmov 0.0  }
 0x516   :  { %v6557_v40 = vsel %vm7356_vm13, %v3004_v2, -1e+30  ;;  %v3078_v49 = vmul.f32 1.442695, %v3058_v16  ;;  %3414 = vmatprep.mubr.msk.bf16.mxu1 %vm3802_vm14, %v7360_v52  ;;  %3434 = vmatprep.mubr.msk.bf16.mxu0 %vm3802_vm14, %v7360_v52 }
 0x517   :  { %3050 = vmax.xlane.f32.xlu0 %v6557_v40  ;;  %v3035_v39 = vpop.xlane.xlu0 %3034 }
 0x518   :  { %3104 = vadd.xlane.f32.xlu1 %v6559_v18  ;;  %v3060_v32 = vsub.f32 %v7359_v50, %v3035_v39  ;;  %v7363_v50 = vld [vmem:[#allocation22_spill] sm:$0xff] }
 0x519   :  { %vm7364_vm0 = vcmp.gt.f32.partialorder %v7363_v50, 0.0 }
 0x51a   :  { %v3082_v23 = vmul.f32 1.442695, %v3060_v32 }
 0x52d   :  { %v3039_v7 = vpop.xlane.xlu0 %3038 }
 0x52e   :  { %v3062_v15 = vsub.f32 %v6360_v44, %v3039_v7 }
 0x530   :  { %v3086_v55 = vmul.f32 1.442695, %v3062_v15 }
 0x53d   :  { %v3023_v51 = vpop.xlane.xlu1 %3022 }
 0x53e   :  { %v3054_v43 = vsub.f32 %v6390_v8, %v3023_v51  ;;  %v3192_v51 = vld [vmem:[%s6704_s6] sm:$0xff] }
 0x540   :  { %v3070_v5 = vmul.f32 1.442695, %v3054_v43  ;;  %v3193_v43 = vld [vmem:[%s6704_s6 + $0x8] sm:$0xff] }
 0x541   :  { %v3029_v11 = vpop.xlane.xlu1 %3028 }
 0x542   :  { %3688 = vpow2.f32 %v3070_v5  ;;  %v3057_v45 = vsub.f32 %v6416_v20, %v3029_v11 }
 0x543   :  { %3690 = vpow2.f32 %v3074_v48 }
 0x544   :  { %v3076_v53 = vmul.f32 1.442695, %v3057_v45  ;;  %v7361_v45 = vld [vmem:[#allocation24_spill] sm:$0xff] }
 0x545   :  { %v3033_v47 = vpop.xlane.xlu1 %3032  ;;  %vm7362_vm15 = vcmp.gt.f32.partialorder %v7361_v45, 0.0 }
 0x546   :  { %3692 = vpow2.f32 %v3076_v53  ;;  %v3059_v12 = vsub.f32 %v6438_v56, %v3033_v47 }
 0x547   :  { %3694 = vpow2.f32 %v3078_v49 }
 0x548   :  { %v3080_v8 = vmul.f32 1.442695, %v3059_v12 }
 0x549   :  { %v3037_v27 = vpop.xlane.xlu1 %3036 }
 0x54a   :  { %3696 = vpow2.f32 %v3080_v8  ;;  %v3061_v62 = vsub.f32 %v6447_v57, %v3037_v27 }
 0x54b   :  { %3698 = vpow2.f32 %v3082_v23 }
 0x54c   :  { %v6571_v20 = vpop.eup %3688  ;;  %v3084_v9 = vmul.f32 1.442695, %v3061_v62  ;;  %v7365_v62 = vld [vmem:[#allocation23_spill] sm:$0xff] }
 0x54d   :  { %v3041_v6 = vpop.xlane.xlu1 %3040  ;;  %3102 = vadd.xlane.f32.xlu0 %v6571_v20  ;;  %v6575_v29 = vpop.eup %3690  ;;  %vm7366_vm2 = vcmp.gt.f32.partialorder %v7365_v62, 0.0 }
 0x54e   :  { %3700 = vpow2.f32 %v3084_v9  ;;  %v3063_v56 = vsub.f32 %v6457_v14, %v3041_v6 }
 0x54f   :  { %3702 = vpow2.f32 %v3086_v55  ;;  %v7367_v55 = vld [vmem:[#allocation21_spill] sm:$0xff] }
 0x550   :  { %v6577_v28 = vpop.eup %3692  ;;  %v3088_v44 = vmul.f32 1.442695, %v3063_v56  ;;  %v3043_v41 = vpop.xlane.xlu0 %3042  ;;  %vm7368_vm5 = vcmp.gt.f32.partialorder %v7367_v55, 0.0 }
 0x551   :  { %v3064_v57 = vsub.f32 %v6464_v33, %v3043_v41  ;;  %3108 = vadd.xlane.f32.xlu1 %v6577_v28  ;;  %3106 = vadd.xlane.f32.xlu0 %v6575_v29  ;;  %v6582_v63 = vpop.eup %3694 }
 0x552   :  { %3704 = vpow2.f32 %v3088_v44 }
 0x553   :  { %v3090_v1 = vmul.f32 1.442695, %v3064_v57 }
 0x554   :  { %v6584_v31 = vpop.eup %3696 }
 0x555   :  { %3706 = vpow2.f32 %v3090_v1  ;;  %3112 = vadd.xlane.f32.xlu1 %v6584_v31  ;;  %3110 = vadd.xlane.f32.xlu0 %v6582_v63  ;;  %v6588_v14 = vpop.eup %3698 }
 0x558   :  { %v6590_v21 = vpop.eup %3700 }
 0x559   :  { %3116 = vadd.xlane.f32.xlu1 %v6590_v21  ;;  %3114 = vadd.xlane.f32.xlu0 %v6588_v14  ;;  %v6594_v33 = vpop.eup %3702 }
 0x55c   :  { %v6596_v13 = vpop.eup %3704  ;;  %v3045_v58 = vpop.xlane.xlu1 %3044 }
 0x55d   :  { %v3065_v24 = vsub.f32 %v6473_v61, %v3045_v58  ;;  %3120 = vadd.xlane.f32.xlu1 %v6596_v13  ;;  %3118 = vadd.xlane.f32.xlu0 %v6594_v33  ;;  %v7369_v58 = vld [vmem:[#allocation26_spill] sm:$0xff] }
 0x55e   :  { %vm7370_vm6 = vcmp.gt.f32.partialorder %v7369_v58, 0.0 }
 0x55f   :  { %v6601_v0 = vpop.eup %3706  ;;  %v3092_v4 = vmul.f32 1.442695, %v3065_v24 }
 0x561   :  { %3708 = vpow2.f32 %v3092_v4  ;;  %3122 = vadd.xlane.f32.xlu0 %v6601_v0  ;;  %v7371_v4 = vld [vmem:[#allocation25_spill] sm:$0xff] }
 0x562   :  { %vm7372_vm7 = vcmp.gt.f32.partialorder %v7371_v4, 0.0 }
 0x56b   :  { %v6604_v17 = vpop.eup %3708 }
 0x56c   :  { %3124 = vadd.xlane.f32.xlu1 %v6604_v17 }
 0x580   :  { %v3047_v36 = vpop.xlane.xlu0 %3046 }
 0x581   :  { %v3066_v59 = vsub.f32 %v6518_v60, %v3047_v36 }
 0x583   :  { %v3094_v3 = vmul.f32 1.442695, %v3066_v59 }
 0x585   :  { %3710 = vpow2.f32 %v3094_v3 }
 0x58c   :  { %v3049_v61 = vpop.xlane.xlu1 %3048 }
 0x58d   :  { %v3067_v30 = vsub.f32 %v6535_v37, %v3049_v61 }
 0x58f   :  { %v6609_v46 = vpop.eup %3710  ;;  %v3096_v26 = vmul.f32 1.442695, %v3067_v30 }
 0x590   :  { %3126 = vadd.xlane.f32.xlu0 %v6609_v46 }
 0x591   :  { %3712 = vpow2.f32 %v3096_v26  ;;  %v7373_v26 = vld [vmem:[#allocation28_spill] sm:$0xff] }
 0x592   :  { %vm7374_vm8 = vcmp.gt.f32.partialorder %v7373_v26, 0.0 }
 0x59b   :  { %v6612_v22 = vpop.eup %3712 }
 0x59c   :  { %3128 = vadd.xlane.f32.xlu1 %v6612_v22 }
 0x5a1   :  { %v3053_v10 = vpop.xlane.xlu1 %3052 }
 0x5a2   :  { %v3069_v38 = vsub.f32 %v6552_v42, %v3053_v10  ;;  %v3190_v42 = vpack.c.bf16 %v3768_v25, %v3768_v25 }
 0x5a4   :  { %v3100_v2 = vmul.f32 1.442695, %v3069_v38  ;;  %v3051_v60 = vpop.xlane.xlu0 %3050  ;;  %3415 = vmatmul.mubr.bf16.vlgmr.msra.gmra.mrb[0].mxu1 %v3190_v42  ;;  %v7375_v38 = vld [vmem:[#allocation27_spill] sm:$0xff]  ;;  %v7377_v42 = vld [vmem:[#allocation30_spill] sm:$0xff] }
 0x5a5   :  { %v3068_v54 = vsub.f32 %v6557_v40, %v3051_v60  ;;  %v3105_v40 = vpop.xlane.xlu1 %3104  ;;  %vm7376_vm10 = vcmp.gt.f32.partialorder %v7375_v38, 0.0  ;;  %vm7378_vm1 = vcmp.gt.f32.partialorder %v7377_v42, 0.0 }
 0x5a6   :  { %3714 = vpow2.f32 %v3100_v2 }
 0x5a7   :  { %v3098_v19 = vmul.f32 1.442695, %v3068_v54 }
 0x5a9   :  { %3716 = vpow2.f32 %v3098_v19 }
 0x5aa   :  { %3718 = vrcp.f32 %v3105_v40 }
 0x5b0   :  { %v6617_v37 = vpop.eup %3714 }
 0x5b1   :  { %3132 = vadd.xlane.f32.xlu1 %v6617_v37 }
 0x5b3   :  { %v6620_v35 = vpop.eup %3716 }
 0x5b4   :  { %3130 = vadd.xlane.f32.xlu0 %v6620_v35  ;;  %v3719_v16 = vpop.eup %3718 }
 0x5b5   :  { %v3151_v53 = vsel %vm7362_vm15, %v3719_v16, 0.0  ;;  %v7381_v16 = vld [vmem:[#allocation31_spill] sm:$0xff] }
 0x5b6   :  { %v3167_v7 = vmul.f32 %v6559_v18, %v3151_v53  ;;  %vm7382_vm11 = vcmp.gt.f32.partialorder %v7381_v16, 0.0 }
 0x5c2   :  { %3201 = vperm.xlu1 %3621, %v3193_v43  }
 0x5ca   :  { %3196 = vperm.xlu0 %3620, %v3192_v51   ;;  %v7379_v51 = vld [vmem:[#allocation29_spill] sm:$0xff] }
 0x5cb   :  { %vm7380_vm9 = vcmp.gt.f32.partialorder %v7379_v51, 0.0 }
 0x5da   :  { %v3103_v5 = vpop.xlane.xlu0 %3102 }
 0x5db   :  { %3720 = vrcp.f32 %v3103_v5 }
 0x5de   :  { %v3109_v48 = vpop.xlane.xlu1 %3108  ;;  %v3107_v34 = vpop.xlane.xlu0 %3106 }
 0x5df   :  { %3722 = vrcp.f32 %v3109_v48 }
 0x5e0   :  { %3724 = vrcp.f32 %v3107_v34 }
 0x5e2   :  { %v3113_v11 = vpop.xlane.xlu1 %3112  ;;  %v3111_v39 = vpop.xlane.xlu0 %3110 }
 0x5e3   :  { %3726 = vrcp.f32 %v3113_v11 }
 0x5e4   :  { %3728 = vrcp.f32 %v3111_v39  ;;  %v7383_v39 = vld [vmem:[#allocation32_spill] sm:$0xff] }
 0x5e5   :  { %v3721_v49 = vpop.eup %3720  ;;  %vm7384_vm12 = vcmp.gt.f32.partialorder %v7383_v39, 0.0 }
 0x5e6   :  { %v3150_v32 = vsel %vm7364_vm0, %v3721_v49, 0.0  ;;  %v3117_v8 = vpop.xlane.xlu1 %3116  ;;  %v3115_v27 = vpop.xlane.xlu0 %3114 }
 0x5e7   :  { %v3166_v47 = vmul.f32 %v6571_v20, %v3150_v32  ;;  %3730 = vrcp.f32 %v3117_v8  ;;  %v7387_v8 = vld [vmem:[#allocation33_spill] sm:$0xff] }
 0x5e8   :  { %3732 = vrcp.f32 %v3115_v27  ;;  %vm7388_vm14 = vcmp.gt.f32.partialorder %v7387_v8, 0.0 }
 0x5e9   :  { %v3723_v12 = vpop.eup %3722  ;;  %v3182_v23 = vpack.c.bf16 %v3167_v7, %v3166_v47  ;;  %v7385_v47 = vld [vmem:[#allocation34_spill] sm:$0xff] }
 0x5ea   :  { %v3725_v15 = vpop.eup %3724  ;;  %v3153_v9 = vsel %vm7366_vm2, %v3723_v12, 0.0  ;;  %v3121_v41 = vpop.xlane.xlu1 %3120  ;;  %vm7386_vm13 = vcmp.gt.f32.partialorder %v7385_v47, 0.0 }
 0x5eb   :  { %3419 = vmatpush3.bf16.xpose.msra.mxu0 %v3182_v23  ;;  %v3152_v6 = vsel %vm7368_vm5, %v3725_v15, 0.0  ;;  %v3169_v18 = vmul.f32 %v6577_v28, %v3153_v9  ;;  %v3119_v1 = vpop.xlane.xlu0 %3118  ;;  %3734 = vrcp.f32 %v3121_v41 }
 0x5ec   :  { %3420 = vmatprep.subr.bf16.mxu0 %v7360_v52  ;;  %v3168_v20 = vmul.f32 %v6575_v29, %v3152_v6  ;;  %3736 = vrcp.f32 %v3119_v1 }
 0x5ed   :  { %v3727_v56 = vpop.eup %3726 }
 0x5ee   :  { %v3729_v44 = vpop.eup %3728  ;;  %v3183_v57 = vpack.c.bf16 %v3169_v18, %v3168_v20  ;;  %v3155_v36 = vsel %vm7372_vm7, %v3727_v56, 0.0 }
 0x5ef   :  { %v3154_v24 = vsel %vm7370_vm6, %v3729_v44, 0.0  ;;  %v3171_v28 = vmul.f32 %v6584_v31, %v3155_v36  ;;  %v3123_v60 = vpop.xlane.xlu0 %3122 }
 0x5f0   :  { %v3170_v29 = vmul.f32 %v6582_v63, %v3154_v24 }
 0x5f1   :  { %v3731_v59 = vpop.eup %3730 }
 0x5f2   :  { %v3733_v3 = vpop.eup %3732  ;;  %v3184_v61 = vpack.c.bf16 %v3171_v28, %v3170_v29  ;;  %v3157_v2 = vsel %vm7376_vm10, %v3731_v59, 0.0 }
 0x5f3   :  { %3421 = vmatpush3.bf16.xpose.msra.mxu0 %v3183_v57  ;;  %v3156_v10 = vsel %vm7374_vm8, %v3733_v3, 0.0  ;;  %v3173_v63 = vmul.f32 %v6590_v21, %v3157_v2 }
 0x5f4   :  { %3422 = vmatprep.subr.bf16.mxu0 %v7360_v52  ;;  %v3172_v54 = vmul.f32 %v6588_v14, %v3156_v10 }
 0x5f5   :  { %v3735_v31 = vpop.eup %3734 }
 0x5f6   :  { %v3737_v19 = vpop.eup %3736  ;;  %v3185_v25 = vpack.c.bf16 %v3173_v63, %v3172_v54  ;;  %v3159_v43 = vsel %vm7380_vm9, %v3735_v31, 0.0 }
 0x5f7   :  { %v3158_v40 = vsel %vm7378_vm1, %v3737_v19, 0.0  ;;  %v3175_v48 = vmul.f32 %v6596_v13, %v3159_v43 }
 0x5f8   :  { %v3174_v5 = vmul.f32 %v6594_v33, %v3158_v40 }
 0x5f9   :  { %v3125_v30 = vpop.xlane.xlu1 %3124 }
 0x5fa   :  { %3738 = vrcp.f32 %v3125_v30  ;;  %v3186_v21 = vpack.c.bf16 %v3175_v48, %v3174_v5 }
 0x5fb   :  { %3423 = vmatpush3.bf16.xpose.msra.mxu0 %v3184_v61  ;;  %3740 = vrcp.f32 %v3123_v60 }
 0x5fc   :  { %3424 = vmatprep.subr.bf16.mxu0 %v7360_v52 }
 0x603   :  { %3425 = vmatpush3.bf16.xpose.msra.mxu0 %v3185_v25 }
 0x604   :  { %3426 = vmatprep.subr.bf16.mxu0 %v7360_v52  ;;  %v3739_v14 = vpop.eup %3738 }
 0x605   :  { %v3741_v34 = vpop.eup %3740  ;;  %v3161_v11 = vsel %vm7382_vm11, %v3739_v14, 0.0 }
 0x606   :  { %v3160_v45 = vsel %vm7384_vm12, %v3741_v34, 0.0  ;;  %v3177_v53 = vmul.f32 %v6604_v17, %v3161_v11 }
 0x607   :  { %v3176_v49 = vmul.f32 %v6601_v0, %v3160_v45 }
 0x609   :  { %v3187_v50 = vpack.c.bf16 %v3177_v53, %v3176_v49 }
 0x60b   :  { %3427 = vmatpush3.bf16.xpose.msra.mxu0 %v3186_v21 }
 0x60c   :  { %3428 = vmatprep.subr.bf16.mxu0 %v7360_v52 }
 0x613   :  { %3429 = vmatpush3.bf16.xpose.msra.mxu0 %v3187_v50 }
 0x614   :  { %3430 = vmatprep.subr.bf16.mxu0 %v7360_v52 }
 0x61d   :  { %v3127_v33 = vpop.xlane.xlu0 %3126 }
 0x61e   :  { %3742 = vrcp.f32 %v3127_v33 }
 0x628   :  { %v3743_v32 = vpop.eup %3742 }
 0x629   :  { %v3129_v13 = vpop.xlane.xlu1 %3128  ;;  %v3162_v7 = vsel %vm7386_vm13, %v3743_v32, 0.0 }
 0x62a   :  { %3744 = vrcp.f32 %v3129_v13  ;;  %v3178_v17 = vmul.f32 %v6609_v46, %v3162_v7 }
 0x634   :  { %v3745_v12 = vpop.eup %3744 }
 0x635   :  { %v3163_v23 = vsel %vm7388_vm14, %v3745_v12, 0.0 }
 0x636   :  { %v3179_v0 = vmul.f32 %v6612_v22, %v3163_v23 }
 0x638   :  { %v3188_v15 = vpack.c.bf16 %v3179_v0, %v3178_v17 }
 0x63a   :  { %3431 = vmatpush3.bf16.xpose.msra.mxu0 %v3188_v15 }
 0x63b   :  { %3432 = vmatprep.subr.bf16.mxu0 %v7360_v52  ;;  %v3769_v52 = vld [vmem:[%s6699_s1 + $0x8] sm:$0xff] }
 0x63c   :  { %v3191_v41 = vpack.c.bf16 %v3769_v52, %v3769_v52 }
 0x63e   :  { %v3133_v27 = vpop.xlane.xlu1 %3132 }
 0x63f   :  { %3746 = vrcp.f32 %v3133_v27 }
 0x641   :  { %v3131_v62 = vpop.xlane.xlu0 %3130 }
 0x642   :  { %3748 = vrcp.f32 %v3131_v62  ;;  %v3202_v3 = vpop.permute.xlu1 %3201 }
 0x649   :  { %v3747_v9 = vpop.eup %3746  ;;  %v3197_v57 = vpop.permute.xlu0 %3196 }
 0x64a   :  { %v3165_v6 = vsel %vm357_vm4, %v3747_v9, 0.0 }
 0x64b   :  { %v3181_v22 = vmul.f32 %v6617_v37, %v3165_v6 }
 0x64c   :  { %v3749_v20 = vpop.eup %3748 }
 0x64d   :  { %v3164_v56 = vsel %vm356_vm3, %v3749_v20, 0.0 }
 0x64e   :  { %v3180_v46 = vmul.f32 %v6620_v35, %v3164_v56 }
 0x650   :  { %v3189_v44 = vpack.c.bf16 %v3181_v22, %v3180_v46 }
 0x652   :  { %3433 = vmatpush3.bf16.xpose.msra.mxu0 %v3189_v44 }
 0x659   :  { %3435 = vmatmul.mubr.bf16.vlgmr.msra.gmra.mrb[16].mxu0 %v3191_v41 }
 0x677   :  { %v3238_v1 = vpop.f32.mrb[0].mxu1 }
 0x678   :  { %v3239_v58 = vadd.f32 %v3238_v1, %v3197_v57  ;;  %v3416_v24 = vpop.f32.mrb[1].mxu1 }
 0x679   :  { %v3241_v4 = vpop.f32.mrb[2].mxu1 }
 0x67a   :  { %v3286_v36 = vmin.f32 %v3239_v58, 0.0  ;;  %v3417_v29 = vpop.f32.mrb[3].mxu1  ;;  %vm3284_vm4 = vcmp.gt.f32.partialorder %v3239_v58, 0.0 }
 0x67c   :  { %v3288_v28 = vmul.f32 1.442695, %v3286_v36 }
 0x67e   :  { %3750 = vpow2.f32 %v3288_v28 }
 0x688   :  { %v3751_v35 = vpop.eup %3750 }
 0x689   :  { %v3335_v37 = vadd.f32 -1.0, %v3751_v35 }
 0x68b   :  { %v3294_v59 = vsel %vm3284_vm4, %v3239_v58, %v3335_v37 }
 0x68c   :  { %3296 = vst [vmem:[%s6705_s7] sm:$0xff] %v3294_v59 }
 0x72c   :  { %v3278_v61 = vpop.f32.mrb[16].mxu0 }
 0x72d   :  { %v3279_v30 = vadd.f32 %v3278_v61, %v3202_v3  ;;  %v3436_v26 = vpop.f32.mrb[17].mxu0 }
 0x72e   :  { %v3281_v10 = vpop.f32.mrb[18].mxu0 }
 0x72f   :  { %v3287_v38 = vmin.f32 %v3279_v30, 0.0  ;;  %v3437_v2 = vpop.f32.mrb[19].mxu0  ;;  %vm3285_vm3 = vcmp.gt.f32.partialorder %v3279_v30, 0.0 }
 0x731   :  { %v3290_v60 = vmul.f32 1.442695, %v3287_v38 }
 0x733   :  { %3752 = vpow2.f32 %v3290_v60 }
 0x73d   :  { %v3753_v54 = vpop.eup %3752 }
 0x73e   :  { %v3336_v63 = vadd.f32 -1.0, %v3753_v54 }
 0x740   :  { %v3295_v31 = vsel %vm3285_vm3, %v3279_v30, %v3336_v63 }
 0x741   :  { %3297 = vst [vmem:[%s6705_s7 + $0x8] sm:$0xff] %v3295_v31 }
 0x742   :  { %3302 = vsyncpa [#allocation3], 1 }

</bundles_post_ra>
